<compile_context>
chip_gen: v7x
topology: tpu7x:2x2x1
jax: 0.10.0
libtpu: 0.0.40
codegen_flags: <defaults>
</compile_context>

<pallas_src>
import jax
import jax.numpy as jnp
from jax import lax
from jax.experimental import pallas as pl
from jax.experimental.pallas import tpu as pltpu

# ---------------------------------------------------------------------------
# Model hyper-parameters (static, small shapes for the demo run)
# ---------------------------------------------------------------------------
BATCH = 2
SEQ_LEN = 16
HIDDEN = 32            # hidden_size
ITEM_NUM = 64          # item_num
KERNEL_SIZE = 3        # model_params['kernel_size']
DILATED_CH = 32        # model_params['dilated_channels']
DILATIONS = (1, 2)     # model_params['dilations']
NUM_FP_ITERS = 8       # fixed-point iterations replacing the DEQ root solver
LN_EPS = 1e-5
# MXU operand dtype (accumulation is always f32).  Set to jnp.float32 if
# numerical parity with an f32 reference matters (bf16 error compounds over
# the 8 fixed-point iterations).
MM_DTYPE = jnp.bfloat16

# ---------------------------------------------------------------------------
# Derived slab-packing constants (shared by wrapper and kernel)
# ---------------------------------------------------------------------------
M_ROWS = BATCH * SEQ_LEN                       # matmul row axis (b*L + l)
N_SHIFT = KERNEL_SIZE - 1                      # number of non-zero causal shifts
S_BLOCK_ROWS = N_SHIFT * M_ROWS                # rows of one dilation's shift slab
W_TAP_BASE = len(DILATIONS) * S_BLOCK_ROWS     # first conv-tap row
N_TAPS = KERNEL_SIZE * (1 + 2 * len(DILATIONS))  # inject + 2 convs per block
WF_OFF = W_TAP_BASE + N_TAPS * HIDDEN          # fconv weight row offset
SLAB_ROWS = WF_OFF + HIDDEN                    # total weight-slab rows
SLAB_LANES = 128                               # lane-dense slab width
PARAM_LANES = 128
OUT_LANES = 128                                # lane-dense output width
BF_ROW = 1 + 6 * len(DILATIONS)                # fconv bias row in the param slab

assert HIDDEN == DILATED_CH, "weight-slab packing assumes equal channel widths"
assert DILATIONS[0] == 1, "inject conv reuses the dilation-1 shift matrices"
assert max(ITEM_NUM, M_ROWS, HIDDEN, DILATED_CH) <= SLAB_LANES


# ---------------------------------------------------------------------------
# Fused kernel: inject conv + fixed-point loop + final 1x1 conv
# ---------------------------------------------------------------------------
def _fused_forward_kernel(z_ref, w_ref, p_ref, out_ref):
    x0 = z_ref[...]                                            # (M, H) f32

    # Both dilations' causal-shift matrices, loaded once and kept live.
    big_s_tbl = [w_ref[d * S_BLOCK_ROWS:(d + 1) * S_BLOCK_ROWS, :M_ROWS]
                 for d in range(len(DILATIONS))]               # ((K-1)*M, M) bf16, 0/1

    def prow(row, width):                                      # (1, width) param row
        return p_ref[row:row + 1, :width]

    def conv(x_f32, big_s, tap0, bias_row, cout):
        """Causal dilated conv = 1 shift matmul + K per-tap matmuls (f32 acc).

        (big_s @ x)[j*M + t] == x[t - (K-1-j)*dil] within each batch's L-row
        block (zero where the causal left pad would be read), so no padded
        buffers, per-batch loops, lane concats or sublane relayouts are needed.
        """
        x = x_f32.astype(MM_DTYPE)                             # one cast per conv input
        shifted = jnp.dot(big_s, x, preferred_element_type=jnp.float32)
        shifted = shifted.astype(MM_DTYPE)                     # exact: big_s is 0/1
        y = prow(bias_row, cout)                               # conv bias (broadcast)
        for j in range(KERNEL_SIZE):
            tap = x if j == N_SHIFT else shifted[j * M_ROWS:(j + 1) * M_ROWS, :]
            r0 = W_TAP_BASE + (tap0 + j) * HIDDEN
            w = w_ref[r0:r0 + HIDDEN, :cout]                   # static aligned slice
            y = y + jnp.dot(tap, w, preferred_element_type=jnp.float32)
        return y                                               # (M, cout) f32

    def ln_relu(x, g_row, be_row):
        width = x.shape[-1]
        inv_n = 1.0 / width
        mean = jnp.sum(x, axis=-1, keepdims=True) * inv_n      # two independent
        mean_sq = jnp.sum(x * x, axis=-1, keepdims=True) * inv_n   # XLU reductions
        var = mean_sq - mean * mean
        y = (x - mean) * lax.rsqrt(var + LN_EPS)
        y = y * prow(g_row, width) + prow(be_row, width)
        return jnp.maximum(y, 0.0)

    # Inject conv (dilation 1) on the embeddings; stays live across the loop.
    us = conv(x0, big_s_tbl[0], 0, 0, DILATED_CH)              # (M, C) f32

    # TODO(synk): DEQCpResidualBlockAdjacentBlock / CpNltNetDEQModule sources
    # are unavailable; residual-block structure and the Broyden root solve are
    # approximated (see module docstring).
    def fp_iter(z):
        for b_idx in range(len(DILATIONS)):
            tap0 = KERNEL_SIZE * (1 + 2 * b_idx)
            brow = 1 + 6 * b_idx
            h = conv(z, big_s_tbl[b_idx], tap0, brow, DILATED_CH)
            if b_idx == 0:
                h = h + us
            h = ln_relu(h, brow + 1, brow + 2)
            h2 = conv(h, big_s_tbl[b_idx], tap0 + KERNEL_SIZE, brow + 3, HIDDEN)
            h2 = ln_relu(h2, brow + 4, brow + 5)
            z = z + h2
        return z

    # Fully unrolled fixed-point loop: straight-line code gives the scheduler
    # cross-iteration visibility (same effect as fori_loop(..., unroll=True)).
    z = x0
    for _ in range(NUM_FP_ITERS):
        z = fp_iter(z)

    # Final 1x1 conv (hidden -> item_num).  The weight/bias are zero-padded to
    # 128 lanes so this is one lane-dense, unmasked full-slab store.
    wf = w_ref[WF_OFF:WF_OFF + HIDDEN, :]
    logits = jnp.dot(z.astype(MM_DTYPE), wf,
                     preferred_element_type=jnp.float32) + prow(BF_ROW, OUT_LANES)
    out_ref[...] = logits


# ---------------------------------------------------------------------------
# Parameter construction (deterministic, in-script)
# ---------------------------------------------------------------------------
def init_params(key):
    keys = jax.random.split(key, 16)
    kidx = iter(range(16))
    scale = 0.05

    params = {
        # nn.Embedding(item_num + 1, hidden), init normal(0, 0.01)
        "emb": 0.01 * jax.random.normal(keys[next(kidx)], (ITEM_NUM + 1, HIDDEN), jnp.float32),
        # inject_conv: Conv2d(H, dilated_channels, (1, K)) stored as (K, Cin, Cout)
        "W_inj": scale * jax.random.normal(keys[next(kidx)], (KERNEL_SIZE, HIDDEN, DILATED_CH), jnp.float32),
        "b_inj": jnp.zeros((DILATED_CH,), jnp.float32),
        # fconv: Conv2d(H, item_num, 1) -> (1, H, item_num)
        "Wf": scale * jax.random.normal(keys[next(kidx)], (1, HIDDEN, ITEM_NUM), jnp.float32),
        "bf": jnp.zeros((ITEM_NUM,), jnp.float32),
        "blocks": [],
    }
    for _ in DILATIONS:
        blk = {
            "W1": scale * jax.random.normal(keys[next(kidx)], (KERNEL_SIZE, HIDDEN, DILATED_CH), jnp.float32),
            "b1": jnp.zeros((DILATED_CH,), jnp.float32),
            "g1": jnp.ones((DILATED_CH,), jnp.float32),
            "be1": jnp.zeros((DILATED_CH,), jnp.float32),
            "W2": scale * jax.random.normal(keys[next(kidx)], (KERNEL_SIZE, DILATED_CH, HIDDEN), jnp.float32),
            "b2": jnp.zeros((HIDDEN,), jnp.float32),
            "g2": jnp.ones((HIDDEN,), jnp.float32),
            "be2": jnp.zeros((HIDDEN,), jnp.float32),
        }
        params["blocks"].append(blk)
    return params


# ---------------------------------------------------------------------------
# Slab packing (wrapper side; all concats/pads run once in XLA, outside kernel)
# ---------------------------------------------------------------------------
def _causal_shift_matrix(shift):
    """(M, M) 0/1 matrix S with (S @ x)[t] = x[t - shift] within each batch's
    L-row block, and 0 for the first `shift` positions (causal left pad)."""
    i = jnp.arange(M_ROWS)[:, None]
    k = jnp.arange(M_ROWS)[None, :]
    keep = (i - k == shift) & ((i % SEQ_LEN) >= shift)
    return keep.astype(jnp.float32)


def _pad_lanes(a):
    return jnp.pad(a, ((0, 0), (0, SLAB_LANES - a.shape[1])))


def _build_weight_slab(params):
    """bf16 slab: [shift matrices per dilation | inject taps | per-block W1/W2
    taps | fconv], every row block 16-sublane aligned.

    TODO(synk): real PyTorch Conv2d weights (Cout, Cin, 1, K) must be permuted
    to (K, Cin, Cout) before packing (tap j pairs with offset t-(K-1-j)*dil).
    """
    pieces = []
    for d in DILATIONS:
        pieces += [_pad_lanes(_causal_shift_matrix((KERNEL_SIZE - 1 - j) * d))
                   for j in range(N_SHIFT)]

    def taps(w):                                   # (K, Cin, Cout) -> K row blocks
        return [_pad_lanes(w[j]) for j in range(KERNEL_SIZE)]

    pieces += taps(params["W_inj"])
    for blk in params["blocks"]:
        pieces += taps(blk["W1"]) + taps(blk["W2"])
    pieces.append(_pad_lanes(params["Wf"][0]))     # (H, ITEM_NUM) -> (H, 128)

    slab = jnp.concatenate(pieces, axis=0).astype(MM_DTYPE)
    assert slab.shape == (SLAB_ROWS, SLAB_LANES), slab.shape
    return slab


def _build_param_slab(params):
    """f32 (rows, 128) slab: b_inj | per block (b1,g1,be1,b2,g2,be2) | bf."""
    def row(v):
        return jnp.pad(v, (0, PARAM_LANES - v.shape[0]))[None, :]

    rows = [row(params["b_inj"])]
    for blk in params["blocks"]:
        rows += [row(blk[n]) for n in ("b1", "g1", "be1", "b2", "g2", "be2")]
    rows.append(row(params["bf"]))
    slab = jnp.concatenate(rows, axis=0)
    pad = (-slab.shape[0]) % 8
    if pad:
        slab = jnp.pad(slab, ((0, pad), (0, 0)))
    return slab


# ---------------------------------------------------------------------------
# Forward pass (single grid-less pallas_call; everything resident in VMEM)
# ---------------------------------------------------------------------------
def forward(params, inputs, inputs_lengths, train_step):
    del inputs_lengths, train_step   # unused by the reference forward semantics
    # self.func_copy.copy(self.func) is a parameter copy -> functional no-op.
    assert inputs.shape == (BATCH, SEQ_LEN), inputs.shape

    # item_embeddings(inputs).permute(0,2,1) -> channels-last, batch folded
    # into the matmul row axis (rows = b*L + l).
    z = jnp.take(params["emb"], inputs, axis=0).reshape(M_ROWS, HIDDEN)

    w_slab = _build_weight_slab(params)   # (640, 128) bf16 -- one DMA
    p_slab = _build_param_slab(params)    # (16, 128)  f32  -- one DMA

    out = pl.pallas_call(
        _fused_forward_kernel,
        out_shape=jax.ShapeDtypeStruct((M_ROWS, OUT_LANES), jnp.float32),
        compiler_params=pltpu.CompilerParams(
            # Working set is ~0.2 MiB; the explicit limit documents the
            # all-resident-in-VMEM assumption across generations
            # (v5e/v6e: 128 MiB physical, v7x: 64 MiB).
            vmem_limit_bytes=4 * 1024 * 1024,
        ),
    )(z, w_slab, p_slab)

    # Drop the zero-padded lanes and restore (B, L, item_num).
    return out[:, :ITEM_NUM].reshape(BATCH, SEQ_LEN, ITEM_NUM)


forward_jit = jax.jit(forward)


# ---------------------------------------------------------------------------
# Demo run
# ---------------------------------------------------------------------------
if __name__ == "__main__":
    key = jax.random.PRNGKey(0)
    k_params, k_inputs = jax.random.split(key)

    params = init_params(k_params)
    inputs = jax.random.randint(k_inputs, (BATCH, SEQ_LEN), 0, ITEM_NUM + 1, dtype=jnp.int32)
    inputs_lengths = jnp.full((BATCH,), SEQ_LEN, dtype=jnp.int32)

    out = forward_jit(params, inputs, inputs_lengths, 0)
    out = jax.block_until_ready(out)

    assert out.shape == (BATCH, SEQ_LEN, ITEM_NUM), out.shape
    assert out.dtype == jnp.float32
    assert bool(jnp.all(jnp.isfinite(out)))
    print("KERNEL_OK")
</pallas_src>

<mosaic_0001>
module attributes {stable_mosaic.version = 11 : i64} {
  func.func @_fused_forward_kernel(%arg0: memref<32x32xf32, #tpu.memory_space<vmem>>, %arg1: memref<640x128xbf16, #tpu.memory_space<vmem>>, %arg2: memref<16x128xf32, #tpu.memory_space<vmem>>, %arg3: memref<32x128xf32, #tpu.memory_space<vmem>>) attributes {dimension_semantics = [], scalar_prefetch = 0 : i64, scratch_operands = 0 : i64, tpu.core_type = #tpu.core_type<tc>} {
    %c0 = arith.constant 0 : index
    %c0_0 = arith.constant 0 : index
    %0 = vector.load %arg0[%c0, %c0_0] : memref<32x32xf32, #tpu.memory_space<vmem>>, vector<32x32xf32>
    %c0_1 = arith.constant 0 : index
    %c0_2 = arith.constant 0 : index
    %1 = vector.load %arg1[%c0_1, %c0_2] : memref<640x128xbf16, #tpu.memory_space<vmem>>, vector<64x32xbf16>
    %c64 = arith.constant 64 : index
    %c0_3 = arith.constant 0 : index
    %2 = vector.load %arg1[%c64, %c0_3] : memref<640x128xbf16, #tpu.memory_space<vmem>>, vector<64x32xbf16>
    %3 = arith.truncf %0 : vector<32x32xf32> to vector<32x32xbf16>
    %cst = arith.constant dense<0.000000e+00> : vector<64x32xf32>
    %4 = tpu.matmul %1, %3, %cst {dimension_numbers = #tpu.dot_dimension_numbers<[1], [0], [0], [1], [0, 0, 1, 1], [], []>} : vector<64x32xbf16>, vector<32x32xbf16>, vector<64x32xf32> -> vector<64x32xf32>
    %5 = arith.truncf %4 : vector<64x32xf32> to vector<64x32xbf16>
    %c0_4 = arith.constant 0 : index
    %c0_5 = arith.constant 0 : index
    %6 = vector.load %arg2[%c0_4, %c0_5] : memref<16x128xf32, #tpu.memory_space<vmem>>, vector<1x32xf32>
    %7 = vector.extract_strided_slice %5 {offsets = [0, 0], sizes = [32, 32], strides = [1, 1]} : vector<64x32xbf16> to vector<32x32xbf16>
    %c128 = arith.constant 128 : index
    %c0_6 = arith.constant 0 : index
    %8 = vector.load %arg1[%c128, %c0_6] : memref<640x128xbf16, #tpu.memory_space<vmem>>, vector<32x32xbf16>
    %cst_7 = arith.constant dense<0.000000e+00> : vector<32x32xf32>
    %9 = tpu.matmul %7, %8, %cst_7 {dimension_numbers = #tpu.dot_dimension_numbers<[1], [0], [0], [1], [0, 0, 1, 1], [], []>} : vector<32x32xbf16>, vector<32x32xbf16>, vector<32x32xf32> -> vector<32x32xf32>
    %10 = vector.broadcast %6 : vector<1x32xf32> to vector<32x32xf32>
    %11 = arith.addf %10, %9 : vector<32x32xf32>
    %12 = vector.extract_strided_slice %5 {offsets = [32, 0], sizes = [32, 32], strides = [1, 1]} : vector<64x32xbf16> to vector<32x32xbf16>
    %c160 = arith.constant 160 : index
    %c0_8 = arith.constant 0 : index
    %13 = vector.load %arg1[%c160, %c0_8] : memref<640x128xbf16, #tpu.memory_space<vmem>>, vector<32x32xbf16>
    %cst_9 = arith.constant dense<0.000000e+00> : vector<32x32xf32>
    %14 = tpu.matmul %12, %13, %cst_9 {dimension_numbers = #tpu.dot_dimension_numbers<[1], [0], [0], [1], [0, 0, 1, 1], [], []>} : vector<32x32xbf16>, vector<32x32xbf16>, vector<32x32xf32> -> vector<32x32xf32>
    %15 = arith.addf %11, %14 : vector<32x32xf32>
    %c192 = arith.constant 192 : index
    %c0_10 = arith.constant 0 : index
    %16 = vector.load %arg1[%c192, %c0_10] : memref<640x128xbf16, #tpu.memory_space<vmem>>, vector<32x32xbf16>
    %cst_11 = arith.constant dense<0.000000e+00> : vector<32x32xf32>
    %17 = tpu.matmul %3, %16, %cst_11 {dimension_numbers = #tpu.dot_dimension_numbers<[1], [0], [0], [1], [0, 0, 1, 1], [], []>} : vector<32x32xbf16>, vector<32x32xbf16>, vector<32x32xf32> -> vector<32x32xf32>
    %18 = arith.addf %15, %17 : vector<32x32xf32>
    %19 = arith.truncf %0 : vector<32x32xf32> to vector<32x32xbf16>
    %cst_12 = arith.constant dense<0.000000e+00> : vector<64x32xf32>
    %20 = tpu.matmul %1, %19, %cst_12 {dimension_numbers = #tpu.dot_dimension_numbers<[1], [0], [0], [1], [0, 0, 1, 1], [], []>} : vector<64x32xbf16>, vector<32x32xbf16>, vector<64x32xf32> -> vector<64x32xf32>
    %21 = arith.truncf %20 : vector<64x32xf32> to vector<64x32xbf16>
    %c1 = arith.constant 1 : index
    %c0_13 = arith.constant 0 : index
    %22 = vector.load %arg2[%c1, %c0_13] : memref<16x128xf32, #tpu.memory_space<vmem>>, vector<1x32xf32>
    %23 = vector.extract_strided_slice %21 {offsets = [0, 0], sizes = [32, 32], strides = [1, 1]} : vector<64x32xbf16> to vector<32x32xbf16>
    %c224 = arith.constant 224 : index
    %c0_14 = arith.constant 0 : index
    %24 = vector.load %arg1[%c224, %c0_14] : memref<640x128xbf16, #tpu.memory_space<vmem>>, vector<32x32xbf16>
    %cst_15 = arith.constant dense<0.000000e+00> : vector<32x32xf32>
    %25 = tpu.matmul %23, %24, %cst_15 {dimension_numbers = #tpu.dot_dimension_numbers<[1], [0], [0], [1], [0, 0, 1, 1], [], []>} : vector<32x32xbf16>, vector<32x32xbf16>, vector<32x32xf32> -> vector<32x32xf32>
    %26 = vector.broadcast %22 : vector<1x32xf32> to vector<32x32xf32>
    %27 = arith.addf %26, %25 : vector<32x32xf32>
    %28 = vector.extract_strided_slice %21 {offsets = [32, 0], sizes = [32, 32], strides = [1, 1]} : vector<64x32xbf16> to vector<32x32xbf16>
    %c256 = arith.constant 256 : index
    %c0_16 = arith.constant 0 : index
    %29 = vector.load %arg1[%c256, %c0_16] : memref<640x128xbf16, #tpu.memory_space<vmem>>, vector<32x32xbf16>
    %cst_17 = arith.constant dense<0.000000e+00> : vector<32x32xf32>
    %30 = tpu.matmul %28, %29, %cst_17 {dimension_numbers = #tpu.dot_dimension_numbers<[1], [0], [0], [1], [0, 0, 1, 1], [], []>} : vector<32x32xbf16>, vector<32x32xbf16>, vector<32x32xf32> -> vector<32x32xf32>
    %31 = arith.addf %27, %30 : vector<32x32xf32>
    %c288 = arith.constant 288 : index
    %c0_18 = arith.constant 0 : index
    %32 = vector.load %arg1[%c288, %c0_18] : memref<640x128xbf16, #tpu.memory_space<vmem>>, vector<32x32xbf16>
    %cst_19 = arith.constant dense<0.000000e+00> : vector<32x32xf32>
    %33 = tpu.matmul %19, %32, %cst_19 {dimension_numbers = #tpu.dot_dimension_numbers<[1], [0], [0], [1], [0, 0, 1, 1], [], []>} : vector<32x32xbf16>, vector<32x32xbf16>, vector<32x32xf32> -> vector<32x32xf32>
    %34 = arith.addf %31, %33 : vector<32x32xf32>
    %35 = arith.addf %34, %18 : vector<32x32xf32>
    %cst_20 = arith.constant dense<0.000000e+00> : vector<32xf32>
    %36 = vector.multi_reduction <add>, %35, %cst_20 [1] : vector<32x32xf32> to vector<32xf32>
    %37 = vector.shape_cast %36 : vector<32xf32> to vector<32x1xf32>
    %cst_21 = arith.constant 3.125000e-02 : f32
    %38 = vector.broadcast %cst_21 : f32 to vector<32x1xf32>
    %39 = arith.mulf %37, %38 : vector<32x1xf32>
    %40 = arith.mulf %35, %35 : vector<32x32xf32>
    %cst_22 = arith.constant dense<0.000000e+00> : vector<32xf32>
    %41 = vector.multi_reduction <add>, %40, %cst_22 [1] : vector<32x32xf32> to vector<32xf32>
    %42 = vector.shape_cast %41 : vector<32xf32> to vector<32x1xf32>
    %cst_23 = arith.constant 3.125000e-02 : f32
    %43 = vector.broadcast %cst_23 : f32 to vector<32x1xf32>
    %44 = arith.mulf %42, %43 : vector<32x1xf32>
    %45 = arith.mulf %39, %39 : vector<32x1xf32>
    %46 = arith.subf %44, %45 : vector<32x1xf32>
    %47 = vector.broadcast %39 : vector<32x1xf32> to vector<32x32xf32>
    %48 = arith.subf %35, %47 : vector<32x32xf32>
    %cst_24 = arith.constant 9.99999974E-6 : f32
    %49 = vector.broadcast %cst_24 : f32 to vector<32x1xf32>
    %50 = arith.addf %46, %49 : vector<32x1xf32>
    %51 = math.rsqrt %50 : vector<32x1xf32>
    %52 = vector.broadcast %51 : vector<32x1xf32> to vector<32x32xf32>
    %53 = arith.mulf %48, %52 : vector<32x32xf32>
    %c2 = arith.constant 2 : index
    %c0_25 = arith.constant 0 : index
    %54 = vector.load %arg2[%c2, %c0_25] : memref<16x128xf32, #tpu.memory_space<vmem>>, vector<1x32xf32>
    %55 = vector.broadcast %54 : vector<1x32xf32> to vector<32x32xf32>
    %56 = arith.mulf %53, %55 : vector<32x32xf32>
    %c3 = arith.constant 3 : index
    %c0_26 = arith.constant 0 : index
    %57 = vector.load %arg2[%c3, %c0_26] : memref<16x128xf32, #tpu.memory_space<vmem>>, vector<1x32xf32>
    %58 = vector.broadcast %57 : vector<1x32xf32> to vector<32x32xf32>
    %59 = arith.addf %56, %58 : vector<32x32xf32>
    %cst_27 = arith.constant 0.000000e+00 : f32
    %60 = vector.broadcast %cst_27 : f32 to vector<32x32xf32>
    %61 = arith.maximumf %59, %60 : vector<32x32xf32>
    %62 = arith.truncf %61 : vector<32x32xf32> to vector<32x32xbf16>
    %cst_28 = arith.constant dense<0.000000e+00> : vector<64x32xf32>
    %63 = tpu.matmul %1, %62, %cst_28 {dimension_numbers = #tpu.dot_dimension_numbers<[1], [0], [0], [1], [0, 0, 1, 1], [], []>} : vector<64x32xbf16>, vector<32x32xbf16>, vector<64x32xf32> -> vector<64x32xf32>
    %64 = arith.truncf %63 : vector<64x32xf32> to vector<64x32xbf16>
    %c4 = arith.constant 4 : index
    %c0_29 = arith.constant 0 : index
    %65 = vector.load %arg2[%c4, %c0_29] : memref<16x128xf32, #tpu.memory_space<vmem>>, vector<1x32xf32>
    %66 = vector.extract_strided_slice %64 {offsets = [0, 0], sizes = [32, 32], strides = [1, 1]} : vector<64x32xbf16> to vector<32x32xbf16>
    %c320 = arith.constant 320 : index
    %c0_30 = arith.constant 0 : index
    %67 = vector.load %arg1[%c320, %c0_30] : memref<640x128xbf16, #tpu.memory_space<vmem>>, vector<32x32xbf16>
    %cst_31 = arith.constant dense<0.000000e+00> : vector<32x32xf32>
    %68 = tpu.matmul %66, %67, %cst_31 {dimension_numbers = #tpu.dot_dimension_numbers<[1], [0], [0], [1], [0, 0, 1, 1], [], []>} : vector<32x32xbf16>, vector<32x32xbf16>, vector<32x32xf32> -> vector<32x32xf32>
    %69 = vector.broadcast %65 : vector<1x32xf32> to vector<32x32xf32>
    %70 = arith.addf %69, %68 : vector<32x32xf32>
    %71 = vector.extract_strided_slice %64 {offsets = [32, 0], sizes = [32, 32], strides = [1, 1]} : vector<64x32xbf16> to vector<32x32xbf16>
    %c352 = arith.constant 352 : index
    %c0_32 = arith.constant 0 : index
    %72 = vector.load %arg1[%c352, %c0_32] : memref<640x128xbf16, #tpu.memory_space<vmem>>, vector<32x32xbf16>
    %cst_33 = arith.constant dense<0.000000e+00> : vector<32x32xf32>
    %73 = tpu.matmul %71, %72, %cst_33 {dimension_numbers = #tpu.dot_dimension_numbers<[1], [0], [0], [1], [0, 0, 1, 1], [], []>} : vector<32x32xbf16>, vector<32x32xbf16>, vector<32x32xf32> -> vector<32x32xf32>
    %74 = arith.addf %70, %73 : vector<32x32xf32>
    %c384 = arith.constant 384 : index
    %c0_34 = arith.constant 0 : index
    %75 = vector.load %arg1[%c384, %c0_34] : memref<640x128xbf16, #tpu.memory_space<vmem>>, vector<32x32xbf16>
    %cst_35 = arith.constant dense<0.000000e+00> : vector<32x32xf32>
    %76 = tpu.matmul %62, %75, %cst_35 {dimension_numbers = #tpu.dot_dimension_numbers<[1], [0], [0], [1], [0, 0, 1, 1], [], []>} : vector<32x32xbf16>, vector<32x32xbf16>, vector<32x32xf32> -> vector<32x32xf32>
    %77 = arith.addf %74, %76 : vector<32x32xf32>
    %cst_36 = arith.constant dense<0.000000e+00> : vector<32xf32>
    %78 = vector.multi_reduction <add>, %77, %cst_36 [1] : vector<32x32xf32> to vector<32xf32>
    %79 = vector.shape_cast %78 : vector<32xf32> to vector<32x1xf32>
    %cst_37 = arith.constant 3.125000e-02 : f32
    %80 = vector.broadcast %cst_37 : f32 to vector<32x1xf32>
    %81 = arith.mulf %79, %80 : vector<32x1xf32>
    %82 = arith.mulf %77, %77 : vector<32x32xf32>
    %cst_38 = arith.constant dense<0.000000e+00> : vector<32xf32>
    %83 = vector.multi_reduction <add>, %82, %cst_38 [1] : vector<32x32xf32> to vector<32xf32>
    %84 = vector.shape_cast %83 : vector<32xf32> to vector<32x1xf32>
    %cst_39 = arith.constant 3.125000e-02 : f32
    %85 = vector.broadcast %cst_39 : f32 to vector<32x1xf32>
    %86 = arith.mulf %84, %85 : vector<32x1xf32>
    %87 = arith.mulf %81, %81 : vector<32x1xf32>
    %88 = arith.subf %86, %87 : vector<32x1xf32>
    %89 = vector.broadcast %81 : vector<32x1xf32> to vector<32x32xf32>
    %90 = arith.subf %77, %89 : vector<32x32xf32>
    %cst_40 = arith.constant 9.99999974E-6 : f32
    %91 = vector.broadcast %cst_40 : f32 to vector<32x1xf32>
    %92 = arith.addf %88, %91 : vector<32x1xf32>
    %93 = math.rsqrt %92 : vector<32x1xf32>
    %94 = vector.broadcast %93 : vector<32x1xf32> to vector<32x32xf32>
    %95 = arith.mulf %90, %94 : vector<32x32xf32>
    %c5 = arith.constant 5 : index
    %c0_41 = arith.constant 0 : index
    %96 = vector.load %arg2[%c5, %c0_41] : memref<16x128xf32, #tpu.memory_space<vmem>>, vector<1x32xf32>
    %97 = vector.broadcast %96 : vector<1x32xf32> to vector<32x32xf32>
    %98 = arith.mulf %95, %97 : vector<32x32xf32>
    %c6 = arith.constant 6 : index
    %c0_42 = arith.constant 0 : index
    %99 = vector.load %arg2[%c6, %c0_42] : memref<16x128xf32, #tpu.memory_space<vmem>>, vector<1x32xf32>
    %100 = vector.broadcast %99 : vector<1x32xf32> to vector<32x32xf32>
    %101 = arith.addf %98, %100 : vector<32x32xf32>
    %cst_43 = arith.constant 0.000000e+00 : f32
    %102 = vector.broadcast %cst_43 : f32 to vector<32x32xf32>
    %103 = arith.maximumf %101, %102 : vector<32x32xf32>
    %104 = arith.addf %0, %103 : vector<32x32xf32>
    %105 = arith.truncf %104 : vector<32x32xf32> to vector<32x32xbf16>
    %cst_44 = arith.constant dense<0.000000e+00> : vector<64x32xf32>
    %106 = tpu.matmul %2, %105, %cst_44 {dimension_numbers = #tpu.dot_dimension_numbers<[1], [0], [0], [1], [0, 0, 1, 1], [], []>} : vector<64x32xbf16>, vector<32x32xbf16>, vector<64x32xf32> -> vector<64x32xf32>
    %107 = arith.truncf %106 : vector<64x32xf32> to vector<64x32xbf16>
    %c7 = arith.constant 7 : index
    %c0_45 = arith.constant 0 : index
    %108 = vector.load %arg2[%c7, %c0_45] : memref<16x128xf32, #tpu.memory_space<vmem>>, vector<1x32xf32>
    %109 = vector.extract_strided_slice %107 {offsets = [0, 0], sizes = [32, 32], strides = [1, 1]} : vector<64x32xbf16> to vector<32x32xbf16>
    %c416 = arith.constant 416 : index
    %c0_46 = arith.constant 0 : index
    %110 = vector.load %arg1[%c416, %c0_46] : memref<640x128xbf16, #tpu.memory_space<vmem>>, vector<32x32xbf16>
    %cst_47 = arith.constant dense<0.000000e+00> : vector<32x32xf32>
    %111 = tpu.matmul %109, %110, %cst_47 {dimension_numbers = #tpu.dot_dimension_numbers<[1], [0], [0], [1], [0, 0, 1, 1], [], []>} : vector<32x32xbf16>, vector<32x32xbf16>, vector<32x32xf32> -> vector<32x32xf32>
    %112 = vector.broadcast %108 : vector<1x32xf32> to vector<32x32xf32>
    %113 = arith.addf %112, %111 : vector<32x32xf32>
    %114 = vector.extract_strided_slice %107 {offsets = [32, 0], sizes = [32, 32], strides = [1, 1]} : vector<64x32xbf16> to vector<32x32xbf16>
    %c448 = arith.constant 448 : index
    %c0_48 = arith.constant 0 : index
    %115 = vector.load %arg1[%c448, %c0_48] : memref<640x128xbf16, #tpu.memory_space<vmem>>, vector<32x32xbf16>
    %cst_49 = arith.constant dense<0.000000e+00> : vector<32x32xf32>
    %116 = tpu.matmul %114, %115, %cst_49 {dimension_numbers = #tpu.dot_dimension_numbers<[1], [0], [0], [1], [0, 0, 1, 1], [], []>} : vector<32x32xbf16>, vector<32x32xbf16>, vector<32x32xf32> -> vector<32x32xf32>
    %117 = arith.addf %113, %116 : vector<32x32xf32>
    %c480 = arith.constant 480 : index
    %c0_50 = arith.constant 0 : index
    %118 = vector.load %arg1[%c480, %c0_50] : memref<640x128xbf16, #tpu.memory_space<vmem>>, vector<32x32xbf16>
    %cst_51 = arith.constant dense<0.000000e+00> : vector<32x32xf32>
    %119 = tpu.matmul %105, %118, %cst_51 {dimension_numbers = #tpu.dot_dimension_numbers<[1], [0], [0], [1], [0, 0, 1, 1], [], []>} : vector<32x32xbf16>, vector<32x32xbf16>, vector<32x32xf32> -> vector<32x32xf32>
    %120 = arith.addf %117, %119 : vector<32x32xf32>
    %cst_52 = arith.constant dense<0.000000e+00> : vector<32xf32>
    %121 = vector.multi_reduction <add>, %120, %cst_52 [1] : vector<32x32xf32> to vector<32xf32>
    %122 = vector.shape_cast %121 : vector<32xf32> to vector<32x1xf32>
    %cst_53 = arith.constant 3.125000e-02 : f32
    %123 = vector.broadcast %cst_53 : f32 to vector<32x1xf32>
    %124 = arith.mulf %122, %123 : vector<32x1xf32>
    %125 = arith.mulf %120, %120 : vector<32x32xf32>
    %cst_54 = arith.constant dense<0.000000e+00> : vector<32xf32>
    %126 = vector.multi_reduction <add>, %125, %cst_54 [1] : vector<32x32xf32> to vector<32xf32>
    %127 = vector.shape_cast %126 : vector<32xf32> to vector<32x1xf32>
    %cst_55 = arith.constant 3.125000e-02 : f32
    %128 = vector.broadcast %cst_55 : f32 to vector<32x1xf32>
    %129 = arith.mulf %127, %128 : vector<32x1xf32>
    %130 = arith.mulf %124, %124 : vector<32x1xf32>
    %131 = arith.subf %129, %130 : vector<32x1xf32>
    %132 = vector.broadcast %124 : vector<32x1xf32> to vector<32x32xf32>
    %133 = arith.subf %120, %132 : vector<32x32xf32>
    %cst_56 = arith.constant 9.99999974E-6 : f32
    %134 = vector.broadcast %cst_56 : f32 to vector<32x1xf32>
    %135 = arith.addf %131, %134 : vector<32x1xf32>
    %136 = math.rsqrt %135 : vector<32x1xf32>
    %137 = vector.broadcast %136 : vector<32x1xf32> to vector<32x32xf32>
    %138 = arith.mulf %133, %137 : vector<32x32xf32>
    %c8 = arith.constant 8 : index
    %c0_57 = arith.constant 0 : index
    %139 = vector.load %arg2[%c8, %c0_57] : memref<16x128xf32, #tpu.memory_space<vmem>>, vector<1x32xf32>
    %140 = vector.broadcast %139 : vector<1x32xf32> to vector<32x32xf32>
    %141 = arith.mulf %138, %140 : vector<32x32xf32>
    %c9 = arith.constant 9 : index
    %c0_58 = arith.constant 0 : index
    %142 = vector.load %arg2[%c9, %c0_58] : memref<16x128xf32, #tpu.memory_space<vmem>>, vector<1x32xf32>
    %143 = vector.broadcast %142 : vector<1x32xf32> to vector<32x32xf32>
    %144 = arith.addf %141, %143 : vector<32x32xf32>
    %cst_59 = arith.constant 0.000000e+00 : f32
    %145 = vector.broadcast %cst_59 : f32 to vector<32x32xf32>
    %146 = arith.maximumf %144, %145 : vector<32x32xf32>
    %147 = arith.truncf %146 : vector<32x32xf32> to vector<32x32xbf16>
    %cst_60 = arith.constant dense<0.000000e+00> : vector<64x32xf32>
    %148 = tpu.matmul %2, %147, %cst_60 {dimension_numbers = #tpu.dot_dimension_numbers<[1], [0], [0], [1], [0, 0, 1, 1], [], []>} : vector<64x32xbf16>, vector<32x32xbf16>, vector<64x32xf32> -> vector<64x32xf32>
    %149 = arith.truncf %148 : vector<64x32xf32> to vector<64x32xbf16>
    %c10 = arith.constant 10 : index
    %c0_61 = arith.constant 0 : index
    %150 = vector.load %arg2[%c10, %c0_61] : memref<16x128xf32, #tpu.memory_space<vmem>>, vector<1x32xf32>
    %151 = vector.extract_strided_slice %149 {offsets = [0, 0], sizes = [32, 32], strides = [1, 1]} : vector<64x32xbf16> to vector<32x32xbf16>
    %c512 = arith.constant 512 : index
    %c0_62 = arith.constant 0 : index
    %152 = vector.load %arg1[%c512, %c0_62] : memref<640x128xbf16, #tpu.memory_space<vmem>>, vector<32x32xbf16>
    %cst_63 = arith.constant dense<0.000000e+00> : vector<32x32xf32>
    %153 = tpu.matmul %151, %152, %cst_63 {dimension_numbers = #tpu.dot_dimension_numbers<[1], [0], [0], [1], [0, 0, 1, 1], [], []>} : vector<32x32xbf16>, vector<32x32xbf16>, vector<32x32xf32> -> vector<32x32xf32>
    %154 = vector.broadcast %150 : vector<1x32xf32> to vector<32x32xf32>
    %155 = arith.addf %154, %153 : vector<32x32xf32>
    %156 = vector.extract_strided_slice %149 {offsets = [32, 0], sizes = [32, 32], strides = [1, 1]} : vector<64x32xbf16> to vector<32x32xbf16>
    %c544 = arith.constant 544 : index
    %c0_64 = arith.constant 0 : index
    %157 = vector.load %arg1[%c544, %c0_64] : memref<640x128xbf16, #tpu.memory_space<vmem>>, vector<32x32xbf16>
    %cst_65 = arith.constant dense<0.000000e+00> : vector<32x32xf32>
    %158 = tpu.matmul %156, %157, %cst_65 {dimension_numbers = #tpu.dot_dimension_numbers<[1], [0], [0], [1], [0, 0, 1, 1], [], []>} : vector<32x32xbf16>, vector<32x32xbf16>, vector<32x32xf32> -> vector<32x32xf32>
    %159 = arith.addf %155, %158 : vector<32x32xf32>
    %c576 = arith.constant 576 : index
    %c0_66 = arith.constant 0 : index
    %160 = vector.load %arg1[%c576, %c0_66] : memref<640x128xbf16, #tpu.memory_space<vmem>>, vector<32x32xbf16>
    %cst_67 = arith.constant dense<0.000000e+00> : vector<32x32xf32>
    %161 = tpu.matmul %147, %160, %cst_67 {dimension_numbers = #tpu.dot_dimension_numbers<[1], [0], [0], [1], [0, 0, 1, 1], [], []>} : vector<32x32xbf16>, vector<32x32xbf16>, vector<32x32xf32> -> vector<32x32xf32>
    %162 = arith.addf %159, %161 : vector<32x32xf32>
    %cst_68 = arith.constant dense<0.000000e+00> : vector<32xf32>
    %163 = vector.multi_reduction <add>, %162, %cst_68 [1] : vector<32x32xf32> to vector<32xf32>
    %164 = vector.shape_cast %163 : vector<32xf32> to vector<32x1xf32>
    %cst_69 = arith.constant 3.125000e-02 : f32
    %165 = vector.broadcast %cst_69 : f32 to vector<32x1xf32>
    %166 = arith.mulf %164, %165 : vector<32x1xf32>
    %167 = arith.mulf %162, %162 : vector<32x32xf32>
    %cst_70 = arith.constant dense<0.000000e+00> : vector<32xf32>
    %168 = vector.multi_reduction <add>, %167, %cst_70 [1] : vector<32x32xf32> to vector<32xf32>
    %169 = vector.shape_cast %168 : vector<32xf32> to vector<32x1xf32>
    %cst_71 = arith.constant 3.125000e-02 : f32
    %170 = vector.broadcast %cst_71 : f32 to vector<32x1xf32>
    %171 = arith.mulf %169, %170 : vector<32x1xf32>
    %172 = arith.mulf %166, %166 : vector<32x1xf32>
    %173 = arith.subf %171, %172 : vector<32x1xf32>
    %174 = vector.broadcast %166 : vector<32x1xf32> to vector<32x32xf32>
    %175 = arith.subf %162, %174 : vector<32x32xf32>
    %cst_72 = arith.constant 9.99999974E-6 : f32
    %176 = vector.broadcast %cst_72 : f32 to vector<32x1xf32>
    %177 = arith.addf %173, %176 : vector<32x1xf32>
    %178 = math.rsqrt %177 : vector<32x1xf32>
    %179 = vector.broadcast %178 : vector<32x1xf32> to vector<32x32xf32>
    %180 = arith.mulf %175, %179 : vector<32x32xf32>
    %c11 = arith.constant 11 : index
    %c0_73 = arith.constant 0 : index
    %181 = vector.load %arg2[%c11, %c0_73] : memref<16x128xf32, #tpu.memory_space<vmem>>, vector<1x32xf32>
    %182 = vector.broadcast %181 : vector<1x32xf32> to vector<32x32xf32>
    %183 = arith.mulf %180, %182 : vector<32x32xf32>
    %c12 = arith.constant 12 : index
    %c0_74 = arith.constant 0 : index
    %184 = vector.load %arg2[%c12, %c0_74] : memref<16x128xf32, #tpu.memory_space<vmem>>, vector<1x32xf32>
    %185 = vector.broadcast %184 : vector<1x32xf32> to vector<32x32xf32>
    %186 = arith.addf %183, %185 : vector<32x32xf32>
    %cst_75 = arith.constant 0.000000e+00 : f32
    %187 = vector.broadcast %cst_75 : f32 to vector<32x32xf32>
    %188 = arith.maximumf %186, %187 : vector<32x32xf32>
    %189 = arith.addf %104, %188 : vector<32x32xf32>
    %190 = arith.truncf %189 : vector<32x32xf32> to vector<32x32xbf16>
    %cst_76 = arith.constant dense<0.000000e+00> : vector<64x32xf32>
    %191 = tpu.matmul %1, %190, %cst_76 {dimension_numbers = #tpu.dot_dimension_numbers<[1], [0], [0], [1], [0, 0, 1, 1], [], []>} : vector<64x32xbf16>, vector<32x32xbf16>, vector<64x32xf32> -> vector<64x32xf32>
    %192 = arith.truncf %191 : vector<64x32xf32> to vector<64x32xbf16>
    %c1_77 = arith.constant 1 : index
    %c0_78 = arith.constant 0 : index
    %193 = vector.load %arg2[%c1_77, %c0_78] : memref<16x128xf32, #tpu.memory_space<vmem>>, vector<1x32xf32>
    %194 = vector.extract_strided_slice %192 {offsets = [0, 0], sizes = [32, 32], strides = [1, 1]} : vector<64x32xbf16> to vector<32x32xbf16>
    %c224_79 = arith.constant 224 : index
    %c0_80 = arith.constant 0 : index
    %195 = vector.load %arg1[%c224_79, %c0_80] : memref<640x128xbf16, #tpu.memory_space<vmem>>, vector<32x32xbf16>
    %cst_81 = arith.constant dense<0.000000e+00> : vector<32x32xf32>
    %196 = tpu.matmul %194, %195, %cst_81 {dimension_numbers = #tpu.dot_dimension_numbers<[1], [0], [0], [1], [0, 0, 1, 1], [], []>} : vector<32x32xbf16>, vector<32x32xbf16>, vector<32x32xf32> -> vector<32x32xf32>
    %197 = vector.broadcast %193 : vector<1x32xf32> to vector<32x32xf32>
    %198 = arith.addf %197, %196 : vector<32x32xf32>
    %199 = vector.extract_strided_slice %192 {offsets = [32, 0], sizes = [32, 32], strides = [1, 1]} : vector<64x32xbf16> to vector<32x32xbf16>
    %c256_82 = arith.constant 256 : index
    %c0_83 = arith.constant 0 : index
    %200 = vector.load %arg1[%c256_82, %c0_83] : memref<640x128xbf16, #tpu.memory_space<vmem>>, vector<32x32xbf16>
    %cst_84 = arith.constant dense<0.000000e+00> : vector<32x32xf32>
    %201 = tpu.matmul %199, %200, %cst_84 {dimension_numbers = #tpu.dot_dimension_numbers<[1], [0], [0], [1], [0, 0, 1, 1], [], []>} : vector<32x32xbf16>, vector<32x32xbf16>, vector<32x32xf32> -> vector<32x32xf32>
    %202 = arith.addf %198, %201 : vector<32x32xf32>
    %c288_85 = arith.constant 288 : index
    %c0_86 = arith.constant 0 : index
    %203 = vector.load %arg1[%c288_85, %c0_86] : memref<640x128xbf16, #tpu.memory_space<vmem>>, vector<32x32xbf16>
    %cst_87 = arith.constant dense<0.000000e+00> : vector<32x32xf32>
    %204 = tpu.matmul %190, %203, %cst_87 {dimension_numbers = #tpu.dot_dimension_numbers<[1], [0], [0], [1], [0, 0, 1, 1], [], []>} : vector<32x32xbf16>, vector<32x32xbf16>, vector<32x32xf32> -> vector<32x32xf32>
    %205 = arith.addf %202, %204 : vector<32x32xf32>
    %206 = arith.addf %205, %18 : vector<32x32xf32>
    %cst_88 = arith.constant dense<0.000000e+00> : vector<32xf32>
    %207 = vector.multi_reduction <add>, %206, %cst_88 [1] : vector<32x32xf32> to vector<32xf32>
    %208 = vector.shape_cast %207 : vector<32xf32> to vector<32x1xf32>
    %cst_89 = arith.constant 3.125000e-02 : f32
    %209 = vector.broadcast %cst_89 : f32 to vector<32x1xf32>
    %210 = arith.mulf %208, %209 : vector<32x1xf32>
    %211 = arith.mulf %206, %206 : vector<32x32xf32>
    %cst_90 = arith.constant dense<0.000000e+00> : vector<32xf32>
    %212 = vector.multi_reduction <add>, %211, %cst_90 [1] : vector<32x32xf32> to vector<32xf32>
    %213 = vector.shape_cast %212 : vector<32xf32> to vector<32x1xf32>
    %cst_91 = arith.constant 3.125000e-02 : f32
    %214 = vector.broadcast %cst_91 : f32 to vector<32x1xf32>
    %215 = arith.mulf %213, %214 : vector<32x1xf32>
    %216 = arith.mulf %210, %210 : vector<32x1xf32>
    %217 = arith.subf %215, %216 : vector<32x1xf32>
    %218 = vector.broadcast %210 : vector<32x1xf32> to vector<32x32xf32>
    %219 = arith.subf %206, %218 : vector<32x32xf32>
    %cst_92 = arith.constant 9.99999974E-6 : f32
    %220 = vector.broadcast %cst_92 : f32 to vector<32x1xf32>
    %221 = arith.addf %217, %220 : vector<32x1xf32>
    %222 = math.rsqrt %221 : vector<32x1xf32>
    %223 = vector.broadcast %222 : vector<32x1xf32> to vector<32x32xf32>
    %224 = arith.mulf %219, %223 : vector<32x32xf32>
    %c2_93 = arith.constant 2 : index
    %c0_94 = arith.constant 0 : index
    %225 = vector.load %arg2[%c2_93, %c0_94] : memref<16x128xf32, #tpu.memory_space<vmem>>, vector<1x32xf32>
    %226 = vector.broadcast %225 : vector<1x32xf32> to vector<32x32xf32>
    %227 = arith.mulf %224, %226 : vector<32x32xf32>
    %c3_95 = arith.constant 3 : index
    %c0_96 = arith.constant 0 : index
    %228 = vector.load %arg2[%c3_95, %c0_96] : memref<16x128xf32, #tpu.memory_space<vmem>>, vector<1x32xf32>
    %229 = vector.broadcast %228 : vector<1x32xf32> to vector<32x32xf32>
    %230 = arith.addf %227, %229 : vector<32x32xf32>
    %cst_97 = arith.constant 0.000000e+00 : f32
    %231 = vector.broadcast %cst_97 : f32 to vector<32x32xf32>
    %232 = arith.maximumf %230, %231 : vector<32x32xf32>
    %233 = arith.truncf %232 : vector<32x32xf32> to vector<32x32xbf16>
    %cst_98 = arith.constant dense<0.000000e+00> : vector<64x32xf32>
    %234 = tpu.matmul %1, %233, %cst_98 {dimension_numbers = #tpu.dot_dimension_numbers<[1], [0], [0], [1], [0, 0, 1, 1], [], []>} : vector<64x32xbf16>, vector<32x32xbf16>, vector<64x32xf32> -> vector<64x32xf32>
    %235 = arith.truncf %234 : vector<64x32xf32> to vector<64x32xbf16>
    %c4_99 = arith.constant 4 : index
    %c0_100 = arith.constant 0 : index
    %236 = vector.load %arg2[%c4_99, %c0_100] : memref<16x128xf32, #tpu.memory_space<vmem>>, vector<1x32xf32>
    %237 = vector.extract_strided_slice %235 {offsets = [0, 0], sizes = [32, 32], strides = [1, 1]} : vector<64x32xbf16> to vector<32x32xbf16>
    %c320_101 = arith.constant 320 : index
    %c0_102 = arith.constant 0 : index
    %238 = vector.load %arg1[%c320_101, %c0_102] : memref<640x128xbf16, #tpu.memory_space<vmem>>, vector<32x32xbf16>
    %cst_103 = arith.constant dense<0.000000e+00> : vector<32x32xf32>
    %239 = tpu.matmul %237, %238, %cst_103 {dimension_numbers = #tpu.dot_dimension_numbers<[1], [0], [0], [1], [0, 0, 1, 1], [], []>} : vector<32x32xbf16>, vector<32x32xbf16>, vector<32x32xf32> -> vector<32x32xf32>
    %240 = vector.broadcast %236 : vector<1x32xf32> to vector<32x32xf32>
    %241 = arith.addf %240, %239 : vector<32x32xf32>
    %242 = vector.extract_strided_slice %235 {offsets = [32, 0], sizes = [32, 32], strides = [1, 1]} : vector<64x32xbf16> to vector<32x32xbf16>
    %c352_104 = arith.constant 352 : index
    %c0_105 = arith.constant 0 : index
    %243 = vector.load %arg1[%c352_104, %c0_105] : memref<640x128xbf16, #tpu.memory_space<vmem>>, vector<32x32xbf16>
    %cst_106 = arith.constant dense<0.000000e+00> : vector<32x32xf32>
    %244 = tpu.matmul %242, %243, %cst_106 {dimension_numbers = #tpu.dot_dimension_numbers<[1], [0], [0], [1], [0, 0, 1, 1], [], []>} : vector<32x32xbf16>, vector<32x32xbf16>, vector<32x32xf32> -> vector<32x32xf32>
    %245 = arith.addf %241, %244 : vector<32x32xf32>
    %c384_107 = arith.constant 384 : index
    %c0_108 = arith.constant 0 : index
    %246 = vector.load %arg1[%c384_107, %c0_108] : memref<640x128xbf16, #tpu.memory_space<vmem>>, vector<32x32xbf16>
    %cst_109 = arith.constant dense<0.000000e+00> : vector<32x32xf32>
    %247 = tpu.matmul %233, %246, %cst_109 {dimension_numbers = #tpu.dot_dimension_numbers<[1], [0], [0], [1], [0, 0, 1, 1], [], []>} : vector<32x32xbf16>, vector<32x32xbf16>, vector<32x32xf32> -> vector<32x32xf32>
    %248 = arith.addf %245, %247 : vector<32x32xf32>
    %cst_110 = arith.constant dense<0.000000e+00> : vector<32xf32>
    %249 = vector.multi_reduction <add>, %248, %cst_110 [1] : vector<32x32xf32> to vector<32xf32>
    %250 = vector.shape_cast %249 : vector<32xf32> to vector<32x1xf32>
    %cst_111 = arith.constant 3.125000e-02 : f32
    %251 = vector.broadcast %cst_111 : f32 to vector<32x1xf32>
    %252 = arith.mulf %250, %251 : vector<32x1xf32>
    %253 = arith.mulf %248, %248 : vector<32x32xf32>
    %cst_112 = arith.constant dense<0.000000e+00> : vector<32xf32>
    %254 = vector.multi_reduction <add>, %253, %cst_112 [1] : vector<32x32xf32> to vector<32xf32>
    %255 = vector.shape_cast %254 : vector<32xf32> to vector<32x1xf32>
    %cst_113 = arith.constant 3.125000e-02 : f32
    %256 = vector.broadcast %cst_113 : f32 to vector<32x1xf32>
    %257 = arith.mulf %255, %256 : vector<32x1xf32>
    %258 = arith.mulf %252, %252 : vector<32x1xf32>
    %259 = arith.subf %257, %258 : vector<32x1xf32>
    %260 = vector.broadcast %252 : vector<32x1xf32> to vector<32x32xf32>
    %261 = arith.subf %248, %260 : vector<32x32xf32>
    %cst_114 = arith.constant 9.99999974E-6 : f32
    %262 = vector.broadcast %cst_114 : f32 to vector<32x1xf32>
    %263 = arith.addf %259, %262 : vector<32x1xf32>
    %264 = math.rsqrt %263 : vector<32x1xf32>
    %265 = vector.broadcast %264 : vector<32x1xf32> to vector<32x32xf32>
    %266 = arith.mulf %261, %265 : vector<32x32xf32>
    %c5_115 = arith.constant 5 : index
    %c0_116 = arith.constant 0 : index
    %267 = vector.load %arg2[%c5_115, %c0_116] : memref<16x128xf32, #tpu.memory_space<vmem>>, vector<1x32xf32>
    %268 = vector.broadcast %267 : vector<1x32xf32> to vector<32x32xf32>
    %269 = arith.mulf %266, %268 : vector<32x32xf32>
    %c6_117 = arith.constant 6 : index
    %c0_118 = arith.constant 0 : index
    %270 = vector.load %arg2[%c6_117, %c0_118] : memref<16x128xf32, #tpu.memory_space<vmem>>, vector<1x32xf32>
    %271 = vector.broadcast %270 : vector<1x32xf32> to vector<32x32xf32>
    %272 = arith.addf %269, %271 : vector<32x32xf32>
    %cst_119 = arith.constant 0.000000e+00 : f32
    %273 = vector.broadcast %cst_119 : f32 to vector<32x32xf32>
    %274 = arith.maximumf %272, %273 : vector<32x32xf32>
    %275 = arith.addf %189, %274 : vector<32x32xf32>
    %276 = arith.truncf %275 : vector<32x32xf32> to vector<32x32xbf16>
    %cst_120 = arith.constant dense<0.000000e+00> : vector<64x32xf32>
    %277 = tpu.matmul %2, %276, %cst_120 {dimension_numbers = #tpu.dot_dimension_numbers<[1], [0], [0], [1], [0, 0, 1, 1], [], []>} : vector<64x32xbf16>, vector<32x32xbf16>, vector<64x32xf32> -> vector<64x32xf32>
    %278 = arith.truncf %277 : vector<64x32xf32> to vector<64x32xbf16>
    %c7_121 = arith.constant 7 : index
    %c0_122 = arith.constant 0 : index
    %279 = vector.load %arg2[%c7_121, %c0_122] : memref<16x128xf32, #tpu.memory_space<vmem>>, vector<1x32xf32>
    %280 = vector.extract_strided_slice %278 {offsets = [0, 0], sizes = [32, 32], strides = [1, 1]} : vector<64x32xbf16> to vector<32x32xbf16>
    %c416_123 = arith.constant 416 : index
    %c0_124 = arith.constant 0 : index
    %281 = vector.load %arg1[%c416_123, %c0_124] : memref<640x128xbf16, #tpu.memory_space<vmem>>, vector<32x32xbf16>
    %cst_125 = arith.constant dense<0.000000e+00> : vector<32x32xf32>
    %282 = tpu.matmul %280, %281, %cst_125 {dimension_numbers = #tpu.dot_dimension_numbers<[1], [0], [0], [1], [0, 0, 1, 1], [], []>} : vector<32x32xbf16>, vector<32x32xbf16>, vector<32x32xf32> -> vector<32x32xf32>
    %283 = vector.broadcast %279 : vector<1x32xf32> to vector<32x32xf32>
    %284 = arith.addf %283, %282 : vector<32x32xf32>
    %285 = vector.extract_strided_slice %278 {offsets = [32, 0], sizes = [32, 32], strides = [1, 1]} : vector<64x32xbf16> to vector<32x32xbf16>
    %c448_126 = arith.constant 448 : index
    %c0_127 = arith.constant 0 : index
    %286 = vector.load %arg1[%c448_126, %c0_127] : memref<640x128xbf16, #tpu.memory_space<vmem>>, vector<32x32xbf16>
    %cst_128 = arith.constant dense<0.000000e+00> : vector<32x32xf32>
    %287 = tpu.matmul %285, %286, %cst_128 {dimension_numbers = #tpu.dot_dimension_numbers<[1], [0], [0], [1], [0, 0, 1, 1], [], []>} : vector<32x32xbf16>, vector<32x32xbf16>, vector<32x32xf32> -> vector<32x32xf32>
    %288 = arith.addf %284, %287 : vector<32x32xf32>
    %c480_129 = arith.constant 480 : index
    %c0_130 = arith.constant 0 : index
    %289 = vector.load %arg1[%c480_129, %c0_130] : memref<640x128xbf16, #tpu.memory_space<vmem>>, vector<32x32xbf16>
    %cst_131 = arith.constant dense<0.000000e+00> : vector<32x32xf32>
    %290 = tpu.matmul %276, %289, %cst_131 {dimension_numbers = #tpu.dot_dimension_numbers<[1], [0], [0], [1], [0, 0, 1, 1], [], []>} : vector<32x32xbf16>, vector<32x32xbf16>, vector<32x32xf32> -> vector<32x32xf32>
    %291 = arith.addf %288, %290 : vector<32x32xf32>
    %cst_132 = arith.constant dense<0.000000e+00> : vector<32xf32>
    %292 = vector.multi_reduction <add>, %291, %cst_132 [1] : vector<32x32xf32> to vector<32xf32>
    %293 = vector.shape_cast %292 : vector<32xf32> to vector<32x1xf32>
    %cst_133 = arith.constant 3.125000e-02 : f32
    %294 = vector.broadcast %cst_133 : f32 to vector<32x1xf32>
    %295 = arith.mulf %293, %294 : vector<32x1xf32>
    %296 = arith.mulf %291, %291 : vector<32x32xf32>
    %cst_134 = arith.constant dense<0.000000e+00> : vector<32xf32>
    %297 = vector.multi_reduction <add>, %296, %cst_134 [1] : vector<32x32xf32> to vector<32xf32>
    %298 = vector.shape_cast %297 : vector<32xf32> to vector<32x1xf32>
    %cst_135 = arith.constant 3.125000e-02 : f32
    %299 = vector.broadcast %cst_135 : f32 to vector<32x1xf32>
    %300 = arith.mulf %298, %299 : vector<32x1xf32>
    %301 = arith.mulf %295, %295 : vector<32x1xf32>
    %302 = arith.subf %300, %301 : vector<32x1xf32>
    %303 = vector.broadcast %295 : vector<32x1xf32> to vector<32x32xf32>
    %304 = arith.subf %291, %303 : vector<32x32xf32>
    %cst_136 = arith.constant 9.99999974E-6 : f32
    %305 = vector.broadcast %cst_136 : f32 to vector<32x1xf32>
    %306 = arith.addf %302, %305 : vector<32x1xf32>
    %307 = math.rsqrt %306 : vector<32x1xf32>
    %308 = vector.broadcast %307 : vector<32x1xf32> to vector<32x32xf32>
    %309 = arith.mulf %304, %308 : vector<32x32xf32>
    %c8_137 = arith.constant 8 : index
    %c0_138 = arith.constant 0 : index
    %310 = vector.load %arg2[%c8_137, %c0_138] : memref<16x128xf32, #tpu.memory_space<vmem>>, vector<1x32xf32>
    %311 = vector.broadcast %310 : vector<1x32xf32> to vector<32x32xf32>
    %312 = arith.mulf %309, %311 : vector<32x32xf32>
    %c9_139 = arith.constant 9 : index
    %c0_140 = arith.constant 0 : index
    %313 = vector.load %arg2[%c9_139, %c0_140] : memref<16x128xf32, #tpu.memory_space<vmem>>, vector<1x32xf32>
    %314 = vector.broadcast %313 : vector<1x32xf32> to vector<32x32xf32>
    %315 = arith.addf %312, %314 : vector<32x32xf32>
    %cst_141 = arith.constant 0.000000e+00 : f32
    %316 = vector.broadcast %cst_141 : f32 to vector<32x32xf32>
    %317 = arith.maximumf %315, %316 : vector<32x32xf32>
    %318 = arith.truncf %317 : vector<32x32xf32> to vector<32x32xbf16>
    %cst_142 = arith.constant dense<0.000000e+00> : vector<64x32xf32>
    %319 = tpu.matmul %2, %318, %cst_142 {dimension_numbers = #tpu.dot_dimension_numbers<[1], [0], [0], [1], [0, 0, 1, 1], [], []>} : vector<64x32xbf16>, vector<32x32xbf16>, vector<64x32xf32> -> vector<64x32xf32>
    %320 = arith.truncf %319 : vector<64x32xf32> to vector<64x32xbf16>
    %c10_143 = arith.constant 10 : index
    %c0_144 = arith.constant 0 : index
    %321 = vector.load %arg2[%c10_143, %c0_144] : memref<16x128xf32, #tpu.memory_space<vmem>>, vector<1x32xf32>
    %322 = vector.extract_strided_slice %320 {offsets = [0, 0], sizes = [32, 32], strides = [1, 1]} : vector<64x32xbf16> to vector<32x32xbf16>
    %c512_145 = arith.constant 512 : index
    %c0_146 = arith.constant 0 : index
    %323 = vector.load %arg1[%c512_145, %c0_146] : memref<640x128xbf16, #tpu.memory_space<vmem>>, vector<32x32xbf16>
    %cst_147 = arith.constant dense<0.000000e+00> : vector<32x32xf32>
    %324 = tpu.matmul %322, %323, %cst_147 {dimension_numbers = #tpu.dot_dimension_numbers<[1], [0], [0], [1], [0, 0, 1, 1], [], []>} : vector<32x32xbf16>, vector<32x32xbf16>, vector<32x32xf32> -> vector<32x32xf32>
    %325 = vector.broadcast %321 : vector<1x32xf32> to vector<32x32xf32>
    %326 = arith.addf %325, %324 : vector<32x32xf32>
    %327 = vector.extract_strided_slice %320 {offsets = [32, 0], sizes = [32, 32], strides = [1, 1]} : vector<64x32xbf16> to vector<32x32xbf16>
    %c544_148 = arith.constant 544 : index
    %c0_149 = arith.constant 0 : index
    %328 = vector.load %arg1[%c544_148, %c0_149] : memref<640x128xbf16, #tpu.memory_space<vmem>>, vector<32x32xbf16>
    %cst_150 = arith.constant dense<0.000000e+00> : vector<32x32xf32>
    %329 = tpu.matmul %327, %328, %cst_150 {dimension_numbers = #tpu.dot_dimension_numbers<[1], [0], [0], [1], [0, 0, 1, 1], [], []>} : vector<32x32xbf16>, vector<32x32xbf16>, vector<32x32xf32> -> vector<32x32xf32>
    %330 = arith.addf %326, %329 : vector<32x32xf32>
    %c576_151 = arith.constant 576 : index
    %c0_152 = arith.constant 0 : index
    %331 = vector.load %arg1[%c576_151, %c0_152] : memref<640x128xbf16, #tpu.memory_space<vmem>>, vector<32x32xbf16>
    %cst_153 = arith.constant dense<0.000000e+00> : vector<32x32xf32>
    %332 = tpu.matmul %318, %331, %cst_153 {dimension_numbers = #tpu.dot_dimension_numbers<[1], [0], [0], [1], [0, 0, 1, 1], [], []>} : vector<32x32xbf16>, vector<32x32xbf16>, vector<32x32xf32> -> vector<32x32xf32>
    %333 = arith.addf %330, %332 : vector<32x32xf32>
    %cst_154 = arith.constant dense<0.000000e+00> : vector<32xf32>
    %334 = vector.multi_reduction <add>, %333, %cst_154 [1] : vector<32x32xf32> to vector<32xf32>
    %335 = vector.shape_cast %334 : vector<32xf32> to vector<32x1xf32>
    %cst_155 = arith.constant 3.125000e-02 : f32
    %336 = vector.broadcast %cst_155 : f32 to vector<32x1xf32>
    %337 = arith.mulf %335, %336 : vector<32x1xf32>
    %338 = arith.mulf %333, %333 : vector<32x32xf32>
    %cst_156 = arith.constant dense<0.000000e+00> : vector<32xf32>
    %339 = vector.multi_reduction <add>, %338, %cst_156 [1] : vector<32x32xf32> to vector<32xf32>
    %340 = vector.shape_cast %339 : vector<32xf32> to vector<32x1xf32>
    %cst_157 = arith.constant 3.125000e-02 : f32
    %341 = vector.broadcast %cst_157 : f32 to vector<32x1xf32>
    %342 = arith.mulf %340, %341 : vector<32x1xf32>
    %343 = arith.mulf %337, %337 : vector<32x1xf32>
    %344 = arith.subf %342, %343 : vector<32x1xf32>
    %345 = vector.broadcast %337 : vector<32x1xf32> to vector<32x32xf32>
    %346 = arith.subf %333, %345 : vector<32x32xf32>
    %cst_158 = arith.constant 9.99999974E-6 : f32
    %347 = vector.broadcast %cst_158 : f32 to vector<32x1xf32>
    %348 = arith.addf %344, %347 : vector<32x1xf32>
    %349 = math.rsqrt %348 : vector<32x1xf32>
    %350 = vector.broadcast %349 : vector<32x1xf32> to vector<32x32xf32>
    %351 = arith.mulf %346, %350 : vector<32x32xf32>
    %c11_159 = arith.constant 11 : index
    %c0_160 = arith.constant 0 : index
    %352 = vector.load %arg2[%c11_159, %c0_160] : memref<16x128xf32, #tpu.memory_space<vmem>>, vector<1x32xf32>
    %353 = vector.broadcast %352 : vector<1x32xf32> to vector<32x32xf32>
    %354 = arith.mulf %351, %353 : vector<32x32xf32>
    %c12_161 = arith.constant 12 : index
    %c0_162 = arith.constant 0 : index
    %355 = vector.load %arg2[%c12_161, %c0_162] : memref<16x128xf32, #tpu.memory_space<vmem>>, vector<1x32xf32>
    %356 = vector.broadcast %355 : vector<1x32xf32> to vector<32x32xf32>
    %357 = arith.addf %354, %356 : vector<32x32xf32>
    %cst_163 = arith.constant 0.000000e+00 : f32
    %358 = vector.broadcast %cst_163 : f32 to vector<32x32xf32>
    %359 = arith.maximumf %357, %358 : vector<32x32xf32>
    %360 = arith.addf %275, %359 : vector<32x32xf32>
    %361 = arith.truncf %360 : vector<32x32xf32> to vector<32x32xbf16>
    %cst_164 = arith.constant dense<0.000000e+00> : vector<64x32xf32>
    %362 = tpu.matmul %1, %361, %cst_164 {dimension_numbers = #tpu.dot_dimension_numbers<[1], [0], [0], [1], [0, 0, 1, 1], [], []>} : vector<64x32xbf16>, vector<32x32xbf16>, vector<64x32xf32> -> vector<64x32xf32>
    %363 = arith.truncf %362 : vector<64x32xf32> to vector<64x32xbf16>
    %c1_165 = arith.constant 1 : index
    %c0_166 = arith.constant 0 : index
    %364 = vector.load %arg2[%c1_165, %c0_166] : memref<16x128xf32, #tpu.memory_space<vmem>>, vector<1x32xf32>
    %365 = vector.extract_strided_slice %363 {offsets = [0, 0], sizes = [32, 32], strides = [1, 1]} : vector<64x32xbf16> to vector<32x32xbf16>
    %c224_167 = arith.constant 224 : index
    %c0_168 = arith.constant 0 : index
    %366 = vector.load %arg1[%c224_167, %c0_168] : memref<640x128xbf16, #tpu.memory_space<vmem>>, vector<32x32xbf16>
    %cst_169 = arith.constant dense<0.000000e+00> : vector<32x32xf32>
    %367 = tpu.matmul %365, %366, %cst_169 {dimension_numbers = #tpu.dot_dimension_numbers<[1], [0], [0], [1], [0, 0, 1, 1], [], []>} : vector<32x32xbf16>, vector<32x32xbf16>, vector<32x32xf32> -> vector<32x32xf32>
    %368 = vector.broadcast %364 : vector<1x32xf32> to vector<32x32xf32>
    %369 = arith.addf %368, %367 : vector<32x32xf32>
    %370 = vector.extract_strided_slice %363 {offsets = [32, 0], sizes = [32, 32], strides = [1, 1]} : vector<64x32xbf16> to vector<32x32xbf16>
    %c256_170 = arith.constant 256 : index
    %c0_171 = arith.constant 0 : index
    %371 = vector.load %arg1[%c256_170, %c0_171] : memref<640x128xbf16, #tpu.memory_space<vmem>>, vector<32x32xbf16>
    %cst_172 = arith.constant dense<0.000000e+00> : vector<32x32xf32>
    %372 = tpu.matmul %370, %371, %cst_172 {dimension_numbers = #tpu.dot_dimension_numbers<[1], [0], [0], [1], [0, 0, 1, 1], [], []>} : vector<32x32xbf16>, vector<32x32xbf16>, vector<32x32xf32> -> vector<32x32xf32>
    %373 = arith.addf %369, %372 : vector<32x32xf32>
    %c288_173 = arith.constant 288 : index
    %c0_174 = arith.constant 0 : index
    %374 = vector.load %arg1[%c288_173, %c0_174] : memref<640x128xbf16, #tpu.memory_space<vmem>>, vector<32x32xbf16>
    %cst_175 = arith.constant dense<0.000000e+00> : vector<32x32xf32>
    %375 = tpu.matmul %361, %374, %cst_175 {dimension_numbers = #tpu.dot_dimension_numbers<[1], [0], [0], [1], [0, 0, 1, 1], [], []>} : vector<32x32xbf16>, vector<32x32xbf16>, vector<32x32xf32> -> vector<32x32xf32>
    %376 = arith.addf %373, %375 : vector<32x32xf32>
    %377 = arith.addf %376, %18 : vector<32x32xf32>
    %cst_176 = arith.constant dense<0.000000e+00> : vector<32xf32>
    %378 = vector.multi_reduction <add>, %377, %cst_176 [1] : vector<32x32xf32> to vector<32xf32>
    %379 = vector.shape_cast %378 : vector<32xf32> to vector<32x1xf32>
    %cst_177 = arith.constant 3.125000e-02 : f32
    %380 = vector.broadcast %cst_177 : f32 to vector<32x1xf32>
    %381 = arith.mulf %379, %380 : vector<32x1xf32>
    %382 = arith.mulf %377, %377 : vector<32x32xf32>
    %cst_178 = arith.constant dense<0.000000e+00> : vector<32xf32>
    %383 = vector.multi_reduction <add>, %382, %cst_178 [1] : vector<32x32xf32> to vector<32xf32>
    %384 = vector.shape_cast %383 : vector<32xf32> to vector<32x1xf32>
    %cst_179 = arith.constant 3.125000e-02 : f32
    %385 = vector.broadcast %cst_179 : f32 to vector<32x1xf32>
    %386 = arith.mulf %384, %385 : vector<32x1xf32>
    %387 = arith.mulf %381, %381 : vector<32x1xf32>
    %388 = arith.subf %386, %387 : vector<32x1xf32>
    %389 = vector.broadcast %381 : vector<32x1xf32> to vector<32x32xf32>
    %390 = arith.subf %377, %389 : vector<32x32xf32>
    %cst_180 = arith.constant 9.99999974E-6 : f32
    %391 = vector.broadcast %cst_180 : f32 to vector<32x1xf32>
    %392 = arith.addf %388, %391 : vector<32x1xf32>
    %393 = math.rsqrt %392 : vector<32x1xf32>
    %394 = vector.broadcast %393 : vector<32x1xf32> to vector<32x32xf32>
    %395 = arith.mulf %390, %394 : vector<32x32xf32>
    %c2_181 = arith.constant 2 : index
    %c0_182 = arith.constant 0 : index
    %396 = vector.load %arg2[%c2_181, %c0_182] : memref<16x128xf32, #tpu.memory_space<vmem>>, vector<1x32xf32>
    %397 = vector.broadcast %396 : vector<1x32xf32> to vector<32x32xf32>
    %398 = arith.mulf %395, %397 : vector<32x32xf32>
    %c3_183 = arith.constant 3 : index
    %c0_184 = arith.constant 0 : index
    %399 = vector.load %arg2[%c3_183, %c0_184] : memref<16x128xf32, #tpu.memory_space<vmem>>, vector<1x32xf32>
    %400 = vector.broadcast %399 : vector<1x32xf32> to vector<32x32xf32>
    %401 = arith.addf %398, %400 : vector<32x32xf32>
    %cst_185 = arith.constant 0.000000e+00 : f32
    %402 = vector.broadcast %cst_185 : f32 to vector<32x32xf32>
    %403 = arith.maximumf %401, %402 : vector<32x32xf32>
    %404 = arith.truncf %403 : vector<32x32xf32> to vector<32x32xbf16>
    %cst_186 = arith.constant dense<0.000000e+00> : vector<64x32xf32>
    %405 = tpu.matmul %1, %404, %cst_186 {dimension_numbers = #tpu.dot_dimension_numbers<[1], [0], [0], [1], [0, 0, 1, 1], [], []>} : vector<64x32xbf16>, vector<32x32xbf16>, vector<64x32xf32> -> vector<64x32xf32>
    %406 = arith.truncf %405 : vector<64x32xf32> to vector<64x32xbf16>
    %c4_187 = arith.constant 4 : index
    %c0_188 = arith.constant 0 : index
    %407 = vector.load %arg2[%c4_187, %c0_188] : memref<16x128xf32, #tpu.memory_space<vmem>>, vector<1x32xf32>
    %408 = vector.extract_strided_slice %406 {offsets = [0, 0], sizes = [32, 32], strides = [1, 1]} : vector<64x32xbf16> to vector<32x32xbf16>
    %c320_189 = arith.constant 320 : index
    %c0_190 = arith.constant 0 : index
    %409 = vector.load %arg1[%c320_189, %c0_190] : memref<640x128xbf16, #tpu.memory_space<vmem>>, vector<32x32xbf16>
    %cst_191 = arith.constant dense<0.000000e+00> : vector<32x32xf32>
    %410 = tpu.matmul %408, %409, %cst_191 {dimension_numbers = #tpu.dot_dimension_numbers<[1], [0], [0], [1], [0, 0, 1, 1], [], []>} : vector<32x32xbf16>, vector<32x32xbf16>, vector<32x32xf32> -> vector<32x32xf32>
    %411 = vector.broadcast %407 : vector<1x32xf32> to vector<32x32xf32>
    %412 = arith.addf %411, %410 : vector<32x32xf32>
    %413 = vector.extract_strided_slice %406 {offsets = [32, 0], sizes = [32, 32], strides = [1, 1]} : vector<64x32xbf16> to vector<32x32xbf16>
    %c352_192 = arith.constant 352 : index
    %c0_193 = arith.constant 0 : index
    %414 = vector.load %arg1[%c352_192, %c0_193] : memref<640x128xbf16, #tpu.memory_space<vmem>>, vector<32x32xbf16>
    %cst_194 = arith.constant dense<0.000000e+00> : vector<32x32xf32>
    %415 = tpu.matmul %413, %414, %cst_194 {dimension_numbers = #tpu.dot_dimension_numbers<[1], [0], [0], [1], [0, 0, 1, 1], [], []>} : vector<32x32xbf16>, vector<32x32xbf16>, vector<32x32xf32> -> vector<32x32xf32>
    %416 = arith.addf %412, %415 : vector<32x32xf32>
    %c384_195 = arith.constant 384 : index
    %c0_196 = arith.constant 0 : index
    %417 = vector.load %arg1[%c384_195, %c0_196] : memref<640x128xbf16, #tpu.memory_space<vmem>>, vector<32x32xbf16>
    %cst_197 = arith.constant dense<0.000000e+00> : vector<32x32xf32>
    %418 = tpu.matmul %404, %417, %cst_197 {dimension_numbers = #tpu.dot_dimension_numbers<[1], [0], [0], [1], [0, 0, 1, 1], [], []>} : vector<32x32xbf16>, vector<32x32xbf16>, vector<32x32xf32> -> vector<32x32xf32>
    %419 = arith.addf %416, %418 : vector<32x32xf32>
    %cst_198 = arith.constant dense<0.000000e+00> : vector<32xf32>
    %420 = vector.multi_reduction <add>, %419, %cst_198 [1] : vector<32x32xf32> to vector<32xf32>
    %421 = vector.shape_cast %420 : vector<32xf32> to vector<32x1xf32>
    %cst_199 = arith.constant 3.125000e-02 : f32
    %422 = vector.broadcast %cst_199 : f32 to vector<32x1xf32>
    %423 = arith.mulf %421, %422 : vector<32x1xf32>
    %424 = arith.mulf %419, %419 : vector<32x32xf32>
    %cst_200 = arith.constant dense<0.000000e+00> : vector<32xf32>
    %425 = vector.multi_reduction <add>, %424, %cst_200 [1] : vector<32x32xf32> to vector<32xf32>
    %426 = vector.shape_cast %425 : vector<32xf32> to vector<32x1xf32>
    %cst_201 = arith.constant 3.125000e-02 : f32
    %427 = vector.broadcast %cst_201 : f32 to vector<32x1xf32>
    %428 = arith.mulf %426, %427 : vector<32x1xf32>
    %429 = arith.mulf %423, %423 : vector<32x1xf32>
    %430 = arith.subf %428, %429 : vector<32x1xf32>
    %431 = vector.broadcast %423 : vector<32x1xf32> to vector<32x32xf32>
    %432 = arith.subf %419, %431 : vector<32x32xf32>
    %cst_202 = arith.constant 9.99999974E-6 : f32
    %433 = vector.broadcast %cst_202 : f32 to vector<32x1xf32>
    %434 = arith.addf %430, %433 : vector<32x1xf32>
    %435 = math.rsqrt %434 : vector<32x1xf32>
    %436 = vector.broadcast %435 : vector<32x1xf32> to vector<32x32xf32>
    %437 = arith.mulf %432, %436 : vector<32x32xf32>
    %c5_203 = arith.constant 5 : index
    %c0_204 = arith.constant 0 : index
    %438 = vector.load %arg2[%c5_203, %c0_204] : memref<16x128xf32, #tpu.memory_space<vmem>>, vector<1x32xf32>
    %439 = vector.broadcast %438 : vector<1x32xf32> to vector<32x32xf32>
    %440 = arith.mulf %437, %439 : vector<32x32xf32>
    %c6_205 = arith.constant 6 : index
    %c0_206 = arith.constant 0 : index
    %441 = vector.load %arg2[%c6_205, %c0_206] : memref<16x128xf32, #tpu.memory_space<vmem>>, vector<1x32xf32>
    %442 = vector.broadcast %441 : vector<1x32xf32> to vector<32x32xf32>
    %443 = arith.addf %440, %442 : vector<32x32xf32>
    %cst_207 = arith.constant 0.000000e+00 : f32
    %444 = vector.broadcast %cst_207 : f32 to vector<32x32xf32>
    %445 = arith.maximumf %443, %444 : vector<32x32xf32>
    %446 = arith.addf %360, %445 : vector<32x32xf32>
    %447 = arith.truncf %446 : vector<32x32xf32> to vector<32x32xbf16>
    %cst_208 = arith.constant dense<0.000000e+00> : vector<64x32xf32>
    %448 = tpu.matmul %2, %447, %cst_208 {dimension_numbers = #tpu.dot_dimension_numbers<[1], [0], [0], [1], [0, 0, 1, 1], [], []>} : vector<64x32xbf16>, vector<32x32xbf16>, vector<64x32xf32> -> vector<64x32xf32>
    %449 = arith.truncf %448 : vector<64x32xf32> to vector<64x32xbf16>
    %c7_209 = arith.constant 7 : index
    %c0_210 = arith.constant 0 : index
    %450 = vector.load %arg2[%c7_209, %c0_210] : memref<16x128xf32, #tpu.memory_space<vmem>>, vector<1x32xf32>
    %451 = vector.extract_strided_slice %449 {offsets = [0, 0], sizes = [32, 32], strides = [1, 1]} : vector<64x32xbf16> to vector<32x32xbf16>
    %c416_211 = arith.constant 416 : index
    %c0_212 = arith.constant 0 : index
    %452 = vector.load %arg1[%c416_211, %c0_212] : memref<640x128xbf16, #tpu.memory_space<vmem>>, vector<32x32xbf16>
    %cst_213 = arith.constant dense<0.000000e+00> : vector<32x32xf32>
    %453 = tpu.matmul %451, %452, %cst_213 {dimension_numbers = #tpu.dot_dimension_numbers<[1], [0], [0], [1], [0, 0, 1, 1], [], []>} : vector<32x32xbf16>, vector<32x32xbf16>, vector<32x32xf32> -> vector<32x32xf32>
    %454 = vector.broadcast %450 : vector<1x32xf32> to vector<32x32xf32>
    %455 = arith.addf %454, %453 : vector<32x32xf32>
    %456 = vector.extract_strided_slice %449 {offsets = [32, 0], sizes = [32, 32], strides = [1, 1]} : vector<64x32xbf16> to vector<32x32xbf16>
    %c448_214 = arith.constant 448 : index
    %c0_215 = arith.constant 0 : index
    %457 = vector.load %arg1[%c448_214, %c0_215] : memref<640x128xbf16, #tpu.memory_space<vmem>>, vector<32x32xbf16>
    %cst_216 = arith.constant dense<0.000000e+00> : vector<32x32xf32>
    %458 = tpu.matmul %456, %457, %cst_216 {dimension_numbers = #tpu.dot_dimension_numbers<[1], [0], [0], [1], [0, 0, 1, 1], [], []>} : vector<32x32xbf16>, vector<32x32xbf16>, vector<32x32xf32> -> vector<32x32xf32>
    %459 = arith.addf %455, %458 : vector<32x32xf32>
    %c480_217 = arith.constant 480 : index
    %c0_218 = arith.constant 0 : index
    %460 = vector.load %arg1[%c480_217, %c0_218] : memref<640x128xbf16, #tpu.memory_space<vmem>>, vector<32x32xbf16>
    %cst_219 = arith.constant dense<0.000000e+00> : vector<32x32xf32>
    %461 = tpu.matmul %447, %460, %cst_219 {dimension_numbers = #tpu.dot_dimension_numbers<[1], [0], [0], [1], [0, 0, 1, 1], [], []>} : vector<32x32xbf16>, vector<32x32xbf16>, vector<32x32xf32> -> vector<32x32xf32>
    %462 = arith.addf %459, %461 : vector<32x32xf32>
    %cst_220 = arith.constant dense<0.000000e+00> : vector<32xf32>
    %463 = vector.multi_reduction <add>, %462, %cst_220 [1] : vector<32x32xf32> to vector<32xf32>
    %464 = vector.shape_cast %463 : vector<32xf32> to vector<32x1xf32>
    %cst_221 = arith.constant 3.125000e-02 : f32
    %465 = vector.broadcast %cst_221 : f32 to vector<32x1xf32>
    %466 = arith.mulf %464, %465 : vector<32x1xf32>
    %467 = arith.mulf %462, %462 : vector<32x32xf32>
    %cst_222 = arith.constant dense<0.000000e+00> : vector<32xf32>
    %468 = vector.multi_reduction <add>, %467, %cst_222 [1] : vector<32x32xf32> to vector<32xf32>
    %469 = vector.shape_cast %468 : vector<32xf32> to vector<32x1xf32>
    %cst_223 = arith.constant 3.125000e-02 : f32
    %470 = vector.broadcast %cst_223 : f32 to vector<32x1xf32>
    %471 = arith.mulf %469, %470 : vector<32x1xf32>
    %472 = arith.mulf %466, %466 : vector<32x1xf32>
    %473 = arith.subf %471, %472 : vector<32x1xf32>
    %474 = vector.broadcast %466 : vector<32x1xf32> to vector<32x32xf32>
    %475 = arith.subf %462, %474 : vector<32x32xf32>
    %cst_224 = arith.constant 9.99999974E-6 : f32
    %476 = vector.broadcast %cst_224 : f32 to vector<32x1xf32>
    %477 = arith.addf %473, %476 : vector<32x1xf32>
    %478 = math.rsqrt %477 : vector<32x1xf32>
    %479 = vector.broadcast %478 : vector<32x1xf32> to vector<32x32xf32>
    %480 = arith.mulf %475, %479 : vector<32x32xf32>
    %c8_225 = arith.constant 8 : index
    %c0_226 = arith.constant 0 : index
    %481 = vector.load %arg2[%c8_225, %c0_226] : memref<16x128xf32, #tpu.memory_space<vmem>>, vector<1x32xf32>
    %482 = vector.broadcast %481 : vector<1x32xf32> to vector<32x32xf32>
    %483 = arith.mulf %480, %482 : vector<32x32xf32>
    %c9_227 = arith.constant 9 : index
    %c0_228 = arith.constant 0 : index
    %484 = vector.load %arg2[%c9_227, %c0_228] : memref<16x128xf32, #tpu.memory_space<vmem>>, vector<1x32xf32>
    %485 = vector.broadcast %484 : vector<1x32xf32> to vector<32x32xf32>
    %486 = arith.addf %483, %485 : vector<32x32xf32>
    %cst_229 = arith.constant 0.000000e+00 : f32
    %487 = vector.broadcast %cst_229 : f32 to vector<32x32xf32>
    %488 = arith.maximumf %486, %487 : vector<32x32xf32>
    %489 = arith.truncf %488 : vector<32x32xf32> to vector<32x32xbf16>
    %cst_230 = arith.constant dense<0.000000e+00> : vector<64x32xf32>
    %490 = tpu.matmul %2, %489, %cst_230 {dimension_numbers = #tpu.dot_dimension_numbers<[1], [0], [0], [1], [0, 0, 1, 1], [], []>} : vector<64x32xbf16>, vector<32x32xbf16>, vector<64x32xf32> -> vector<64x32xf32>
    %491 = arith.truncf %490 : vector<64x32xf32> to vector<64x32xbf16>
    %c10_231 = arith.constant 10 : index
    %c0_232 = arith.constant 0 : index
    %492 = vector.load %arg2[%c10_231, %c0_232] : memref<16x128xf32, #tpu.memory_space<vmem>>, vector<1x32xf32>
    %493 = vector.extract_strided_slice %491 {offsets = [0, 0], sizes = [32, 32], strides = [1, 1]} : vector<64x32xbf16> to vector<32x32xbf16>
    %c512_233 = arith.constant 512 : index
    %c0_234 = arith.constant 0 : index
    %494 = vector.load %arg1[%c512_233, %c0_234] : memref<640x128xbf16, #tpu.memory_space<vmem>>, vector<32x32xbf16>
    %cst_235 = arith.constant dense<0.000000e+00> : vector<32x32xf32>
    %495 = tpu.matmul %493, %494, %cst_235 {dimension_numbers = #tpu.dot_dimension_numbers<[1], [0], [0], [1], [0, 0, 1, 1], [], []>} : vector<32x32xbf16>, vector<32x32xbf16>, vector<32x32xf32> -> vector<32x32xf32>
    %496 = vector.broadcast %492 : vector<1x32xf32> to vector<32x32xf32>
    %497 = arith.addf %496, %495 : vector<32x32xf32>
    %498 = vector.extract_strided_slice %491 {offsets = [32, 0], sizes = [32, 32], strides = [1, 1]} : vector<64x32xbf16> to vector<32x32xbf16>
    %c544_236 = arith.constant 544 : index
    %c0_237 = arith.constant 0 : index
    %499 = vector.load %arg1[%c544_236, %c0_237] : memref<640x128xbf16, #tpu.memory_space<vmem>>, vector<32x32xbf16>
    %cst_238 = arith.constant dense<0.000000e+00> : vector<32x32xf32>
    %500 = tpu.matmul %498, %499, %cst_238 {dimension_numbers = #tpu.dot_dimension_numbers<[1], [0], [0], [1], [0, 0, 1, 1], [], []>} : vector<32x32xbf16>, vector<32x32xbf16>, vector<32x32xf32> -> vector<32x32xf32>
    %501 = arith.addf %497, %500 : vector<32x32xf32>
    %c576_239 = arith.constant 576 : index
    %c0_240 = arith.constant 0 : index
    %502 = vector.load %arg1[%c576_239, %c0_240] : memref<640x128xbf16, #tpu.memory_space<vmem>>, vector<32x32xbf16>
    %cst_241 = arith.constant dense<0.000000e+00> : vector<32x32xf32>
    %503 = tpu.matmul %489, %502, %cst_241 {dimension_numbers = #tpu.dot_dimension_numbers<[1], [0], [0], [1], [0, 0, 1, 1], [], []>} : vector<32x32xbf16>, vector<32x32xbf16>, vector<32x32xf32> -> vector<32x32xf32>
    %504 = arith.addf %501, %503 : vector<32x32xf32>
    %cst_242 = arith.constant dense<0.000000e+00> : vector<32xf32>
    %505 = vector.multi_reduction <add>, %504, %cst_242 [1] : vector<32x32xf32> to vector<32xf32>
    %506 = vector.shape_cast %505 : vector<32xf32> to vector<32x1xf32>
    %cst_243 = arith.constant 3.125000e-02 : f32
    %507 = vector.broadcast %cst_243 : f32 to vector<32x1xf32>
    %508 = arith.mulf %506, %507 : vector<32x1xf32>
    %509 = arith.mulf %504, %504 : vector<32x32xf32>
    %cst_244 = arith.constant dense<0.000000e+00> : vector<32xf32>
    %510 = vector.multi_reduction <add>, %509, %cst_244 [1] : vector<32x32xf32> to vector<32xf32>
    %511 = vector.shape_cast %510 : vector<32xf32> to vector<32x1xf32>
    %cst_245 = arith.constant 3.125000e-02 : f32
    %512 = vector.broadcast %cst_245 : f32 to vector<32x1xf32>
    %513 = arith.mulf %511, %512 : vector<32x1xf32>
    %514 = arith.mulf %508, %508 : vector<32x1xf32>
    %515 = arith.subf %513, %514 : vector<32x1xf32>
    %516 = vector.broadcast %508 : vector<32x1xf32> to vector<32x32xf32>
    %517 = arith.subf %504, %516 : vector<32x32xf32>
    %cst_246 = arith.constant 9.99999974E-6 : f32
    %518 = vector.broadcast %cst_246 : f32 to vector<32x1xf32>
    %519 = arith.addf %515, %518 : vector<32x1xf32>
    %520 = math.rsqrt %519 : vector<32x1xf32>
    %521 = vector.broadcast %520 : vector<32x1xf32> to vector<32x32xf32>
    %522 = arith.mulf %517, %521 : vector<32x32xf32>
    %c11_247 = arith.constant 11 : index
    %c0_248 = arith.constant 0 : index
    %523 = vector.load %arg2[%c11_247, %c0_248] : memref<16x128xf32, #tpu.memory_space<vmem>>, vector<1x32xf32>
    %524 = vector.broadcast %523 : vector<1x32xf32> to vector<32x32xf32>
    %525 = arith.mulf %522, %524 : vector<32x32xf32>
    %c12_249 = arith.constant 12 : index
    %c0_250 = arith.constant 0 : index
    %526 = vector.load %arg2[%c12_249, %c0_250] : memref<16x128xf32, #tpu.memory_space<vmem>>, vector<1x32xf32>
    %527 = vector.broadcast %526 : vector<1x32xf32> to vector<32x32xf32>
    %528 = arith.addf %525, %527 : vector<32x32xf32>
    %cst_251 = arith.constant 0.000000e+00 : f32
    %529 = vector.broadcast %cst_251 : f32 to vector<32x32xf32>
    %530 = arith.maximumf %528, %529 : vector<32x32xf32>
    %531 = arith.addf %446, %530 : vector<32x32xf32>
    %532 = arith.truncf %531 : vector<32x32xf32> to vector<32x32xbf16>
    %cst_252 = arith.constant dense<0.000000e+00> : vector<64x32xf32>
    %533 = tpu.matmul %1, %532, %cst_252 {dimension_numbers = #tpu.dot_dimension_numbers<[1], [0], [0], [1], [0, 0, 1, 1], [], []>} : vector<64x32xbf16>, vector<32x32xbf16>, vector<64x32xf32> -> vector<64x32xf32>
    %534 = arith.truncf %533 : vector<64x32xf32> to vector<64x32xbf16>
    %c1_253 = arith.constant 1 : index
    %c0_254 = arith.constant 0 : index
    %535 = vector.load %arg2[%c1_253, %c0_254] : memref<16x128xf32, #tpu.memory_space<vmem>>, vector<1x32xf32>
    %536 = vector.extract_strided_slice %534 {offsets = [0, 0], sizes = [32, 32], strides = [1, 1]} : vector<64x32xbf16> to vector<32x32xbf16>
    %c224_255 = arith.constant 224 : index
    %c0_256 = arith.constant 0 : index
    %537 = vector.load %arg1[%c224_255, %c0_256] : memref<640x128xbf16, #tpu.memory_space<vmem>>, vector<32x32xbf16>
    %cst_257 = arith.constant dense<0.000000e+00> : vector<32x32xf32>
    %538 = tpu.matmul %536, %537, %cst_257 {dimension_numbers = #tpu.dot_dimension_numbers<[1], [0], [0], [1], [0, 0, 1, 1], [], []>} : vector<32x32xbf16>, vector<32x32xbf16>, vector<32x32xf32> -> vector<32x32xf32>
    %539 = vector.broadcast %535 : vector<1x32xf32> to vector<32x32xf32>
    %540 = arith.addf %539, %538 : vector<32x32xf32>
    %541 = vector.extract_strided_slice %534 {offsets = [32, 0], sizes = [32, 32], strides = [1, 1]} : vector<64x32xbf16> to vector<32x32xbf16>
    %c256_258 = arith.constant 256 : index
    %c0_259 = arith.constant 0 : index
    %542 = vector.load %arg1[%c256_258, %c0_259] : memref<640x128xbf16, #tpu.memory_space<vmem>>, vector<32x32xbf16>
    %cst_260 = arith.constant dense<0.000000e+00> : vector<32x32xf32>
    %543 = tpu.matmul %541, %542, %cst_260 {dimension_numbers = #tpu.dot_dimension_numbers<[1], [0], [0], [1], [0, 0, 1, 1], [], []>} : vector<32x32xbf16>, vector<32x32xbf16>, vector<32x32xf32> -> vector<32x32xf32>
    %544 = arith.addf %540, %543 : vector<32x32xf32>
    %c288_261 = arith.constant 288 : index
    %c0_262 = arith.constant 0 : index
    %545 = vector.load %arg1[%c288_261, %c0_262] : memref<640x128xbf16, #tpu.memory_space<vmem>>, vector<32x32xbf16>
    %cst_263 = arith.constant dense<0.000000e+00> : vector<32x32xf32>
    %546 = tpu.matmul %532, %545, %cst_263 {dimension_numbers = #tpu.dot_dimension_numbers<[1], [0], [0], [1], [0, 0, 1, 1], [], []>} : vector<32x32xbf16>, vector<32x32xbf16>, vector<32x32xf32> -> vector<32x32xf32>
    %547 = arith.addf %544, %546 : vector<32x32xf32>
    %548 = arith.addf %547, %18 : vector<32x32xf32>
    %cst_264 = arith.constant dense<0.000000e+00> : vector<32xf32>
    %549 = vector.multi_reduction <add>, %548, %cst_264 [1] : vector<32x32xf32> to vector<32xf32>
    %550 = vector.shape_cast %549 : vector<32xf32> to vector<32x1xf32>
    %cst_265 = arith.constant 3.125000e-02 : f32
    %551 = vector.broadcast %cst_265 : f32 to vector<32x1xf32>
    %552 = arith.mulf %550, %551 : vector<32x1xf32>
    %553 = arith.mulf %548, %548 : vector<32x32xf32>
    %cst_266 = arith.constant dense<0.000000e+00> : vector<32xf32>
    %554 = vector.multi_reduction <add>, %553, %cst_266 [1] : vector<32x32xf32> to vector<32xf32>
    %555 = vector.shape_cast %554 : vector<32xf32> to vector<32x1xf32>
    %cst_267 = arith.constant 3.125000e-02 : f32
    %556 = vector.broadcast %cst_267 : f32 to vector<32x1xf32>
    %557 = arith.mulf %555, %556 : vector<32x1xf32>
    %558 = arith.mulf %552, %552 : vector<32x1xf32>
    %559 = arith.subf %557, %558 : vector<32x1xf32>
    %560 = vector.broadcast %552 : vector<32x1xf32> to vector<32x32xf32>
    %561 = arith.subf %548, %560 : vector<32x32xf32>
    %cst_268 = arith.constant 9.99999974E-6 : f32
    %562 = vector.broadcast %cst_268 : f32 to vector<32x1xf32>
    %563 = arith.addf %559, %562 : vector<32x1xf32>
    %564 = math.rsqrt %563 : vector<32x1xf32>
    %565 = vector.broadcast %564 : vector<32x1xf32> to vector<32x32xf32>
    %566 = arith.mulf %561, %565 : vector<32x32xf32>
    %c2_269 = arith.constant 2 : index
    %c0_270 = arith.constant 0 : index
    %567 = vector.load %arg2[%c2_269, %c0_270] : memref<16x128xf32, #tpu.memory_space<vmem>>, vector<1x32xf32>
    %568 = vector.broadcast %567 : vector<1x32xf32> to vector<32x32xf32>
    %569 = arith.mulf %566, %568 : vector<32x32xf32>
    %c3_271 = arith.constant 3 : index
    %c0_272 = arith.constant 0 : index
    %570 = vector.load %arg2[%c3_271, %c0_272] : memref<16x128xf32, #tpu.memory_space<vmem>>, vector<1x32xf32>
    %571 = vector.broadcast %570 : vector<1x32xf32> to vector<32x32xf32>
    %572 = arith.addf %569, %571 : vector<32x32xf32>
    %cst_273 = arith.constant 0.000000e+00 : f32
    %573 = vector.broadcast %cst_273 : f32 to vector<32x32xf32>
    %574 = arith.maximumf %572, %573 : vector<32x32xf32>
    %575 = arith.truncf %574 : vector<32x32xf32> to vector<32x32xbf16>
    %cst_274 = arith.constant dense<0.000000e+00> : vector<64x32xf32>
    %576 = tpu.matmul %1, %575, %cst_274 {dimension_numbers = #tpu.dot_dimension_numbers<[1], [0], [0], [1], [0, 0, 1, 1], [], []>} : vector<64x32xbf16>, vector<32x32xbf16>, vector<64x32xf32> -> vector<64x32xf32>
    %577 = arith.truncf %576 : vector<64x32xf32> to vector<64x32xbf16>
    %c4_275 = arith.constant 4 : index
    %c0_276 = arith.constant 0 : index
    %578 = vector.load %arg2[%c4_275, %c0_276] : memref<16x128xf32, #tpu.memory_space<vmem>>, vector<1x32xf32>
    %579 = vector.extract_strided_slice %577 {offsets = [0, 0], sizes = [32, 32], strides = [1, 1]} : vector<64x32xbf16> to vector<32x32xbf16>
    %c320_277 = arith.constant 320 : index
    %c0_278 = arith.constant 0 : index
    %580 = vector.load %arg1[%c320_277, %c0_278] : memref<640x128xbf16, #tpu.memory_space<vmem>>, vector<32x32xbf16>
    %cst_279 = arith.constant dense<0.000000e+00> : vector<32x32xf32>
    %581 = tpu.matmul %579, %580, %cst_279 {dimension_numbers = #tpu.dot_dimension_numbers<[1], [0], [0], [1], [0, 0, 1, 1], [], []>} : vector<32x32xbf16>, vector<32x32xbf16>, vector<32x32xf32> -> vector<32x32xf32>
    %582 = vector.broadcast %578 : vector<1x32xf32> to vector<32x32xf32>
    %583 = arith.addf %582, %581 : vector<32x32xf32>
    %584 = vector.extract_strided_slice %577 {offsets = [32, 0], sizes = [32, 32], strides = [1, 1]} : vector<64x32xbf16> to vector<32x32xbf16>
    %c352_280 = arith.constant 352 : index
    %c0_281 = arith.constant 0 : index
    %585 = vector.load %arg1[%c352_280, %c0_281] : memref<640x128xbf16, #tpu.memory_space<vmem>>, vector<32x32xbf16>
    %cst_282 = arith.constant dense<0.000000e+00> : vector<32x32xf32>
    %586 = tpu.matmul %584, %585, %cst_282 {dimension_numbers = #tpu.dot_dimension_numbers<[1], [0], [0], [1], [0, 0, 1, 1], [], []>} : vector<32x32xbf16>, vector<32x32xbf16>, vector<32x32xf32> -> vector<32x32xf32>
    %587 = arith.addf %583, %586 : vector<32x32xf32>
    %c384_283 = arith.constant 384 : index
    %c0_284 = arith.constant 0 : index
    %588 = vector.load %arg1[%c384_283, %c0_284] : memref<640x128xbf16, #tpu.memory_space<vmem>>, vector<32x32xbf16>
    %cst_285 = arith.constant dense<0.000000e+00> : vector<32x32xf32>
    %589 = tpu.matmul %575, %588, %cst_285 {dimension_numbers = #tpu.dot_dimension_numbers<[1], [0], [0], [1], [0, 0, 1, 1], [], []>} : vector<32x32xbf16>, vector<32x32xbf16>, vector<32x32xf32> -> vector<32x32xf32>
    %590 = arith.addf %587, %589 : vector<32x32xf32>
    %cst_286 = arith.constant dense<0.000000e+00> : vector<32xf32>
    %591 = vector.multi_reduction <add>, %590, %cst_286 [1] : vector<32x32xf32> to vector<32xf32>
    %592 = vector.shape_cast %591 : vector<32xf32> to vector<32x1xf32>
    %cst_287 = arith.constant 3.125000e-02 : f32
    %593 = vector.broadcast %cst_287 : f32 to vector<32x1xf32>
    %594 = arith.mulf %592, %593 : vector<32x1xf32>
    %595 = arith.mulf %590, %590 : vector<32x32xf32>
    %cst_288 = arith.constant dense<0.000000e+00> : vector<32xf32>
    %596 = vector.multi_reduction <add>, %595, %cst_288 [1] : vector<32x32xf32> to vector<32xf32>
    %597 = vector.shape_cast %596 : vector<32xf32> to vector<32x1xf32>
    %cst_289 = arith.constant 3.125000e-02 : f32
    %598 = vector.broadcast %cst_289 : f32 to vector<32x1xf32>
    %599 = arith.mulf %597, %598 : vector<32x1xf32>
    %600 = arith.mulf %594, %594 : vector<32x1xf32>
    %601 = arith.subf %599, %600 : vector<32x1xf32>
    %602 = vector.broadcast %594 : vector<32x1xf32> to vector<32x32xf32>
    %603 = arith.subf %590, %602 : vector<32x32xf32>
    %cst_290 = arith.constant 9.99999974E-6 : f32
    %604 = vector.broadcast %cst_290 : f32 to vector<32x1xf32>
    %605 = arith.addf %601, %604 : vector<32x1xf32>
    %606 = math.rsqrt %605 : vector<32x1xf32>
    %607 = vector.broadcast %606 : vector<32x1xf32> to vector<32x32xf32>
    %608 = arith.mulf %603, %607 : vector<32x32xf32>
    %c5_291 = arith.constant 5 : index
    %c0_292 = arith.constant 0 : index
    %609 = vector.load %arg2[%c5_291, %c0_292] : memref<16x128xf32, #tpu.memory_space<vmem>>, vector<1x32xf32>
    %610 = vector.broadcast %609 : vector<1x32xf32> to vector<32x32xf32>
    %611 = arith.mulf %608, %610 : vector<32x32xf32>
    %c6_293 = arith.constant 6 : index
    %c0_294 = arith.constant 0 : index
    %612 = vector.load %arg2[%c6_293, %c0_294] : memref<16x128xf32, #tpu.memory_space<vmem>>, vector<1x32xf32>
    %613 = vector.broadcast %612 : vector<1x32xf32> to vector<32x32xf32>
    %614 = arith.addf %611, %613 : vector<32x32xf32>
    %cst_295 = arith.constant 0.000000e+00 : f32
    %615 = vector.broadcast %cst_295 : f32 to vector<32x32xf32>
    %616 = arith.maximumf %614, %615 : vector<32x32xf32>
    %617 = arith.addf %531, %616 : vector<32x32xf32>
    %618 = arith.truncf %617 : vector<32x32xf32> to vector<32x32xbf16>
    %cst_296 = arith.constant dense<0.000000e+00> : vector<64x32xf32>
    %619 = tpu.matmul %2, %618, %cst_296 {dimension_numbers = #tpu.dot_dimension_numbers<[1], [0], [0], [1], [0, 0, 1, 1], [], []>} : vector<64x32xbf16>, vector<32x32xbf16>, vector<64x32xf32> -> vector<64x32xf32>
    %620 = arith.truncf %619 : vector<64x32xf32> to vector<64x32xbf16>
    %c7_297 = arith.constant 7 : index
    %c0_298 = arith.constant 0 : index
    %621 = vector.load %arg2[%c7_297, %c0_298] : memref<16x128xf32, #tpu.memory_space<vmem>>, vector<1x32xf32>
    %622 = vector.extract_strided_slice %620 {offsets = [0, 0], sizes = [32, 32], strides = [1, 1]} : vector<64x32xbf16> to vector<32x32xbf16>
    %c416_299 = arith.constant 416 : index
    %c0_300 = arith.constant 0 : index
    %623 = vector.load %arg1[%c416_299, %c0_300] : memref<640x128xbf16, #tpu.memory_space<vmem>>, vector<32x32xbf16>
    %cst_301 = arith.constant dense<0.000000e+00> : vector<32x32xf32>
    %624 = tpu.matmul %622, %623, %cst_301 {dimension_numbers = #tpu.dot_dimension_numbers<[1], [0], [0], [1], [0, 0, 1, 1], [], []>} : vector<32x32xbf16>, vector<32x32xbf16>, vector<32x32xf32> -> vector<32x32xf32>
    %625 = vector.broadcast %621 : vector<1x32xf32> to vector<32x32xf32>
    %626 = arith.addf %625, %624 : vector<32x32xf32>
    %627 = vector.extract_strided_slice %620 {offsets = [32, 0], sizes = [32, 32], strides = [1, 1]} : vector<64x32xbf16> to vector<32x32xbf16>
    %c448_302 = arith.constant 448 : index
    %c0_303 = arith.constant 0 : index
    %628 = vector.load %arg1[%c448_302, %c0_303] : memref<640x128xbf16, #tpu.memory_space<vmem>>, vector<32x32xbf16>
    %cst_304 = arith.constant dense<0.000000e+00> : vector<32x32xf32>
    %629 = tpu.matmul %627, %628, %cst_304 {dimension_numbers = #tpu.dot_dimension_numbers<[1], [0], [0], [1], [0, 0, 1, 1], [], []>} : vector<32x32xbf16>, vector<32x32xbf16>, vector<32x32xf32> -> vector<32x32xf32>
    %630 = arith.addf %626, %629 : vector<32x32xf32>
    %c480_305 = arith.constant 480 : index
    %c0_306 = arith.constant 0 : index
    %631 = vector.load %arg1[%c480_305, %c0_306] : memref<640x128xbf16, #tpu.memory_space<vmem>>, vector<32x32xbf16>
    %cst_307 = arith.constant dense<0.000000e+00> : vector<32x32xf32>
    %632 = tpu.matmul %618, %631, %cst_307 {dimension_numbers = #tpu.dot_dimension_numbers<[1], [0], [0], [1], [0, 0, 1, 1], [], []>} : vector<32x32xbf16>, vector<32x32xbf16>, vector<32x32xf32> -> vector<32x32xf32>
    %633 = arith.addf %630, %632 : vector<32x32xf32>
    %cst_308 = arith.constant dense<0.000000e+00> : vector<32xf32>
    %634 = vector.multi_reduction <add>, %633, %cst_308 [1] : vector<32x32xf32> to vector<32xf32>
    %635 = vector.shape_cast %634 : vector<32xf32> to vector<32x1xf32>
    %cst_309 = arith.constant 3.125000e-02 : f32
    %636 = vector.broadcast %cst_309 : f32 to vector<32x1xf32>
    %637 = arith.mulf %635, %636 : vector<32x1xf32>
    %638 = arith.mulf %633, %633 : vector<32x32xf32>
    %cst_310 = arith.constant dense<0.000000e+00> : vector<32xf32>
    %639 = vector.multi_reduction <add>, %638, %cst_310 [1] : vector<32x32xf32> to vector<32xf32>
    %640 = vector.shape_cast %639 : vector<32xf32> to vector<32x1xf32>
    %cst_311 = arith.constant 3.125000e-02 : f32
    %641 = vector.broadcast %cst_311 : f32 to vector<32x1xf32>
    %642 = arith.mulf %640, %641 : vector<32x1xf32>
    %643 = arith.mulf %637, %637 : vector<32x1xf32>
    %644 = arith.subf %642, %643 : vector<32x1xf32>
    %645 = vector.broadcast %637 : vector<32x1xf32> to vector<32x32xf32>
    %646 = arith.subf %633, %645 : vector<32x32xf32>
    %cst_312 = arith.constant 9.99999974E-6 : f32
    %647 = vector.broadcast %cst_312 : f32 to vector<32x1xf32>
    %648 = arith.addf %644, %647 : vector<32x1xf32>
    %649 = math.rsqrt %648 : vector<32x1xf32>
    %650 = vector.broadcast %649 : vector<32x1xf32> to vector<32x32xf32>
    %651 = arith.mulf %646, %650 : vector<32x32xf32>
    %c8_313 = arith.constant 8 : index
    %c0_314 = arith.constant 0 : index
    %652 = vector.load %arg2[%c8_313, %c0_314] : memref<16x128xf32, #tpu.memory_space<vmem>>, vector<1x32xf32>
    %653 = vector.broadcast %652 : vector<1x32xf32> to vector<32x32xf32>
    %654 = arith.mulf %651, %653 : vector<32x32xf32>
    %c9_315 = arith.constant 9 : index
    %c0_316 = arith.constant 0 : index
    %655 = vector.load %arg2[%c9_315, %c0_316] : memref<16x128xf32, #tpu.memory_space<vmem>>, vector<1x32xf32>
    %656 = vector.broadcast %655 : vector<1x32xf32> to vector<32x32xf32>
    %657 = arith.addf %654, %656 : vector<32x32xf32>
    %cst_317 = arith.constant 0.000000e+00 : f32
    %658 = vector.broadcast %cst_317 : f32 to vector<32x32xf32>
    %659 = arith.maximumf %657, %658 : vector<32x32xf32>
    %660 = arith.truncf %659 : vector<32x32xf32> to vector<32x32xbf16>
    %cst_318 = arith.constant dense<0.000000e+00> : vector<64x32xf32>
    %661 = tpu.matmul %2, %660, %cst_318 {dimension_numbers = #tpu.dot_dimension_numbers<[1], [0], [0], [1], [0, 0, 1, 1], [], []>} : vector<64x32xbf16>, vector<32x32xbf16>, vector<64x32xf32> -> vector<64x32xf32>
    %662 = arith.truncf %661 : vector<64x32xf32> to vector<64x32xbf16>
    %c10_319 = arith.constant 10 : index
    %c0_320 = arith.constant 0 : index
    %663 = vector.load %arg2[%c10_319, %c0_320] : memref<16x128xf32, #tpu.memory_space<vmem>>, vector<1x32xf32>
    %664 = vector.extract_strided_slice %662 {offsets = [0, 0], sizes = [32, 32], strides = [1, 1]} : vector<64x32xbf16> to vector<32x32xbf16>
    %c512_321 = arith.constant 512 : index
    %c0_322 = arith.constant 0 : index
    %665 = vector.load %arg1[%c512_321, %c0_322] : memref<640x128xbf16, #tpu.memory_space<vmem>>, vector<32x32xbf16>
    %cst_323 = arith.constant dense<0.000000e+00> : vector<32x32xf32>
    %666 = tpu.matmul %664, %665, %cst_323 {dimension_numbers = #tpu.dot_dimension_numbers<[1], [0], [0], [1], [0, 0, 1, 1], [], []>} : vector<32x32xbf16>, vector<32x32xbf16>, vector<32x32xf32> -> vector<32x32xf32>
    %667 = vector.broadcast %663 : vector<1x32xf32> to vector<32x32xf32>
    %668 = arith.addf %667, %666 : vector<32x32xf32>
    %669 = vector.extract_strided_slice %662 {offsets = [32, 0], sizes = [32, 32], strides = [1, 1]} : vector<64x32xbf16> to vector<32x32xbf16>
    %c544_324 = arith.constant 544 : index
    %c0_325 = arith.constant 0 : index
    %670 = vector.load %arg1[%c544_324, %c0_325] : memref<640x128xbf16, #tpu.memory_space<vmem>>, vector<32x32xbf16>
    %cst_326 = arith.constant dense<0.000000e+00> : vector<32x32xf32>
    %671 = tpu.matmul %669, %670, %cst_326 {dimension_numbers = #tpu.dot_dimension_numbers<[1], [0], [0], [1], [0, 0, 1, 1], [], []>} : vector<32x32xbf16>, vector<32x32xbf16>, vector<32x32xf32> -> vector<32x32xf32>
    %672 = arith.addf %668, %671 : vector<32x32xf32>
    %c576_327 = arith.constant 576 : index
    %c0_328 = arith.constant 0 : index
    %673 = vector.load %arg1[%c576_327, %c0_328] : memref<640x128xbf16, #tpu.memory_space<vmem>>, vector<32x32xbf16>
    %cst_329 = arith.constant dense<0.000000e+00> : vector<32x32xf32>
    %674 = tpu.matmul %660, %673, %cst_329 {dimension_numbers = #tpu.dot_dimension_numbers<[1], [0], [0], [1], [0, 0, 1, 1], [], []>} : vector<32x32xbf16>, vector<32x32xbf16>, vector<32x32xf32> -> vector<32x32xf32>
    %675 = arith.addf %672, %674 : vector<32x32xf32>
    %cst_330 = arith.constant dense<0.000000e+00> : vector<32xf32>
    %676 = vector.multi_reduction <add>, %675, %cst_330 [1] : vector<32x32xf32> to vector<32xf32>
    %677 = vector.shape_cast %676 : vector<32xf32> to vector<32x1xf32>
    %cst_331 = arith.constant 3.125000e-02 : f32
    %678 = vector.broadcast %cst_331 : f32 to vector<32x1xf32>
    %679 = arith.mulf %677, %678 : vector<32x1xf32>
    %680 = arith.mulf %675, %675 : vector<32x32xf32>
    %cst_332 = arith.constant dense<0.000000e+00> : vector<32xf32>
    %681 = vector.multi_reduction <add>, %680, %cst_332 [1] : vector<32x32xf32> to vector<32xf32>
    %682 = vector.shape_cast %681 : vector<32xf32> to vector<32x1xf32>
    %cst_333 = arith.constant 3.125000e-02 : f32
    %683 = vector.broadcast %cst_333 : f32 to vector<32x1xf32>
    %684 = arith.mulf %682, %683 : vector<32x1xf32>
    %685 = arith.mulf %679, %679 : vector<32x1xf32>
    %686 = arith.subf %684, %685 : vector<32x1xf32>
    %687 = vector.broadcast %679 : vector<32x1xf32> to vector<32x32xf32>
    %688 = arith.subf %675, %687 : vector<32x32xf32>
    %cst_334 = arith.constant 9.99999974E-6 : f32
    %689 = vector.broadcast %cst_334 : f32 to vector<32x1xf32>
    %690 = arith.addf %686, %689 : vector<32x1xf32>
    %691 = math.rsqrt %690 : vector<32x1xf32>
    %692 = vector.broadcast %691 : vector<32x1xf32> to vector<32x32xf32>
    %693 = arith.mulf %688, %692 : vector<32x32xf32>
    %c11_335 = arith.constant 11 : index
    %c0_336 = arith.constant 0 : index
    %694 = vector.load %arg2[%c11_335, %c0_336] : memref<16x128xf32, #tpu.memory_space<vmem>>, vector<1x32xf32>
    %695 = vector.broadcast %694 : vector<1x32xf32> to vector<32x32xf32>
    %696 = arith.mulf %693, %695 : vector<32x32xf32>
    %c12_337 = arith.constant 12 : index
    %c0_338 = arith.constant 0 : index
    %697 = vector.load %arg2[%c12_337, %c0_338] : memref<16x128xf32, #tpu.memory_space<vmem>>, vector<1x32xf32>
    %698 = vector.broadcast %697 : vector<1x32xf32> to vector<32x32xf32>
    %699 = arith.addf %696, %698 : vector<32x32xf32>
    %cst_339 = arith.constant 0.000000e+00 : f32
    %700 = vector.broadcast %cst_339 : f32 to vector<32x32xf32>
    %701 = arith.maximumf %699, %700 : vector<32x32xf32>
    %702 = arith.addf %617, %701 : vector<32x32xf32>
    %703 = arith.truncf %702 : vector<32x32xf32> to vector<32x32xbf16>
    %cst_340 = arith.constant dense<0.000000e+00> : vector<64x32xf32>
    %704 = tpu.matmul %1, %703, %cst_340 {dimension_numbers = #tpu.dot_dimension_numbers<[1], [0], [0], [1], [0, 0, 1, 1], [], []>} : vector<64x32xbf16>, vector<32x32xbf16>, vector<64x32xf32> -> vector<64x32xf32>
    %705 = arith.truncf %704 : vector<64x32xf32> to vector<64x32xbf16>
    %c1_341 = arith.constant 1 : index
    %c0_342 = arith.constant 0 : index
    %706 = vector.load %arg2[%c1_341, %c0_342] : memref<16x128xf32, #tpu.memory_space<vmem>>, vector<1x32xf32>
    %707 = vector.extract_strided_slice %705 {offsets = [0, 0], sizes = [32, 32], strides = [1, 1]} : vector<64x32xbf16> to vector<32x32xbf16>
    %c224_343 = arith.constant 224 : index
    %c0_344 = arith.constant 0 : index
    %708 = vector.load %arg1[%c224_343, %c0_344] : memref<640x128xbf16, #tpu.memory_space<vmem>>, vector<32x32xbf16>
    %cst_345 = arith.constant dense<0.000000e+00> : vector<32x32xf32>
    %709 = tpu.matmul %707, %708, %cst_345 {dimension_numbers = #tpu.dot_dimension_numbers<[1], [0], [0], [1], [0, 0, 1, 1], [], []>} : vector<32x32xbf16>, vector<32x32xbf16>, vector<32x32xf32> -> vector<32x32xf32>
    %710 = vector.broadcast %706 : vector<1x32xf32> to vector<32x32xf32>
    %711 = arith.addf %710, %709 : vector<32x32xf32>
    %712 = vector.extract_strided_slice %705 {offsets = [32, 0], sizes = [32, 32], strides = [1, 1]} : vector<64x32xbf16> to vector<32x32xbf16>
    %c256_346 = arith.constant 256 : index
    %c0_347 = arith.constant 0 : index
    %713 = vector.load %arg1[%c256_346, %c0_347] : memref<640x128xbf16, #tpu.memory_space<vmem>>, vector<32x32xbf16>
    %cst_348 = arith.constant dense<0.000000e+00> : vector<32x32xf32>
    %714 = tpu.matmul %712, %713, %cst_348 {dimension_numbers = #tpu.dot_dimension_numbers<[1], [0], [0], [1], [0, 0, 1, 1], [], []>} : vector<32x32xbf16>, vector<32x32xbf16>, vector<32x32xf32> -> vector<32x32xf32>
    %715 = arith.addf %711, %714 : vector<32x32xf32>
    %c288_349 = arith.constant 288 : index
    %c0_350 = arith.constant 0 : index
    %716 = vector.load %arg1[%c288_349, %c0_350] : memref<640x128xbf16, #tpu.memory_space<vmem>>, vector<32x32xbf16>
    %cst_351 = arith.constant dense<0.000000e+00> : vector<32x32xf32>
    %717 = tpu.matmul %703, %716, %cst_351 {dimension_numbers = #tpu.dot_dimension_numbers<[1], [0], [0], [1], [0, 0, 1, 1], [], []>} : vector<32x32xbf16>, vector<32x32xbf16>, vector<32x32xf32> -> vector<32x32xf32>
    %718 = arith.addf %715, %717 : vector<32x32xf32>
    %719 = arith.addf %718, %18 : vector<32x32xf32>
    %cst_352 = arith.constant dense<0.000000e+00> : vector<32xf32>
    %720 = vector.multi_reduction <add>, %719, %cst_352 [1] : vector<32x32xf32> to vector<32xf32>
    %721 = vector.shape_cast %720 : vector<32xf32> to vector<32x1xf32>
    %cst_353 = arith.constant 3.125000e-02 : f32
    %722 = vector.broadcast %cst_353 : f32 to vector<32x1xf32>
    %723 = arith.mulf %721, %722 : vector<32x1xf32>
    %724 = arith.mulf %719, %719 : vector<32x32xf32>
    %cst_354 = arith.constant dense<0.000000e+00> : vector<32xf32>
    %725 = vector.multi_reduction <add>, %724, %cst_354 [1] : vector<32x32xf32> to vector<32xf32>
    %726 = vector.shape_cast %725 : vector<32xf32> to vector<32x1xf32>
    %cst_355 = arith.constant 3.125000e-02 : f32
    %727 = vector.broadcast %cst_355 : f32 to vector<32x1xf32>
    %728 = arith.mulf %726, %727 : vector<32x1xf32>
    %729 = arith.mulf %723, %723 : vector<32x1xf32>
    %730 = arith.subf %728, %729 : vector<32x1xf32>
    %731 = vector.broadcast %723 : vector<32x1xf32> to vector<32x32xf32>
    %732 = arith.subf %719, %731 : vector<32x32xf32>
    %cst_356 = arith.constant 9.99999974E-6 : f32
    %733 = vector.broadcast %cst_356 : f32 to vector<32x1xf32>
    %734 = arith.addf %730, %733 : vector<32x1xf32>
    %735 = math.rsqrt %734 : vector<32x1xf32>
    %736 = vector.broadcast %735 : vector<32x1xf32> to vector<32x32xf32>
    %737 = arith.mulf %732, %736 : vector<32x32xf32>
    %c2_357 = arith.constant 2 : index
    %c0_358 = arith.constant 0 : index
    %738 = vector.load %arg2[%c2_357, %c0_358] : memref<16x128xf32, #tpu.memory_space<vmem>>, vector<1x32xf32>
    %739 = vector.broadcast %738 : vector<1x32xf32> to vector<32x32xf32>
    %740 = arith.mulf %737, %739 : vector<32x32xf32>
    %c3_359 = arith.constant 3 : index
    %c0_360 = arith.constant 0 : index
    %741 = vector.load %arg2[%c3_359, %c0_360] : memref<16x128xf32, #tpu.memory_space<vmem>>, vector<1x32xf32>
    %742 = vector.broadcast %741 : vector<1x32xf32> to vector<32x32xf32>
    %743 = arith.addf %740, %742 : vector<32x32xf32>
    %cst_361 = arith.constant 0.000000e+00 : f32
    %744 = vector.broadcast %cst_361 : f32 to vector<32x32xf32>
    %745 = arith.maximumf %743, %744 : vector<32x32xf32>
    %746 = arith.truncf %745 : vector<32x32xf32> to vector<32x32xbf16>
    %cst_362 = arith.constant dense<0.000000e+00> : vector<64x32xf32>
    %747 = tpu.matmul %1, %746, %cst_362 {dimension_numbers = #tpu.dot_dimension_numbers<[1], [0], [0], [1], [0, 0, 1, 1], [], []>} : vector<64x32xbf16>, vector<32x32xbf16>, vector<64x32xf32> -> vector<64x32xf32>
    %748 = arith.truncf %747 : vector<64x32xf32> to vector<64x32xbf16>
    %c4_363 = arith.constant 4 : index
    %c0_364 = arith.constant 0 : index
    %749 = vector.load %arg2[%c4_363, %c0_364] : memref<16x128xf32, #tpu.memory_space<vmem>>, vector<1x32xf32>
    %750 = vector.extract_strided_slice %748 {offsets = [0, 0], sizes = [32, 32], strides = [1, 1]} : vector<64x32xbf16> to vector<32x32xbf16>
    %c320_365 = arith.constant 320 : index
    %c0_366 = arith.constant 0 : index
    %751 = vector.load %arg1[%c320_365, %c0_366] : memref<640x128xbf16, #tpu.memory_space<vmem>>, vector<32x32xbf16>
    %cst_367 = arith.constant dense<0.000000e+00> : vector<32x32xf32>
    %752 = tpu.matmul %750, %751, %cst_367 {dimension_numbers = #tpu.dot_dimension_numbers<[1], [0], [0], [1], [0, 0, 1, 1], [], []>} : vector<32x32xbf16>, vector<32x32xbf16>, vector<32x32xf32> -> vector<32x32xf32>
    %753 = vector.broadcast %749 : vector<1x32xf32> to vector<32x32xf32>
    %754 = arith.addf %753, %752 : vector<32x32xf32>
    %755 = vector.extract_strided_slice %748 {offsets = [32, 0], sizes = [32, 32], strides = [1, 1]} : vector<64x32xbf16> to vector<32x32xbf16>
    %c352_368 = arith.constant 352 : index
    %c0_369 = arith.constant 0 : index
    %756 = vector.load %arg1[%c352_368, %c0_369] : memref<640x128xbf16, #tpu.memory_space<vmem>>, vector<32x32xbf16>
    %cst_370 = arith.constant dense<0.000000e+00> : vector<32x32xf32>
    %757 = tpu.matmul %755, %756, %cst_370 {dimension_numbers = #tpu.dot_dimension_numbers<[1], [0], [0], [1], [0, 0, 1, 1], [], []>} : vector<32x32xbf16>, vector<32x32xbf16>, vector<32x32xf32> -> vector<32x32xf32>
    %758 = arith.addf %754, %757 : vector<32x32xf32>
    %c384_371 = arith.constant 384 : index
    %c0_372 = arith.constant 0 : index
    %759 = vector.load %arg1[%c384_371, %c0_372] : memref<640x128xbf16, #tpu.memory_space<vmem>>, vector<32x32xbf16>
    %cst_373 = arith.constant dense<0.000000e+00> : vector<32x32xf32>
    %760 = tpu.matmul %746, %759, %cst_373 {dimension_numbers = #tpu.dot_dimension_numbers<[1], [0], [0], [1], [0, 0, 1, 1], [], []>} : vector<32x32xbf16>, vector<32x32xbf16>, vector<32x32xf32> -> vector<32x32xf32>
    %761 = arith.addf %758, %760 : vector<32x32xf32>
    %cst_374 = arith.constant dense<0.000000e+00> : vector<32xf32>
    %762 = vector.multi_reduction <add>, %761, %cst_374 [1] : vector<32x32xf32> to vector<32xf32>
    %763 = vector.shape_cast %762 : vector<32xf32> to vector<32x1xf32>
    %cst_375 = arith.constant 3.125000e-02 : f32
    %764 = vector.broadcast %cst_375 : f32 to vector<32x1xf32>
    %765 = arith.mulf %763, %764 : vector<32x1xf32>
    %766 = arith.mulf %761, %761 : vector<32x32xf32>
    %cst_376 = arith.constant dense<0.000000e+00> : vector<32xf32>
    %767 = vector.multi_reduction <add>, %766, %cst_376 [1] : vector<32x32xf32> to vector<32xf32>
    %768 = vector.shape_cast %767 : vector<32xf32> to vector<32x1xf32>
    %cst_377 = arith.constant 3.125000e-02 : f32
    %769 = vector.broadcast %cst_377 : f32 to vector<32x1xf32>
    %770 = arith.mulf %768, %769 : vector<32x1xf32>
    %771 = arith.mulf %765, %765 : vector<32x1xf32>
    %772 = arith.subf %770, %771 : vector<32x1xf32>
    %773 = vector.broadcast %765 : vector<32x1xf32> to vector<32x32xf32>
    %774 = arith.subf %761, %773 : vector<32x32xf32>
    %cst_378 = arith.constant 9.99999974E-6 : f32
    %775 = vector.broadcast %cst_378 : f32 to vector<32x1xf32>
    %776 = arith.addf %772, %775 : vector<32x1xf32>
    %777 = math.rsqrt %776 : vector<32x1xf32>
    %778 = vector.broadcast %777 : vector<32x1xf32> to vector<32x32xf32>
    %779 = arith.mulf %774, %778 : vector<32x32xf32>
    %c5_379 = arith.constant 5 : index
    %c0_380 = arith.constant 0 : index
    %780 = vector.load %arg2[%c5_379, %c0_380] : memref<16x128xf32, #tpu.memory_space<vmem>>, vector<1x32xf32>
    %781 = vector.broadcast %780 : vector<1x32xf32> to vector<32x32xf32>
    %782 = arith.mulf %779, %781 : vector<32x32xf32>
    %c6_381 = arith.constant 6 : index
    %c0_382 = arith.constant 0 : index
    %783 = vector.load %arg2[%c6_381, %c0_382] : memref<16x128xf32, #tpu.memory_space<vmem>>, vector<1x32xf32>
    %784 = vector.broadcast %783 : vector<1x32xf32> to vector<32x32xf32>
    %785 = arith.addf %782, %784 : vector<32x32xf32>
    %cst_383 = arith.constant 0.000000e+00 : f32
    %786 = vector.broadcast %cst_383 : f32 to vector<32x32xf32>
    %787 = arith.maximumf %785, %786 : vector<32x32xf32>
    %788 = arith.addf %702, %787 : vector<32x32xf32>
    %789 = arith.truncf %788 : vector<32x32xf32> to vector<32x32xbf16>
    %cst_384 = arith.constant dense<0.000000e+00> : vector<64x32xf32>
    %790 = tpu.matmul %2, %789, %cst_384 {dimension_numbers = #tpu.dot_dimension_numbers<[1], [0], [0], [1], [0, 0, 1, 1], [], []>} : vector<64x32xbf16>, vector<32x32xbf16>, vector<64x32xf32> -> vector<64x32xf32>
    %791 = arith.truncf %790 : vector<64x32xf32> to vector<64x32xbf16>
    %c7_385 = arith.constant 7 : index
    %c0_386 = arith.constant 0 : index
    %792 = vector.load %arg2[%c7_385, %c0_386] : memref<16x128xf32, #tpu.memory_space<vmem>>, vector<1x32xf32>
    %793 = vector.extract_strided_slice %791 {offsets = [0, 0], sizes = [32, 32], strides = [1, 1]} : vector<64x32xbf16> to vector<32x32xbf16>
    %c416_387 = arith.constant 416 : index
    %c0_388 = arith.constant 0 : index
    %794 = vector.load %arg1[%c416_387, %c0_388] : memref<640x128xbf16, #tpu.memory_space<vmem>>, vector<32x32xbf16>
    %cst_389 = arith.constant dense<0.000000e+00> : vector<32x32xf32>
    %795 = tpu.matmul %793, %794, %cst_389 {dimension_numbers = #tpu.dot_dimension_numbers<[1], [0], [0], [1], [0, 0, 1, 1], [], []>} : vector<32x32xbf16>, vector<32x32xbf16>, vector<32x32xf32> -> vector<32x32xf32>
    %796 = vector.broadcast %792 : vector<1x32xf32> to vector<32x32xf32>
    %797 = arith.addf %796, %795 : vector<32x32xf32>
    %798 = vector.extract_strided_slice %791 {offsets = [32, 0], sizes = [32, 32], strides = [1, 1]} : vector<64x32xbf16> to vector<32x32xbf16>
    %c448_390 = arith.constant 448 : index
    %c0_391 = arith.constant 0 : index
    %799 = vector.load %arg1[%c448_390, %c0_391] : memref<640x128xbf16, #tpu.memory_space<vmem>>, vector<32x32xbf16>
    %cst_392 = arith.constant dense<0.000000e+00> : vector<32x32xf32>
    %800 = tpu.matmul %798, %799, %cst_392 {dimension_numbers = #tpu.dot_dimension_numbers<[1], [0], [0], [1], [0, 0, 1, 1], [], []>} : vector<32x32xbf16>, vector<32x32xbf16>, vector<32x32xf32> -> vector<32x32xf32>
    %801 = arith.addf %797, %800 : vector<32x32xf32>
    %c480_393 = arith.constant 480 : index
    %c0_394 = arith.constant 0 : index
    %802 = vector.load %arg1[%c480_393, %c0_394] : memref<640x128xbf16, #tpu.memory_space<vmem>>, vector<32x32xbf16>
    %cst_395 = arith.constant dense<0.000000e+00> : vector<32x32xf32>
    %803 = tpu.matmul %789, %802, %cst_395 {dimension_numbers = #tpu.dot_dimension_numbers<[1], [0], [0], [1], [0, 0, 1, 1], [], []>} : vector<32x32xbf16>, vector<32x32xbf16>, vector<32x32xf32> -> vector<32x32xf32>
    %804 = arith.addf %801, %803 : vector<32x32xf32>
    %cst_396 = arith.constant dense<0.000000e+00> : vector<32xf32>
    %805 = vector.multi_reduction <add>, %804, %cst_396 [1] : vector<32x32xf32> to vector<32xf32>
    %806 = vector.shape_cast %805 : vector<32xf32> to vector<32x1xf32>
    %cst_397 = arith.constant 3.125000e-02 : f32
    %807 = vector.broadcast %cst_397 : f32 to vector<32x1xf32>
    %808 = arith.mulf %806, %807 : vector<32x1xf32>
    %809 = arith.mulf %804, %804 : vector<32x32xf32>
    %cst_398 = arith.constant dense<0.000000e+00> : vector<32xf32>
    %810 = vector.multi_reduction <add>, %809, %cst_398 [1] : vector<32x32xf32> to vector<32xf32>
    %811 = vector.shape_cast %810 : vector<32xf32> to vector<32x1xf32>
    %cst_399 = arith.constant 3.125000e-02 : f32
    %812 = vector.broadcast %cst_399 : f32 to vector<32x1xf32>
    %813 = arith.mulf %811, %812 : vector<32x1xf32>
    %814 = arith.mulf %808, %808 : vector<32x1xf32>
    %815 = arith.subf %813, %814 : vector<32x1xf32>
    %816 = vector.broadcast %808 : vector<32x1xf32> to vector<32x32xf32>
    %817 = arith.subf %804, %816 : vector<32x32xf32>
    %cst_400 = arith.constant 9.99999974E-6 : f32
    %818 = vector.broadcast %cst_400 : f32 to vector<32x1xf32>
    %819 = arith.addf %815, %818 : vector<32x1xf32>
    %820 = math.rsqrt %819 : vector<32x1xf32>
    %821 = vector.broadcast %820 : vector<32x1xf32> to vector<32x32xf32>
    %822 = arith.mulf %817, %821 : vector<32x32xf32>
    %c8_401 = arith.constant 8 : index
    %c0_402 = arith.constant 0 : index
    %823 = vector.load %arg2[%c8_401, %c0_402] : memref<16x128xf32, #tpu.memory_space<vmem>>, vector<1x32xf32>
    %824 = vector.broadcast %823 : vector<1x32xf32> to vector<32x32xf32>
    %825 = arith.mulf %822, %824 : vector<32x32xf32>
    %c9_403 = arith.constant 9 : index
    %c0_404 = arith.constant 0 : index
    %826 = vector.load %arg2[%c9_403, %c0_404] : memref<16x128xf32, #tpu.memory_space<vmem>>, vector<1x32xf32>
    %827 = vector.broadcast %826 : vector<1x32xf32> to vector<32x32xf32>
    %828 = arith.addf %825, %827 : vector<32x32xf32>
    %cst_405 = arith.constant 0.000000e+00 : f32
    %829 = vector.broadcast %cst_405 : f32 to vector<32x32xf32>
    %830 = arith.maximumf %828, %829 : vector<32x32xf32>
    %831 = arith.truncf %830 : vector<32x32xf32> to vector<32x32xbf16>
    %cst_406 = arith.constant dense<0.000000e+00> : vector<64x32xf32>
    %832 = tpu.matmul %2, %831, %cst_406 {dimension_numbers = #tpu.dot_dimension_numbers<[1], [0], [0], [1], [0, 0, 1, 1], [], []>} : vector<64x32xbf16>, vector<32x32xbf16>, vector<64x32xf32> -> vector<64x32xf32>
    %833 = arith.truncf %832 : vector<64x32xf32> to vector<64x32xbf16>
    %c10_407 = arith.constant 10 : index
    %c0_408 = arith.constant 0 : index
    %834 = vector.load %arg2[%c10_407, %c0_408] : memref<16x128xf32, #tpu.memory_space<vmem>>, vector<1x32xf32>
    %835 = vector.extract_strided_slice %833 {offsets = [0, 0], sizes = [32, 32], strides = [1, 1]} : vector<64x32xbf16> to vector<32x32xbf16>
    %c512_409 = arith.constant 512 : index
    %c0_410 = arith.constant 0 : index
    %836 = vector.load %arg1[%c512_409, %c0_410] : memref<640x128xbf16, #tpu.memory_space<vmem>>, vector<32x32xbf16>
    %cst_411 = arith.constant dense<0.000000e+00> : vector<32x32xf32>
    %837 = tpu.matmul %835, %836, %cst_411 {dimension_numbers = #tpu.dot_dimension_numbers<[1], [0], [0], [1], [0, 0, 1, 1], [], []>} : vector<32x32xbf16>, vector<32x32xbf16>, vector<32x32xf32> -> vector<32x32xf32>
    %838 = vector.broadcast %834 : vector<1x32xf32> to vector<32x32xf32>
    %839 = arith.addf %838, %837 : vector<32x32xf32>
    %840 = vector.extract_strided_slice %833 {offsets = [32, 0], sizes = [32, 32], strides = [1, 1]} : vector<64x32xbf16> to vector<32x32xbf16>
    %c544_412 = arith.constant 544 : index
    %c0_413 = arith.constant 0 : index
    %841 = vector.load %arg1[%c544_412, %c0_413] : memref<640x128xbf16, #tpu.memory_space<vmem>>, vector<32x32xbf16>
    %cst_414 = arith.constant dense<0.000000e+00> : vector<32x32xf32>
    %842 = tpu.matmul %840, %841, %cst_414 {dimension_numbers = #tpu.dot_dimension_numbers<[1], [0], [0], [1], [0, 0, 1, 1], [], []>} : vector<32x32xbf16>, vector<32x32xbf16>, vector<32x32xf32> -> vector<32x32xf32>
    %843 = arith.addf %839, %842 : vector<32x32xf32>
    %c576_415 = arith.constant 576 : index
    %c0_416 = arith.constant 0 : index
    %844 = vector.load %arg1[%c576_415, %c0_416] : memref<640x128xbf16, #tpu.memory_space<vmem>>, vector<32x32xbf16>
    %cst_417 = arith.constant dense<0.000000e+00> : vector<32x32xf32>
    %845 = tpu.matmul %831, %844, %cst_417 {dimension_numbers = #tpu.dot_dimension_numbers<[1], [0], [0], [1], [0, 0, 1, 1], [], []>} : vector<32x32xbf16>, vector<32x32xbf16>, vector<32x32xf32> -> vector<32x32xf32>
    %846 = arith.addf %843, %845 : vector<32x32xf32>
    %cst_418 = arith.constant dense<0.000000e+00> : vector<32xf32>
    %847 = vector.multi_reduction <add>, %846, %cst_418 [1] : vector<32x32xf32> to vector<32xf32>
    %848 = vector.shape_cast %847 : vector<32xf32> to vector<32x1xf32>
    %cst_419 = arith.constant 3.125000e-02 : f32
    %849 = vector.broadcast %cst_419 : f32 to vector<32x1xf32>
    %850 = arith.mulf %848, %849 : vector<32x1xf32>
    %851 = arith.mulf %846, %846 : vector<32x32xf32>
    %cst_420 = arith.constant dense<0.000000e+00> : vector<32xf32>
    %852 = vector.multi_reduction <add>, %851, %cst_420 [1] : vector<32x32xf32> to vector<32xf32>
    %853 = vector.shape_cast %852 : vector<32xf32> to vector<32x1xf32>
    %cst_421 = arith.constant 3.125000e-02 : f32
    %854 = vector.broadcast %cst_421 : f32 to vector<32x1xf32>
    %855 = arith.mulf %853, %854 : vector<32x1xf32>
    %856 = arith.mulf %850, %850 : vector<32x1xf32>
    %857 = arith.subf %855, %856 : vector<32x1xf32>
    %858 = vector.broadcast %850 : vector<32x1xf32> to vector<32x32xf32>
    %859 = arith.subf %846, %858 : vector<32x32xf32>
    %cst_422 = arith.constant 9.99999974E-6 : f32
    %860 = vector.broadcast %cst_422 : f32 to vector<32x1xf32>
    %861 = arith.addf %857, %860 : vector<32x1xf32>
    %862 = math.rsqrt %861 : vector<32x1xf32>
    %863 = vector.broadcast %862 : vector<32x1xf32> to vector<32x32xf32>
    %864 = arith.mulf %859, %863 : vector<32x32xf32>
    %c11_423 = arith.constant 11 : index
    %c0_424 = arith.constant 0 : index
    %865 = vector.load %arg2[%c11_423, %c0_424] : memref<16x128xf32, #tpu.memory_space<vmem>>, vector<1x32xf32>
    %866 = vector.broadcast %865 : vector<1x32xf32> to vector<32x32xf32>
    %867 = arith.mulf %864, %866 : vector<32x32xf32>
    %c12_425 = arith.constant 12 : index
    %c0_426 = arith.constant 0 : index
    %868 = vector.load %arg2[%c12_425, %c0_426] : memref<16x128xf32, #tpu.memory_space<vmem>>, vector<1x32xf32>
    %869 = vector.broadcast %868 : vector<1x32xf32> to vector<32x32xf32>
    %870 = arith.addf %867, %869 : vector<32x32xf32>
    %cst_427 = arith.constant 0.000000e+00 : f32
    %871 = vector.broadcast %cst_427 : f32 to vector<32x32xf32>
    %872 = arith.maximumf %870, %871 : vector<32x32xf32>
    %873 = arith.addf %788, %872 : vector<32x32xf32>
    %874 = arith.truncf %873 : vector<32x32xf32> to vector<32x32xbf16>
    %cst_428 = arith.constant dense<0.000000e+00> : vector<64x32xf32>
    %875 = tpu.matmul %1, %874, %cst_428 {dimension_numbers = #tpu.dot_dimension_numbers<[1], [0], [0], [1], [0, 0, 1, 1], [], []>} : vector<64x32xbf16>, vector<32x32xbf16>, vector<64x32xf32> -> vector<64x32xf32>
    %876 = arith.truncf %875 : vector<64x32xf32> to vector<64x32xbf16>
    %c1_429 = arith.constant 1 : index
    %c0_430 = arith.constant 0 : index
    %877 = vector.load %arg2[%c1_429, %c0_430] : memref<16x128xf32, #tpu.memory_space<vmem>>, vector<1x32xf32>
    %878 = vector.extract_strided_slice %876 {offsets = [0, 0], sizes = [32, 32], strides = [1, 1]} : vector<64x32xbf16> to vector<32x32xbf16>
    %c224_431 = arith.constant 224 : index
    %c0_432 = arith.constant 0 : index
    %879 = vector.load %arg1[%c224_431, %c0_432] : memref<640x128xbf16, #tpu.memory_space<vmem>>, vector<32x32xbf16>
    %cst_433 = arith.constant dense<0.000000e+00> : vector<32x32xf32>
    %880 = tpu.matmul %878, %879, %cst_433 {dimension_numbers = #tpu.dot_dimension_numbers<[1], [0], [0], [1], [0, 0, 1, 1], [], []>} : vector<32x32xbf16>, vector<32x32xbf16>, vector<32x32xf32> -> vector<32x32xf32>
    %881 = vector.broadcast %877 : vector<1x32xf32> to vector<32x32xf32>
    %882 = arith.addf %881, %880 : vector<32x32xf32>
    %883 = vector.extract_strided_slice %876 {offsets = [32, 0], sizes = [32, 32], strides = [1, 1]} : vector<64x32xbf16> to vector<32x32xbf16>
    %c256_434 = arith.constant 256 : index
    %c0_435 = arith.constant 0 : index
    %884 = vector.load %arg1[%c256_434, %c0_435] : memref<640x128xbf16, #tpu.memory_space<vmem>>, vector<32x32xbf16>
    %cst_436 = arith.constant dense<0.000000e+00> : vector<32x32xf32>
    %885 = tpu.matmul %883, %884, %cst_436 {dimension_numbers = #tpu.dot_dimension_numbers<[1], [0], [0], [1], [0, 0, 1, 1], [], []>} : vector<32x32xbf16>, vector<32x32xbf16>, vector<32x32xf32> -> vector<32x32xf32>
    %886 = arith.addf %882, %885 : vector<32x32xf32>
    %c288_437 = arith.constant 288 : index
    %c0_438 = arith.constant 0 : index
    %887 = vector.load %arg1[%c288_437, %c0_438] : memref<640x128xbf16, #tpu.memory_space<vmem>>, vector<32x32xbf16>
    %cst_439 = arith.constant dense<0.000000e+00> : vector<32x32xf32>
    %888 = tpu.matmul %874, %887, %cst_439 {dimension_numbers = #tpu.dot_dimension_numbers<[1], [0], [0], [1], [0, 0, 1, 1], [], []>} : vector<32x32xbf16>, vector<32x32xbf16>, vector<32x32xf32> -> vector<32x32xf32>
    %889 = arith.addf %886, %888 : vector<32x32xf32>
    %890 = arith.addf %889, %18 : vector<32x32xf32>
    %cst_440 = arith.constant dense<0.000000e+00> : vector<32xf32>
    %891 = vector.multi_reduction <add>, %890, %cst_440 [1] : vector<32x32xf32> to vector<32xf32>
    %892 = vector.shape_cast %891 : vector<32xf32> to vector<32x1xf32>
    %cst_441 = arith.constant 3.125000e-02 : f32
    %893 = vector.broadcast %cst_441 : f32 to vector<32x1xf32>
    %894 = arith.mulf %892, %893 : vector<32x1xf32>
    %895 = arith.mulf %890, %890 : vector<32x32xf32>
    %cst_442 = arith.constant dense<0.000000e+00> : vector<32xf32>
    %896 = vector.multi_reduction <add>, %895, %cst_442 [1] : vector<32x32xf32> to vector<32xf32>
    %897 = vector.shape_cast %896 : vector<32xf32> to vector<32x1xf32>
    %cst_443 = arith.constant 3.125000e-02 : f32
    %898 = vector.broadcast %cst_443 : f32 to vector<32x1xf32>
    %899 = arith.mulf %897, %898 : vector<32x1xf32>
    %900 = arith.mulf %894, %894 : vector<32x1xf32>
    %901 = arith.subf %899, %900 : vector<32x1xf32>
    %902 = vector.broadcast %894 : vector<32x1xf32> to vector<32x32xf32>
    %903 = arith.subf %890, %902 : vector<32x32xf32>
    %cst_444 = arith.constant 9.99999974E-6 : f32
    %904 = vector.broadcast %cst_444 : f32 to vector<32x1xf32>
    %905 = arith.addf %901, %904 : vector<32x1xf32>
    %906 = math.rsqrt %905 : vector<32x1xf32>
    %907 = vector.broadcast %906 : vector<32x1xf32> to vector<32x32xf32>
    %908 = arith.mulf %903, %907 : vector<32x32xf32>
    %c2_445 = arith.constant 2 : index
    %c0_446 = arith.constant 0 : index
    %909 = vector.load %arg2[%c2_445, %c0_446] : memref<16x128xf32, #tpu.memory_space<vmem>>, vector<1x32xf32>
    %910 = vector.broadcast %909 : vector<1x32xf32> to vector<32x32xf32>
    %911 = arith.mulf %908, %910 : vector<32x32xf32>
    %c3_447 = arith.constant 3 : index
    %c0_448 = arith.constant 0 : index
    %912 = vector.load %arg2[%c3_447, %c0_448] : memref<16x128xf32, #tpu.memory_space<vmem>>, vector<1x32xf32>
    %913 = vector.broadcast %912 : vector<1x32xf32> to vector<32x32xf32>
    %914 = arith.addf %911, %913 : vector<32x32xf32>
    %cst_449 = arith.constant 0.000000e+00 : f32
    %915 = vector.broadcast %cst_449 : f32 to vector<32x32xf32>
    %916 = arith.maximumf %914, %915 : vector<32x32xf32>
    %917 = arith.truncf %916 : vector<32x32xf32> to vector<32x32xbf16>
    %cst_450 = arith.constant dense<0.000000e+00> : vector<64x32xf32>
    %918 = tpu.matmul %1, %917, %cst_450 {dimension_numbers = #tpu.dot_dimension_numbers<[1], [0], [0], [1], [0, 0, 1, 1], [], []>} : vector<64x32xbf16>, vector<32x32xbf16>, vector<64x32xf32> -> vector<64x32xf32>
    %919 = arith.truncf %918 : vector<64x32xf32> to vector<64x32xbf16>
    %c4_451 = arith.constant 4 : index
    %c0_452 = arith.constant 0 : index
    %920 = vector.load %arg2[%c4_451, %c0_452] : memref<16x128xf32, #tpu.memory_space<vmem>>, vector<1x32xf32>
    %921 = vector.extract_strided_slice %919 {offsets = [0, 0], sizes = [32, 32], strides = [1, 1]} : vector<64x32xbf16> to vector<32x32xbf16>
    %c320_453 = arith.constant 320 : index
    %c0_454 = arith.constant 0 : index
    %922 = vector.load %arg1[%c320_453, %c0_454] : memref<640x128xbf16, #tpu.memory_space<vmem>>, vector<32x32xbf16>
    %cst_455 = arith.constant dense<0.000000e+00> : vector<32x32xf32>
    %923 = tpu.matmul %921, %922, %cst_455 {dimension_numbers = #tpu.dot_dimension_numbers<[1], [0], [0], [1], [0, 0, 1, 1], [], []>} : vector<32x32xbf16>, vector<32x32xbf16>, vector<32x32xf32> -> vector<32x32xf32>
    %924 = vector.broadcast %920 : vector<1x32xf32> to vector<32x32xf32>
    %925 = arith.addf %924, %923 : vector<32x32xf32>
    %926 = vector.extract_strided_slice %919 {offsets = [32, 0], sizes = [32, 32], strides = [1, 1]} : vector<64x32xbf16> to vector<32x32xbf16>
    %c352_456 = arith.constant 352 : index
    %c0_457 = arith.constant 0 : index
    %927 = vector.load %arg1[%c352_456, %c0_457] : memref<640x128xbf16, #tpu.memory_space<vmem>>, vector<32x32xbf16>
    %cst_458 = arith.constant dense<0.000000e+00> : vector<32x32xf32>
    %928 = tpu.matmul %926, %927, %cst_458 {dimension_numbers = #tpu.dot_dimension_numbers<[1], [0], [0], [1], [0, 0, 1, 1], [], []>} : vector<32x32xbf16>, vector<32x32xbf16>, vector<32x32xf32> -> vector<32x32xf32>
    %929 = arith.addf %925, %928 : vector<32x32xf32>
    %c384_459 = arith.constant 384 : index
    %c0_460 = arith.constant 0 : index
    %930 = vector.load %arg1[%c384_459, %c0_460] : memref<640x128xbf16, #tpu.memory_space<vmem>>, vector<32x32xbf16>
    %cst_461 = arith.constant dense<0.000000e+00> : vector<32x32xf32>
    %931 = tpu.matmul %917, %930, %cst_461 {dimension_numbers = #tpu.dot_dimension_numbers<[1], [0], [0], [1], [0, 0, 1, 1], [], []>} : vector<32x32xbf16>, vector<32x32xbf16>, vector<32x32xf32> -> vector<32x32xf32>
    %932 = arith.addf %929, %931 : vector<32x32xf32>
    %cst_462 = arith.constant dense<0.000000e+00> : vector<32xf32>
    %933 = vector.multi_reduction <add>, %932, %cst_462 [1] : vector<32x32xf32> to vector<32xf32>
    %934 = vector.shape_cast %933 : vector<32xf32> to vector<32x1xf32>
    %cst_463 = arith.constant 3.125000e-02 : f32
    %935 = vector.broadcast %cst_463 : f32 to vector<32x1xf32>
    %936 = arith.mulf %934, %935 : vector<32x1xf32>
    %937 = arith.mulf %932, %932 : vector<32x32xf32>
    %cst_464 = arith.constant dense<0.000000e+00> : vector<32xf32>
    %938 = vector.multi_reduction <add>, %937, %cst_464 [1] : vector<32x32xf32> to vector<32xf32>
    %939 = vector.shape_cast %938 : vector<32xf32> to vector<32x1xf32>
    %cst_465 = arith.constant 3.125000e-02 : f32
    %940 = vector.broadcast %cst_465 : f32 to vector<32x1xf32>
    %941 = arith.mulf %939, %940 : vector<32x1xf32>
    %942 = arith.mulf %936, %936 : vector<32x1xf32>
    %943 = arith.subf %941, %942 : vector<32x1xf32>
    %944 = vector.broadcast %936 : vector<32x1xf32> to vector<32x32xf32>
    %945 = arith.subf %932, %944 : vector<32x32xf32>
    %cst_466 = arith.constant 9.99999974E-6 : f32
    %946 = vector.broadcast %cst_466 : f32 to vector<32x1xf32>
    %947 = arith.addf %943, %946 : vector<32x1xf32>
    %948 = math.rsqrt %947 : vector<32x1xf32>
    %949 = vector.broadcast %948 : vector<32x1xf32> to vector<32x32xf32>
    %950 = arith.mulf %945, %949 : vector<32x32xf32>
    %c5_467 = arith.constant 5 : index
    %c0_468 = arith.constant 0 : index
    %951 = vector.load %arg2[%c5_467, %c0_468] : memref<16x128xf32, #tpu.memory_space<vmem>>, vector<1x32xf32>
    %952 = vector.broadcast %951 : vector<1x32xf32> to vector<32x32xf32>
    %953 = arith.mulf %950, %952 : vector<32x32xf32>
    %c6_469 = arith.constant 6 : index
    %c0_470 = arith.constant 0 : index
    %954 = vector.load %arg2[%c6_469, %c0_470] : memref<16x128xf32, #tpu.memory_space<vmem>>, vector<1x32xf32>
    %955 = vector.broadcast %954 : vector<1x32xf32> to vector<32x32xf32>
    %956 = arith.addf %953, %955 : vector<32x32xf32>
    %cst_471 = arith.constant 0.000000e+00 : f32
    %957 = vector.broadcast %cst_471 : f32 to vector<32x32xf32>
    %958 = arith.maximumf %956, %957 : vector<32x32xf32>
    %959 = arith.addf %873, %958 : vector<32x32xf32>
    %960 = arith.truncf %959 : vector<32x32xf32> to vector<32x32xbf16>
    %cst_472 = arith.constant dense<0.000000e+00> : vector<64x32xf32>
    %961 = tpu.matmul %2, %960, %cst_472 {dimension_numbers = #tpu.dot_dimension_numbers<[1], [0], [0], [1], [0, 0, 1, 1], [], []>} : vector<64x32xbf16>, vector<32x32xbf16>, vector<64x32xf32> -> vector<64x32xf32>
    %962 = arith.truncf %961 : vector<64x32xf32> to vector<64x32xbf16>
    %c7_473 = arith.constant 7 : index
    %c0_474 = arith.constant 0 : index
    %963 = vector.load %arg2[%c7_473, %c0_474] : memref<16x128xf32, #tpu.memory_space<vmem>>, vector<1x32xf32>
    %964 = vector.extract_strided_slice %962 {offsets = [0, 0], sizes = [32, 32], strides = [1, 1]} : vector<64x32xbf16> to vector<32x32xbf16>
    %c416_475 = arith.constant 416 : index
    %c0_476 = arith.constant 0 : index
    %965 = vector.load %arg1[%c416_475, %c0_476] : memref<640x128xbf16, #tpu.memory_space<vmem>>, vector<32x32xbf16>
    %cst_477 = arith.constant dense<0.000000e+00> : vector<32x32xf32>
    %966 = tpu.matmul %964, %965, %cst_477 {dimension_numbers = #tpu.dot_dimension_numbers<[1], [0], [0], [1], [0, 0, 1, 1], [], []>} : vector<32x32xbf16>, vector<32x32xbf16>, vector<32x32xf32> -> vector<32x32xf32>
    %967 = vector.broadcast %963 : vector<1x32xf32> to vector<32x32xf32>
    %968 = arith.addf %967, %966 : vector<32x32xf32>
    %969 = vector.extract_strided_slice %962 {offsets = [32, 0], sizes = [32, 32], strides = [1, 1]} : vector<64x32xbf16> to vector<32x32xbf16>
    %c448_478 = arith.constant 448 : index
    %c0_479 = arith.constant 0 : index
    %970 = vector.load %arg1[%c448_478, %c0_479] : memref<640x128xbf16, #tpu.memory_space<vmem>>, vector<32x32xbf16>
    %cst_480 = arith.constant dense<0.000000e+00> : vector<32x32xf32>
    %971 = tpu.matmul %969, %970, %cst_480 {dimension_numbers = #tpu.dot_dimension_numbers<[1], [0], [0], [1], [0, 0, 1, 1], [], []>} : vector<32x32xbf16>, vector<32x32xbf16>, vector<32x32xf32> -> vector<32x32xf32>
    %972 = arith.addf %968, %971 : vector<32x32xf32>
    %c480_481 = arith.constant 480 : index
    %c0_482 = arith.constant 0 : index
    %973 = vector.load %arg1[%c480_481, %c0_482] : memref<640x128xbf16, #tpu.memory_space<vmem>>, vector<32x32xbf16>
    %cst_483 = arith.constant dense<0.000000e+00> : vector<32x32xf32>
    %974 = tpu.matmul %960, %973, %cst_483 {dimension_numbers = #tpu.dot_dimension_numbers<[1], [0], [0], [1], [0, 0, 1, 1], [], []>} : vector<32x32xbf16>, vector<32x32xbf16>, vector<32x32xf32> -> vector<32x32xf32>
    %975 = arith.addf %972, %974 : vector<32x32xf32>
    %cst_484 = arith.constant dense<0.000000e+00> : vector<32xf32>
    %976 = vector.multi_reduction <add>, %975, %cst_484 [1] : vector<32x32xf32> to vector<32xf32>
    %977 = vector.shape_cast %976 : vector<32xf32> to vector<32x1xf32>
    %cst_485 = arith.constant 3.125000e-02 : f32
    %978 = vector.broadcast %cst_485 : f32 to vector<32x1xf32>
    %979 = arith.mulf %977, %978 : vector<32x1xf32>
    %980 = arith.mulf %975, %975 : vector<32x32xf32>
    %cst_486 = arith.constant dense<0.000000e+00> : vector<32xf32>
    %981 = vector.multi_reduction <add>, %980, %cst_486 [1] : vector<32x32xf32> to vector<32xf32>
    %982 = vector.shape_cast %981 : vector<32xf32> to vector<32x1xf32>
    %cst_487 = arith.constant 3.125000e-02 : f32
    %983 = vector.broadcast %cst_487 : f32 to vector<32x1xf32>
    %984 = arith.mulf %982, %983 : vector<32x1xf32>
    %985 = arith.mulf %979, %979 : vector<32x1xf32>
    %986 = arith.subf %984, %985 : vector<32x1xf32>
    %987 = vector.broadcast %979 : vector<32x1xf32> to vector<32x32xf32>
    %988 = arith.subf %975, %987 : vector<32x32xf32>
    %cst_488 = arith.constant 9.99999974E-6 : f32
    %989 = vector.broadcast %cst_488 : f32 to vector<32x1xf32>
    %990 = arith.addf %986, %989 : vector<32x1xf32>
    %991 = math.rsqrt %990 : vector<32x1xf32>
    %992 = vector.broadcast %991 : vector<32x1xf32> to vector<32x32xf32>
    %993 = arith.mulf %988, %992 : vector<32x32xf32>
    %c8_489 = arith.constant 8 : index
    %c0_490 = arith.constant 0 : index
    %994 = vector.load %arg2[%c8_489, %c0_490] : memref<16x128xf32, #tpu.memory_space<vmem>>, vector<1x32xf32>
    %995 = vector.broadcast %994 : vector<1x32xf32> to vector<32x32xf32>
    %996 = arith.mulf %993, %995 : vector<32x32xf32>
    %c9_491 = arith.constant 9 : index
    %c0_492 = arith.constant 0 : index
    %997 = vector.load %arg2[%c9_491, %c0_492] : memref<16x128xf32, #tpu.memory_space<vmem>>, vector<1x32xf32>
    %998 = vector.broadcast %997 : vector<1x32xf32> to vector<32x32xf32>
    %999 = arith.addf %996, %998 : vector<32x32xf32>
    %cst_493 = arith.constant 0.000000e+00 : f32
    %1000 = vector.broadcast %cst_493 : f32 to vector<32x32xf32>
    %1001 = arith.maximumf %999, %1000 : vector<32x32xf32>
    %1002 = arith.truncf %1001 : vector<32x32xf32> to vector<32x32xbf16>
    %cst_494 = arith.constant dense<0.000000e+00> : vector<64x32xf32>
    %1003 = tpu.matmul %2, %1002, %cst_494 {dimension_numbers = #tpu.dot_dimension_numbers<[1], [0], [0], [1], [0, 0, 1, 1], [], []>} : vector<64x32xbf16>, vector<32x32xbf16>, vector<64x32xf32> -> vector<64x32xf32>
    %1004 = arith.truncf %1003 : vector<64x32xf32> to vector<64x32xbf16>
    %c10_495 = arith.constant 10 : index
    %c0_496 = arith.constant 0 : index
    %1005 = vector.load %arg2[%c10_495, %c0_496] : memref<16x128xf32, #tpu.memory_space<vmem>>, vector<1x32xf32>
    %1006 = vector.extract_strided_slice %1004 {offsets = [0, 0], sizes = [32, 32], strides = [1, 1]} : vector<64x32xbf16> to vector<32x32xbf16>
    %c512_497 = arith.constant 512 : index
    %c0_498 = arith.constant 0 : index
    %1007 = vector.load %arg1[%c512_497, %c0_498] : memref<640x128xbf16, #tpu.memory_space<vmem>>, vector<32x32xbf16>
    %cst_499 = arith.constant dense<0.000000e+00> : vector<32x32xf32>
    %1008 = tpu.matmul %1006, %1007, %cst_499 {dimension_numbers = #tpu.dot_dimension_numbers<[1], [0], [0], [1], [0, 0, 1, 1], [], []>} : vector<32x32xbf16>, vector<32x32xbf16>, vector<32x32xf32> -> vector<32x32xf32>
    %1009 = vector.broadcast %1005 : vector<1x32xf32> to vector<32x32xf32>
    %1010 = arith.addf %1009, %1008 : vector<32x32xf32>
    %1011 = vector.extract_strided_slice %1004 {offsets = [32, 0], sizes = [32, 32], strides = [1, 1]} : vector<64x32xbf16> to vector<32x32xbf16>
    %c544_500 = arith.constant 544 : index
    %c0_501 = arith.constant 0 : index
    %1012 = vector.load %arg1[%c544_500, %c0_501] : memref<640x128xbf16, #tpu.memory_space<vmem>>, vector<32x32xbf16>
    %cst_502 = arith.constant dense<0.000000e+00> : vector<32x32xf32>
    %1013 = tpu.matmul %1011, %1012, %cst_502 {dimension_numbers = #tpu.dot_dimension_numbers<[1], [0], [0], [1], [0, 0, 1, 1], [], []>} : vector<32x32xbf16>, vector<32x32xbf16>, vector<32x32xf32> -> vector<32x32xf32>
    %1014 = arith.addf %1010, %1013 : vector<32x32xf32>
    %c576_503 = arith.constant 576 : index
    %c0_504 = arith.constant 0 : index
    %1015 = vector.load %arg1[%c576_503, %c0_504] : memref<640x128xbf16, #tpu.memory_space<vmem>>, vector<32x32xbf16>
    %cst_505 = arith.constant dense<0.000000e+00> : vector<32x32xf32>
    %1016 = tpu.matmul %1002, %1015, %cst_505 {dimension_numbers = #tpu.dot_dimension_numbers<[1], [0], [0], [1], [0, 0, 1, 1], [], []>} : vector<32x32xbf16>, vector<32x32xbf16>, vector<32x32xf32> -> vector<32x32xf32>
    %1017 = arith.addf %1014, %1016 : vector<32x32xf32>
    %cst_506 = arith.constant dense<0.000000e+00> : vector<32xf32>
    %1018 = vector.multi_reduction <add>, %1017, %cst_506 [1] : vector<32x32xf32> to vector<32xf32>
    %1019 = vector.shape_cast %1018 : vector<32xf32> to vector<32x1xf32>
    %cst_507 = arith.constant 3.125000e-02 : f32
    %1020 = vector.broadcast %cst_507 : f32 to vector<32x1xf32>
    %1021 = arith.mulf %1019, %1020 : vector<32x1xf32>
    %1022 = arith.mulf %1017, %1017 : vector<32x32xf32>
    %cst_508 = arith.constant dense<0.000000e+00> : vector<32xf32>
    %1023 = vector.multi_reduction <add>, %1022, %cst_508 [1] : vector<32x32xf32> to vector<32xf32>
    %1024 = vector.shape_cast %1023 : vector<32xf32> to vector<32x1xf32>
    %cst_509 = arith.constant 3.125000e-02 : f32
    %1025 = vector.broadcast %cst_509 : f32 to vector<32x1xf32>
    %1026 = arith.mulf %1024, %1025 : vector<32x1xf32>
    %1027 = arith.mulf %1021, %1021 : vector<32x1xf32>
    %1028 = arith.subf %1026, %1027 : vector<32x1xf32>
    %1029 = vector.broadcast %1021 : vector<32x1xf32> to vector<32x32xf32>
    %1030 = arith.subf %1017, %1029 : vector<32x32xf32>
    %cst_510 = arith.constant 9.99999974E-6 : f32
    %1031 = vector.broadcast %cst_510 : f32 to vector<32x1xf32>
    %1032 = arith.addf %1028, %1031 : vector<32x1xf32>
    %1033 = math.rsqrt %1032 : vector<32x1xf32>
    %1034 = vector.broadcast %1033 : vector<32x1xf32> to vector<32x32xf32>
    %1035 = arith.mulf %1030, %1034 : vector<32x32xf32>
    %c11_511 = arith.constant 11 : index
    %c0_512 = arith.constant 0 : index
    %1036 = vector.load %arg2[%c11_511, %c0_512] : memref<16x128xf32, #tpu.memory_space<vmem>>, vector<1x32xf32>
    %1037 = vector.broadcast %1036 : vector<1x32xf32> to vector<32x32xf32>
    %1038 = arith.mulf %1035, %1037 : vector<32x32xf32>
    %c12_513 = arith.constant 12 : index
    %c0_514 = arith.constant 0 : index
    %1039 = vector.load %arg2[%c12_513, %c0_514] : memref<16x128xf32, #tpu.memory_space<vmem>>, vector<1x32xf32>
    %1040 = vector.broadcast %1039 : vector<1x32xf32> to vector<32x32xf32>
    %1041 = arith.addf %1038, %1040 : vector<32x32xf32>
    %cst_515 = arith.constant 0.000000e+00 : f32
    %1042 = vector.broadcast %cst_515 : f32 to vector<32x32xf32>
    %1043 = arith.maximumf %1041, %1042 : vector<32x32xf32>
    %1044 = arith.addf %959, %1043 : vector<32x32xf32>
    %1045 = arith.truncf %1044 : vector<32x32xf32> to vector<32x32xbf16>
    %cst_516 = arith.constant dense<0.000000e+00> : vector<64x32xf32>
    %1046 = tpu.matmul %1, %1045, %cst_516 {dimension_numbers = #tpu.dot_dimension_numbers<[1], [0], [0], [1], [0, 0, 1, 1], [], []>} : vector<64x32xbf16>, vector<32x32xbf16>, vector<64x32xf32> -> vector<64x32xf32>
    %1047 = arith.truncf %1046 : vector<64x32xf32> to vector<64x32xbf16>
    %c1_517 = arith.constant 1 : index
    %c0_518 = arith.constant 0 : index
    %1048 = vector.load %arg2[%c1_517, %c0_518] : memref<16x128xf32, #tpu.memory_space<vmem>>, vector<1x32xf32>
    %1049 = vector.extract_strided_slice %1047 {offsets = [0, 0], sizes = [32, 32], strides = [1, 1]} : vector<64x32xbf16> to vector<32x32xbf16>
    %c224_519 = arith.constant 224 : index
    %c0_520 = arith.constant 0 : index
    %1050 = vector.load %arg1[%c224_519, %c0_520] : memref<640x128xbf16, #tpu.memory_space<vmem>>, vector<32x32xbf16>
    %cst_521 = arith.constant dense<0.000000e+00> : vector<32x32xf32>
    %1051 = tpu.matmul %1049, %1050, %cst_521 {dimension_numbers = #tpu.dot_dimension_numbers<[1], [0], [0], [1], [0, 0, 1, 1], [], []>} : vector<32x32xbf16>, vector<32x32xbf16>, vector<32x32xf32> -> vector<32x32xf32>
    %1052 = vector.broadcast %1048 : vector<1x32xf32> to vector<32x32xf32>
    %1053 = arith.addf %1052, %1051 : vector<32x32xf32>
    %1054 = vector.extract_strided_slice %1047 {offsets = [32, 0], sizes = [32, 32], strides = [1, 1]} : vector<64x32xbf16> to vector<32x32xbf16>
    %c256_522 = arith.constant 256 : index
    %c0_523 = arith.constant 0 : index
    %1055 = vector.load %arg1[%c256_522, %c0_523] : memref<640x128xbf16, #tpu.memory_space<vmem>>, vector<32x32xbf16>
    %cst_524 = arith.constant dense<0.000000e+00> : vector<32x32xf32>
    %1056 = tpu.matmul %1054, %1055, %cst_524 {dimension_numbers = #tpu.dot_dimension_numbers<[1], [0], [0], [1], [0, 0, 1, 1], [], []>} : vector<32x32xbf16>, vector<32x32xbf16>, vector<32x32xf32> -> vector<32x32xf32>
    %1057 = arith.addf %1053, %1056 : vector<32x32xf32>
    %c288_525 = arith.constant 288 : index
    %c0_526 = arith.constant 0 : index
    %1058 = vector.load %arg1[%c288_525, %c0_526] : memref<640x128xbf16, #tpu.memory_space<vmem>>, vector<32x32xbf16>
    %cst_527 = arith.constant dense<0.000000e+00> : vector<32x32xf32>
    %1059 = tpu.matmul %1045, %1058, %cst_527 {dimension_numbers = #tpu.dot_dimension_numbers<[1], [0], [0], [1], [0, 0, 1, 1], [], []>} : vector<32x32xbf16>, vector<32x32xbf16>, vector<32x32xf32> -> vector<32x32xf32>
    %1060 = arith.addf %1057, %1059 : vector<32x32xf32>
    %1061 = arith.addf %1060, %18 : vector<32x32xf32>
    %cst_528 = arith.constant dense<0.000000e+00> : vector<32xf32>
    %1062 = vector.multi_reduction <add>, %1061, %cst_528 [1] : vector<32x32xf32> to vector<32xf32>
    %1063 = vector.shape_cast %1062 : vector<32xf32> to vector<32x1xf32>
    %cst_529 = arith.constant 3.125000e-02 : f32
    %1064 = vector.broadcast %cst_529 : f32 to vector<32x1xf32>
    %1065 = arith.mulf %1063, %1064 : vector<32x1xf32>
    %1066 = arith.mulf %1061, %1061 : vector<32x32xf32>
    %cst_530 = arith.constant dense<0.000000e+00> : vector<32xf32>
    %1067 = vector.multi_reduction <add>, %1066, %cst_530 [1] : vector<32x32xf32> to vector<32xf32>
    %1068 = vector.shape_cast %1067 : vector<32xf32> to vector<32x1xf32>
    %cst_531 = arith.constant 3.125000e-02 : f32
    %1069 = vector.broadcast %cst_531 : f32 to vector<32x1xf32>
    %1070 = arith.mulf %1068, %1069 : vector<32x1xf32>
    %1071 = arith.mulf %1065, %1065 : vector<32x1xf32>
    %1072 = arith.subf %1070, %1071 : vector<32x1xf32>
    %1073 = vector.broadcast %1065 : vector<32x1xf32> to vector<32x32xf32>
    %1074 = arith.subf %1061, %1073 : vector<32x32xf32>
    %cst_532 = arith.constant 9.99999974E-6 : f32
    %1075 = vector.broadcast %cst_532 : f32 to vector<32x1xf32>
    %1076 = arith.addf %1072, %1075 : vector<32x1xf32>
    %1077 = math.rsqrt %1076 : vector<32x1xf32>
    %1078 = vector.broadcast %1077 : vector<32x1xf32> to vector<32x32xf32>
    %1079 = arith.mulf %1074, %1078 : vector<32x32xf32>
    %c2_533 = arith.constant 2 : index
    %c0_534 = arith.constant 0 : index
    %1080 = vector.load %arg2[%c2_533, %c0_534] : memref<16x128xf32, #tpu.memory_space<vmem>>, vector<1x32xf32>
    %1081 = vector.broadcast %1080 : vector<1x32xf32> to vector<32x32xf32>
    %1082 = arith.mulf %1079, %1081 : vector<32x32xf32>
    %c3_535 = arith.constant 3 : index
    %c0_536 = arith.constant 0 : index
    %1083 = vector.load %arg2[%c3_535, %c0_536] : memref<16x128xf32, #tpu.memory_space<vmem>>, vector<1x32xf32>
    %1084 = vector.broadcast %1083 : vector<1x32xf32> to vector<32x32xf32>
    %1085 = arith.addf %1082, %1084 : vector<32x32xf32>
    %cst_537 = arith.constant 0.000000e+00 : f32
    %1086 = vector.broadcast %cst_537 : f32 to vector<32x32xf32>
    %1087 = arith.maximumf %1085, %1086 : vector<32x32xf32>
    %1088 = arith.truncf %1087 : vector<32x32xf32> to vector<32x32xbf16>
    %cst_538 = arith.constant dense<0.000000e+00> : vector<64x32xf32>
    %1089 = tpu.matmul %1, %1088, %cst_538 {dimension_numbers = #tpu.dot_dimension_numbers<[1], [0], [0], [1], [0, 0, 1, 1], [], []>} : vector<64x32xbf16>, vector<32x32xbf16>, vector<64x32xf32> -> vector<64x32xf32>
    %1090 = arith.truncf %1089 : vector<64x32xf32> to vector<64x32xbf16>
    %c4_539 = arith.constant 4 : index
    %c0_540 = arith.constant 0 : index
    %1091 = vector.load %arg2[%c4_539, %c0_540] : memref<16x128xf32, #tpu.memory_space<vmem>>, vector<1x32xf32>
    %1092 = vector.extract_strided_slice %1090 {offsets = [0, 0], sizes = [32, 32], strides = [1, 1]} : vector<64x32xbf16> to vector<32x32xbf16>
    %c320_541 = arith.constant 320 : index
    %c0_542 = arith.constant 0 : index
    %1093 = vector.load %arg1[%c320_541, %c0_542] : memref<640x128xbf16, #tpu.memory_space<vmem>>, vector<32x32xbf16>
    %cst_543 = arith.constant dense<0.000000e+00> : vector<32x32xf32>
    %1094 = tpu.matmul %1092, %1093, %cst_543 {dimension_numbers = #tpu.dot_dimension_numbers<[1], [0], [0], [1], [0, 0, 1, 1], [], []>} : vector<32x32xbf16>, vector<32x32xbf16>, vector<32x32xf32> -> vector<32x32xf32>
    %1095 = vector.broadcast %1091 : vector<1x32xf32> to vector<32x32xf32>
    %1096 = arith.addf %1095, %1094 : vector<32x32xf32>
    %1097 = vector.extract_strided_slice %1090 {offsets = [32, 0], sizes = [32, 32], strides = [1, 1]} : vector<64x32xbf16> to vector<32x32xbf16>
    %c352_544 = arith.constant 352 : index
    %c0_545 = arith.constant 0 : index
    %1098 = vector.load %arg1[%c352_544, %c0_545] : memref<640x128xbf16, #tpu.memory_space<vmem>>, vector<32x32xbf16>
    %cst_546 = arith.constant dense<0.000000e+00> : vector<32x32xf32>
    %1099 = tpu.matmul %1097, %1098, %cst_546 {dimension_numbers = #tpu.dot_dimension_numbers<[1], [0], [0], [1], [0, 0, 1, 1], [], []>} : vector<32x32xbf16>, vector<32x32xbf16>, vector<32x32xf32> -> vector<32x32xf32>
    %1100 = arith.addf %1096, %1099 : vector<32x32xf32>
    %c384_547 = arith.constant 384 : index
    %c0_548 = arith.constant 0 : index
    %1101 = vector.load %arg1[%c384_547, %c0_548] : memref<640x128xbf16, #tpu.memory_space<vmem>>, vector<32x32xbf16>
    %cst_549 = arith.constant dense<0.000000e+00> : vector<32x32xf32>
    %1102 = tpu.matmul %1088, %1101, %cst_549 {dimension_numbers = #tpu.dot_dimension_numbers<[1], [0], [0], [1], [0, 0, 1, 1], [], []>} : vector<32x32xbf16>, vector<32x32xbf16>, vector<32x32xf32> -> vector<32x32xf32>
    %1103 = arith.addf %1100, %1102 : vector<32x32xf32>
    %cst_550 = arith.constant dense<0.000000e+00> : vector<32xf32>
    %1104 = vector.multi_reduction <add>, %1103, %cst_550 [1] : vector<32x32xf32> to vector<32xf32>
    %1105 = vector.shape_cast %1104 : vector<32xf32> to vector<32x1xf32>
    %cst_551 = arith.constant 3.125000e-02 : f32
    %1106 = vector.broadcast %cst_551 : f32 to vector<32x1xf32>
    %1107 = arith.mulf %1105, %1106 : vector<32x1xf32>
    %1108 = arith.mulf %1103, %1103 : vector<32x32xf32>
    %cst_552 = arith.constant dense<0.000000e+00> : vector<32xf32>
    %1109 = vector.multi_reduction <add>, %1108, %cst_552 [1] : vector<32x32xf32> to vector<32xf32>
    %1110 = vector.shape_cast %1109 : vector<32xf32> to vector<32x1xf32>
    %cst_553 = arith.constant 3.125000e-02 : f32
    %1111 = vector.broadcast %cst_553 : f32 to vector<32x1xf32>
    %1112 = arith.mulf %1110, %1111 : vector<32x1xf32>
    %1113 = arith.mulf %1107, %1107 : vector<32x1xf32>
    %1114 = arith.subf %1112, %1113 : vector<32x1xf32>
    %1115 = vector.broadcast %1107 : vector<32x1xf32> to vector<32x32xf32>
    %1116 = arith.subf %1103, %1115 : vector<32x32xf32>
    %cst_554 = arith.constant 9.99999974E-6 : f32
    %1117 = vector.broadcast %cst_554 : f32 to vector<32x1xf32>
    %1118 = arith.addf %1114, %1117 : vector<32x1xf32>
    %1119 = math.rsqrt %1118 : vector<32x1xf32>
    %1120 = vector.broadcast %1119 : vector<32x1xf32> to vector<32x32xf32>
    %1121 = arith.mulf %1116, %1120 : vector<32x32xf32>
    %c5_555 = arith.constant 5 : index
    %c0_556 = arith.constant 0 : index
    %1122 = vector.load %arg2[%c5_555, %c0_556] : memref<16x128xf32, #tpu.memory_space<vmem>>, vector<1x32xf32>
    %1123 = vector.broadcast %1122 : vector<1x32xf32> to vector<32x32xf32>
    %1124 = arith.mulf %1121, %1123 : vector<32x32xf32>
    %c6_557 = arith.constant 6 : index
    %c0_558 = arith.constant 0 : index
    %1125 = vector.load %arg2[%c6_557, %c0_558] : memref<16x128xf32, #tpu.memory_space<vmem>>, vector<1x32xf32>
    %1126 = vector.broadcast %1125 : vector<1x32xf32> to vector<32x32xf32>
    %1127 = arith.addf %1124, %1126 : vector<32x32xf32>
    %cst_559 = arith.constant 0.000000e+00 : f32
    %1128 = vector.broadcast %cst_559 : f32 to vector<32x32xf32>
    %1129 = arith.maximumf %1127, %1128 : vector<32x32xf32>
    %1130 = arith.addf %1044, %1129 : vector<32x32xf32>
    %1131 = arith.truncf %1130 : vector<32x32xf32> to vector<32x32xbf16>
    %cst_560 = arith.constant dense<0.000000e+00> : vector<64x32xf32>
    %1132 = tpu.matmul %2, %1131, %cst_560 {dimension_numbers = #tpu.dot_dimension_numbers<[1], [0], [0], [1], [0, 0, 1, 1], [], []>} : vector<64x32xbf16>, vector<32x32xbf16>, vector<64x32xf32> -> vector<64x32xf32>
    %1133 = arith.truncf %1132 : vector<64x32xf32> to vector<64x32xbf16>
    %c7_561 = arith.constant 7 : index
    %c0_562 = arith.constant 0 : index
    %1134 = vector.load %arg2[%c7_561, %c0_562] : memref<16x128xf32, #tpu.memory_space<vmem>>, vector<1x32xf32>
    %1135 = vector.extract_strided_slice %1133 {offsets = [0, 0], sizes = [32, 32], strides = [1, 1]} : vector<64x32xbf16> to vector<32x32xbf16>
    %c416_563 = arith.constant 416 : index
    %c0_564 = arith.constant 0 : index
    %1136 = vector.load %arg1[%c416_563, %c0_564] : memref<640x128xbf16, #tpu.memory_space<vmem>>, vector<32x32xbf16>
    %cst_565 = arith.constant dense<0.000000e+00> : vector<32x32xf32>
    %1137 = tpu.matmul %1135, %1136, %cst_565 {dimension_numbers = #tpu.dot_dimension_numbers<[1], [0], [0], [1], [0, 0, 1, 1], [], []>} : vector<32x32xbf16>, vector<32x32xbf16>, vector<32x32xf32> -> vector<32x32xf32>
    %1138 = vector.broadcast %1134 : vector<1x32xf32> to vector<32x32xf32>
    %1139 = arith.addf %1138, %1137 : vector<32x32xf32>
    %1140 = vector.extract_strided_slice %1133 {offsets = [32, 0], sizes = [32, 32], strides = [1, 1]} : vector<64x32xbf16> to vector<32x32xbf16>
    %c448_566 = arith.constant 448 : index
    %c0_567 = arith.constant 0 : index
    %1141 = vector.load %arg1[%c448_566, %c0_567] : memref<640x128xbf16, #tpu.memory_space<vmem>>, vector<32x32xbf16>
    %cst_568 = arith.constant dense<0.000000e+00> : vector<32x32xf32>
    %1142 = tpu.matmul %1140, %1141, %cst_568 {dimension_numbers = #tpu.dot_dimension_numbers<[1], [0], [0], [1], [0, 0, 1, 1], [], []>} : vector<32x32xbf16>, vector<32x32xbf16>, vector<32x32xf32> -> vector<32x32xf32>
    %1143 = arith.addf %1139, %1142 : vector<32x32xf32>
    %c480_569 = arith.constant 480 : index
    %c0_570 = arith.constant 0 : index
    %1144 = vector.load %arg1[%c480_569, %c0_570] : memref<640x128xbf16, #tpu.memory_space<vmem>>, vector<32x32xbf16>
    %cst_571 = arith.constant dense<0.000000e+00> : vector<32x32xf32>
    %1145 = tpu.matmul %1131, %1144, %cst_571 {dimension_numbers = #tpu.dot_dimension_numbers<[1], [0], [0], [1], [0, 0, 1, 1], [], []>} : vector<32x32xbf16>, vector<32x32xbf16>, vector<32x32xf32> -> vector<32x32xf32>
    %1146 = arith.addf %1143, %1145 : vector<32x32xf32>
    %cst_572 = arith.constant dense<0.000000e+00> : vector<32xf32>
    %1147 = vector.multi_reduction <add>, %1146, %cst_572 [1] : vector<32x32xf32> to vector<32xf32>
    %1148 = vector.shape_cast %1147 : vector<32xf32> to vector<32x1xf32>
    %cst_573 = arith.constant 3.125000e-02 : f32
    %1149 = vector.broadcast %cst_573 : f32 to vector<32x1xf32>
    %1150 = arith.mulf %1148, %1149 : vector<32x1xf32>
    %1151 = arith.mulf %1146, %1146 : vector<32x32xf32>
    %cst_574 = arith.constant dense<0.000000e+00> : vector<32xf32>
    %1152 = vector.multi_reduction <add>, %1151, %cst_574 [1] : vector<32x32xf32> to vector<32xf32>
    %1153 = vector.shape_cast %1152 : vector<32xf32> to vector<32x1xf32>
    %cst_575 = arith.constant 3.125000e-02 : f32
    %1154 = vector.broadcast %cst_575 : f32 to vector<32x1xf32>
    %1155 = arith.mulf %1153, %1154 : vector<32x1xf32>
    %1156 = arith.mulf %1150, %1150 : vector<32x1xf32>
    %1157 = arith.subf %1155, %1156 : vector<32x1xf32>
    %1158 = vector.broadcast %1150 : vector<32x1xf32> to vector<32x32xf32>
    %1159 = arith.subf %1146, %1158 : vector<32x32xf32>
    %cst_576 = arith.constant 9.99999974E-6 : f32
    %1160 = vector.broadcast %cst_576 : f32 to vector<32x1xf32>
    %1161 = arith.addf %1157, %1160 : vector<32x1xf32>
    %1162 = math.rsqrt %1161 : vector<32x1xf32>
    %1163 = vector.broadcast %1162 : vector<32x1xf32> to vector<32x32xf32>
    %1164 = arith.mulf %1159, %1163 : vector<32x32xf32>
    %c8_577 = arith.constant 8 : index
    %c0_578 = arith.constant 0 : index
    %1165 = vector.load %arg2[%c8_577, %c0_578] : memref<16x128xf32, #tpu.memory_space<vmem>>, vector<1x32xf32>
    %1166 = vector.broadcast %1165 : vector<1x32xf32> to vector<32x32xf32>
    %1167 = arith.mulf %1164, %1166 : vector<32x32xf32>
    %c9_579 = arith.constant 9 : index
    %c0_580 = arith.constant 0 : index
    %1168 = vector.load %arg2[%c9_579, %c0_580] : memref<16x128xf32, #tpu.memory_space<vmem>>, vector<1x32xf32>
    %1169 = vector.broadcast %1168 : vector<1x32xf32> to vector<32x32xf32>
    %1170 = arith.addf %1167, %1169 : vector<32x32xf32>
    %cst_581 = arith.constant 0.000000e+00 : f32
    %1171 = vector.broadcast %cst_581 : f32 to vector<32x32xf32>
    %1172 = arith.maximumf %1170, %1171 : vector<32x32xf32>
    %1173 = arith.truncf %1172 : vector<32x32xf32> to vector<32x32xbf16>
    %cst_582 = arith.constant dense<0.000000e+00> : vector<64x32xf32>
    %1174 = tpu.matmul %2, %1173, %cst_582 {dimension_numbers = #tpu.dot_dimension_numbers<[1], [0], [0], [1], [0, 0, 1, 1], [], []>} : vector<64x32xbf16>, vector<32x32xbf16>, vector<64x32xf32> -> vector<64x32xf32>
    %1175 = arith.truncf %1174 : vector<64x32xf32> to vector<64x32xbf16>
    %c10_583 = arith.constant 10 : index
    %c0_584 = arith.constant 0 : index
    %1176 = vector.load %arg2[%c10_583, %c0_584] : memref<16x128xf32, #tpu.memory_space<vmem>>, vector<1x32xf32>
    %1177 = vector.extract_strided_slice %1175 {offsets = [0, 0], sizes = [32, 32], strides = [1, 1]} : vector<64x32xbf16> to vector<32x32xbf16>
    %c512_585 = arith.constant 512 : index
    %c0_586 = arith.constant 0 : index
    %1178 = vector.load %arg1[%c512_585, %c0_586] : memref<640x128xbf16, #tpu.memory_space<vmem>>, vector<32x32xbf16>
    %cst_587 = arith.constant dense<0.000000e+00> : vector<32x32xf32>
    %1179 = tpu.matmul %1177, %1178, %cst_587 {dimension_numbers = #tpu.dot_dimension_numbers<[1], [0], [0], [1], [0, 0, 1, 1], [], []>} : vector<32x32xbf16>, vector<32x32xbf16>, vector<32x32xf32> -> vector<32x32xf32>
    %1180 = vector.broadcast %1176 : vector<1x32xf32> to vector<32x32xf32>
    %1181 = arith.addf %1180, %1179 : vector<32x32xf32>
    %1182 = vector.extract_strided_slice %1175 {offsets = [32, 0], sizes = [32, 32], strides = [1, 1]} : vector<64x32xbf16> to vector<32x32xbf16>
    %c544_588 = arith.constant 544 : index
    %c0_589 = arith.constant 0 : index
    %1183 = vector.load %arg1[%c544_588, %c0_589] : memref<640x128xbf16, #tpu.memory_space<vmem>>, vector<32x32xbf16>
    %cst_590 = arith.constant dense<0.000000e+00> : vector<32x32xf32>
    %1184 = tpu.matmul %1182, %1183, %cst_590 {dimension_numbers = #tpu.dot_dimension_numbers<[1], [0], [0], [1], [0, 0, 1, 1], [], []>} : vector<32x32xbf16>, vector<32x32xbf16>, vector<32x32xf32> -> vector<32x32xf32>
    %1185 = arith.addf %1181, %1184 : vector<32x32xf32>
    %c576_591 = arith.constant 576 : index
    %c0_592 = arith.constant 0 : index
    %1186 = vector.load %arg1[%c576_591, %c0_592] : memref<640x128xbf16, #tpu.memory_space<vmem>>, vector<32x32xbf16>
    %cst_593 = arith.constant dense<0.000000e+00> : vector<32x32xf32>
    %1187 = tpu.matmul %1173, %1186, %cst_593 {dimension_numbers = #tpu.dot_dimension_numbers<[1], [0], [0], [1], [0, 0, 1, 1], [], []>} : vector<32x32xbf16>, vector<32x32xbf16>, vector<32x32xf32> -> vector<32x32xf32>
    %1188 = arith.addf %1185, %1187 : vector<32x32xf32>
    %cst_594 = arith.constant dense<0.000000e+00> : vector<32xf32>
    %1189 = vector.multi_reduction <add>, %1188, %cst_594 [1] : vector<32x32xf32> to vector<32xf32>
    %1190 = vector.shape_cast %1189 : vector<32xf32> to vector<32x1xf32>
    %cst_595 = arith.constant 3.125000e-02 : f32
    %1191 = vector.broadcast %cst_595 : f32 to vector<32x1xf32>
    %1192 = arith.mulf %1190, %1191 : vector<32x1xf32>
    %1193 = arith.mulf %1188, %1188 : vector<32x32xf32>
    %cst_596 = arith.constant dense<0.000000e+00> : vector<32xf32>
    %1194 = vector.multi_reduction <add>, %1193, %cst_596 [1] : vector<32x32xf32> to vector<32xf32>
    %1195 = vector.shape_cast %1194 : vector<32xf32> to vector<32x1xf32>
    %cst_597 = arith.constant 3.125000e-02 : f32
    %1196 = vector.broadcast %cst_597 : f32 to vector<32x1xf32>
    %1197 = arith.mulf %1195, %1196 : vector<32x1xf32>
    %1198 = arith.mulf %1192, %1192 : vector<32x1xf32>
    %1199 = arith.subf %1197, %1198 : vector<32x1xf32>
    %1200 = vector.broadcast %1192 : vector<32x1xf32> to vector<32x32xf32>
    %1201 = arith.subf %1188, %1200 : vector<32x32xf32>
    %cst_598 = arith.constant 9.99999974E-6 : f32
    %1202 = vector.broadcast %cst_598 : f32 to vector<32x1xf32>
    %1203 = arith.addf %1199, %1202 : vector<32x1xf32>
    %1204 = math.rsqrt %1203 : vector<32x1xf32>
    %1205 = vector.broadcast %1204 : vector<32x1xf32> to vector<32x32xf32>
    %1206 = arith.mulf %1201, %1205 : vector<32x32xf32>
    %c11_599 = arith.constant 11 : index
    %c0_600 = arith.constant 0 : index
    %1207 = vector.load %arg2[%c11_599, %c0_600] : memref<16x128xf32, #tpu.memory_space<vmem>>, vector<1x32xf32>
    %1208 = vector.broadcast %1207 : vector<1x32xf32> to vector<32x32xf32>
    %1209 = arith.mulf %1206, %1208 : vector<32x32xf32>
    %c12_601 = arith.constant 12 : index
    %c0_602 = arith.constant 0 : index
    %1210 = vector.load %arg2[%c12_601, %c0_602] : memref<16x128xf32, #tpu.memory_space<vmem>>, vector<1x32xf32>
    %1211 = vector.broadcast %1210 : vector<1x32xf32> to vector<32x32xf32>
    %1212 = arith.addf %1209, %1211 : vector<32x32xf32>
    %cst_603 = arith.constant 0.000000e+00 : f32
    %1213 = vector.broadcast %cst_603 : f32 to vector<32x32xf32>
    %1214 = arith.maximumf %1212, %1213 : vector<32x32xf32>
    %1215 = arith.addf %1130, %1214 : vector<32x32xf32>
    %1216 = arith.truncf %1215 : vector<32x32xf32> to vector<32x32xbf16>
    %cst_604 = arith.constant dense<0.000000e+00> : vector<64x32xf32>
    %1217 = tpu.matmul %1, %1216, %cst_604 {dimension_numbers = #tpu.dot_dimension_numbers<[1], [0], [0], [1], [0, 0, 1, 1], [], []>} : vector<64x32xbf16>, vector<32x32xbf16>, vector<64x32xf32> -> vector<64x32xf32>
    %1218 = arith.truncf %1217 : vector<64x32xf32> to vector<64x32xbf16>
    %c1_605 = arith.constant 1 : index
    %c0_606 = arith.constant 0 : index
    %1219 = vector.load %arg2[%c1_605, %c0_606] : memref<16x128xf32, #tpu.memory_space<vmem>>, vector<1x32xf32>
    %1220 = vector.extract_strided_slice %1218 {offsets = [0, 0], sizes = [32, 32], strides = [1, 1]} : vector<64x32xbf16> to vector<32x32xbf16>
    %c224_607 = arith.constant 224 : index
    %c0_608 = arith.constant 0 : index
    %1221 = vector.load %arg1[%c224_607, %c0_608] : memref<640x128xbf16, #tpu.memory_space<vmem>>, vector<32x32xbf16>
    %cst_609 = arith.constant dense<0.000000e+00> : vector<32x32xf32>
    %1222 = tpu.matmul %1220, %1221, %cst_609 {dimension_numbers = #tpu.dot_dimension_numbers<[1], [0], [0], [1], [0, 0, 1, 1], [], []>} : vector<32x32xbf16>, vector<32x32xbf16>, vector<32x32xf32> -> vector<32x32xf32>
    %1223 = vector.broadcast %1219 : vector<1x32xf32> to vector<32x32xf32>
    %1224 = arith.addf %1223, %1222 : vector<32x32xf32>
    %1225 = vector.extract_strided_slice %1218 {offsets = [32, 0], sizes = [32, 32], strides = [1, 1]} : vector<64x32xbf16> to vector<32x32xbf16>
    %c256_610 = arith.constant 256 : index
    %c0_611 = arith.constant 0 : index
    %1226 = vector.load %arg1[%c256_610, %c0_611] : memref<640x128xbf16, #tpu.memory_space<vmem>>, vector<32x32xbf16>
    %cst_612 = arith.constant dense<0.000000e+00> : vector<32x32xf32>
    %1227 = tpu.matmul %1225, %1226, %cst_612 {dimension_numbers = #tpu.dot_dimension_numbers<[1], [0], [0], [1], [0, 0, 1, 1], [], []>} : vector<32x32xbf16>, vector<32x32xbf16>, vector<32x32xf32> -> vector<32x32xf32>
    %1228 = arith.addf %1224, %1227 : vector<32x32xf32>
    %c288_613 = arith.constant 288 : index
    %c0_614 = arith.constant 0 : index
    %1229 = vector.load %arg1[%c288_613, %c0_614] : memref<640x128xbf16, #tpu.memory_space<vmem>>, vector<32x32xbf16>
    %cst_615 = arith.constant dense<0.000000e+00> : vector<32x32xf32>
    %1230 = tpu.matmul %1216, %1229, %cst_615 {dimension_numbers = #tpu.dot_dimension_numbers<[1], [0], [0], [1], [0, 0, 1, 1], [], []>} : vector<32x32xbf16>, vector<32x32xbf16>, vector<32x32xf32> -> vector<32x32xf32>
    %1231 = arith.addf %1228, %1230 : vector<32x32xf32>
    %1232 = arith.addf %1231, %18 : vector<32x32xf32>
    %cst_616 = arith.constant dense<0.000000e+00> : vector<32xf32>
    %1233 = vector.multi_reduction <add>, %1232, %cst_616 [1] : vector<32x32xf32> to vector<32xf32>
    %1234 = vector.shape_cast %1233 : vector<32xf32> to vector<32x1xf32>
    %cst_617 = arith.constant 3.125000e-02 : f32
    %1235 = vector.broadcast %cst_617 : f32 to vector<32x1xf32>
    %1236 = arith.mulf %1234, %1235 : vector<32x1xf32>
    %1237 = arith.mulf %1232, %1232 : vector<32x32xf32>
    %cst_618 = arith.constant dense<0.000000e+00> : vector<32xf32>
    %1238 = vector.multi_reduction <add>, %1237, %cst_618 [1] : vector<32x32xf32> to vector<32xf32>
    %1239 = vector.shape_cast %1238 : vector<32xf32> to vector<32x1xf32>
    %cst_619 = arith.constant 3.125000e-02 : f32
    %1240 = vector.broadcast %cst_619 : f32 to vector<32x1xf32>
    %1241 = arith.mulf %1239, %1240 : vector<32x1xf32>
    %1242 = arith.mulf %1236, %1236 : vector<32x1xf32>
    %1243 = arith.subf %1241, %1242 : vector<32x1xf32>
    %1244 = vector.broadcast %1236 : vector<32x1xf32> to vector<32x32xf32>
    %1245 = arith.subf %1232, %1244 : vector<32x32xf32>
    %cst_620 = arith.constant 9.99999974E-6 : f32
    %1246 = vector.broadcast %cst_620 : f32 to vector<32x1xf32>
    %1247 = arith.addf %1243, %1246 : vector<32x1xf32>
    %1248 = math.rsqrt %1247 : vector<32x1xf32>
    %1249 = vector.broadcast %1248 : vector<32x1xf32> to vector<32x32xf32>
    %1250 = arith.mulf %1245, %1249 : vector<32x32xf32>
    %c2_621 = arith.constant 2 : index
    %c0_622 = arith.constant 0 : index
    %1251 = vector.load %arg2[%c2_621, %c0_622] : memref<16x128xf32, #tpu.memory_space<vmem>>, vector<1x32xf32>
    %1252 = vector.broadcast %1251 : vector<1x32xf32> to vector<32x32xf32>
    %1253 = arith.mulf %1250, %1252 : vector<32x32xf32>
    %c3_623 = arith.constant 3 : index
    %c0_624 = arith.constant 0 : index
    %1254 = vector.load %arg2[%c3_623, %c0_624] : memref<16x128xf32, #tpu.memory_space<vmem>>, vector<1x32xf32>
    %1255 = vector.broadcast %1254 : vector<1x32xf32> to vector<32x32xf32>
    %1256 = arith.addf %1253, %1255 : vector<32x32xf32>
    %cst_625 = arith.constant 0.000000e+00 : f32
    %1257 = vector.broadcast %cst_625 : f32 to vector<32x32xf32>
    %1258 = arith.maximumf %1256, %1257 : vector<32x32xf32>
    %1259 = arith.truncf %1258 : vector<32x32xf32> to vector<32x32xbf16>
    %cst_626 = arith.constant dense<0.000000e+00> : vector<64x32xf32>
    %1260 = tpu.matmul %1, %1259, %cst_626 {dimension_numbers = #tpu.dot_dimension_numbers<[1], [0], [0], [1], [0, 0, 1, 1], [], []>} : vector<64x32xbf16>, vector<32x32xbf16>, vector<64x32xf32> -> vector<64x32xf32>
    %1261 = arith.truncf %1260 : vector<64x32xf32> to vector<64x32xbf16>
    %c4_627 = arith.constant 4 : index
    %c0_628 = arith.constant 0 : index
    %1262 = vector.load %arg2[%c4_627, %c0_628] : memref<16x128xf32, #tpu.memory_space<vmem>>, vector<1x32xf32>
    %1263 = vector.extract_strided_slice %1261 {offsets = [0, 0], sizes = [32, 32], strides = [1, 1]} : vector<64x32xbf16> to vector<32x32xbf16>
    %c320_629 = arith.constant 320 : index
    %c0_630 = arith.constant 0 : index
    %1264 = vector.load %arg1[%c320_629, %c0_630] : memref<640x128xbf16, #tpu.memory_space<vmem>>, vector<32x32xbf16>
    %cst_631 = arith.constant dense<0.000000e+00> : vector<32x32xf32>
    %1265 = tpu.matmul %1263, %1264, %cst_631 {dimension_numbers = #tpu.dot_dimension_numbers<[1], [0], [0], [1], [0, 0, 1, 1], [], []>} : vector<32x32xbf16>, vector<32x32xbf16>, vector<32x32xf32> -> vector<32x32xf32>
    %1266 = vector.broadcast %1262 : vector<1x32xf32> to vector<32x32xf32>
    %1267 = arith.addf %1266, %1265 : vector<32x32xf32>
    %1268 = vector.extract_strided_slice %1261 {offsets = [32, 0], sizes = [32, 32], strides = [1, 1]} : vector<64x32xbf16> to vector<32x32xbf16>
    %c352_632 = arith.constant 352 : index
    %c0_633 = arith.constant 0 : index
    %1269 = vector.load %arg1[%c352_632, %c0_633] : memref<640x128xbf16, #tpu.memory_space<vmem>>, vector<32x32xbf16>
    %cst_634 = arith.constant dense<0.000000e+00> : vector<32x32xf32>
    %1270 = tpu.matmul %1268, %1269, %cst_634 {dimension_numbers = #tpu.dot_dimension_numbers<[1], [0], [0], [1], [0, 0, 1, 1], [], []>} : vector<32x32xbf16>, vector<32x32xbf16>, vector<32x32xf32> -> vector<32x32xf32>
    %1271 = arith.addf %1267, %1270 : vector<32x32xf32>
    %c384_635 = arith.constant 384 : index
    %c0_636 = arith.constant 0 : index
    %1272 = vector.load %arg1[%c384_635, %c0_636] : memref<640x128xbf16, #tpu.memory_space<vmem>>, vector<32x32xbf16>
    %cst_637 = arith.constant dense<0.000000e+00> : vector<32x32xf32>
    %1273 = tpu.matmul %1259, %1272, %cst_637 {dimension_numbers = #tpu.dot_dimension_numbers<[1], [0], [0], [1], [0, 0, 1, 1], [], []>} : vector<32x32xbf16>, vector<32x32xbf16>, vector<32x32xf32> -> vector<32x32xf32>
    %1274 = arith.addf %1271, %1273 : vector<32x32xf32>
    %cst_638 = arith.constant dense<0.000000e+00> : vector<32xf32>
    %1275 = vector.multi_reduction <add>, %1274, %cst_638 [1] : vector<32x32xf32> to vector<32xf32>
    %1276 = vector.shape_cast %1275 : vector<32xf32> to vector<32x1xf32>
    %cst_639 = arith.constant 3.125000e-02 : f32
    %1277 = vector.broadcast %cst_639 : f32 to vector<32x1xf32>
    %1278 = arith.mulf %1276, %1277 : vector<32x1xf32>
    %1279 = arith.mulf %1274, %1274 : vector<32x32xf32>
    %cst_640 = arith.constant dense<0.000000e+00> : vector<32xf32>
    %1280 = vector.multi_reduction <add>, %1279, %cst_640 [1] : vector<32x32xf32> to vector<32xf32>
    %1281 = vector.shape_cast %1280 : vector<32xf32> to vector<32x1xf32>
    %cst_641 = arith.constant 3.125000e-02 : f32
    %1282 = vector.broadcast %cst_641 : f32 to vector<32x1xf32>
    %1283 = arith.mulf %1281, %1282 : vector<32x1xf32>
    %1284 = arith.mulf %1278, %1278 : vector<32x1xf32>
    %1285 = arith.subf %1283, %1284 : vector<32x1xf32>
    %1286 = vector.broadcast %1278 : vector<32x1xf32> to vector<32x32xf32>
    %1287 = arith.subf %1274, %1286 : vector<32x32xf32>
    %cst_642 = arith.constant 9.99999974E-6 : f32
    %1288 = vector.broadcast %cst_642 : f32 to vector<32x1xf32>
    %1289 = arith.addf %1285, %1288 : vector<32x1xf32>
    %1290 = math.rsqrt %1289 : vector<32x1xf32>
    %1291 = vector.broadcast %1290 : vector<32x1xf32> to vector<32x32xf32>
    %1292 = arith.mulf %1287, %1291 : vector<32x32xf32>
    %c5_643 = arith.constant 5 : index
    %c0_644 = arith.constant 0 : index
    %1293 = vector.load %arg2[%c5_643, %c0_644] : memref<16x128xf32, #tpu.memory_space<vmem>>, vector<1x32xf32>
    %1294 = vector.broadcast %1293 : vector<1x32xf32> to vector<32x32xf32>
    %1295 = arith.mulf %1292, %1294 : vector<32x32xf32>
    %c6_645 = arith.constant 6 : index
    %c0_646 = arith.constant 0 : index
    %1296 = vector.load %arg2[%c6_645, %c0_646] : memref<16x128xf32, #tpu.memory_space<vmem>>, vector<1x32xf32>
    %1297 = vector.broadcast %1296 : vector<1x32xf32> to vector<32x32xf32>
    %1298 = arith.addf %1295, %1297 : vector<32x32xf32>
    %cst_647 = arith.constant 0.000000e+00 : f32
    %1299 = vector.broadcast %cst_647 : f32 to vector<32x32xf32>
    %1300 = arith.maximumf %1298, %1299 : vector<32x32xf32>
    %1301 = arith.addf %1215, %1300 : vector<32x32xf32>
    %1302 = arith.truncf %1301 : vector<32x32xf32> to vector<32x32xbf16>
    %cst_648 = arith.constant dense<0.000000e+00> : vector<64x32xf32>
    %1303 = tpu.matmul %2, %1302, %cst_648 {dimension_numbers = #tpu.dot_dimension_numbers<[1], [0], [0], [1], [0, 0, 1, 1], [], []>} : vector<64x32xbf16>, vector<32x32xbf16>, vector<64x32xf32> -> vector<64x32xf32>
    %1304 = arith.truncf %1303 : vector<64x32xf32> to vector<64x32xbf16>
    %c7_649 = arith.constant 7 : index
    %c0_650 = arith.constant 0 : index
    %1305 = vector.load %arg2[%c7_649, %c0_650] : memref<16x128xf32, #tpu.memory_space<vmem>>, vector<1x32xf32>
    %1306 = vector.extract_strided_slice %1304 {offsets = [0, 0], sizes = [32, 32], strides = [1, 1]} : vector<64x32xbf16> to vector<32x32xbf16>
    %c416_651 = arith.constant 416 : index
    %c0_652 = arith.constant 0 : index
    %1307 = vector.load %arg1[%c416_651, %c0_652] : memref<640x128xbf16, #tpu.memory_space<vmem>>, vector<32x32xbf16>
    %cst_653 = arith.constant dense<0.000000e+00> : vector<32x32xf32>
    %1308 = tpu.matmul %1306, %1307, %cst_653 {dimension_numbers = #tpu.dot_dimension_numbers<[1], [0], [0], [1], [0, 0, 1, 1], [], []>} : vector<32x32xbf16>, vector<32x32xbf16>, vector<32x32xf32> -> vector<32x32xf32>
    %1309 = vector.broadcast %1305 : vector<1x32xf32> to vector<32x32xf32>
    %1310 = arith.addf %1309, %1308 : vector<32x32xf32>
    %1311 = vector.extract_strided_slice %1304 {offsets = [32, 0], sizes = [32, 32], strides = [1, 1]} : vector<64x32xbf16> to vector<32x32xbf16>
    %c448_654 = arith.constant 448 : index
    %c0_655 = arith.constant 0 : index
    %1312 = vector.load %arg1[%c448_654, %c0_655] : memref<640x128xbf16, #tpu.memory_space<vmem>>, vector<32x32xbf16>
    %cst_656 = arith.constant dense<0.000000e+00> : vector<32x32xf32>
    %1313 = tpu.matmul %1311, %1312, %cst_656 {dimension_numbers = #tpu.dot_dimension_numbers<[1], [0], [0], [1], [0, 0, 1, 1], [], []>} : vector<32x32xbf16>, vector<32x32xbf16>, vector<32x32xf32> -> vector<32x32xf32>
    %1314 = arith.addf %1310, %1313 : vector<32x32xf32>
    %c480_657 = arith.constant 480 : index
    %c0_658 = arith.constant 0 : index
    %1315 = vector.load %arg1[%c480_657, %c0_658] : memref<640x128xbf16, #tpu.memory_space<vmem>>, vector<32x32xbf16>
    %cst_659 = arith.constant dense<0.000000e+00> : vector<32x32xf32>
    %1316 = tpu.matmul %1302, %1315, %cst_659 {dimension_numbers = #tpu.dot_dimension_numbers<[1], [0], [0], [1], [0, 0, 1, 1], [], []>} : vector<32x32xbf16>, vector<32x32xbf16>, vector<32x32xf32> -> vector<32x32xf32>
    %1317 = arith.addf %1314, %1316 : vector<32x32xf32>
    %cst_660 = arith.constant dense<0.000000e+00> : vector<32xf32>
    %1318 = vector.multi_reduction <add>, %1317, %cst_660 [1] : vector<32x32xf32> to vector<32xf32>
    %1319 = vector.shape_cast %1318 : vector<32xf32> to vector<32x1xf32>
    %cst_661 = arith.constant 3.125000e-02 : f32
    %1320 = vector.broadcast %cst_661 : f32 to vector<32x1xf32>
    %1321 = arith.mulf %1319, %1320 : vector<32x1xf32>
    %1322 = arith.mulf %1317, %1317 : vector<32x32xf32>
    %cst_662 = arith.constant dense<0.000000e+00> : vector<32xf32>
    %1323 = vector.multi_reduction <add>, %1322, %cst_662 [1] : vector<32x32xf32> to vector<32xf32>
    %1324 = vector.shape_cast %1323 : vector<32xf32> to vector<32x1xf32>
    %cst_663 = arith.constant 3.125000e-02 : f32
    %1325 = vector.broadcast %cst_663 : f32 to vector<32x1xf32>
    %1326 = arith.mulf %1324, %1325 : vector<32x1xf32>
    %1327 = arith.mulf %1321, %1321 : vector<32x1xf32>
    %1328 = arith.subf %1326, %1327 : vector<32x1xf32>
    %1329 = vector.broadcast %1321 : vector<32x1xf32> to vector<32x32xf32>
    %1330 = arith.subf %1317, %1329 : vector<32x32xf32>
    %cst_664 = arith.constant 9.99999974E-6 : f32
    %1331 = vector.broadcast %cst_664 : f32 to vector<32x1xf32>
    %1332 = arith.addf %1328, %1331 : vector<32x1xf32>
    %1333 = math.rsqrt %1332 : vector<32x1xf32>
    %1334 = vector.broadcast %1333 : vector<32x1xf32> to vector<32x32xf32>
    %1335 = arith.mulf %1330, %1334 : vector<32x32xf32>
    %c8_665 = arith.constant 8 : index
    %c0_666 = arith.constant 0 : index
    %1336 = vector.load %arg2[%c8_665, %c0_666] : memref<16x128xf32, #tpu.memory_space<vmem>>, vector<1x32xf32>
    %1337 = vector.broadcast %1336 : vector<1x32xf32> to vector<32x32xf32>
    %1338 = arith.mulf %1335, %1337 : vector<32x32xf32>
    %c9_667 = arith.constant 9 : index
    %c0_668 = arith.constant 0 : index
    %1339 = vector.load %arg2[%c9_667, %c0_668] : memref<16x128xf32, #tpu.memory_space<vmem>>, vector<1x32xf32>
    %1340 = vector.broadcast %1339 : vector<1x32xf32> to vector<32x32xf32>
    %1341 = arith.addf %1338, %1340 : vector<32x32xf32>
    %cst_669 = arith.constant 0.000000e+00 : f32
    %1342 = vector.broadcast %cst_669 : f32 to vector<32x32xf32>
    %1343 = arith.maximumf %1341, %1342 : vector<32x32xf32>
    %1344 = arith.truncf %1343 : vector<32x32xf32> to vector<32x32xbf16>
    %cst_670 = arith.constant dense<0.000000e+00> : vector<64x32xf32>
    %1345 = tpu.matmul %2, %1344, %cst_670 {dimension_numbers = #tpu.dot_dimension_numbers<[1], [0], [0], [1], [0, 0, 1, 1], [], []>} : vector<64x32xbf16>, vector<32x32xbf16>, vector<64x32xf32> -> vector<64x32xf32>
    %1346 = arith.truncf %1345 : vector<64x32xf32> to vector<64x32xbf16>
    %c10_671 = arith.constant 10 : index
    %c0_672 = arith.constant 0 : index
    %1347 = vector.load %arg2[%c10_671, %c0_672] : memref<16x128xf32, #tpu.memory_space<vmem>>, vector<1x32xf32>
    %1348 = vector.extract_strided_slice %1346 {offsets = [0, 0], sizes = [32, 32], strides = [1, 1]} : vector<64x32xbf16> to vector<32x32xbf16>
    %c512_673 = arith.constant 512 : index
    %c0_674 = arith.constant 0 : index
    %1349 = vector.load %arg1[%c512_673, %c0_674] : memref<640x128xbf16, #tpu.memory_space<vmem>>, vector<32x32xbf16>
    %cst_675 = arith.constant dense<0.000000e+00> : vector<32x32xf32>
    %1350 = tpu.matmul %1348, %1349, %cst_675 {dimension_numbers = #tpu.dot_dimension_numbers<[1], [0], [0], [1], [0, 0, 1, 1], [], []>} : vector<32x32xbf16>, vector<32x32xbf16>, vector<32x32xf32> -> vector<32x32xf32>
    %1351 = vector.broadcast %1347 : vector<1x32xf32> to vector<32x32xf32>
    %1352 = arith.addf %1351, %1350 : vector<32x32xf32>
    %1353 = vector.extract_strided_slice %1346 {offsets = [32, 0], sizes = [32, 32], strides = [1, 1]} : vector<64x32xbf16> to vector<32x32xbf16>
    %c544_676 = arith.constant 544 : index
    %c0_677 = arith.constant 0 : index
    %1354 = vector.load %arg1[%c544_676, %c0_677] : memref<640x128xbf16, #tpu.memory_space<vmem>>, vector<32x32xbf16>
    %cst_678 = arith.constant dense<0.000000e+00> : vector<32x32xf32>
    %1355 = tpu.matmul %1353, %1354, %cst_678 {dimension_numbers = #tpu.dot_dimension_numbers<[1], [0], [0], [1], [0, 0, 1, 1], [], []>} : vector<32x32xbf16>, vector<32x32xbf16>, vector<32x32xf32> -> vector<32x32xf32>
    %1356 = arith.addf %1352, %1355 : vector<32x32xf32>
    %c576_679 = arith.constant 576 : index
    %c0_680 = arith.constant 0 : index
    %1357 = vector.load %arg1[%c576_679, %c0_680] : memref<640x128xbf16, #tpu.memory_space<vmem>>, vector<32x32xbf16>
    %cst_681 = arith.constant dense<0.000000e+00> : vector<32x32xf32>
    %1358 = tpu.matmul %1344, %1357, %cst_681 {dimension_numbers = #tpu.dot_dimension_numbers<[1], [0], [0], [1], [0, 0, 1, 1], [], []>} : vector<32x32xbf16>, vector<32x32xbf16>, vector<32x32xf32> -> vector<32x32xf32>
    %1359 = arith.addf %1356, %1358 : vector<32x32xf32>
    %cst_682 = arith.constant dense<0.000000e+00> : vector<32xf32>
    %1360 = vector.multi_reduction <add>, %1359, %cst_682 [1] : vector<32x32xf32> to vector<32xf32>
    %1361 = vector.shape_cast %1360 : vector<32xf32> to vector<32x1xf32>
    %cst_683 = arith.constant 3.125000e-02 : f32
    %1362 = vector.broadcast %cst_683 : f32 to vector<32x1xf32>
    %1363 = arith.mulf %1361, %1362 : vector<32x1xf32>
    %1364 = arith.mulf %1359, %1359 : vector<32x32xf32>
    %cst_684 = arith.constant dense<0.000000e+00> : vector<32xf32>
    %1365 = vector.multi_reduction <add>, %1364, %cst_684 [1] : vector<32x32xf32> to vector<32xf32>
    %1366 = vector.shape_cast %1365 : vector<32xf32> to vector<32x1xf32>
    %cst_685 = arith.constant 3.125000e-02 : f32
    %1367 = vector.broadcast %cst_685 : f32 to vector<32x1xf32>
    %1368 = arith.mulf %1366, %1367 : vector<32x1xf32>
    %1369 = arith.mulf %1363, %1363 : vector<32x1xf32>
    %1370 = arith.subf %1368, %1369 : vector<32x1xf32>
    %1371 = vector.broadcast %1363 : vector<32x1xf32> to vector<32x32xf32>
    %1372 = arith.subf %1359, %1371 : vector<32x32xf32>
    %cst_686 = arith.constant 9.99999974E-6 : f32
    %1373 = vector.broadcast %cst_686 : f32 to vector<32x1xf32>
    %1374 = arith.addf %1370, %1373 : vector<32x1xf32>
    %1375 = math.rsqrt %1374 : vector<32x1xf32>
    %1376 = vector.broadcast %1375 : vector<32x1xf32> to vector<32x32xf32>
    %1377 = arith.mulf %1372, %1376 : vector<32x32xf32>
    %c11_687 = arith.constant 11 : index
    %c0_688 = arith.constant 0 : index
    %1378 = vector.load %arg2[%c11_687, %c0_688] : memref<16x128xf32, #tpu.memory_space<vmem>>, vector<1x32xf32>
    %1379 = vector.broadcast %1378 : vector<1x32xf32> to vector<32x32xf32>
    %1380 = arith.mulf %1377, %1379 : vector<32x32xf32>
    %c12_689 = arith.constant 12 : index
    %c0_690 = arith.constant 0 : index
    %1381 = vector.load %arg2[%c12_689, %c0_690] : memref<16x128xf32, #tpu.memory_space<vmem>>, vector<1x32xf32>
    %1382 = vector.broadcast %1381 : vector<1x32xf32> to vector<32x32xf32>
    %1383 = arith.addf %1380, %1382 : vector<32x32xf32>
    %cst_691 = arith.constant 0.000000e+00 : f32
    %1384 = vector.broadcast %cst_691 : f32 to vector<32x32xf32>
    %1385 = arith.maximumf %1383, %1384 : vector<32x32xf32>
    %1386 = arith.addf %1301, %1385 : vector<32x32xf32>
    %c608 = arith.constant 608 : index
    %c0_692 = arith.constant 0 : index
    %1387 = vector.load %arg1[%c608, %c0_692] : memref<640x128xbf16, #tpu.memory_space<vmem>>, vector<32x128xbf16>
    %1388 = arith.truncf %1386 : vector<32x32xf32> to vector<32x32xbf16>
    %cst_693 = arith.constant dense<0.000000e+00> : vector<32x128xf32>
    %1389 = tpu.matmul %1388, %1387, %cst_693 {dimension_numbers = #tpu.dot_dimension_numbers<[1], [0], [0], [1], [0, 0, 1, 1], [], []>} : vector<32x32xbf16>, vector<32x128xbf16>, vector<32x128xf32> -> vector<32x128xf32>
    %c13 = arith.constant 13 : index
    %c0_694 = arith.constant 0 : index
    %1390 = vector.load %arg2[%c13, %c0_694] : memref<16x128xf32, #tpu.memory_space<vmem>>, vector<1x128xf32>
    %1391 = vector.broadcast %1390 : vector<1x128xf32> to vector<32x128xf32>
    %1392 = arith.addf %1389, %1391 : vector<32x128xf32>
    %c0_695 = arith.constant 0 : index
    %c0_696 = arith.constant 0 : index
    %1393 = vector.load %arg3[%c0_695, %c0_696] : memref<32x128xf32, #tpu.memory_space<vmem>>, vector<32x128xf32>
    tpu.vector_store %arg3[%c0_695, %c0_696], %1392 {strides = array<i32>} : memref<32x128xf32, #tpu.memory_space<vmem>>, vector<32x128xf32>,
    return
  }
}

</mosaic_0001>

<bundles_post_ra>
// kernel: forward.1
= control target key start
LH: loop header
LB: loop body
LE: loop exit
PB: predicated region body
PF: predicated region fallthrough
CT: control target
= control target key end

     0   :  { %vm58_vm0 = vcmask 261120   ;;  %s17313_s0 = inlined_call_operand.vmem [shape: f32[32,32], index: 0, kind: input, shape index: {}]   ;;  %s17314_s1 = inlined_call_operand.vmem [shape: bf16[640,128], index: 1, kind: input, shape index: {}]   ;;  %s17315_s2 = inlined_call_operand.vmem [shape: f32[16,128], index: 2, kind: input, shape index: {}]   ;;  %s17316_s3 = inlined_call_operand.hbm [shape: f32[32,128], index: 3, kind: output, shape index: {}]  }
   0x1   :  { %v14114_v0 = vld [vmem:[%s17313_s0] sm:$0xff]  ;;  %v14119_v1 = vld [vmem:[%s17313_s0 + $0x8] sm:$0xff]  ;;  %v14124_v2 = vld [vmem:[%s17313_s0 + $0x10] sm:$0xff] }
   0x2   :  { %v14128_v3 = vpack.c.bf16 %v14119_v1, %v14114_v0  ;;  %v14133_v4 = vld [vmem:[%s17313_s0 + $0x18] sm:$0xff]  ;;  %v14142_v6 = vld [vmem:[%s17314_s1] sm:$0xff]   ;;  %v14152_v7 = vld [vmem:[%s17314_s1 + $0x10] sm:$0xff]  }
   0x3   :  { %v14137_v5 = vpack.c.bf16 %v14133_v4, %v14124_v2  ;;  %11977 = vmatprep.mubr.msk.bf16.mxu0 %vm58_vm0, %v14142_v6  ;;  %v14158_v8 = vld [vmem:[%s17314_s1 + $0x8] sm:$0xff]   ;;  %11981 = vmatprep.mubr.msk.bf16.mxu1 %vm58_vm0, %v14152_v7  ;;  %v14167_v9 = vld [vmem:[%s17314_s1 + $0x18] sm:$0xff]   ;;  %v13564_v10 = vld [vmem:[%s17314_s1 + $0x40] sm:$0xff]  }
   0x4   :  { %11973 = vmatprep.subr.bf16.mxu0 %v14128_v3  ;;  %13157 = vmatprep.subr.bf16.mxu1 %v14128_v3  ;;  %v13565_v11 = vld [vmem:[%s17314_s1 + $0x70] sm:$0xff]  }
   0x5   :  { %11974 = vmatpush3.bf16.msra.mxu0 %v14128_v3  ;;  %13159 = vmatpush3.bf16.msra.mxu1 %v14128_v3 }
   0x6   :  { %11975 = vmatprep.subr.bf16.mxu0 %v14137_v5  ;;  %13158 = vmatprep.subr.bf16.mxu1 %v14137_v5 }
   0x9   :  { %11976 = vmatpush3.bf16.msra.mxu0 %v14137_v5  ;;  %13160 = vmatpush3.bf16.msra.mxu1 %v14137_v5 }
   0xa   :  { %12009 = vmatprep.subr.bf16.mxu0 %v13565_v11  ;;  %11985 = vmatprep.subr.bf16.mxu1 %v13564_v10 }
   0xc   :  { %11978 = vmatmul.mubr.msk.bf16.vlgmr.msra.gmra.mrb[0].mxu0 %vm58_vm0, %v14158_v8  ;;  %11982 = vmatmul.mubr.msk.bf16.vlgmr.msra.gmra.mrb[0].mxu1 %vm58_vm0, %v14167_v9 }
   0xd   :  { %12010 = vmatpush3.bf16.msra.mxu0 %v13565_v11  ;;  %11986 = vmatpush3.bf16.msra.mxu1 %v13564_v10 }
   0xe   :  { %8 = vsyncpa [#allocation3], 0  ;;  %v13566_v12 = vld [vmem:[%s17314_s1 + $0x48] sm:$0xff]   ;;  %v13567_v13 = vld [vmem:[%s17314_s1 + $0x78] sm:$0xff]   ;;  %s14088_s11 = smov [#allocation2]  }
   0xf   :  { %11987 = vmatprep.subr.bf16.mxu1 %v13566_v12  ;;  %12011 = vmatprep.subr.bf16.mxu0 %v13567_v13  ;;  %v13568_v14 = vld [vmem:[%s17314_s1 + $0x50] sm:$0xff]   ;;  %v13569_v15 = vld [vmem:[%s17314_s1 + $0x80] sm:$0xff]   ;;  %v13570_v28 = vld [vmem:[%s17314_s1 + $0x58] sm:$0xff]   ;;  %s10988_s12 = sshll.u32 %s14088_s11, 4  ;;  %s10989_s12 = int_to_ptr.vmem [resolvable:$true] %s10988_s12 }
  0x10   :  { %v13571_v29 = vld [vmem:[%s17314_s1 + $0x88] sm:$0xff]   ;;  %v13572_v30 = vld [vmem:[%s17314_s1 + $0x60] sm:$0xff]   ;;  %v13573_v31 = vld [vmem:[%s17314_s1 + $0x90] sm:$0xff]   ;;  %s14064_s13 = scalar_lea.vmem %s10989_s12, 512  ;;  %p14069_p1 = scmp.lt.s32.totalorder %s10989_s12, %s10989_s12 }
  0x11   :  { %11988 = vmatpush3.bf16.msra.mxu1 %v13566_v12  ;;  %12012 = vmatpush3.bf16.msra.mxu0 %v13567_v13  ;;  %v13574_v32 = vld [vmem:[%s17314_s1 + $0x68] sm:$0xff]   ;;  %v13575_v33 = vld [vmem:[%s17314_s1 + $0x98] sm:$0xff]   ;;  %v11011_v34 = vld [vmem:[%s17315_s2] ss:$0 sm:$0xff]  ;;  %p14065_p0 = scmp.ne.s32.totalorder %s10989_s12, %s14064_s13  ;;  %p14070_p2 = scmp.lt.s32.totalorder %s14064_s13, %s14064_s13 }
  0x12   :  { %11993 = vmatprep.subr.bf16.mxu1 %v13568_v14  ;;  %12017 = vmatprep.subr.bf16.mxu0 %v13569_v15  ;;  %v11024_v35 = vld [vmem:[%s17315_s2 + $0x1] ss:$0 sm:$0xff] }
  0x13   :  { %v13576_v12 = vld [vmem:[%s17314_s1 + $0xa0] sm:$0xff]   ;;  %p14071_p3 = por %p14070_p2, %p14069_p1 }
  0x15   :  { %p14072_p4 = pnand %p14071_p3, %p14065_p0 }
  0xdf   :  { %v11979_v16 = vpop.f32.mrb[0].mxu0  ;;  %v11983_v18 = vpop.f32.mrb[0].mxu1 }
  0xe0   :  { %v105_v17 = vpop.f32.mrb[1].mxu0  ;;  %v121_v20 = vpop.f32.mrb[1].mxu1 }
  0xe1   :  { %v11980_v19 = vpop.f32.mrb[2].mxu0  ;;  %v11984_v23 = vpop.f32.mrb[2].mxu1 }
  0xe2   :  { %v137_v21 = vpack.c.bf16 %v11980_v19, %v11979_v16  ;;  %v108_v22 = vpop.f32.mrb[3].mxu0  ;;  %v139_v25 = vpack.c.bf16 %v11984_v23, %v11983_v18  ;;  %v124_v26 = vpop.f32.mrb[3].mxu1 }
  0xe3   :  { %v136_v24 = vpack.c.bf16 %v108_v22, %v105_v17  ;;  %v138_v27 = vpack.c.bf16 %v124_v26, %v121_v20 }
  0xe5   :  { %11989 = vmatprep.mubr.msk.bf16.mxu1 %vm58_vm0, %v136_v24  ;;  %12013 = vmatprep.mubr.msk.bf16.mxu0 %vm58_vm0, %v136_v24 }
  0xe6   :  { %11990 = vmatmul.mubr.msk.bf16.vlgmr.msra.gmra.mrb[4].mxu1 %vm58_vm0, %v137_v21  ;;  %12014 = vmatmul.mubr.msk.bf16.vlgmr.msra.gmra.mrb[4].mxu0 %vm58_vm0, %v137_v21 }
  0xe7   :  { %11994 = vmatpush3.bf16.msra.mxu1 %v13568_v14  ;;  %12018 = vmatpush3.bf16.msra.mxu0 %v13569_v15 }
  0xe8   :  { %11995 = vmatprep.subr.bf16.mxu1 %v13570_v28  ;;  %11997 = vmatprep.mubr.msk.bf16.mxu1 %vm58_vm0, %v138_v27 }
  0xe9   :  { %12019 = vmatprep.subr.bf16.mxu0 %v13571_v29  ;;  %12021 = vmatprep.mubr.msk.bf16.mxu0 %vm58_vm0, %v138_v27 }
  0xeb   :  { %11996 = vmatpush3.bf16.msra.mxu1 %v13570_v28  ;;  %12020 = vmatpush3.bf16.msra.mxu0 %v13571_v29 }
  0xec   :  { %12001 = vmatprep.subr.bf16.mxu1 %v13572_v30  ;;  %12025 = vmatprep.subr.bf16.mxu0 %v13573_v31 }
  0xf2   :  { %11998 = vmatmul.mubr.msk.bf16.vlgmr.msra.gmra.mrb[4].mxu1 %vm58_vm0, %v139_v25  ;;  %12022 = vmatmul.mubr.msk.bf16.vlgmr.msra.gmra.mrb[4].mxu0 %vm58_vm0, %v139_v25 }
  0xf3   :  { %12002 = vmatpush3.bf16.msra.mxu1 %v13572_v30  ;;  %12026 = vmatpush3.bf16.msra.mxu0 %v13573_v31 }
  0xf4   :  { %12003 = vmatprep.subr.bf16.mxu1 %v13574_v32  ;;  %12027 = vmatprep.subr.bf16.mxu0 %v13575_v33 }
  0xf5   :  { %12005 = vmatprep.mubr.msk.bf16.mxu1 %vm58_vm0, %v14128_v3  ;;  %12029 = vmatprep.mubr.msk.bf16.mxu0 %vm58_vm0, %v14128_v3 }
  0xf7   :  { %12004 = vmatpush3.bf16.msra.mxu1 %v13574_v32  ;;  %12028 = vmatpush3.bf16.msra.mxu0 %v13575_v33 }
  0xf8   :  { %12045 = vmatprep.subr.bf16.mxu0 %v13576_v12 }
  0xfe   :  { %12006 = vmatmul.mubr.msk.bf16.vlgmr.msra.gmra.mrb[4].mxu1 %vm58_vm0, %v14137_v5  ;;  %12030 = vmatmul.mubr.msk.bf16.vlgmr.msra.gmra.mrb[4].mxu0 %vm58_vm0, %v14137_v5 }
  0xff   :  { %12037 = vmatprep.mubr.msk.bf16.mxu1 %vm58_vm0, %v14142_v6  ;;  %12046 = vmatpush3.bf16.msra.mxu0 %v13576_v12 }
 0x1d1   :  { %v12007_v36 = vpop.f32.mrb[4].mxu1  ;;  %v12031_v37 = vpop.f32.mrb[4].mxu0 }
 0x1d2   :  { %v351_v38 = vpop.f32.mrb[5].mxu1  ;;  %v563_v39 = vpop.f32.mrb[5].mxu0  ;;  %v14247_v52 = vadd.f32 %v12007_v36, %v11011_v34  ;;  %v13165_v53 = vadd.f32 %v12031_v37, %v11024_v35 }
 0x1d3   :  { %v14235_v40 = vadd.f32 %v11011_v34, %v351_v38  ;;  %v13166_v41 = vadd.f32 %v11024_v35, %v563_v39  ;;  %v12008_v42 = vpop.f32.mrb[6].mxu1  ;;  %v12032_v43 = vpop.f32.mrb[6].mxu0 }
 0x1d4   :  { %v14237_v44 = vadd.f32 %v12008_v42, %v11011_v34  ;;  %v13167_v45 = vadd.f32 %v12032_v43, %v11024_v35  ;;  %v354_v46 = vpop.f32.mrb[7].mxu1  ;;  %v566_v47 = vpop.f32.mrb[7].mxu0  ;;  %v14259_v58 = vadd.f32 %v13165_v53, %v14247_v52 }
 0x1d5   :  { %v14240_v48 = vadd.f32 %v13166_v41, %v14235_v40  ;;  %v14242_v49 = vadd.f32 %v11011_v34, %v354_v46  ;;  %v13168_v50 = vadd.f32 %v11024_v35, %v566_v47 }
 0x1d6   :  { %v14245_v51 = vadd.f32 %v13167_v45, %v14237_v44  ;;  %v592_v62 = vsel %vm58_vm0, %v14259_v58, 0.0  ;;  %v604_v63 = vmul.f32 %v14259_v58, %v14259_v58  ;;  %v11033_v45 = vld [vmem:[%s17315_s2 + $0x2] ss:$0 sm:$0xff] }
 0x1d7   :  { %17381 = vst [vmem:[#allocation5_spill] sm:$0xff] %v14242_v49  ;;  %v14250_v54 = vadd.f32 %v13168_v50, %v14242_v49  ;;  %v586_v55 = vsel %vm58_vm0, %v14240_v48, 0.0  ;;  %v602_v57 = vmul.f32 %v14240_v48, %v14240_v48 }
 0x1d8   :  { %587 = vadd.xlane.f32.xlu0 %v586_v55  ;;  %v595_v56 = vsel %vm58_vm0, %v14245_v51, 0.0  ;;  %v605_v5 = vmul.f32 %v14245_v51, %v14245_v51  ;;  %v612_v10 = vsel %vm58_vm0, %v604_v63, 0.0  ;;  %v11034_v55 = vld [vmem:[%s17315_s2 + $0x3] ss:$0 sm:$0xff] }
 0x1d9   :  { %596 = vadd.xlane.f32.xlu1 %v595_v56  ;;  %v589_v59 = vsel %vm58_vm0, %v14250_v54, 0.0  ;;  %v606_v60 = vsel %vm58_vm0, %v602_v57, 0.0  ;;  %v603_v61 = vmul.f32 %v14250_v54, %v14250_v54 }
 0x1da   :  { %v615_v11 = vsel %vm58_vm0, %v605_v5, 0.0 }
 0x1db   :  { %v609_v3 = vsel %vm58_vm0, %v603_v61, 0.0 }
 0x1dc   :  { %590 = vadd.xlane.f32.xlu0 %v589_v59 }
 0x1dd   :  { %607 = vadd.xlane.f32.xlu1 %v606_v60 }
 0x1e0   :  { %593 = vadd.xlane.f32.xlu0 %v592_v62 }
 0x1e1   :  { %610 = vadd.xlane.f32.xlu1 %v609_v3 }
 0x1e4   :  { %613 = vadd.xlane.f32.xlu0 %v612_v10 }
 0x1e5   :  { %616 = vadd.xlane.f32.xlu1 %v615_v11 }
 0x265   :  { %v588_v13 = vpop.xlane.xlu0 %587 }
 0x266   :  { %v597_v14 = vpop.xlane.xlu1 %596  ;;  %v598_v15 = vmul.f32 0.03125, %v588_v13 }
 0x267   :  { %v601_v25 = vmul.f32 0.03125, %v597_v14 }
 0x268   :  { %v622_v18 = vmul.f32 %v598_v15, %v598_v15  ;;  %v630_v42 = vsub.f32 %v14240_v48, %v598_v15 }
 0x269   :  { %v591_v16 = vpop.xlane.xlu0 %590  ;;  %v625_v34 = vmul.f32 %v601_v25, %v601_v25  ;;  %v633_v48 = vsub.f32 %v14245_v51, %v601_v25  ;;  %v13577_v51 = vld [vmem:[%s17314_s1 + $0xa8] sm:$0xff]   ;;  %v13580_v25 = vld [vmem:[%s17314_s1 + $0xc0] sm:$0xff]  }
 0x26a   :  { %v608_v17 = vpop.xlane.xlu1 %607  ;;  %v599_v19 = vmul.f32 0.03125, %v591_v16  ;;  %12047 = vmatprep.subr.bf16.mxu0 %v13577_v51 }
 0x26b   :  { %v618_v20 = vmul.f32 0.03125, %v608_v17  ;;  %12048 = vmatpush3.bf16.msra.mxu0 %v13577_v51 }
 0x26c   :  { %v623_v26 = vmul.f32 %v599_v19, %v599_v19  ;;  %v631_v47 = vsub.f32 %v14250_v54, %v599_v19 }
 0x26d   :  { %v626_v21 = vsub.f32 %v618_v20, %v622_v18  ;;  %v594_v22 = vpop.xlane.xlu0 %593  ;;  %v13578_v18 = vld [vmem:[%s17314_s1 + $0xb0] sm:$0xff]  }
 0x26e   :  { %v600_v23 = vmul.f32 0.03125, %v594_v22  ;;  %v611_v24 = vpop.xlane.xlu1 %610  ;;  %12053 = vmatprep.subr.bf16.mxu0 %v13578_v18 }
 0x26f   :  { %v634_v27 = vadd.f32 1e-05, %v626_v21  ;;  %v619_v28 = vmul.f32 0.03125, %v611_v24 }
 0x270   :  { %v624_v31 = vmul.f32 %v600_v23, %v600_v23  ;;  %v632_v57 = vsub.f32 %v14259_v58, %v600_v23 }
 0x271   :  { %13600 = vrsqrt.f32 %v634_v27  ;;  %v627_v29 = vsub.f32 %v619_v28, %v623_v26  ;;  %v614_v30 = vpop.xlane.xlu0 %613 }
 0x272   :  { %v620_v32 = vmul.f32 0.03125, %v614_v30  ;;  %v617_v33 = vpop.xlane.xlu1 %616  ;;  %v13581_v30 = vld [vmem:[%s17314_s1 + $0xc8] sm:$0xff]  }
 0x273   :  { %v635_v35 = vadd.f32 1e-05, %v627_v29  ;;  %v621_v36 = vmul.f32 0.03125, %v617_v33 }
 0x274   :  { %v628_v37 = vsub.f32 %v620_v32, %v624_v31  ;;  %v11043_v31 = vld [vmem:[%s17315_s2 + $0x4] ss:$0 sm:$0xff] }
 0x275   :  { %13602 = vrsqrt.f32 %v635_v35  ;;  %v629_v38 = vsub.f32 %v621_v36, %v625_v34 }
 0x276   :  { %v636_v39 = vadd.f32 1e-05, %v628_v37 }
 0x277   :  { %v637_v41 = vadd.f32 1e-05, %v629_v38 }
 0x278   :  { %13604 = vrsqrt.f32 %v636_v39 }
 0x279   :  { %13606 = vrsqrt.f32 %v637_v41 }
 0x27b   :  { %v13601_v43 = vpop.eup %13600 }
 0x27c   :  { %v642_v46 = vmul.f32 %v13601_v43, %v630_v42 }
 0x27e   :  { %v651_v50 = vmul.f32 %v11033_v45, %v642_v46 }
 0x27f   :  { %v13603_v53 = vpop.eup %13602 }
 0x280   :  { %v643_v56 = vmul.f32 %v13603_v53, %v631_v47  ;;  %v660_v61 = vadd.f32 %v11034_v55, %v651_v50 }
 0x282   :  { %v13605_v59 = vpop.eup %13604  ;;  %v652_v60 = vmul.f32 %v11033_v45, %v643_v56  ;;  %v664_v54 = vmax.f32 %v660_v61, 0.0 }
 0x283   :  { %v13607_v62 = vpop.eup %13606  ;;  %v644_v63 = vmul.f32 %v13605_v59, %v632_v57 }
 0x284   :  { %v661_v3 = vadd.f32 %v11034_v55, %v652_v60  ;;  %v645_v5 = vmul.f32 %v13607_v62, %v633_v48  ;;  %v14349_v48 = vld [vmem:[%s17314_s1 + $0x20] sm:$0xff]  }
 0x285   :  { %v653_v10 = vmul.f32 %v11033_v45, %v644_v63 }
 0x286   :  { %v665_v11 = vmax.f32 %v661_v3, 0.0  ;;  %v654_v12 = vmul.f32 %v11033_v45, %v645_v5 }
 0x287   :  { %v662_v13 = vadd.f32 %v11034_v55, %v653_v10 }
 0x288   :  { %v668_v14 = vpack.c.bf16 %v665_v11, %v664_v54  ;;  %v663_v15 = vadd.f32 %v11034_v55, %v654_v12 }
 0x289   :  { %v666_v16 = vmax.f32 %v662_v13, 0.0 }
 0x28a   :  { %12033 = vmatprep.subr.bf16.mxu1 %v668_v14  ;;  %v667_v17 = vmax.f32 %v663_v15, 0.0 }
 0x28b   :  { %12034 = vmatpush3.bf16.msra.mxu1 %v668_v14 }
 0x28c   :  { %v669_v58 = vpack.c.bf16 %v667_v17, %v666_v16 }
 0x28e   :  { %12035 = vmatprep.subr.bf16.mxu1 %v669_v58 }
 0x28f   :  { %12036 = vmatpush3.bf16.msra.mxu1 %v669_v58 }
 0x292   :  { %12038 = vmatmul.mubr.msk.bf16.vlgmr.msra.gmra.mrb[8].mxu1 %vm58_vm0, %v14158_v8 }
 0x293   :  { %12041 = vmatprep.mubr.msk.bf16.mxu1 %vm58_vm0, %v14152_v7 }
 0x29a   :  { %12042 = vmatmul.mubr.msk.bf16.gmra.mrb[12].mxu1 %vm58_vm0, %v14167_v9  ;;  %v13579_v9 = vld [vmem:[%s17314_s1 + $0xb8] sm:$0xff]  }
 0x29b   :  { %12073 = vmatprep.mubr.msk.bf16.mxu1 %vm58_vm0, %v14349_v48 }
 0x365   :  { %v12039_v19 = vpop.f32.mrb[8].mxu1 }
 0x366   :  { %v704_v20 = vpop.f32.mrb[9].mxu1 }
 0x367   :  { %v12040_v8 = vpop.f32.mrb[10].mxu1 }
 0x368   :  { %v736_v21 = vpack.c.bf16 %v12040_v8, %v12039_v19  ;;  %v707_v22 = vpop.f32.mrb[11].mxu1 }
 0x369   :  { %v735_v7 = vpack.c.bf16 %v707_v22, %v704_v20 }
 0x36b   :  { %12049 = vmatprep.mubr.msk.bf16.mxu0 %vm58_vm0, %v735_v7 }
 0x36c   :  { %12050 = vmatmul.mubr.msk.bf16.vlgmr.msra.gmra.mrb[8].mxu0 %vm58_vm0, %v736_v21 }
 0x36d   :  { %v12043_v23 = vpop.f32.mrb[12].mxu1  ;;  %12054 = vmatpush3.bf16.msra.mxu0 %v13578_v18 }
 0x36e   :  { %v720_v24 = vpop.f32.mrb[13].mxu1  ;;  %12055 = vmatprep.subr.bf16.mxu0 %v13579_v9 }
 0x36f   :  { %v12044_v26 = vpop.f32.mrb[14].mxu1 }
 0x370   :  { %v738_v27 = vpack.c.bf16 %v12044_v26, %v12043_v23  ;;  %v723_v28 = vpop.f32.mrb[15].mxu1 }
 0x371   :  { %v737_v29 = vpack.c.bf16 %v723_v28, %v720_v24  ;;  %12056 = vmatpush3.bf16.msra.mxu0 %v13579_v9  ;;  %v11052_v28 = vld [vmem:[%s17315_s2 + $0x5] ss:$0 sm:$0xff] }
 0x372   :  { %12061 = vmatprep.subr.bf16.mxu0 %v13580_v25 }
 0x373   :  { %12057 = vmatprep.mubr.msk.bf16.mxu0 %vm58_vm0, %v737_v29 }
 0x378   :  { %12058 = vmatmul.mubr.msk.bf16.vlgmr.msra.gmra.mrb[8].mxu0 %vm58_vm0, %v738_v27 }
 0x379   :  { %12065 = vmatprep.mubr.msk.bf16.mxu0 %vm58_vm0, %v668_v14  ;;  %12062 = vmatpush3.bf16.msra.mxu0 %v13580_v25 }
 0x37a   :  { %12063 = vmatprep.subr.bf16.mxu0 %v13581_v30 }
 0x37d   :  { %12064 = vmatpush3.bf16.msra.mxu0 %v13581_v30 }
 0x384   :  { %12066 = vmatmul.mubr.msk.bf16.vlgmr.msra.gmra.mrb[8].mxu0 %vm58_vm0, %v669_v58 }
 0x385   :  { %12109 = vmatprep.mubr.msk.bf16.mxu0 %vm58_vm0, %v14349_v48 }
 0x457   :  { %v12067_v32 = vpop.f32.mrb[8].mxu0 }
 0x458   :  { %v14318_v33 = vadd.f32 %v12067_v32, %v11043_v31  ;;  %v950_v34 = vpop.f32.mrb[9].mxu0  ;;  %v11053_v32 = vld [vmem:[%s17315_s2 + $0x6] ss:$0 sm:$0xff] }
 0x459   :  { %v12068_v35 = vpop.f32.mrb[10].mxu0  ;;  %v14320_v36 = vadd.f32 %v11043_v31, %v950_v34 }
 0x45a   :  { %v14322_v37 = vadd.f32 %v12068_v35, %v11043_v31  ;;  %v953_v38 = vpop.f32.mrb[11].mxu0  ;;  %v975_v39 = vsel %vm58_vm0, %v14318_v33, 0.0  ;;  %v987_v53 = vmul.f32 %v14318_v33, %v14318_v33 }
 0x45b   :  { %976 = vadd.xlane.f32.xlu0 %v975_v39  ;;  %v14326_v41 = vadd.f32 %v11043_v31, %v953_v38  ;;  %v969_v43 = vsel %vm58_vm0, %v14320_v36, 0.0  ;;  %v985_v45 = vmul.f32 %v14320_v36, %v14320_v36 }
 0x45c   :  { %v978_v42 = vsel %vm58_vm0, %v14322_v37, 0.0  ;;  %v988_v56 = vmul.f32 %v14322_v37, %v14322_v37  ;;  %v995_v57 = vsel %vm58_vm0, %v987_v53, 0.0 }
 0x45d   :  { %979 = vadd.xlane.f32.xlu1 %v978_v42  ;;  %v972_v46 = vsel %vm58_vm0, %v14326_v41, 0.0  ;;  %v986_v47 = vmul.f32 %v14326_v41, %v14326_v41  ;;  %v989_v50 = vsel %vm58_vm0, %v985_v45, 0.0 }
 0x45e   :  { %v998_v59 = vsel %vm58_vm0, %v988_v56, 0.0 }
 0x45f   :  { %970 = vadd.xlane.f32.xlu0 %v969_v43  ;;  %v992_v55 = vsel %vm58_vm0, %v986_v47, 0.0 }
 0x461   :  { %973 = vadd.xlane.f32.xlu1 %v972_v46 }
 0x463   :  { %990 = vadd.xlane.f32.xlu0 %v989_v50 }
 0x465   :  { %993 = vadd.xlane.f32.xlu1 %v992_v55 }
 0x467   :  { %996 = vadd.xlane.f32.xlu0 %v995_v57 }
 0x469   :  { %999 = vadd.xlane.f32.xlu1 %v998_v59 }
 0x4e8   :  { %v977_v60 = vpop.xlane.xlu0 %976 }
 0x4e9   :  { %v983_v54 = vmul.f32 0.03125, %v977_v60 }
 0x4ea   :  { %v980_v61 = vpop.xlane.xlu1 %979 }
 0x4eb   :  { %v984_v13 = vmul.f32 0.03125, %v980_v61  ;;  %v1007_v51 = vmul.f32 %v983_v54, %v983_v54  ;;  %v1015_v34 = vsub.f32 %v14318_v33, %v983_v54  ;;  %v13588_v54 = vld [vmem:[%s17314_s1 + $0xe0] sm:$0xff]  }
 0x4ec   :  { %v971_v62 = vpop.xlane.xlu0 %970 }
 0x4ed   :  { %v981_v63 = vmul.f32 0.03125, %v971_v62  ;;  %v1008_v8 = vmul.f32 %v984_v13, %v984_v13 }
 0x4ee   :  { %v974_v3 = vpop.xlane.xlu1 %973 }
 0x4ef   :  { %v982_v5 = vmul.f32 0.03125, %v974_v3  ;;  %v1005_v11 = vmul.f32 %v981_v63, %v981_v63  ;;  %v1013_v26 = vsub.f32 %v14320_v36, %v981_v63  ;;  %v1016_v36 = vsub.f32 %v14322_v37, %v984_v13 }
 0x4f0   :  { %v991_v10 = vpop.xlane.xlu0 %990 }
 0x4f1   :  { %v1001_v12 = vmul.f32 0.03125, %v991_v10  ;;  %v1006_v15 = vmul.f32 %v982_v5, %v982_v5  ;;  %v1014_v29 = vsub.f32 %v14326_v41, %v982_v5  ;;  %v14387_v5 = vld [vmem:[%s17314_s1 + $0x28] sm:$0xff]   ;;  %v13587_v10 = vld [vmem:[%s17314_s1 + $0xd8] sm:$0xff]  }
 0x4f2   :  { %v994_v14 = vpop.xlane.xlu1 %993 }
 0x4f3   :  { %v1009_v16 = vsub.f32 %v1001_v12, %v1005_v11  ;;  %v1002_v17 = vmul.f32 0.03125, %v994_v14 }
 0x4f4   :  { %v997_v58 = vpop.xlane.xlu0 %996 }
 0x4f5   :  { %v1017_v18 = vadd.f32 1e-05, %v1009_v16  ;;  %v1010_v19 = vsub.f32 %v1002_v17, %v1006_v15  ;;  %v1003_v20 = vmul.f32 0.03125, %v997_v58  ;;  %v13589_v17 = vld [vmem:[%s17314_s1 + $0xe8] sm:$0xff]  }
 0x4f6   :  { %v1000_v21 = vpop.xlane.xlu1 %999 }
 0x4f7   :  { %13608 = vrsqrt.f32 %v1017_v18  ;;  %v1018_v22 = vadd.f32 1e-05, %v1010_v19  ;;  %v1011_v7 = vsub.f32 %v1003_v20, %v1007_v51  ;;  %v1004_v9 = vmul.f32 0.03125, %v1000_v21  ;;  %v13590_v18 = vld [vmem:[%s17314_s1 + $0xf0] sm:$0xff]  }
 0x4f9   :  { %13610 = vrsqrt.f32 %v1018_v22  ;;  %v1019_v23 = vadd.f32 1e-05, %v1011_v7  ;;  %v1012_v24 = vsub.f32 %v1004_v9, %v1008_v8  ;;  %v13591_v22 = vld [vmem:[%s17314_s1 + $0xf8] sm:$0xff]   ;;  %v11066_v7 = vld [vmem:[%s17315_s2 + $0x7] ss:$0 sm:$0xff] }
 0x4fb   :  { %13612 = vrsqrt.f32 %v1019_v23  ;;  %v1020_v25 = vadd.f32 1e-05, %v1012_v24 }
 0x4fd   :  { %13614 = vrsqrt.f32 %v1020_v25 }
 0x501   :  { %v13609_v27 = vpop.eup %13608 }
 0x502   :  { %v1025_v30 = vmul.f32 %v13609_v27, %v1013_v26 }
 0x503   :  { %v13611_v31 = vpop.eup %13610 }
 0x504   :  { %v1026_v35 = vmul.f32 %v13611_v31, %v1014_v29  ;;  %v1034_v38 = vmul.f32 %v11052_v28, %v1025_v30 }
 0x505   :  { %v13613_v39 = vpop.eup %13612 }
 0x506   :  { %v1035_v42 = vmul.f32 %v11052_v28, %v1026_v35  ;;  %v1043_v43 = vadd.f32 %v11053_v32, %v1034_v38  ;;  %v1027_v45 = vmul.f32 %v13613_v39, %v1015_v34 }
 0x507   :  { %v13615_v46 = vpop.eup %13614 }
 0x508   :  { %v1044_v47 = vadd.f32 %v11053_v32, %v1035_v42  ;;  %v1047_v50 = vmax.f32 %v1043_v43, 0.0  ;;  %v1028_v41 = vmul.f32 %v13615_v46, %v1016_v36  ;;  %v1036_v53 = vmul.f32 %v11052_v28, %v1027_v45 }
 0x50a   :  { %v1048_v55 = vmax.f32 %v1044_v47, 0.0  ;;  %v1037_v56 = vmul.f32 %v11052_v28, %v1028_v41  ;;  %v1045_v57 = vadd.f32 %v11053_v32, %v1036_v53  ;;  %v14366_v59 = vadd.f32 %v1047_v50, %v14114_v0 }
 0x50c   :  { %v14369_v33 = vadd.f32 %v1048_v55, %v14119_v1  ;;  %v1046_v60 = vadd.f32 %v11053_v32, %v1037_v56  ;;  %v1049_v61 = vmax.f32 %v1045_v57, 0.0  ;;  %v13586_v1 = vld [vmem:[%s17314_s1 + $0xd0] sm:$0xff]  }
 0x50e   :  { %v1055_v37 = vpack.c.bf16 %v14369_v33, %v14366_v59  ;;  %v1050_v62 = vmax.f32 %v1046_v60, 0.0  ;;  %v14374_v63 = vadd.f32 %v1049_v61, %v14124_v2  ;;  %v14392_v2 = vld [vmem:[%s17314_s1 + $0x30] sm:$0xff]  }
 0x510   :  { %12069 = vmatprep.subr.bf16.mxu1 %v1055_v37  ;;  %v14377_v3 = vadd.f32 %v1050_v62, %v14133_v4  ;;  %v14401_v4 = vld [vmem:[%s17314_s1 + $0x38] sm:$0xff]  }
 0x511   :  { %12070 = vmatpush3.bf16.msra.mxu1 %v1055_v37 }
 0x512   :  { %v1056_v0 = vpack.c.bf16 %v14377_v3, %v14374_v63 }
 0x514   :  { %12071 = vmatprep.subr.bf16.mxu1 %v1056_v0 }
 0x515   :  { %12072 = vmatpush3.bf16.msra.mxu1 %v1056_v0 }
 0x516   :  { %12081 = vmatprep.subr.bf16.mxu1 %v13586_v1 }
 0x518   :  { %12074 = vmatmul.mubr.msk.bf16.vlgmr.msra.gmra.mrb[16].mxu1 %vm58_vm0, %v14387_v5 }
 0x519   :  { %12077 = vmatprep.mubr.msk.bf16.mxu1 %vm58_vm0, %v14392_v2  ;;  %12082 = vmatpush3.bf16.msra.mxu1 %v13586_v1 }
 0x51a   :  { %12083 = vmatprep.subr.bf16.mxu1 %v13587_v10 }
 0x51d   :  { %12084 = vmatpush3.bf16.msra.mxu1 %v13587_v10 }
 0x51e   :  { %12089 = vmatprep.subr.bf16.mxu1 %v13588_v54 }
 0x520   :  { %12078 = vmatmul.mubr.msk.bf16.gmra.mrb[20].mxu1 %vm58_vm0, %v14401_v4 }
 0x5eb   :  { %v12075_v11 = vpop.f32.mrb[16].mxu1 }
 0x5ec   :  { %v1123_v12 = vpop.f32.mrb[17].mxu1 }
 0x5ed   :  { %v12076_v13 = vpop.f32.mrb[18].mxu1 }
 0x5ee   :  { %v1155_v14 = vpack.c.bf16 %v12076_v13, %v12075_v11  ;;  %v1126_v15 = vpop.f32.mrb[19].mxu1 }
 0x5ef   :  { %v1154_v16 = vpack.c.bf16 %v1126_v15, %v1123_v12 }
 0x5f1   :  { %12085 = vmatprep.mubr.msk.bf16.mxu1 %vm58_vm0, %v1154_v16 }
 0x5f2   :  { %12086 = vmatmul.mubr.msk.bf16.vlgmr.msra.gmra.mrb[24].mxu1 %vm58_vm0, %v1155_v14 }
 0x5f3   :  { %v12079_v58 = vpop.f32.mrb[20].mxu1  ;;  %12090 = vmatpush3.bf16.msra.mxu1 %v13588_v54 }
 0x5f4   :  { %v1139_v51 = vpop.f32.mrb[21].mxu1  ;;  %12091 = vmatprep.subr.bf16.mxu1 %v13589_v17 }
 0x5f5   :  { %v12080_v19 = vpop.f32.mrb[22].mxu1 }
 0x5f6   :  { %v1157_v20 = vpack.c.bf16 %v12080_v19, %v12079_v58  ;;  %v1142_v8 = vpop.f32.mrb[23].mxu1 }
 0x5f7   :  { %v1156_v21 = vpack.c.bf16 %v1142_v8, %v1139_v51  ;;  %12092 = vmatpush3.bf16.msra.mxu1 %v13589_v17 }
 0x5f8   :  { %12097 = vmatprep.subr.bf16.mxu1 %v13590_v18 }
 0x5f9   :  { %12093 = vmatprep.mubr.msk.bf16.mxu1 %vm58_vm0, %v1156_v21 }
 0x5fe   :  { %12094 = vmatmul.mubr.msk.bf16.vlgmr.msra.gmra.mrb[24].mxu1 %vm58_vm0, %v1157_v20 }
 0x5ff   :  { %12101 = vmatprep.mubr.msk.bf16.mxu1 %vm58_vm0, %v1055_v37  ;;  %12098 = vmatpush3.bf16.msra.mxu1 %v13590_v18 }
 0x600   :  { %12099 = vmatprep.subr.bf16.mxu1 %v13591_v22 }
 0x603   :  { %12100 = vmatpush3.bf16.msra.mxu1 %v13591_v22  ;;  %v11075_v22 = vld [vmem:[%s17315_s2 + $0x8] ss:$0 sm:$0xff] }
 0x60a   :  { %12102 = vmatmul.mubr.msk.bf16.vlgmr.msra.gmra.mrb[24].mxu1 %vm58_vm0, %v1056_v0 }
 0x60b   :  { %12145 = vmatprep.mubr.msk.bf16.mxu1 %vm58_vm0, %v14142_v6 }
 0x6dd   :  { %v12103_v9 = vpop.f32.mrb[24].mxu1 }
 0x6de   :  { %v14431_v23 = vadd.f32 %v12103_v9, %v11066_v7  ;;  %v1369_v24 = vpop.f32.mrb[25].mxu1 }
 0x6df   :  { %v12104_v25 = vpop.f32.mrb[26].mxu1  ;;  %v13174_v26 = vadd.f32 %v11066_v7, %v1369_v24 }
 0x6e0   :  { %v14433_v27 = vadd.f32 %v12104_v25, %v11066_v7  ;;  %v1372_v28 = vpop.f32.mrb[27].mxu1  ;;  %v1394_v29 = vsel %vm58_vm0, %v14431_v23, 0.0  ;;  %v1406_v39 = vmul.f32 %v14431_v23, %v14431_v23  ;;  %v11076_v25 = vld [vmem:[%s17315_s2 + $0x9] ss:$0 sm:$0xff] }
 0x6e1   :  { %1395 = vadd.xlane.f32.xlu0 %v1394_v29  ;;  %v13176_v30 = vadd.f32 %v11066_v7, %v1372_v28  ;;  %v1388_v31 = vsel %vm58_vm0, %v13174_v26, 0.0  ;;  %v1404_v32 = vmul.f32 %v13174_v26, %v13174_v26 }
 0x6e2   :  { %v1397_v6 = vsel %vm58_vm0, %v14433_v27, 0.0  ;;  %v1407_v42 = vmul.f32 %v14433_v27, %v14433_v27  ;;  %v1414_v43 = vsel %vm58_vm0, %v1406_v39, 0.0 }
 0x6e3   :  { %1398 = vadd.xlane.f32.xlu1 %v1397_v6  ;;  %v1391_v34 = vsel %vm58_vm0, %v13176_v30, 0.0  ;;  %v1405_v35 = vmul.f32 %v13176_v30, %v13176_v30  ;;  %v1408_v38 = vsel %vm58_vm0, %v1404_v32, 0.0 }
 0x6e4   :  { %v1417_v45 = vsel %vm58_vm0, %v1407_v42, 0.0 }
 0x6e5   :  { %1389 = vadd.xlane.f32.xlu0 %v1388_v31  ;;  %v1411_v36 = vsel %vm58_vm0, %v1405_v35, 0.0 }
 0x6e7   :  { %1392 = vadd.xlane.f32.xlu1 %v1391_v34 }
 0x6e9   :  { %1409 = vadd.xlane.f32.xlu0 %v1408_v38 }
 0x6eb   :  { %1412 = vadd.xlane.f32.xlu1 %v1411_v36 }
 0x6ed   :  { %1415 = vadd.xlane.f32.xlu0 %v1414_v43 }
 0x6ef   :  { %1418 = vadd.xlane.f32.xlu1 %v1417_v45 }
 0x76e   :  { %v1396_v46 = vpop.xlane.xlu0 %1395 }
 0x76f   :  { %v1402_v57 = vmul.f32 0.03125, %v1396_v46 }
 0x770   :  { %v1399_v47 = vpop.xlane.xlu1 %1398 }
 0x771   :  { %v1403_v37 = vmul.f32 0.03125, %v1399_v47  ;;  %v1426_v11 = vmul.f32 %v1402_v57, %v1402_v57  ;;  %v1434_v28 = vsub.f32 %v14431_v23, %v1402_v57 }
 0x772   :  { %v1390_v50 = vpop.xlane.xlu0 %1389 }
 0x773   :  { %v1400_v41 = vmul.f32 0.03125, %v1390_v50  ;;  %v1427_v15 = vmul.f32 %v1403_v37, %v1403_v37  ;;  %v1435_v32 = vsub.f32 %v14433_v27, %v1403_v37  ;;  %v13592_v27 = vld [vmem:[%s17314_s1 + $0x100] sm:$0xff]  }
 0x774   :  { %v1393_v53 = vpop.xlane.xlu1 %1392 }
 0x775   :  { %v1401_v55 = vmul.f32 0.03125, %v1393_v53  ;;  %v1424_v60 = vmul.f32 %v1400_v41, %v1400_v41  ;;  %v1432_v8 = vsub.f32 %v13174_v26, %v1400_v41 }
 0x776   :  { %v1410_v56 = vpop.xlane.xlu0 %1409 }
 0x777   :  { %v1420_v61 = vmul.f32 0.03125, %v1410_v56  ;;  %v1425_v0 = vmul.f32 %v1401_v55, %v1401_v55  ;;  %v1433_v7 = vsub.f32 %v13176_v30, %v1401_v55  ;;  %v13593_v55 = vld [vmem:[%s17314_s1 + $0x108] sm:$0xff]   ;;  %v13594_v56 = vld [vmem:[%s17314_s1 + $0x110] sm:$0xff]  }
 0x778   :  { %v1413_v62 = vpop.xlane.xlu1 %1412 }
 0x779   :  { %v1428_v1 = vsub.f32 %v1420_v61, %v1424_v60  ;;  %v1421_v10 = vmul.f32 0.03125, %v1413_v62 }
 0x77a   :  { %v1416_v54 = vpop.xlane.xlu0 %1415 }
 0x77b   :  { %v1436_v12 = vadd.f32 1e-05, %v1428_v1  ;;  %v1429_v13 = vsub.f32 %v1421_v10, %v1425_v0  ;;  %v1422_v14 = vmul.f32 0.03125, %v1416_v54  ;;  %v13596_v1 = vld [vmem:[%s17314_s1 + $0x120] sm:$0xff]  }
 0x77c   :  { %v1419_v16 = vpop.xlane.xlu1 %1418 }
 0x77d   :  { %13616 = vrsqrt.f32 %v1436_v12  ;;  %v1437_v17 = vadd.f32 1e-05, %v1429_v13  ;;  %v1430_v58 = vsub.f32 %v1422_v14, %v1426_v11  ;;  %v1423_v51 = vmul.f32 0.03125, %v1419_v16  ;;  %v13597_v13 = vld [vmem:[%s17314_s1 + $0x128] sm:$0xff]   ;;  %v14490_v14 = vld [vmem:[%s17314_s1] sm:$0xff]  }
 0x77f   :  { %13618 = vrsqrt.f32 %v1437_v17  ;;  %v1438_v18 = vadd.f32 1e-05, %v1430_v58  ;;  %v1431_v19 = vsub.f32 %v1423_v51, %v1427_v15  ;;  %v11085_v15 = vld [vmem:[%s17315_s2 + $0xa] ss:$0 sm:$0xff] }
 0x781   :  { %13620 = vrsqrt.f32 %v1438_v18  ;;  %v1439_v20 = vadd.f32 1e-05, %v1431_v19 }
 0x783   :  { %13622 = vrsqrt.f32 %v1439_v20 }
 0x787   :  { %v13617_v21 = vpop.eup %13616 }
 0x788   :  { %v1444_v9 = vmul.f32 %v13617_v21, %v1432_v8 }
 0x789   :  { %v13619_v24 = vpop.eup %13618 }
 0x78a   :  { %v1445_v29 = vmul.f32 %v13619_v24, %v1433_v7  ;;  %v1453_v6 = vmul.f32 %v11075_v22, %v1444_v9 }
 0x78b   :  { %v13621_v31 = vpop.eup %13620 }
 0x78c   :  { %v1454_v26 = vmul.f32 %v11075_v22, %v1445_v29  ;;  %v1462_v34 = vadd.f32 %v11076_v25, %v1453_v6  ;;  %v1446_v35 = vmul.f32 %v13621_v31, %v1434_v28 }
 0x78d   :  { %v13623_v38 = vpop.eup %13622 }
 0x78e   :  { %v1463_v39 = vadd.f32 %v11076_v25, %v1454_v26  ;;  %v1447_v36 = vmul.f32 %v13623_v38, %v1435_v32  ;;  %v1455_v30 = vmul.f32 %v11075_v22, %v1446_v35  ;;  %v1466_v42 = vmax.f32 %v1462_v34, 0.0 }
 0x790   :  { %v1467_v43 = vmax.f32 %v1463_v39, 0.0  ;;  %v1456_v45 = vmul.f32 %v11075_v22, %v1447_v36  ;;  %v1464_v46 = vadd.f32 %v11076_v25, %v1455_v30 }
 0x792   :  { %v1470_v47 = vpack.c.bf16 %v1467_v43, %v1466_v42  ;;  %v1465_v50 = vadd.f32 %v11076_v25, %v1456_v45  ;;  %v1468_v23 = vmax.f32 %v1464_v46, 0.0 }
 0x794   :  { %12105 = vmatprep.subr.bf16.mxu0 %v1470_v47  ;;  %v1469_v41 = vmax.f32 %v1465_v50, 0.0 }
 0x795   :  { %12106 = vmatpush3.bf16.msra.mxu0 %v1470_v47 }
 0x796   :  { %v1471_v53 = vpack.c.bf16 %v1469_v41, %v1468_v23 }
 0x798   :  { %12107 = vmatprep.subr.bf16.mxu0 %v1471_v53 }
 0x799   :  { %12108 = vmatpush3.bf16.msra.mxu0 %v1471_v53 }
 0x79a   :  { %12117 = vmatprep.subr.bf16.mxu0 %v13592_v27 }
 0x79c   :  { %12110 = vmatmul.mubr.msk.bf16.vlgmr.msra.gmra.mrb[12].mxu0 %vm58_vm0, %v14387_v5 }
 0x79d   :  { %12113 = vmatprep.mubr.msk.bf16.mxu0 %vm58_vm0, %v14392_v2  ;;  %12118 = vmatpush3.bf16.msra.mxu0 %v13592_v27 }
 0x79e   :  { %12119 = vmatprep.subr.bf16.mxu0 %v13593_v55 }
 0x7a1   :  { %12120 = vmatpush3.bf16.msra.mxu0 %v13593_v55 }
 0x7a2   :  { %12125 = vmatprep.subr.bf16.mxu0 %v13594_v56 }
 0x7a4   :  { %12114 = vmatmul.mubr.msk.bf16.gmra.mrb[16].mxu0 %vm58_vm0, %v14401_v4  ;;  %v13595_v4 = vld [vmem:[%s17314_s1 + $0x118] sm:$0xff]  }
 0x86f   :  { %v12111_v57 = vpop.f32.mrb[12].mxu0 }
 0x870   :  { %v1506_v5 = vpop.f32.mrb[13].mxu0 }
 0x871   :  { %v12112_v60 = vpop.f32.mrb[14].mxu0 }
 0x872   :  { %v1538_v61 = vpack.c.bf16 %v12112_v60, %v12111_v57  ;;  %v1509_v2 = vpop.f32.mrb[15].mxu0 }
 0x873   :  { %v1537_v37 = vpack.c.bf16 %v1509_v2, %v1506_v5 }
 0x875   :  { %12121 = vmatprep.mubr.msk.bf16.mxu0 %vm58_vm0, %v1537_v37 }
 0x876   :  { %12122 = vmatmul.mubr.msk.bf16.vlgmr.msra.gmra.mrb[20].mxu0 %vm58_vm0, %v1538_v61 }
 0x877   :  { %v12115_v62 = vpop.f32.mrb[16].mxu0  ;;  %12126 = vmatpush3.bf16.msra.mxu0 %v13594_v56 }
 0x878   :  { %v1522_v0 = vpop.f32.mrb[17].mxu0  ;;  %12127 = vmatprep.subr.bf16.mxu0 %v13595_v4 }
 0x879   :  { %v12116_v10 = vpop.f32.mrb[18].mxu0 }
 0x87a   :  { %v1540_v54 = vpack.c.bf16 %v12116_v10, %v12115_v62  ;;  %v1525_v11 = vpop.f32.mrb[19].mxu0 }
 0x87b   :  { %v1539_v12 = vpack.c.bf16 %v1525_v11, %v1522_v0  ;;  %12128 = vmatpush3.bf16.msra.mxu0 %v13595_v4  ;;  %v11094_v11 = vld [vmem:[%s17315_s2 + $0xb] ss:$0 sm:$0xff] }
 0x87c   :  { %12133 = vmatprep.subr.bf16.mxu0 %v13596_v1 }
 0x87d   :  { %12129 = vmatprep.mubr.msk.bf16.mxu0 %vm58_vm0, %v1539_v12 }
 0x882   :  { %12130 = vmatmul.mubr.msk.bf16.vlgmr.msra.gmra.mrb[20].mxu0 %vm58_vm0, %v1540_v54 }
 0x883   :  { %12137 = vmatprep.mubr.msk.bf16.mxu0 %vm58_vm0, %v1470_v47  ;;  %12134 = vmatpush3.bf16.msra.mxu0 %v13596_v1 }
 0x884   :  { %12135 = vmatprep.subr.bf16.mxu0 %v13597_v13 }
 0x887   :  { %12136 = vmatpush3.bf16.msra.mxu0 %v13597_v13 }
 0x88e   :  { %12138 = vmatmul.mubr.msk.bf16.vlgmr.msra.gmra.mrb[20].mxu0 %vm58_vm0, %v1471_v53 }
 0x88f   :  { %12181 = vmatprep.mubr.msk.bf16.mxu0 %vm58_vm0, %v14490_v14 }
 0x961   :  { %v12139_v16 = vpop.f32.mrb[20].mxu0 }
 0x962   :  { %v14497_v17 = vadd.f32 %v12139_v16, %v11085_v15  ;;  %v1752_v58 = vpop.f32.mrb[21].mxu0  ;;  %v11095_v16 = vld [vmem:[%s17315_s2 + $0xc] ss:$0 sm:$0xff] }
 0x963   :  { %v12140_v51 = vpop.f32.mrb[22].mxu0  ;;  %v13178_v18 = vadd.f32 %v11085_v15, %v1752_v58 }
 0x964   :  { %v14499_v19 = vadd.f32 %v12140_v51, %v11085_v15  ;;  %v1755_v20 = vpop.f32.mrb[23].mxu0  ;;  %v1777_v8 = vsel %vm58_vm0, %v14497_v17, 0.0  ;;  %v1789_v29 = vmul.f32 %v14497_v17, %v14497_v17 }
 0x965   :  { %1778 = vadd.xlane.f32.xlu0 %v1777_v8  ;;  %v13180_v21 = vadd.f32 %v11085_v15, %v1755_v20  ;;  %v1771_v7 = vsel %vm58_vm0, %v13178_v18, 0.0  ;;  %v1787_v9 = vmul.f32 %v13178_v18, %v13178_v18 }
 0x966   :  { %v1780_v22 = vsel %vm58_vm0, %v14499_v19, 0.0  ;;  %v1790_v31 = vmul.f32 %v14499_v19, %v14499_v19  ;;  %v1797_v32 = vsel %vm58_vm0, %v1789_v29, 0.0 }
 0x967   :  { %1781 = vadd.xlane.f32.xlu1 %v1780_v22  ;;  %v1774_v24 = vsel %vm58_vm0, %v13180_v21, 0.0  ;;  %v1788_v25 = vmul.f32 %v13180_v21, %v13180_v21  ;;  %v1791_v28 = vsel %vm58_vm0, %v1787_v9, 0.0 }
 0x968   :  { %v1800_v26 = vsel %vm58_vm0, %v1790_v31, 0.0 }
 0x969   :  { %1772 = vadd.xlane.f32.xlu0 %v1771_v7  ;;  %v1794_v6 = vsel %vm58_vm0, %v1788_v25, 0.0 }
 0x96b   :  { %1775 = vadd.xlane.f32.xlu1 %v1774_v24 }
 0x96d   :  { %1792 = vadd.xlane.f32.xlu0 %v1791_v28 }
 0x96f   :  { %1795 = vadd.xlane.f32.xlu1 %v1794_v6 }
 0x971   :  { %1798 = vadd.xlane.f32.xlu0 %v1797_v32 }
 0x973   :  { %1801 = vadd.xlane.f32.xlu1 %v1800_v26 }
 0x9f2   :  { %v1779_v34 = vpop.xlane.xlu0 %1778 }
 0x9f3   :  { %v1785_v43 = vmul.f32 0.03125, %v1779_v34 }
 0x9f4   :  { %v1782_v35 = vpop.xlane.xlu1 %1781 }
 0x9f5   :  { %v1786_v47 = vmul.f32 0.03125, %v1782_v35  ;;  %v1809_v55 = vmul.f32 %v1785_v43, %v1785_v43  ;;  %v1817_v58 = vsub.f32 %v14497_v17, %v1785_v43  ;;  %v14576_v43 = vld [vmem:[%s17314_s1 + $0x18] sm:$0xff]  }
 0x9f6   :  { %v1773_v38 = vpop.xlane.xlu0 %1772 }
 0x9f7   :  { %v1783_v39 = vmul.f32 0.03125, %v1773_v38  ;;  %v1810_v60 = vmul.f32 %v1786_v47, %v1786_v47  ;;  %v1818_v22 = vsub.f32 %v14499_v19, %v1786_v47 }
 0x9f8   :  { %v1776_v36 = vpop.xlane.xlu1 %1775 }
 0x9f9   :  { %v1784_v30 = vmul.f32 0.03125, %v1776_v36  ;;  %v1807_v45 = vmul.f32 %v1783_v39, %v1783_v39  ;;  %v1815_v10 = vsub.f32 %v13178_v18, %v1783_v39 }
 0x9fa   :  { %v1793_v42 = vpop.xlane.xlu0 %1792 }
 0x9fb   :  { %v1803_v46 = vmul.f32 0.03125, %v1793_v42  ;;  %v1808_v23 = vmul.f32 %v1784_v30, %v1784_v30  ;;  %v1816_v12 = vsub.f32 %v13180_v21, %v1784_v30  ;;  %v14563_v30 = vld [vmem:[%s17314_s1 + $0x78] sm:$0xff]   ;;  %v14570_v42 = vld [vmem:[%s17314_s1 + $0x80] sm:$0xff]  }
 0x9fc   :  { %v1796_v50 = vpop.xlane.xlu1 %1795 }
 0x9fd   :  { %v1811_v41 = vsub.f32 %v1803_v46, %v1807_v45  ;;  %v1804_v53 = vmul.f32 0.03125, %v1796_v50 }
 0x9fe   :  { %v1799_v27 = vpop.xlane.xlu0 %1798 }
 0x9ff   :  { %v1819_v56 = vadd.f32 1e-05, %v1811_v41  ;;  %v1812_v57 = vsub.f32 %v1804_v53, %v1808_v23  ;;  %v1805_v5 = vmul.f32 0.03125, %v1799_v27 }
 0xa00   :  { %v1802_v61 = vpop.xlane.xlu1 %1801 }
 0xa01   :  { %13624 = vrsqrt.f32 %v1819_v56  ;;  %v1820_v2 = vadd.f32 1e-05, %v1812_v57  ;;  %v1813_v37 = vsub.f32 %v1805_v5, %v1809_v55  ;;  %v1806_v4 = vmul.f32 0.03125, %v1802_v61  ;;  %v14586_v55 = vld [vmem:[%s17314_s1 + $0x88] sm:$0xff]   ;;  %v14593_v61 = vld [vmem:[%s17314_s1 + $0x90] sm:$0xff]  }
 0xa03   :  { %13626 = vrsqrt.f32 %v1820_v2  ;;  %v1821_v62 = vadd.f32 1e-05, %v1813_v37  ;;  %v1814_v0 = vsub.f32 %v1806_v4, %v1810_v60  ;;  %v14603_v2 = vld [vmem:[%s17314_s1 + $0x98] sm:$0xff]   ;;  %v14613_v4 = vld [vmem:[%s17315_s2 + $0x1] ss:$0 sm:$0xff] }
 0xa05   :  { %13628 = vrsqrt.f32 %v1821_v62  ;;  %v1822_v1 = vadd.f32 1e-05, %v1814_v0 }
 0xa07   :  { %13630 = vrsqrt.f32 %v1822_v1 }
 0xa0b   :  { %v13625_v54 = vpop.eup %13624 }
 0xa0c   :  { %v1827_v13 = vmul.f32 %v13625_v54, %v1815_v10 }
 0xa0d   :  { %v13627_v15 = vpop.eup %13626 }
 0xa0e   :  { %v1828_v51 = vmul.f32 %v13627_v15, %v1816_v12  ;;  %v1836_v20 = vmul.f32 %v11094_v11, %v1827_v13 }
 0xa0f   :  { %v13629_v8 = vpop.eup %13628 }
 0xa10   :  { %v1837_v18 = vmul.f32 %v11094_v11, %v1828_v51  ;;  %v1845_v7 = vadd.f32 %v11095_v16, %v1836_v20  ;;  %v1829_v9 = vmul.f32 %v13629_v8, %v1817_v58 }
 0xa11   :  { %v13631_v24 = vpop.eup %13630 }
 0xa12   :  { %v1846_v25 = vadd.f32 %v11095_v16, %v1837_v18  ;;  %v1849_v28 = vmax.f32 %v1845_v7, 0.0  ;;  %v1830_v21 = vmul.f32 %v13631_v24, %v1818_v22  ;;  %v1838_v29 = vmul.f32 %v11094_v11, %v1829_v9 }
 0xa14   :  { %v1850_v6 = vmax.f32 %v1846_v25, 0.0  ;;  %v1839_v31 = vmul.f32 %v11094_v11, %v1830_v21  ;;  %v1847_v32 = vadd.f32 %v11095_v16, %v1838_v29  ;;  %v14524_v26 = vadd.f32 %v1849_v28, %v14366_v59 }
 0xa16   :  { %v14527_v17 = vadd.f32 %v1850_v6, %v14369_v33  ;;  %v1848_v34 = vadd.f32 %v11095_v16, %v1839_v31  ;;  %v1851_v35 = vmax.f32 %v1847_v32, 0.0  ;;  %v14542_v33 = vld [vmem:[%s17314_s1 + $0x70] sm:$0xff]  }
 0xa18   :  { %v1857_v19 = vpack.c.bf16 %v14527_v17, %v14524_v26  ;;  %v1852_v38 = vmax.f32 %v1848_v34, 0.0  ;;  %v14532_v39 = vadd.f32 %v1851_v35, %v14374_v63  ;;  %v14548_v63 = vld [vmem:[%s17314_s1 + $0x8] sm:$0xff]  }
 0xa1a   :  { %12141 = vmatprep.subr.bf16.mxu1 %v1857_v19  ;;  %v14535_v36 = vadd.f32 %v1852_v38, %v14377_v3  ;;  %v14555_v3 = vld [vmem:[%s17314_s1 + $0x10] sm:$0xff]  }
 0xa1b   :  { %12142 = vmatpush3.bf16.msra.mxu1 %v1857_v19 }
 0xa1c   :  { %v1858_v59 = vpack.c.bf16 %v14535_v36, %v14532_v39 }
 0xa1e   :  { %12143 = vmatprep.subr.bf16.mxu1 %v1858_v59 }
 0xa1f   :  { %12144 = vmatpush3.bf16.msra.mxu1 %v1858_v59 }
 0xa20   :  { %12153 = vmatprep.subr.bf16.mxu1 %v14542_v33 }
 0xa22   :  { %12146 = vmatmul.mubr.msk.bf16.vlgmr.msra.gmra.mrb[28].mxu1 %vm58_vm0, %v14548_v63 }
 0xa23   :  { %12149 = vmatprep.mubr.msk.bf16.mxu1 %vm58_vm0, %v14555_v3  ;;  %12154 = vmatpush3.bf16.msra.mxu1 %v14542_v33 }
 0xa24   :  { %12155 = vmatprep.subr.bf16.mxu1 %v14563_v30 }
 0xa27   :  { %12156 = vmatpush3.bf16.msra.mxu1 %v14563_v30 }
 0xa28   :  { %12161 = vmatprep.subr.bf16.mxu1 %v14570_v42 }
 0xa2a   :  { %12150 = vmatmul.mubr.msk.bf16.gmra.mrb[32].mxu1 %vm58_vm0, %v14576_v43 }
 0xaf5   :  { %v12147_v45 = vpop.f32.mrb[28].mxu1 }
 0xaf6   :  { %v1893_v46 = vpop.f32.mrb[29].mxu1 }
 0xaf7   :  { %v12148_v47 = vpop.f32.mrb[30].mxu1 }
 0xaf8   :  { %v1925_v50 = vpack.c.bf16 %v12148_v47, %v12147_v45  ;;  %v1896_v23 = vpop.f32.mrb[31].mxu1 }
 0xaf9   :  { %v1924_v41 = vpack.c.bf16 %v1896_v23, %v1893_v46 }
 0xafb   :  { %12157 = vmatprep.mubr.msk.bf16.mxu1 %vm58_vm0, %v1924_v41 }
 0xafc   :  { %12158 = vmatmul.mubr.msk.bf16.vlgmr.msra.gmra.mrb[36].mxu1 %vm58_vm0, %v1925_v50 }
 0xafd   :  { %v12151_v53 = vpop.f32.mrb[32].mxu1  ;;  %12162 = vmatpush3.bf16.msra.mxu1 %v14570_v42 }
 0xafe   :  { %v1909_v27 = vpop.f32.mrb[33].mxu1  ;;  %12163 = vmatprep.subr.bf16.mxu1 %v14586_v55 }
 0xaff   :  { %v12152_v56 = vpop.f32.mrb[34].mxu1 }
 0xb00   :  { %v1927_v57 = vpack.c.bf16 %v12152_v56, %v12151_v53  ;;  %v1912_v5 = vpop.f32.mrb[35].mxu1 }
 0xb01   :  { %v1926_v60 = vpack.c.bf16 %v1912_v5, %v1909_v27  ;;  %12164 = vmatpush3.bf16.msra.mxu1 %v14586_v55 }
 0xb02   :  { %12169 = vmatprep.subr.bf16.mxu1 %v14593_v61 }
 0xb03   :  { %12165 = vmatprep.mubr.msk.bf16.mxu1 %vm58_vm0, %v1926_v60 }
 0xb08   :  { %12166 = vmatmul.mubr.msk.bf16.vlgmr.msra.gmra.mrb[36].mxu1 %vm58_vm0, %v1927_v57 }
 0xb09   :  { %12173 = vmatprep.mubr.msk.bf16.mxu1 %vm58_vm0, %v1857_v19  ;;  %12170 = vmatpush3.bf16.msra.mxu1 %v14593_v61 }
 0xb0a   :  { %12171 = vmatprep.subr.bf16.mxu1 %v14603_v2 }
 0xb0d   :  { %12172 = vmatpush3.bf16.msra.mxu1 %v14603_v2 }
 0xb14   :  { %12174 = vmatmul.mubr.msk.bf16.vlgmr.msra.gmra.mrb[36].mxu1 %vm58_vm0, %v1858_v59 }
 0xb15   :  { %12217 = vmatprep.mubr.msk.bf16.mxu1 %vm58_vm0, %v14349_v48 }
 0xbe7   :  { %v12175_v37 = vpop.f32.mrb[36].mxu1 }
 0xbe8   :  { %v13181_v62 = vadd.f32 %v14613_v4, %v12175_v37  ;;  %v2086_v0 = vpop.f32.mrb[37].mxu1 }
 0xbe9   :  { %v13182_v1 = vadd.f32 %v14613_v4, %v2086_v0  ;;  %v12176_v10 = vpop.f32.mrb[38].mxu1 }
 0xbea   :  { %v14618_v54 = vadd.f32 %v13181_v62, %v14247_v52  ;;  %v13183_v11 = vadd.f32 %v14613_v4, %v12176_v10  ;;  %v2089_v12 = vpop.f32.mrb[39].mxu1 }
 0xbeb   :  { %v13184_v13 = vadd.f32 %v14613_v4, %v2089_v12  ;;  %v2105_v15 = vadd.f32 %v13182_v1, %v14235_v40 }
 0xbec   :  { %v14624_v16 = vadd.f32 %v13183_v11, %v14237_v44  ;;  %v2115_v58 = vsel %vm58_vm0, %v14618_v54, 0.0  ;;  %v2127_v24 = vmul.f32 %v14618_v54, %v14618_v54 }
 0xbed   :  { %2116 = vadd.xlane.f32.xlu0 %v2115_v58  ;;  %v2106_v51 = vadd.f32 %v13184_v13, %v14242_v49  ;;  %v2109_v8 = vsel %vm58_vm0, %v2105_v15, 0.0  ;;  %v2125_v22 = vmul.f32 %v2105_v15, %v2105_v15 }
 0xbee   :  { %v2118_v20 = vsel %vm58_vm0, %v14624_v16, 0.0  ;;  %v2128_v28 = vmul.f32 %v14624_v16, %v14624_v16  ;;  %v2135_v21 = vsel %vm58_vm0, %v2127_v24, 0.0  ;;  %v14645_v24 = vld [vmem:[%s17315_s2 + $0x2] ss:$0 sm:$0xff] }
 0xbef   :  { %2119 = vadd.xlane.f32.xlu1 %v2118_v20  ;;  %v2112_v18 = vsel %vm58_vm0, %v2106_v51, 0.0  ;;  %v2126_v7 = vmul.f32 %v2106_v51, %v2106_v51  ;;  %v2129_v9 = vsel %vm58_vm0, %v2125_v22, 0.0 }
 0xbf0   :  { %v2138_v29 = vsel %vm58_vm0, %v2128_v28, 0.0 }
 0xbf1   :  { %2110 = vadd.xlane.f32.xlu0 %v2109_v8  ;;  %v2132_v25 = vsel %vm58_vm0, %v2126_v7, 0.0 }
 0xbf3   :  { %2113 = vadd.xlane.f32.xlu1 %v2112_v18 }
 0xbf5   :  { %2130 = vadd.xlane.f32.xlu0 %v2129_v9 }
 0xbf7   :  { %2133 = vadd.xlane.f32.xlu1 %v2132_v25 }
 0xbf9   :  { %2136 = vadd.xlane.f32.xlu0 %v2135_v21 }
 0xbfb   :  { %2139 = vadd.xlane.f32.xlu1 %v2138_v29 }
 0xc7a   :  { %v2117_v6 = vpop.xlane.xlu0 %2116 }
 0xc7b   :  { %v2123_v59 = vmul.f32 0.03125, %v2117_v6 }
 0xc7c   :  { %v2120_v31 = vpop.xlane.xlu1 %2119 }
 0xc7d   :  { %v2124_v47 = vmul.f32 0.03125, %v2120_v31  ;;  %v2147_v56 = vmul.f32 %v2123_v59, %v2123_v59  ;;  %v2155_v7 = vsub.f32 %v14618_v54, %v2123_v59 }
 0xc7e   :  { %v2111_v32 = vpop.xlane.xlu0 %2110 }
 0xc7f   :  { %v2121_v34 = vmul.f32 0.03125, %v2111_v32  ;;  %v2148_v37 = vmul.f32 %v2124_v47, %v2124_v47  ;;  %v2156_v21 = vsub.f32 %v14624_v16, %v2124_v47 }
 0xc80   :  { %v2114_v35 = vpop.xlane.xlu1 %2113 }
 0xc81   :  { %v2122_v19 = vmul.f32 0.03125, %v2114_v35  ;;  %v2145_v45 = vmul.f32 %v2121_v34, %v2121_v34  ;;  %v2153_v58 = vsub.f32 %v2105_v15, %v2121_v34  ;;  %v14653_v15 = vld [vmem:[%s17315_s2 + $0x3] ss:$0 sm:$0xff] }
 0xc82   :  { %v2131_v38 = vpop.xlane.xlu0 %2130 }
 0xc83   :  { %v2141_v46 = vmul.f32 0.03125, %v2131_v38  ;;  %v2146_v23 = vmul.f32 %v2122_v19, %v2122_v19  ;;  %v2154_v8 = vsub.f32 %v2106_v51, %v2122_v19 }
 0xc84   :  { %v2134_v50 = vpop.xlane.xlu1 %2133 }
 0xc85   :  { %v2149_v41 = vsub.f32 %v2141_v46, %v2145_v45  ;;  %v2142_v53 = vmul.f32 0.03125, %v2134_v50 }
 0xc86   :  { %v2137_v27 = vpop.xlane.xlu0 %2136 }
 0xc87   :  { %v2157_v57 = vadd.f32 1e-05, %v2149_v41  ;;  %v2150_v5 = vsub.f32 %v2142_v53, %v2146_v23  ;;  %v2143_v60 = vmul.f32 0.03125, %v2137_v27  ;;  %v14664_v23 = vld [vmem:[%s17314_s1 + $0xa0] sm:$0xff]   ;;  %v14675_v41 = vld [vmem:[%s17314_s1 + $0xa8] sm:$0xff]   ;;  %v14682_v53 = vld [vmem:[%s17314_s1 + $0xb0] sm:$0xff]  }
 0xc88   :  { %v2140_v62 = vpop.xlane.xlu1 %2139 }
 0xc89   :  { %13632 = vrsqrt.f32 %v2157_v57  ;;  %v2158_v0 = vadd.f32 1e-05, %v2150_v5  ;;  %v2151_v1 = vsub.f32 %v2143_v60, %v2147_v56  ;;  %v2144_v10 = vmul.f32 0.03125, %v2140_v62 }
 0xc8b   :  { %13634 = vrsqrt.f32 %v2158_v0  ;;  %v2159_v11 = vadd.f32 1e-05, %v2151_v1  ;;  %v2152_v12 = vsub.f32 %v2144_v10, %v2148_v37  ;;  %v14693_v1 = vld [vmem:[%s17314_s1 + $0xb8] sm:$0xff]  }
 0xc8d   :  { %13636 = vrsqrt.f32 %v2159_v11  ;;  %v2160_v13 = vadd.f32 1e-05, %v2152_v12 }
 0xc8f   :  { %13638 = vrsqrt.f32 %v2160_v13 }
 0xc93   :  { %v13633_v20 = vpop.eup %13632 }
 0xc94   :  { %v2165_v22 = vmul.f32 %v13633_v20, %v2153_v58  ;;  %v14700_v58 = vld [vmem:[%s17314_s1 + $0xc0] sm:$0xff]   ;;  %v14710_v20 = vld [vmem:[%s17314_s1 + $0xc8] sm:$0xff]  }
 0xc95   :  { %v13635_v18 = vpop.eup %13634 }
 0xc96   :  { %v2166_v9 = vmul.f32 %v13635_v18, %v2154_v8  ;;  %v2169_v25 = vmul.f32 %v14645_v24, %v2165_v22  ;;  %v14720_v22 = vld [vmem:[%s17315_s2 + $0x4] ss:$0 sm:$0xff] }
 0xc97   :  { %v13637_v28 = vpop.eup %13636 }
 0xc98   :  { %v2170_v29 = vmul.f32 %v14645_v24, %v2166_v9  ;;  %v2173_v54 = vadd.f32 %v14653_v15, %v2169_v25  ;;  %v2167_v51 = vmul.f32 %v13637_v28, %v2155_v7 }
 0xc99   :  { %v13639_v6 = vpop.eup %13638 }
 0xc9a   :  { %v2174_v31 = vadd.f32 %v14653_v15, %v2170_v29  ;;  %v2168_v32 = vmul.f32 %v13639_v6, %v2156_v21  ;;  %v2171_v34 = vmul.f32 %v14645_v24, %v2167_v51  ;;  %v2177_v35 = vmax.f32 %v2173_v54, 0.0 }
 0xc9c   :  { %v2178_v19 = vmax.f32 %v2174_v31, 0.0  ;;  %v2172_v16 = vmul.f32 %v14645_v24, %v2168_v32  ;;  %v2175_v38 = vadd.f32 %v14653_v15, %v2171_v34 }
 0xc9e   :  { %v2181_v59 = vpack.c.bf16 %v2178_v19, %v2177_v35  ;;  %v2176_v45 = vadd.f32 %v14653_v15, %v2172_v16  ;;  %v2179_v46 = vmax.f32 %v2175_v38, 0.0 }
 0xca0   :  { %12177 = vmatprep.subr.bf16.mxu0 %v2181_v59  ;;  %v2180_v47 = vmax.f32 %v2176_v45, 0.0 }
 0xca1   :  { %12178 = vmatpush3.bf16.msra.mxu0 %v2181_v59 }
 0xca2   :  { %v2182_v50 = vpack.c.bf16 %v2180_v47, %v2179_v46 }
 0xca4   :  { %12179 = vmatprep.subr.bf16.mxu0 %v2182_v50 }
 0xca5   :  { %12180 = vmatpush3.bf16.msra.mxu0 %v2182_v50 }
 0xca6   :  { %12189 = vmatprep.subr.bf16.mxu0 %v14664_v23 }
 0xca8   :  { %12182 = vmatmul.mubr.msk.bf16.vlgmr.msra.gmra.mrb[24].mxu0 %vm58_vm0, %v14548_v63 }
 0xca9   :  { %12185 = vmatprep.mubr.msk.bf16.mxu0 %vm58_vm0, %v14555_v3  ;;  %12190 = vmatpush3.bf16.msra.mxu0 %v14664_v23 }
 0xcaa   :  { %12191 = vmatprep.subr.bf16.mxu0 %v14675_v41 }
 0xcad   :  { %12192 = vmatpush3.bf16.msra.mxu0 %v14675_v41 }
 0xcae   :  { %12197 = vmatprep.subr.bf16.mxu0 %v14682_v53 }
 0xcb0   :  { %12186 = vmatmul.mubr.msk.bf16.gmra.mrb[28].mxu0 %vm58_vm0, %v14576_v43 }
 0xd7b   :  { %v12183_v27 = vpop.f32.mrb[24].mxu0 }
 0xd7c   :  { %v2217_v56 = vpop.f32.mrb[25].mxu0 }
 0xd7d   :  { %v12184_v57 = vpop.f32.mrb[26].mxu0 }
 0xd7e   :  { %v2249_v5 = vpack.c.bf16 %v12184_v57, %v12183_v27  ;;  %v2220_v60 = vpop.f32.mrb[27].mxu0 }
 0xd7f   :  { %v2248_v37 = vpack.c.bf16 %v2220_v60, %v2217_v56 }
 0xd81   :  { %12193 = vmatprep.mubr.msk.bf16.mxu0 %vm58_vm0, %v2248_v37 }
 0xd82   :  { %12194 = vmatmul.mubr.msk.bf16.vlgmr.msra.gmra.mrb[32].mxu0 %vm58_vm0, %v2249_v5 }
 0xd83   :  { %v12187_v62 = vpop.f32.mrb[28].mxu0  ;;  %12198 = vmatpush3.bf16.msra.mxu0 %v14682_v53 }
 0xd84   :  { %v2233_v0 = vpop.f32.mrb[29].mxu0  ;;  %12199 = vmatprep.subr.bf16.mxu0 %v14693_v1 }
 0xd85   :  { %v12188_v10 = vpop.f32.mrb[30].mxu0 }
 0xd86   :  { %v2251_v11 = vpack.c.bf16 %v12188_v10, %v12187_v62  ;;  %v2236_v12 = vpop.f32.mrb[31].mxu0 }
 0xd87   :  { %v2250_v13 = vpack.c.bf16 %v2236_v12, %v2233_v0  ;;  %12200 = vmatpush3.bf16.msra.mxu0 %v14693_v1 }
 0xd88   :  { %12205 = vmatprep.subr.bf16.mxu0 %v14700_v58 }
 0xd89   :  { %12201 = vmatprep.mubr.msk.bf16.mxu0 %vm58_vm0, %v2250_v13 }
 0xd8e   :  { %12202 = vmatmul.mubr.msk.bf16.vlgmr.msra.gmra.mrb[32].mxu0 %vm58_vm0, %v2251_v11 }
 0xd8f   :  { %12209 = vmatprep.mubr.msk.bf16.mxu0 %vm58_vm0, %v2181_v59  ;;  %12206 = vmatpush3.bf16.msra.mxu0 %v14700_v58 }
 0xd90   :  { %12207 = vmatprep.subr.bf16.mxu0 %v14710_v20 }
 0xd93   :  { %12208 = vmatpush3.bf16.msra.mxu0 %v14710_v20 }
 0xd9a   :  { %12210 = vmatmul.mubr.msk.bf16.vlgmr.msra.gmra.mrb[32].mxu0 %vm58_vm0, %v2182_v50 }
 0xd9b   :  { %12253 = vmatprep.mubr.msk.bf16.mxu0 %vm58_vm0, %v14349_v48 }
 0xe6d   :  { %v12211_v8 = vpop.f32.mrb[32].mxu0 }
 0xe6e   :  { %v14723_v18 = vadd.f32 %v14720_v22, %v12211_v8  ;;  %v2410_v7 = vpop.f32.mrb[33].mxu0 }
 0xe6f   :  { %v12212_v9 = vpop.f32.mrb[34].mxu0  ;;  %v13186_v25 = vadd.f32 %v14720_v22, %v2410_v7 }
 0xe70   :  { %v14727_v28 = vadd.f32 %v14720_v22, %v12212_v9  ;;  %v2413_v21 = vpop.f32.mrb[35].mxu0  ;;  %v2435_v48 = vsel %vm58_vm0, %v14723_v18, 0.0  ;;  %v2447_v35 = vmul.f32 %v14723_v18, %v14723_v18 }
 0xe71   :  { %2436 = vadd.xlane.f32.xlu0 %v2435_v48  ;;  %v13188_v29 = vadd.f32 %v14720_v22, %v2413_v21  ;;  %v2429_v51 = vsel %vm58_vm0, %v13186_v25, 0.0  ;;  %v2445_v6 = vmul.f32 %v13186_v25, %v13186_v25 }
 0xe72   :  { %v2438_v54 = vsel %vm58_vm0, %v14727_v28, 0.0  ;;  %v2448_v16 = vmul.f32 %v14727_v28, %v14727_v28  ;;  %v2455_v38 = vsel %vm58_vm0, %v2447_v35, 0.0 }
 0xe73   :  { %2439 = vadd.xlane.f32.xlu1 %v2438_v54  ;;  %v2432_v31 = vsel %vm58_vm0, %v13188_v29, 0.0  ;;  %v2446_v32 = vmul.f32 %v13188_v29, %v13188_v29  ;;  %v2449_v34 = vsel %vm58_vm0, %v2445_v6, 0.0 }
 0xe74   :  { %v2458_v59 = vsel %vm58_vm0, %v2448_v16, 0.0 }
 0xe75   :  { %2430 = vadd.xlane.f32.xlu0 %v2429_v51  ;;  %v2452_v19 = vsel %vm58_vm0, %v2446_v32, 0.0 }
 0xe77   :  { %2433 = vadd.xlane.f32.xlu1 %v2432_v31 }
 0xe79   :  { %2450 = vadd.xlane.f32.xlu0 %v2449_v34 }
 0xe7b   :  { %2453 = vadd.xlane.f32.xlu1 %v2452_v19 }
 0xe7d   :  { %2456 = vadd.xlane.f32.xlu0 %v2455_v38 }
 0xe7f   :  { %2459 = vadd.xlane.f32.xlu1 %v2458_v59 }
 0xefe   :  { %v2437_v45 = vpop.xlane.xlu0 %2436 }
 0xeff   :  { %v2443_v5 = vmul.f32 0.03125, %v2437_v45 }
 0xf00   :  { %v2440_v46 = vpop.xlane.xlu1 %2439 }
 0xf01   :  { %v2444_v62 = vmul.f32 0.03125, %v2440_v46  ;;  %v2467_v8 = vmul.f32 %v2443_v5, %v2443_v5  ;;  %v2475_v46 = vsub.f32 %v14723_v18, %v2443_v5 }
 0xf02   :  { %v2431_v47 = vpop.xlane.xlu0 %2430 }
 0xf03   :  { %v2441_v50 = vmul.f32 0.03125, %v2431_v47  ;;  %v2468_v48 = vmul.f32 %v2444_v62, %v2444_v62 }
 0xf04   :  { %v2434_v27 = vpop.xlane.xlu1 %2433 }
 0xf05   :  { %v2442_v56 = vmul.f32 0.03125, %v2434_v27  ;;  %v2465_v60 = vmul.f32 %v2441_v50, %v2441_v50  ;;  %v2473_v19 = vsub.f32 %v13186_v25, %v2441_v50  ;;  %v14748_v27 = vld [vmem:[%s17315_s2 + $0x5] ss:$0 sm:$0xff]  ;;  %v14756_v25 = vld [vmem:[%s17315_s2 + $0x6] ss:$0 sm:$0xff] }
 0xf06   :  { %v2451_v57 = vpop.xlane.xlu0 %2450 }
 0xf07   :  { %v2461_v37 = vmul.f32 0.03125, %v2451_v57  ;;  %v2466_v10 = vmul.f32 %v2442_v56, %v2442_v56  ;;  %v2474_v38 = vsub.f32 %v13188_v29, %v2442_v56 }
 0xf08   :  { %v2454_v0 = vpop.xlane.xlu1 %2453 }
 0xf09   :  { %v2469_v11 = vsub.f32 %v2461_v37, %v2465_v60  ;;  %v2462_v12 = vmul.f32 0.03125, %v2454_v0  ;;  %v2476_v37 = vsub.f32 %v14727_v28, %v2444_v62 }
 0xf0a   :  { %v2457_v13 = vpop.xlane.xlu0 %2456 }
 0xf0b   :  { %v2477_v7 = vadd.f32 1e-05, %v2469_v11  ;;  %v2470_v9 = vsub.f32 %v2462_v12, %v2466_v10  ;;  %v2463_v21 = vmul.f32 0.03125, %v2457_v13 }
 0xf0c   :  { %v2460_v54 = vpop.xlane.xlu1 %2459 }
 0xf0d   :  { %13640 = vrsqrt.f32 %v2477_v7  ;;  %v2478_v51 = vadd.f32 1e-05, %v2470_v9  ;;  %v2471_v6 = vsub.f32 %v2463_v21, %v2467_v8  ;;  %v2464_v31 = vmul.f32 0.03125, %v2460_v54 }
 0xf0f   :  { %13642 = vrsqrt.f32 %v2478_v51  ;;  %v2479_v32 = vadd.f32 1e-05, %v2471_v6  ;;  %v2472_v34 = vsub.f32 %v2464_v31, %v2468_v48  ;;  %v14804_v6 = vld [vmem:[%s17314_s1 + $0xd8] sm:$0xff]   ;;  %v14811_v31 = vld [vmem:[%s17314_s1 + $0xe0] sm:$0xff]  }
 0xf10   :  { %17382 = vst [vmem:[#allocation6_spill] sm:$0xff] %v14811_v31 }
 0xf11   :  { %13644 = vrsqrt.f32 %v2479_v32  ;;  %v2480_v35 = vadd.f32 1e-05, %v2472_v34  ;;  %v14817_v32 = vld [vmem:[%s17314_s1 + $0x38] sm:$0xff]  }
 0xf13   :  { %13646 = vrsqrt.f32 %v2480_v35 }
 0xf17   :  { %v13641_v16 = vpop.eup %13640 }
 0xf18   :  { %v2485_v59 = vmul.f32 %v13641_v16, %v2473_v19 }
 0xf19   :  { %v13643_v45 = vpop.eup %13642 }
 0xf1a   :  { %v2486_v47 = vmul.f32 %v13643_v45, %v2474_v38  ;;  %v2489_v57 = vmul.f32 %v14748_v27, %v2485_v59 }
 0xf1b   :  { %v13645_v60 = vpop.eup %13644 }
 0xf1c   :  { %v2490_v0 = vmul.f32 %v14748_v27, %v2486_v47  ;;  %v2493_v18 = vadd.f32 %v14756_v25, %v2489_v57  ;;  %v2487_v29 = vmul.f32 %v13645_v60, %v2475_v46  ;;  %v14827_v47 = vld [vmem:[%s17314_s1 + $0xe8] sm:$0xff]  }
 0xf1d   :  { %v13647_v50 = vpop.eup %13646  ;;  %17383 = vst [vmem:[#allocation7_spill] sm:$0xff] %v14827_v47 }
 0xf1e   :  { %v2494_v56 = vadd.f32 %v14756_v25, %v2490_v0  ;;  %v2497_v5 = vmax.f32 %v2493_v18, 0.0  ;;  %v2488_v10 = vmul.f32 %v13647_v50, %v2476_v37  ;;  %v2491_v11 = vmul.f32 %v14748_v27, %v2487_v29  ;;  %v14834_v18 = vld [vmem:[%s17314_s1 + $0xf0] sm:$0xff]   ;;  %v14844_v29 = vld [vmem:[%s17314_s1 + $0xf8] sm:$0xff]  }
 0xf1f   :  { %17384 = vst [vmem:[#allocation8_spill] sm:$0xff] %v14834_v18  ;;  %17385 = vst [vmem:[#allocation9_spill] sm:$0xff] %v14844_v29 }
 0xf20   :  { %v2498_v12 = vmax.f32 %v2494_v56, 0.0  ;;  %v2492_v28 = vmul.f32 %v14748_v27, %v2488_v10  ;;  %v2495_v62 = vadd.f32 %v14756_v25, %v2491_v11  ;;  %v14764_v13 = vadd.f32 %v2497_v5, %v14524_v26  ;;  %v14854_v56 = vld [vmem:[%s17315_s2 + $0x7] ss:$0 sm:$0xff] }
 0xf21   :  { %17386 = vst [vmem:[#allocation10_spill] sm:$0xff] %v14854_v56 }
 0xf22   :  { %v14767_v8 = vadd.f32 %v2498_v12, %v14527_v17  ;;  %v2496_v7 = vadd.f32 %v14756_v25, %v2492_v28  ;;  %v2499_v9 = vmax.f32 %v2495_v62, 0.0  ;;  %v14783_v17 = vld [vmem:[%s17314_s1 + $0xd0] sm:$0xff]  }
 0xf24   :  { %v2505_v21 = vpack.c.bf16 %v14767_v8, %v14764_v13  ;;  %v2500_v48 = vmax.f32 %v2496_v7, 0.0  ;;  %v14773_v54 = vadd.f32 %v2499_v9, %v14532_v39  ;;  %v14789_v39 = vld [vmem:[%s17314_s1 + $0x28] sm:$0xff]  }
 0xf26   :  { %12213 = vmatprep.subr.bf16.mxu1 %v2505_v21  ;;  %v14776_v51 = vadd.f32 %v2500_v48, %v14535_v36  ;;  %v14796_v36 = vld [vmem:[%s17314_s1 + $0x30] sm:$0xff]  }
 0xf27   :  { %12214 = vmatpush3.bf16.msra.mxu1 %v2505_v21 }
 0xf28   :  { %v2506_v26 = vpack.c.bf16 %v14776_v51, %v14773_v54 }
 0xf2a   :  { %12215 = vmatprep.subr.bf16.mxu1 %v2506_v26 }
 0xf2b   :  { %12216 = vmatpush3.bf16.msra.mxu1 %v2506_v26 }
 0xf2c   :  { %12225 = vmatprep.subr.bf16.mxu1 %v14783_v17 }
 0xf2e   :  { %12218 = vmatmul.mubr.msk.bf16.vlgmr.msra.gmra.mrb[40].mxu1 %vm58_vm0, %v14789_v39 }
 0xf2f   :  { %12221 = vmatprep.mubr.msk.bf16.mxu1 %vm58_vm0, %v14796_v36  ;;  %12226 = vmatpush3.bf16.msra.mxu1 %v14783_v17 }
 0xf30   :  { %12227 = vmatprep.subr.bf16.mxu1 %v14804_v6 }
 0xf33   :  { %12228 = vmatpush3.bf16.msra.mxu1 %v14804_v6 }
 0xf34   :  { %12233 = vmatprep.subr.bf16.mxu1 %v14811_v31 }
 0xf36   :  { %12222 = vmatmul.mubr.msk.bf16.gmra.mrb[44].mxu1 %vm58_vm0, %v14817_v32 }
0x1001   :  { %v12219_v34 = vpop.f32.mrb[40].mxu1 }
0x1002   :  { %v2541_v35 = vpop.f32.mrb[41].mxu1 }
0x1003   :  { %v12220_v19 = vpop.f32.mrb[42].mxu1 }
0x1004   :  { %v2573_v16 = vpack.c.bf16 %v12220_v19, %v12219_v34  ;;  %v2544_v38 = vpop.f32.mrb[43].mxu1 }
0x1005   :  { %v2572_v59 = vpack.c.bf16 %v2544_v38, %v2541_v35 }
0x1007   :  { %12229 = vmatprep.mubr.msk.bf16.mxu1 %vm58_vm0, %v2572_v59 }
0x1008   :  { %12230 = vmatmul.mubr.msk.bf16.vlgmr.msra.gmra.mrb[48].mxu1 %vm58_vm0, %v2573_v16 }
0x1009   :  { %v12223_v45 = vpop.f32.mrb[44].mxu1  ;;  %12234 = vmatpush3.bf16.msra.mxu1 %v14811_v31 }
0x100a   :  { %v2557_v46 = vpop.f32.mrb[45].mxu1  ;;  %12235 = vmatprep.subr.bf16.mxu1 %v14827_v47 }
0x100b   :  { %v12224_v57 = vpop.f32.mrb[46].mxu1 }
0x100c   :  { %v2575_v60 = vpack.c.bf16 %v12224_v57, %v12223_v45  ;;  %v2560_v37 = vpop.f32.mrb[47].mxu1 }
0x100d   :  { %v2574_v0 = vpack.c.bf16 %v2560_v37, %v2557_v46  ;;  %12236 = vmatpush3.bf16.msra.mxu1 %v14827_v47 }
0x100e   :  { %12241 = vmatprep.subr.bf16.mxu1 %v14834_v18 }
0x100f   :  { %12237 = vmatprep.mubr.msk.bf16.mxu1 %vm58_vm0, %v2574_v0 }
0x1014   :  { %12238 = vmatmul.mubr.msk.bf16.vlgmr.msra.gmra.mrb[48].mxu1 %vm58_vm0, %v2575_v60 }
0x1015   :  { %12245 = vmatprep.mubr.msk.bf16.mxu1 %vm58_vm0, %v2505_v21  ;;  %12242 = vmatpush3.bf16.msra.mxu1 %v14834_v18 }
0x1016   :  { %12243 = vmatprep.subr.bf16.mxu1 %v14844_v29 }
0x1019   :  { %12244 = vmatpush3.bf16.msra.mxu1 %v14844_v29 }
0x1020   :  { %12246 = vmatmul.mubr.msk.bf16.vlgmr.msra.gmra.mrb[48].mxu1 %vm58_vm0, %v2506_v26 }
0x1021   :  { %12289 = vmatprep.mubr.msk.bf16.mxu1 %vm58_vm0, %v14490_v14 }
0x10f3   :  { %v12247_v50 = vpop.f32.mrb[48].mxu1 }
0x10f4   :  { %v14857_v5 = vadd.f32 %v14854_v56, %v12247_v50  ;;  %v2734_v10 = vpop.f32.mrb[49].mxu1 }
0x10f5   :  { %v12248_v11 = vpop.f32.mrb[50].mxu1  ;;  %v13190_v12 = vadd.f32 %v14854_v56, %v2734_v10 }
0x10f6   :  { %v14861_v28 = vadd.f32 %v14854_v56, %v12248_v11  ;;  %v2737_v62 = vpop.f32.mrb[51].mxu1  ;;  %v2759_v7 = vsel %vm58_vm0, %v14857_v5, 0.0  ;;  %v2771_v16 = vmul.f32 %v14857_v5, %v14857_v5 }
0x10f7   :  { %2760 = vadd.xlane.f32.xlu0 %v2759_v7  ;;  %v13192_v9 = vadd.f32 %v14854_v56, %v2737_v62  ;;  %v2753_v48 = vsel %vm58_vm0, %v13190_v12, 0.0  ;;  %v2769_v26 = vmul.f32 %v13190_v12, %v13190_v12 }
0x10f8   :  { %v2762_v21 = vsel %vm58_vm0, %v14861_v28, 0.0  ;;  %v2772_v59 = vmul.f32 %v14861_v28, %v14861_v28  ;;  %v2779_v45 = vsel %vm58_vm0, %v2771_v16, 0.0 }
0x10f9   :  { %2763 = vadd.xlane.f32.xlu1 %v2762_v21  ;;  %v2756_v34 = vsel %vm58_vm0, %v13192_v9, 0.0  ;;  %v2770_v35 = vmul.f32 %v13192_v9, %v13192_v9  ;;  %v2773_v19 = vsel %vm58_vm0, %v2769_v26, 0.0 }
0x10fa   :  { %v2782_v46 = vsel %vm58_vm0, %v2772_v59, 0.0 }
0x10fb   :  { %2754 = vadd.xlane.f32.xlu0 %v2753_v48  ;;  %v2776_v38 = vsel %vm58_vm0, %v2770_v35, 0.0 }
0x10fd   :  { %2757 = vadd.xlane.f32.xlu1 %v2756_v34 }
0x10ff   :  { %2774 = vadd.xlane.f32.xlu0 %v2773_v19 }
0x1101   :  { %2777 = vadd.xlane.f32.xlu1 %v2776_v38 }
0x1103   :  { %2780 = vadd.xlane.f32.xlu0 %v2779_v45 }
0x1105   :  { %2783 = vadd.xlane.f32.xlu1 %v2782_v46 }
0x1184   :  { %v2761_v57 = vpop.xlane.xlu0 %2760 }
0x1185   :  { %v2767_v62 = vmul.f32 0.03125, %v2761_v57 }
0x1186   :  { %v2764_v60 = vpop.xlane.xlu1 %2763 }
0x1187   :  { %v2768_v48 = vmul.f32 0.03125, %v2764_v60  ;;  %v2791_v38 = vmul.f32 %v2767_v62, %v2767_v62 }
0x1188   :  { %v2755_v37 = vpop.xlane.xlu0 %2754 }
0x1189   :  { %v2765_v0 = vmul.f32 0.03125, %v2755_v37  ;;  %v2792_v56 = vmul.f32 %v2768_v48, %v2768_v48 }
0x118a   :  { %v2758_v50 = vpop.xlane.xlu1 %2757 }
0x118b   :  { %v2766_v10 = vmul.f32 0.03125, %v2758_v50  ;;  %v2789_v7 = vmul.f32 %v2765_v0, %v2765_v0 }
0x118c   :  { %v2775_v11 = vpop.xlane.xlu0 %2774 }
0x118d   :  { %v2785_v21 = vmul.f32 0.03125, %v2775_v11  ;;  %v2790_v34 = vmul.f32 %v2766_v10, %v2766_v10  ;;  %v2797_v11 = vsub.f32 %v13190_v12, %v2765_v0  ;;  %v14890_v12 = vld [vmem:[%s17315_s2 + $0x9] ss:$0 sm:$0xff] }
0x118e   :  { %v2778_v26 = vpop.xlane.xlu1 %2777  ;;  %17387 = vst [vmem:[#allocation11_spill] sm:$0xff] %v14890_v12 }
0x118f   :  { %v2793_v35 = vsub.f32 %v2785_v21, %v2789_v7  ;;  %v2786_v19 = vmul.f32 0.03125, %v2778_v26  ;;  %v2798_v21 = vsub.f32 %v13192_v9, %v2766_v10 }
0x1190   :  { %v2781_v16 = vpop.xlane.xlu0 %2780 }
0x1191   :  { %v2801_v45 = vadd.f32 1e-05, %v2793_v35  ;;  %v2794_v59 = vsub.f32 %v2786_v19, %v2790_v34  ;;  %v2787_v46 = vmul.f32 0.03125, %v2781_v16  ;;  %v2799_v34 = vsub.f32 %v14857_v5, %v2767_v62  ;;  %v14882_v19 = vld [vmem:[%s17315_s2 + $0x8] ss:$0 sm:$0xff] }
0x1192   :  { %v2784_v29 = vpop.xlane.xlu1 %2783 }
0x1193   :  { %13648 = vrsqrt.f32 %v2801_v45  ;;  %v2802_v37 = vadd.f32 1e-05, %v2794_v59  ;;  %v2795_v18 = vsub.f32 %v2787_v46, %v2791_v38  ;;  %v2788_v50 = vmul.f32 0.03125, %v2784_v29 }
0x1195   :  { %13650 = vrsqrt.f32 %v2802_v37  ;;  %v2803_v57 = vadd.f32 1e-05, %v2795_v18  ;;  %v2796_v47 = vsub.f32 %v2788_v50, %v2792_v56  ;;  %v2800_v56 = vsub.f32 %v14861_v28, %v2768_v48 }
0x1197   :  { %13652 = vrsqrt.f32 %v2803_v57  ;;  %v2804_v60 = vadd.f32 1e-05, %v2796_v47  ;;  %v14901_v57 = vld [vmem:[%s17314_s1 + $0x100] sm:$0xff]  }
0x1198   :  { %17388 = vst [vmem:[#allocation12_spill] sm:$0xff] %v14901_v57 }
0x1199   :  { %13654 = vrsqrt.f32 %v2804_v60  ;;  %v14912_v60 = vld [vmem:[%s17314_s1 + $0x108] sm:$0xff]  }
0x119a   :  { %17389 = vst [vmem:[#allocation13_spill] sm:$0xff] %v14912_v60 }
0x119d   :  { %v13649_v7 = vpop.eup %13648 }
0x119e   :  { %v2809_v26 = vmul.f32 %v13649_v7, %v2797_v11  ;;  %v14919_v11 = vld [vmem:[%s17314_s1 + $0x110] sm:$0xff]  }
0x119f   :  { %v13651_v31 = vpop.eup %13650  ;;  %17390 = vst [vmem:[#allocation14_spill] sm:$0xff] %v14919_v11 }
0x11a0   :  { %v2810_v35 = vmul.f32 %v13651_v31, %v2798_v21  ;;  %v2813_v29 = vmul.f32 %v14882_v19, %v2809_v26 }
0x11a1   :  { %v13653_v18 = vpop.eup %13652 }
0x11a2   :  { %v2814_v47 = vmul.f32 %v14882_v19, %v2810_v35  ;;  %v2817_v5 = vadd.f32 %v14890_v12, %v2813_v29  ;;  %v2811_v31 = vmul.f32 %v13653_v18, %v2799_v34 }
0x11a3   :  { %v13655_v9 = vpop.eup %13654 }
0x11a4   :  { %v2818_v0 = vadd.f32 %v14890_v12, %v2814_v47  ;;  %v2812_v10 = vmul.f32 %v13655_v9, %v2800_v56  ;;  %v2815_v62 = vmul.f32 %v14882_v19, %v2811_v31  ;;  %v2821_v16 = vmax.f32 %v2817_v5, 0.0  ;;  %v14930_v47 = vld [vmem:[%s17314_s1 + $0x118] sm:$0xff]  }
0x11a5   :  { %17391 = vst [vmem:[#allocation15_spill] sm:$0xff] %v14930_v47 }
0x11a6   :  { %v2822_v38 = vmax.f32 %v2818_v0, 0.0  ;;  %v2816_v28 = vmul.f32 %v14882_v19, %v2812_v10  ;;  %v2819_v48 = vadd.f32 %v14890_v12, %v2815_v62  ;;  %v14937_v10 = vld [vmem:[%s17314_s1 + $0x120] sm:$0xff]   ;;  %v14947_v62 = vld [vmem:[%s17314_s1 + $0x128] sm:$0xff]  }
0x11a7   :  { %17392 = vst [vmem:[#allocation16_spill] sm:$0xff] %v14937_v10  ;;  %17393 = vst [vmem:[#allocation17_spill] sm:$0xff] %v14947_v62 }
0x11a8   :  { %v2825_v45 = vpack.c.bf16 %v2822_v38, %v2821_v16  ;;  %v2820_v59 = vadd.f32 %v14890_v12, %v2816_v28  ;;  %v2823_v46 = vmax.f32 %v2819_v48, 0.0  ;;  %v14957_v38 = vld [vmem:[%s17315_s2 + $0xa] ss:$0 sm:$0xff] }
0x11a9   :  { %17394 = vst [vmem:[#allocation18_spill] sm:$0xff] %v14957_v38 }
0x11aa   :  { %12249 = vmatprep.subr.bf16.mxu0 %v2825_v45  ;;  %v2824_v37 = vmax.f32 %v2820_v59, 0.0 }
0x11ab   :  { %12250 = vmatpush3.bf16.msra.mxu0 %v2825_v45 }
0x11ac   :  { %v2826_v50 = vpack.c.bf16 %v2824_v37, %v2823_v46 }
0x11ae   :  { %12251 = vmatprep.subr.bf16.mxu0 %v2826_v50 }
0x11af   :  { %12252 = vmatpush3.bf16.msra.mxu0 %v2826_v50 }
0x11b0   :  { %12261 = vmatprep.subr.bf16.mxu0 %v14901_v57 }
0x11b2   :  { %12254 = vmatmul.mubr.msk.bf16.vlgmr.msra.gmra.mrb[36].mxu0 %vm58_vm0, %v14789_v39 }
0x11b3   :  { %12257 = vmatprep.mubr.msk.bf16.mxu0 %vm58_vm0, %v14796_v36  ;;  %12262 = vmatpush3.bf16.msra.mxu0 %v14901_v57 }
0x11b4   :  { %12263 = vmatprep.subr.bf16.mxu0 %v14912_v60 }
0x11b7   :  { %12264 = vmatpush3.bf16.msra.mxu0 %v14912_v60 }
0x11b8   :  { %12269 = vmatprep.subr.bf16.mxu0 %v14919_v11 }
0x11ba   :  { %12258 = vmatmul.mubr.msk.bf16.gmra.mrb[40].mxu0 %vm58_vm0, %v14817_v32 }
0x1285   :  { %v12255_v7 = vpop.f32.mrb[36].mxu0 }
0x1286   :  { %v2861_v21 = vpop.f32.mrb[37].mxu0 }
0x1287   :  { %v12256_v26 = vpop.f32.mrb[38].mxu0 }
0x1288   :  { %v2893_v34 = vpack.c.bf16 %v12256_v26, %v12255_v7  ;;  %v2864_v35 = vpop.f32.mrb[39].mxu0 }
0x1289   :  { %v2892_v29 = vpack.c.bf16 %v2864_v35, %v2861_v21 }
0x128b   :  { %12265 = vmatprep.mubr.msk.bf16.mxu0 %vm58_vm0, %v2892_v29 }
0x128c   :  { %12266 = vmatmul.mubr.msk.bf16.vlgmr.msra.gmra.mrb[44].mxu0 %vm58_vm0, %v2893_v34 }
0x128d   :  { %v12259_v18 = vpop.f32.mrb[40].mxu0  ;;  %12270 = vmatpush3.bf16.msra.mxu0 %v14919_v11 }
0x128e   :  { %v2877_v56 = vpop.f32.mrb[41].mxu0  ;;  %12271 = vmatprep.subr.bf16.mxu0 %v14930_v47 }
0x128f   :  { %v12260_v5 = vpop.f32.mrb[42].mxu0 }
0x1290   :  { %v2895_v31 = vpack.c.bf16 %v12260_v5, %v12259_v18  ;;  %v2880_v9 = vpop.f32.mrb[43].mxu0 }
0x1291   :  { %v2894_v0 = vpack.c.bf16 %v2880_v9, %v2877_v56  ;;  %12272 = vmatpush3.bf16.msra.mxu0 %v14930_v47 }
0x1292   :  { %12277 = vmatprep.subr.bf16.mxu0 %v14937_v10 }
0x1293   :  { %12273 = vmatprep.mubr.msk.bf16.mxu0 %vm58_vm0, %v2894_v0 }
0x1298   :  { %12274 = vmatmul.mubr.msk.bf16.vlgmr.msra.gmra.mrb[44].mxu0 %vm58_vm0, %v2895_v31 }
0x1299   :  { %12281 = vmatprep.mubr.msk.bf16.mxu0 %vm58_vm0, %v2825_v45  ;;  %12278 = vmatpush3.bf16.msra.mxu0 %v14937_v10 }
0x129a   :  { %12279 = vmatprep.subr.bf16.mxu0 %v14947_v62 }
0x129d   :  { %12280 = vmatpush3.bf16.msra.mxu0 %v14947_v62 }
0x12a4   :  { %12282 = vmatmul.mubr.msk.bf16.vlgmr.msra.gmra.mrb[44].mxu0 %vm58_vm0, %v2826_v50 }
0x12a5   :  { %12325 = vmatprep.mubr.msk.bf16.mxu0 %vm58_vm0, %v14490_v14 }
0x1377   :  { %v12283_v16 = vpop.f32.mrb[44].mxu0 }
0x1378   :  { %v14960_v28 = vadd.f32 %v14957_v38, %v12283_v16  ;;  %v3054_v48 = vpop.f32.mrb[45].mxu0 }
0x1379   :  { %v12284_v45 = vpop.f32.mrb[46].mxu0  ;;  %v13194_v59 = vadd.f32 %v14957_v38, %v3054_v48 }
0x137a   :  { %v14964_v46 = vadd.f32 %v14957_v38, %v12284_v45  ;;  %v3057_v37 = vpop.f32.mrb[47].mxu0  ;;  %v3079_v14 = vsel %vm58_vm0, %v14960_v28, 0.0  ;;  %v3091_v18 = vmul.f32 %v14960_v28, %v14960_v28 }
0x137b   :  { %3080 = vadd.xlane.f32.xlu0 %v3079_v14  ;;  %v13196_v50 = vadd.f32 %v14957_v38, %v3057_v37  ;;  %v3073_v21 = vsel %vm58_vm0, %v13194_v59, 0.0  ;;  %v3089_v26 = vmul.f32 %v13194_v59, %v13194_v59 }
0x137c   :  { %v3082_v7 = vsel %vm58_vm0, %v14964_v46, 0.0  ;;  %v3092_v5 = vmul.f32 %v14964_v46, %v14964_v46  ;;  %v3099_v31 = vsel %vm58_vm0, %v3091_v18, 0.0 }
0x137d   :  { %3083 = vadd.xlane.f32.xlu1 %v3082_v7  ;;  %v3076_v34 = vsel %vm58_vm0, %v13196_v50, 0.0  ;;  %v3090_v35 = vmul.f32 %v13196_v50, %v13196_v50  ;;  %v3093_v29 = vsel %vm58_vm0, %v3089_v26, 0.0 }
0x137e   :  { %v3102_v9 = vsel %vm58_vm0, %v3092_v5, 0.0 }
0x137f   :  { %3074 = vadd.xlane.f32.xlu0 %v3073_v21  ;;  %v3096_v56 = vsel %vm58_vm0, %v3090_v35, 0.0 }
0x1381   :  { %3077 = vadd.xlane.f32.xlu1 %v3076_v34 }
0x1383   :  { %3094 = vadd.xlane.f32.xlu0 %v3093_v29 }
0x1385   :  { %3097 = vadd.xlane.f32.xlu1 %v3096_v56 }
0x1387   :  { %3100 = vadd.xlane.f32.xlu0 %v3099_v31 }
0x1389   :  { %3103 = vadd.xlane.f32.xlu1 %v3102_v9 }
0x1408   :  { %v3081_v0 = vpop.xlane.xlu0 %3080 }
0x1409   :  { %v3087_v21 = vmul.f32 0.03125, %v3081_v0 }
0x140a   :  { %v3084_v16 = vpop.xlane.xlu1 %3083 }
0x140b   :  { %v3088_v35 = vmul.f32 0.03125, %v3084_v16  ;;  %v3111_v31 = vmul.f32 %v3087_v21, %v3087_v21 }
0x140c   :  { %v3075_v48 = vpop.xlane.xlu0 %3074 }
0x140d   :  { %v3085_v45 = vmul.f32 0.03125, %v3075_v48  ;;  %v3112_v47 = vmul.f32 %v3088_v35, %v3088_v35 }
0x140e   :  { %v3078_v37 = vpop.xlane.xlu1 %3077 }
0x140f   :  { %v3086_v14 = vmul.f32 0.03125, %v3078_v37  ;;  %v3109_v26 = vmul.f32 %v3085_v45, %v3085_v45 }
0x1410   :  { %v3095_v7 = vpop.xlane.xlu0 %3094 }
0x1411   :  { %v3105_v34 = vmul.f32 0.03125, %v3095_v7  ;;  %v3110_v38 = vmul.f32 %v3086_v14, %v3086_v14  ;;  %v3117_v7 = vsub.f32 %v13194_v59, %v3085_v45  ;;  %v14993_v59 = vld [vmem:[%s17315_s2 + $0xc] ss:$0 sm:$0xff] }
0x1412   :  { %v3098_v29 = vpop.xlane.xlu1 %3097 }
0x1413   :  { %v3113_v56 = vsub.f32 %v3105_v34, %v3109_v26  ;;  %v3106_v62 = vmul.f32 0.03125, %v3098_v29  ;;  %v3118_v34 = vsub.f32 %v13196_v50, %v3086_v14 }
0x1414   :  { %v3101_v18 = vpop.xlane.xlu0 %3100 }
0x1415   :  { %v3121_v10 = vadd.f32 1e-05, %v3113_v56  ;;  %v3114_v5 = vsub.f32 %v3106_v62, %v3110_v38  ;;  %v3107_v9 = vmul.f32 0.03125, %v3101_v18  ;;  %v3119_v62 = vsub.f32 %v14960_v28, %v3087_v21 }
0x1416   :  { %v3104_v11 = vpop.xlane.xlu1 %3103 }
0x1417   :  { %13656 = vrsqrt.f32 %v3121_v10  ;;  %v3122_v48 = vadd.f32 1e-05, %v3114_v5  ;;  %v3115_v60 = vsub.f32 %v3107_v9, %v3111_v31  ;;  %v3108_v37 = vmul.f32 0.03125, %v3104_v11  ;;  %v14985_v10 = vld [vmem:[%s17315_s2 + $0xb] ss:$0 sm:$0xff] }
0x1419   :  { %13658 = vrsqrt.f32 %v3122_v48  ;;  %v3123_v0 = vadd.f32 1e-05, %v3115_v60  ;;  %v3116_v57 = vsub.f32 %v3108_v37, %v3112_v47  ;;  %v3120_v47 = vsub.f32 %v14964_v46, %v3088_v35 }
0x141b   :  { %13660 = vrsqrt.f32 %v3123_v0  ;;  %v3124_v16 = vadd.f32 1e-05, %v3116_v57 }
0x141d   :  { %13662 = vrsqrt.f32 %v3124_v16 }
0x1421   :  { %v13657_v26 = vpop.eup %13656 }
0x1422   :  { %v3129_v29 = vmul.f32 %v13657_v26, %v3117_v7 }
0x1423   :  { %v13659_v12 = vpop.eup %13658 }
0x1424   :  { %v3130_v38 = vmul.f32 %v13659_v12, %v3118_v34  ;;  %v3133_v11 = vmul.f32 %v14985_v10, %v3129_v29 }
0x1425   :  { %v13661_v60 = vpop.eup %13660 }
0x1426   :  { %v3134_v57 = vmul.f32 %v14985_v10, %v3130_v38  ;;  %v3137_v28 = vadd.f32 %v14993_v59, %v3133_v11  ;;  %v3131_v12 = vmul.f32 %v13661_v60, %v3119_v62  ;;  %v15040_v38 = vld [vmem:[%s17314_s1 + $0x88] sm:$0xff]  }
0x1427   :  { %v13663_v50 = vpop.eup %13662 }
0x1428   :  { %v3138_v45 = vadd.f32 %v14993_v59, %v3134_v57  ;;  %v3141_v14 = vmax.f32 %v3137_v28, 0.0  ;;  %v3132_v21 = vmul.f32 %v13663_v50, %v3120_v47  ;;  %v3135_v56 = vmul.f32 %v14985_v10, %v3131_v12 }
0x142a   :  { %v3142_v18 = vmax.f32 %v3138_v45, 0.0  ;;  %v3136_v46 = vmul.f32 %v14985_v10, %v3132_v21  ;;  %v3139_v35 = vadd.f32 %v14993_v59, %v3135_v56  ;;  %v15001_v31 = vadd.f32 %v3141_v14, %v14764_v13 }
0x142c   :  { %v15004_v5 = vadd.f32 %v3142_v18, %v14767_v8  ;;  %v3140_v9 = vadd.f32 %v14993_v59, %v3136_v46  ;;  %v3143_v48 = vmax.f32 %v3139_v35, 0.0 }
0x142e   :  { %v3149_v37 = vpack.c.bf16 %v15004_v5, %v15001_v31  ;;  %v3144_v0 = vmax.f32 %v3140_v9, 0.0  ;;  %v15010_v16 = vadd.f32 %v3143_v48, %v14773_v54 }
0x1430   :  { %12285 = vmatprep.subr.bf16.mxu1 %v3149_v37  ;;  %v15013_v7 = vadd.f32 %v3144_v0, %v14776_v51 }
0x1431   :  { %12286 = vmatpush3.bf16.msra.mxu1 %v3149_v37 }
0x1432   :  { %v3150_v13 = vpack.c.bf16 %v15013_v7, %v15010_v16 }
0x1434   :  { %12287 = vmatprep.subr.bf16.mxu1 %v3150_v13 }
0x1435   :  { %12288 = vmatpush3.bf16.msra.mxu1 %v3150_v13 }
0x1436   :  { %12297 = vmatprep.subr.bf16.mxu1 %v14542_v33 }
0x1438   :  { %12290 = vmatmul.mubr.msk.bf16.vlgmr.msra.gmra.mrb[52].mxu1 %vm58_vm0, %v14548_v63 }
0x1439   :  { %12293 = vmatprep.mubr.msk.bf16.mxu1 %vm58_vm0, %v14555_v3  ;;  %12298 = vmatpush3.bf16.msra.mxu1 %v14542_v33  ;;  %v15033_v3 = vld [vmem:[%s17314_s1 + $0x80] sm:$0xff]  }
0x143a   :  { %12299 = vmatprep.subr.bf16.mxu1 %v14563_v30 }
0x143d   :  { %12300 = vmatpush3.bf16.msra.mxu1 %v14563_v30 }
0x143e   :  { %12305 = vmatprep.subr.bf16.mxu1 %v14570_v42 }
0x1440   :  { %12294 = vmatmul.mubr.msk.bf16.gmra.mrb[56].mxu1 %vm58_vm0, %v14576_v43 }
0x150b   :  { %v12291_v8 = vpop.f32.mrb[52].mxu1 }
0x150c   :  { %v3185_v54 = vpop.f32.mrb[53].mxu1 }
0x150d   :  { %v12292_v51 = vpop.f32.mrb[54].mxu1 }
0x150e   :  { %v3217_v26 = vpack.c.bf16 %v12292_v51, %v12291_v8  ;;  %v3188_v34 = vpop.f32.mrb[55].mxu1 }
0x150f   :  { %v3216_v63 = vpack.c.bf16 %v3188_v34, %v3185_v54 }
0x1511   :  { %12301 = vmatprep.mubr.msk.bf16.mxu1 %vm58_vm0, %v3216_v63 }
0x1512   :  { %12302 = vmatmul.mubr.msk.bf16.vlgmr.msra.gmra.mrb[60].mxu1 %vm58_vm0, %v3217_v26 }
0x1513   :  { %v12295_v33 = vpop.f32.mrb[56].mxu1  ;;  %12306 = vmatpush3.bf16.msra.mxu1 %v15033_v3 }
0x1514   :  { %v3201_v30 = vpop.f32.mrb[57].mxu1  ;;  %12307 = vmatprep.subr.bf16.mxu1 %v14586_v55  ;;  %v15050_v55 = vld [vmem:[%s17314_s1 + $0x90] sm:$0xff]  }
0x1515   :  { %v12296_v42 = vpop.f32.mrb[58].mxu1 }
0x1516   :  { %v3219_v43 = vpack.c.bf16 %v12296_v42, %v12295_v33  ;;  %v3204_v29 = vpop.f32.mrb[59].mxu1 }
0x1517   :  { %v3218_v62 = vpack.c.bf16 %v3204_v29, %v3201_v30  ;;  %12308 = vmatpush3.bf16.msra.mxu1 %v15040_v38 }
0x1518   :  { %12313 = vmatprep.subr.bf16.mxu1 %v14593_v61  ;;  %v15059_v61 = vld [vmem:[%s17314_s1 + $0x20] sm:$0xff]  }
0x1519   :  { %12309 = vmatprep.mubr.msk.bf16.mxu1 %vm58_vm0, %v3218_v62 }
0x151e   :  { %12310 = vmatmul.mubr.msk.bf16.vlgmr.msra.gmra.mrb[60].mxu1 %vm58_vm0, %v3219_v43 }
0x151f   :  { %12317 = vmatprep.mubr.msk.bf16.mxu1 %vm58_vm0, %v3149_v37  ;;  %12314 = vmatpush3.bf16.msra.mxu1 %v15050_v55 }
0x1520   :  { %12315 = vmatprep.subr.bf16.mxu1 %v14603_v2 }
0x1523   :  { %12316 = vmatpush3.bf16.msra.mxu1 %v14603_v2  ;;  %v15071_v2 = vld [vmem:[%s17315_s2 + $0x1] ss:$0 sm:$0xff] }
0x152a   :  { %12318 = vmatmul.mubr.msk.bf16.vlgmr.msra.gmra.mrb[60].mxu1 %vm58_vm0, %v3150_v13 }
0x152b   :  { %12361 = vmatprep.mubr.msk.bf16.mxu1 %vm58_vm0, %v15059_v61 }
0x15fd   :  { %v12319_v11 = vpop.f32.mrb[60].mxu1 }
0x15fe   :  { %v13197_v60 = vadd.f32 %v14613_v4, %v12319_v11  ;;  %v3378_v47 = vpop.f32.mrb[61].mxu1 }
0x15ff   :  { %v13198_v57 = vadd.f32 %v14613_v4, %v3378_v47  ;;  %v12320_v28 = vpop.f32.mrb[62].mxu1 }
0x1600   :  { %v15066_v12 = vadd.f32 %v13197_v60, %v14247_v52  ;;  %v13199_v50 = vadd.f32 %v15071_v2, %v12320_v28  ;;  %v3381_v45 = vpop.f32.mrb[63].mxu1 }
0x1601   :  { %v13200_v14 = vadd.f32 %v15071_v2, %v3381_v45  ;;  %v3397_v21 = vadd.f32 %v13198_v57, %v14235_v40 }
0x1602   :  { %v15077_v56 = vadd.f32 %v13199_v50, %v14237_v44  ;;  %v3407_v4 = vsel %vm58_vm0, %v15066_v12, 0.0  ;;  %v3419_v13 = vmul.f32 %v15066_v12, %v15066_v12 }
0x1603   :  { %3408 = vadd.xlane.f32.xlu0 %v3407_v4  ;;  %v3398_v18 = vadd.f32 %v13200_v14, %v14242_v49  ;;  %v3401_v35 = vsel %vm58_vm0, %v3397_v21, 0.0  ;;  %v3417_v9 = vmul.f32 %v3397_v21, %v3397_v21 }
0x1604   :  { %v3410_v46 = vsel %vm58_vm0, %v15077_v56, 0.0  ;;  %v3420_v54 = vmul.f32 %v15077_v56, %v15077_v56  ;;  %v3427_v51 = vsel %vm58_vm0, %v3419_v13, 0.0 }
0x1605   :  { %3411 = vadd.xlane.f32.xlu1 %v3410_v46  ;;  %v3404_v48 = vsel %vm58_vm0, %v3398_v18, 0.0  ;;  %v3418_v37 = vmul.f32 %v3398_v18, %v3398_v18  ;;  %v3421_v0 = vsel %vm58_vm0, %v3417_v9, 0.0 }
0x1606   :  { %v3430_v26 = vsel %vm58_vm0, %v3420_v54, 0.0 }
0x1607   :  { %3402 = vadd.xlane.f32.xlu0 %v3401_v35  ;;  %v3424_v8 = vsel %vm58_vm0, %v3418_v37, 0.0 }
0x1609   :  { %3405 = vadd.xlane.f32.xlu1 %v3404_v48 }
0x160b   :  { %3422 = vadd.xlane.f32.xlu0 %v3421_v0 }
0x160d   :  { %3425 = vadd.xlane.f32.xlu1 %v3424_v8 }
0x160f   :  { %3428 = vadd.xlane.f32.xlu0 %v3427_v51 }
0x1611   :  { %3431 = vadd.xlane.f32.xlu1 %v3430_v26 }
0x1690   :  { %v3409_v34 = vpop.xlane.xlu0 %3408 }
0x1691   :  { %v3415_v62 = vmul.f32 0.03125, %v3409_v34 }
0x1692   :  { %v3412_v63 = vpop.xlane.xlu1 %3411 }
0x1693   :  { %v3416_v47 = vmul.f32 0.03125, %v3412_v63  ;;  %v3439_v4 = vmul.f32 %v3415_v62, %v3415_v62 }
0x1694   :  { %v3403_v33 = vpop.xlane.xlu0 %3402 }
0x1695   :  { %v3413_v30 = vmul.f32 0.03125, %v3403_v33  ;;  %v3440_v48 = vmul.f32 %v3416_v47, %v3416_v47 }
0x1696   :  { %v3406_v42 = vpop.xlane.xlu1 %3405 }
0x1697   :  { %v3414_v43 = vmul.f32 0.03125, %v3406_v42  ;;  %v3437_v11 = vmul.f32 %v3413_v30, %v3413_v30  ;;  %v3445_v34 = vsub.f32 %v3397_v21, %v3413_v30 }
0x1698   :  { %v3423_v29 = vpop.xlane.xlu0 %3422 }
0x1699   :  { %v3433_v60 = vmul.f32 0.03125, %v3423_v29  ;;  %v3438_v28 = vmul.f32 %v3414_v43, %v3414_v43  ;;  %v3446_v33 = vsub.f32 %v3398_v18, %v3414_v43  ;;  %v15103_v18 = vld [vmem:[%s17315_s2 + $0x2] ss:$0 sm:$0xff] }
0x169a   :  { %v3426_v57 = vpop.xlane.xlu1 %3425 }
0x169b   :  { %v3441_v50 = vsub.f32 %v3433_v60, %v3437_v11  ;;  %v3434_v45 = vmul.f32 0.03125, %v3426_v57  ;;  %v3447_v11 = vsub.f32 %v15066_v12, %v3415_v62 }
0x169c   :  { %v3429_v14 = vpop.xlane.xlu0 %3428 }
0x169d   :  { %v3449_v46 = vadd.f32 1e-05, %v3441_v50  ;;  %v3442_v35 = vsub.f32 %v3434_v45, %v3438_v28  ;;  %v3435_v9 = vmul.f32 0.03125, %v3429_v14  ;;  %v3448_v50 = vsub.f32 %v15077_v56, %v3416_v47 }
0x169e   :  { %v3432_v37 = vpop.xlane.xlu1 %3431 }
0x169f   :  { %13664 = vrsqrt.f32 %v3449_v46  ;;  %v3450_v0 = vadd.f32 1e-05, %v3442_v35  ;;  %v3443_v13 = vsub.f32 %v3435_v9, %v3439_v4  ;;  %v3436_v8 = vmul.f32 0.03125, %v3432_v37 }
0x16a1   :  { %13666 = vrsqrt.f32 %v3450_v0  ;;  %v3451_v54 = vadd.f32 1e-05, %v3443_v13  ;;  %v3444_v51 = vsub.f32 %v3436_v8, %v3440_v48  ;;  %v15118_v0 = vld [vmem:[%s17314_s1 + $0x8] sm:$0xff]   ;;  %v15125_v13 = vld [vmem:[%s17314_s1 + $0x10] sm:$0xff]   ;;  %v15136_v8 = vld [vmem:[%s17314_s1 + $0x18] sm:$0xff]  }
0x16a3   :  { %13668 = vrsqrt.f32 %v3451_v54  ;;  %v3452_v26 = vadd.f32 1e-05, %v3444_v51 }
0x16a5   :  { %13670 = vrsqrt.f32 %v3452_v26 }
0x16a9   :  { %v13665_v63 = vpop.eup %13664 }
0x16aa   :  { %v3457_v42 = vmul.f32 %v13665_v63, %v3445_v34 }
0x16ab   :  { %v13667_v29 = vpop.eup %13666 }
0x16ac   :  { %v3458_v60 = vmul.f32 %v13667_v29, %v3446_v33  ;;  %v3461_v57 = vmul.f32 %v14645_v24, %v3457_v42 }
0x16ad   :  { %v13669_v28 = vpop.eup %13668 }
0x16ae   :  { %v3462_v45 = vmul.f32 %v14645_v24, %v3458_v60  ;;  %v3465_v14 = vadd.f32 %v14653_v15, %v3461_v57  ;;  %v3459_v4 = vmul.f32 %v13669_v28, %v3447_v11  ;;  %v15110_v24 = vld [vmem:[%s17315_s2 + $0x3] ss:$0 sm:$0xff]  ;;  %v15152_v57 = vld [vmem:[%s17314_s1 + $0xb8] sm:$0xff]  }
0x16af   :  { %v13671_v46 = vpop.eup %13670 }
0x16b0   :  { %v3466_v21 = vadd.f32 %v14653_v15, %v3462_v45  ;;  %v3460_v30 = vmul.f32 %v13671_v46, %v3448_v50  ;;  %v3463_v12 = vmul.f32 %v15103_v18, %v3459_v4  ;;  %v3469_v43 = vmax.f32 %v3465_v14, 0.0  ;;  %v15177_v4 = vld [vmem:[%s17315_s2 + $0x4] ss:$0 sm:$0xff] }
0x16b2   :  { %v3470_v62 = vmax.f32 %v3466_v21, 0.0  ;;  %v3464_v56 = vmul.f32 %v15103_v18, %v3460_v30  ;;  %v3467_v47 = vadd.f32 %v15110_v24, %v3463_v12 }
0x16b4   :  { %v3473_v15 = vpack.c.bf16 %v3470_v62, %v3469_v43  ;;  %v3468_v35 = vadd.f32 %v15110_v24, %v3464_v56  ;;  %v3471_v9 = vmax.f32 %v3467_v47, 0.0 }
0x16b6   :  { %12321 = vmatprep.subr.bf16.mxu0 %v3473_v15  ;;  %v3472_v48 = vmax.f32 %v3468_v35, 0.0 }
0x16b7   :  { %12322 = vmatpush3.bf16.msra.mxu0 %v3473_v15 }
0x16b8   :  { %v3474_v37 = vpack.c.bf16 %v3472_v48, %v3471_v9 }
0x16ba   :  { %12323 = vmatprep.subr.bf16.mxu0 %v3474_v37 }
0x16bb   :  { %12324 = vmatpush3.bf16.msra.mxu0 %v3474_v37 }
0x16bc   :  { %12333 = vmatprep.subr.bf16.mxu0 %v14664_v23 }
0x16be   :  { %12326 = vmatmul.mubr.msk.bf16.vlgmr.msra.gmra.mrb[48].mxu0 %vm58_vm0, %v15118_v0 }
0x16bf   :  { %12329 = vmatprep.mubr.msk.bf16.mxu0 %vm58_vm0, %v15125_v13  ;;  %12334 = vmatpush3.bf16.msra.mxu0 %v14664_v23 }
0x16c0   :  { %12335 = vmatprep.subr.bf16.mxu0 %v14675_v41 }
0x16c3   :  { %12336 = vmatpush3.bf16.msra.mxu0 %v14675_v41 }
0x16c4   :  { %12341 = vmatprep.subr.bf16.mxu0 %v14682_v53  ;;  %v15145_v53 = vld [vmem:[%s17314_s1 + $0xb0] sm:$0xff]  }
0x16c6   :  { %12330 = vmatmul.mubr.msk.bf16.gmra.mrb[52].mxu0 %vm58_vm0, %v15136_v8 }
0x1791   :  { %v12327_v54 = vpop.f32.mrb[48].mxu0 }
0x1792   :  { %v3509_v51 = vpop.f32.mrb[49].mxu0 }
0x1793   :  { %v12328_v26 = vpop.f32.mrb[50].mxu0 }
0x1794   :  { %v3541_v34 = vpack.c.bf16 %v12328_v26, %v12327_v54  ;;  %v3512_v63 = vpop.f32.mrb[51].mxu0 }
0x1795   :  { %v3540_v23 = vpack.c.bf16 %v3512_v63, %v3509_v51 }
0x1797   :  { %12337 = vmatprep.mubr.msk.bf16.mxu0 %vm58_vm0, %v3540_v23 }
0x1798   :  { %12338 = vmatmul.mubr.msk.bf16.vlgmr.msra.gmra.mrb[56].mxu0 %vm58_vm0, %v3541_v34 }
0x1799   :  { %v12331_v41 = vpop.f32.mrb[52].mxu0  ;;  %12342 = vmatpush3.bf16.msra.mxu0 %v15145_v53 }
0x179a   :  { %v3525_v33 = vpop.f32.mrb[53].mxu0  ;;  %12343 = vmatprep.subr.bf16.mxu0 %v14693_v1  ;;  %v15162_v1 = vld [vmem:[%s17314_s1 + $0xc0] sm:$0xff]  }
0x179b   :  { %v12332_v42 = vpop.f32.mrb[54].mxu0 }
0x179c   :  { %v3543_v29 = vpack.c.bf16 %v12332_v42, %v12331_v41  ;;  %v3528_v11 = vpop.f32.mrb[55].mxu0 }
0x179d   :  { %v3542_v60 = vpack.c.bf16 %v3528_v11, %v3525_v33  ;;  %12344 = vmatpush3.bf16.msra.mxu0 %v15152_v57 }
0x179e   :  { %12349 = vmatprep.subr.bf16.mxu0 %v14700_v58 }
0x179f   :  { %12345 = vmatprep.mubr.msk.bf16.mxu0 %vm58_vm0, %v3542_v60 }
0x17a4   :  { %12346 = vmatmul.mubr.msk.bf16.vlgmr.msra.gmra.mrb[56].mxu0 %vm58_vm0, %v3543_v29 }
0x17a5   :  { %12353 = vmatprep.mubr.msk.bf16.mxu0 %vm58_vm0, %v3473_v15  ;;  %12350 = vmatpush3.bf16.msra.mxu0 %v15162_v1 }
0x17a6   :  { %12351 = vmatprep.subr.bf16.mxu0 %v14710_v20 }
0x17a9   :  { %12352 = vmatpush3.bf16.msra.mxu0 %v14710_v20 }
0x17b0   :  { %12354 = vmatmul.mubr.msk.bf16.vlgmr.msra.gmra.mrb[56].mxu0 %vm58_vm0, %v3474_v37 }
0x17b1   :  { %12397 = vmatprep.mubr.msk.bf16.mxu0 %vm58_vm0, %v15059_v61 }
0x1883   :  { %v12355_v58 = vpop.f32.mrb[56].mxu0 }
0x1884   :  { %v15171_v28 = vadd.f32 %v14720_v22, %v12355_v58  ;;  %v3702_v50 = vpop.f32.mrb[57].mxu0 }
0x1885   :  { %v12356_v45 = vpop.f32.mrb[58].mxu0  ;;  %v13202_v14 = vadd.f32 %v14720_v22, %v3702_v50 }
0x1886   :  { %v15180_v20 = vadd.f32 %v15177_v4, %v12356_v45  ;;  %v3705_v46 = vpop.f32.mrb[59].mxu0  ;;  %v3727_v21 = vsel %vm58_vm0, %v15171_v28, 0.0  ;;  %v3739_v15 = vmul.f32 %v15171_v28, %v15171_v28 }
0x1887   :  { %3728 = vadd.xlane.f32.xlu0 %v3727_v21  ;;  %v13204_v30 = vadd.f32 %v15177_v4, %v3705_v46  ;;  %v3721_v22 = vsel %vm58_vm0, %v13202_v14, 0.0  ;;  %v3737_v43 = vmul.f32 %v13202_v14, %v13202_v14 }
0x1888   :  { %v3730_v12 = vsel %vm58_vm0, %v15180_v20, 0.0  ;;  %v3740_v9 = vmul.f32 %v15180_v20, %v15180_v20  ;;  %v3747_v48 = vsel %vm58_vm0, %v3739_v15, 0.0 }
0x1889   :  { %3731 = vadd.xlane.f32.xlu1 %v3730_v12  ;;  %v3724_v62 = vsel %vm58_vm0, %v13204_v30, 0.0  ;;  %v3738_v56 = vmul.f32 %v13204_v30, %v13204_v30  ;;  %v3741_v47 = vsel %vm58_vm0, %v3737_v43, 0.0 }
0x188a   :  { %v3750_v37 = vsel %vm58_vm0, %v3740_v9, 0.0 }
0x188b   :  { %3722 = vadd.xlane.f32.xlu0 %v3721_v22  ;;  %v3744_v35 = vsel %vm58_vm0, %v3738_v56, 0.0 }
0x188d   :  { %3725 = vadd.xlane.f32.xlu1 %v3724_v62 }
0x188f   :  { %3742 = vadd.xlane.f32.xlu0 %v3741_v47 }
0x1891   :  { %3745 = vadd.xlane.f32.xlu1 %v3744_v35 }
0x1893   :  { %3748 = vadd.xlane.f32.xlu0 %v3747_v48 }
0x1895   :  { %3751 = vadd.xlane.f32.xlu1 %v3750_v37 }
0x1914   :  { %v3729_v54 = vpop.xlane.xlu0 %3728 }
0x1915   :  { %v3735_v33 = vmul.f32 0.03125, %v3729_v54 }
0x1916   :  { %v3732_v51 = vpop.xlane.xlu1 %3731 }
0x1917   :  { %v3736_v11 = vmul.f32 0.03125, %v3732_v51  ;;  %v3759_v21 = vmul.f32 %v3735_v33, %v3735_v33 }
0x1918   :  { %v3723_v26 = vpop.xlane.xlu0 %3722 }
0x1919   :  { %v3733_v34 = vmul.f32 0.03125, %v3723_v26  ;;  %v3760_v62 = vmul.f32 %v3736_v11, %v3736_v11 }
0x191a   :  { %v3726_v63 = vpop.xlane.xlu1 %3725 }
0x191b   :  { %v3734_v23 = vmul.f32 0.03125, %v3726_v63  ;;  %v3757_v42 = vmul.f32 %v3733_v34, %v3733_v34  ;;  %v3765_v54 = vsub.f32 %v13202_v14, %v3733_v34 }
0x191c   :  { %v3743_v41 = vpop.xlane.xlu0 %3742 }
0x191d   :  { %v3753_v29 = vmul.f32 0.03125, %v3743_v41  ;;  %v3758_v58 = vmul.f32 %v3734_v23, %v3734_v23  ;;  %v3766_v26 = vsub.f32 %v13204_v30, %v3734_v23 }
0x191e   :  { %v3746_v60 = vpop.xlane.xlu1 %3745 }
0x191f   :  { %v3761_v50 = vsub.f32 %v3753_v29, %v3757_v42  ;;  %v3754_v45 = vmul.f32 0.03125, %v3746_v60  ;;  %v3767_v42 = vsub.f32 %v15171_v28, %v3735_v33  ;;  %v15206_v28 = vld [vmem:[%s17315_s2 + $0x5] ss:$0 sm:$0xff] }
0x1920   :  { %v3749_v46 = vpop.xlane.xlu0 %3748 }
0x1921   :  { %v3769_v12 = vadd.f32 1e-05, %v3761_v50  ;;  %v3762_v22 = vsub.f32 %v3754_v45, %v3758_v58  ;;  %v3755_v43 = vmul.f32 0.03125, %v3749_v46  ;;  %v3768_v50 = vsub.f32 %v15180_v20, %v3736_v11 }
0x1922   :  { %v3752_v56 = vpop.xlane.xlu1 %3751 }
0x1923   :  { %13672 = vrsqrt.f32 %v3769_v12  ;;  %v3770_v47 = vadd.f32 1e-05, %v3762_v22  ;;  %v3763_v15 = vsub.f32 %v3755_v43, %v3759_v21  ;;  %v3756_v35 = vmul.f32 0.03125, %v3752_v56 }
0x1925   :  { %13674 = vrsqrt.f32 %v3770_v47  ;;  %v3771_v9 = vadd.f32 1e-05, %v3763_v15  ;;  %v3764_v48 = vsub.f32 %v3756_v35, %v3760_v62 }
0x1927   :  { %13676 = vrsqrt.f32 %v3771_v9  ;;  %v3772_v37 = vadd.f32 1e-05, %v3764_v48 }
0x1929   :  { %13678 = vrsqrt.f32 %v3772_v37 }
0x192d   :  { %v13673_v51 = vpop.eup %13672 }
0x192e   :  { %v3777_v63 = vmul.f32 %v13673_v51, %v3765_v54 }
0x192f   :  { %v13675_v41 = vpop.eup %13674 }
0x1930   :  { %v3778_v29 = vmul.f32 %v13675_v41, %v3766_v26  ;;  %v3781_v60 = vmul.f32 %v14748_v27, %v3777_v63  ;;  %v15256_v41 = vld [vmem:[%s17314_s1 + $0xe8] sm:$0xff]  }
0x1931   :  { %v13677_v58 = vpop.eup %13676 }
0x1932   :  { %v3782_v45 = vmul.f32 %v14748_v27, %v3778_v29  ;;  %v3785_v46 = vadd.f32 %v14756_v25, %v3781_v60  ;;  %v3779_v21 = vmul.f32 %v13677_v58, %v3767_v42  ;;  %v15213_v27 = vld [vmem:[%s17315_s2 + $0x6] ss:$0 sm:$0xff]  ;;  %v17397_v42 = vld [vmem:[#allocation8_spill] sm:$0xff]  ;;  %v15266_v29 = vld [vmem:[%s17314_s1 + $0xf0] sm:$0xff]  }
0x1933   :  { %v13679_v12 = vpop.eup %13678  ;;  %v17398_v60 = vld [vmem:[#allocation9_spill] sm:$0xff] }
0x1934   :  { %v3786_v14 = vadd.f32 %v14756_v25, %v3782_v45  ;;  %v3789_v34 = vmax.f32 %v3785_v46, 0.0  ;;  %v3780_v30 = vmul.f32 %v13679_v12, %v3768_v50  ;;  %v3783_v23 = vmul.f32 %v15206_v28, %v3779_v21  ;;  %v15275_v58 = vld [vmem:[%s17314_s1] sm:$0xff]   ;;  %v17399_v45 = vld [vmem:[#allocation10_spill] sm:$0xff] }
0x1936   :  { %v3790_v33 = vmax.f32 %v3786_v14, 0.0  ;;  %v3784_v20 = vmul.f32 %v15206_v28, %v3780_v30  ;;  %v3787_v11 = vadd.f32 %v15213_v27, %v3783_v23  ;;  %v15217_v25 = vadd.f32 %v3789_v34, %v15001_v31  ;;  %v15286_v34 = vld [vmem:[%s17315_s2 + $0x7] ss:$0 sm:$0xff] }
0x1938   :  { %v15220_v22 = vadd.f32 %v3790_v33, %v15004_v5  ;;  %v3788_v43 = vadd.f32 %v15213_v27, %v3784_v20  ;;  %v3791_v62 = vmax.f32 %v3787_v11, 0.0  ;;  %v17395_v5 = vld [vmem:[#allocation6_spill] sm:$0xff] }
0x193a   :  { %v3797_v56 = vpack.c.bf16 %v15220_v22, %v15217_v25  ;;  %v3792_v47 = vmax.f32 %v3788_v43, 0.0  ;;  %v15226_v15 = vadd.f32 %v3791_v62, %v15010_v16 }
0x193c   :  { %12357 = vmatprep.subr.bf16.mxu1 %v3797_v56  ;;  %v15229_v35 = vadd.f32 %v3792_v47, %v15013_v7 }
0x193d   :  { %12358 = vmatpush3.bf16.msra.mxu1 %v3797_v56 }
0x193e   :  { %v3798_v31 = vpack.c.bf16 %v15229_v35, %v15226_v15 }
0x1940   :  { %12359 = vmatprep.subr.bf16.mxu1 %v3798_v31 }
0x1941   :  { %12360 = vmatpush3.bf16.msra.mxu1 %v3798_v31 }
0x1942   :  { %12369 = vmatprep.subr.bf16.mxu1 %v14783_v17 }
0x1944   :  { %12362 = vmatmul.mubr.msk.bf16.vlgmr.msra.gmra.mrb[64].mxu1 %vm58_vm0, %v14789_v39 }
0x1945   :  { %12365 = vmatprep.mubr.msk.bf16.mxu1 %vm58_vm0, %v14796_v36  ;;  %12370 = vmatpush3.bf16.msra.mxu1 %v14783_v17  ;;  %v15249_v36 = vld [vmem:[%s17314_s1 + $0xe0] sm:$0xff]  }
0x1946   :  { %12371 = vmatprep.subr.bf16.mxu1 %v14804_v6 }
0x1949   :  { %12372 = vmatpush3.bf16.msra.mxu1 %v14804_v6 }
0x194a   :  { %12377 = vmatprep.subr.bf16.mxu1 %v17395_v5 }
0x194c   :  { %12366 = vmatmul.mubr.msk.bf16.gmra.mrb[68].mxu1 %vm58_vm0, %v14817_v32  ;;  %v17396_v32 = vld [vmem:[#allocation7_spill] sm:$0xff] }
0x1a17   :  { %v12363_v16 = vpop.f32.mrb[64].mxu1 }
0x1a18   :  { %v3833_v7 = vpop.f32.mrb[65].mxu1 }
0x1a19   :  { %v12364_v9 = vpop.f32.mrb[66].mxu1 }
0x1a1a   :  { %v3865_v48 = vpack.c.bf16 %v12364_v9, %v12363_v16  ;;  %v3836_v37 = vpop.f32.mrb[67].mxu1 }
0x1a1b   :  { %v3864_v39 = vpack.c.bf16 %v3836_v37, %v3833_v7 }
0x1a1d   :  { %12373 = vmatprep.mubr.msk.bf16.mxu1 %vm58_vm0, %v3864_v39 }
0x1a1e   :  { %12374 = vmatmul.mubr.msk.bf16.vlgmr.msra.gmra.mrb[72].mxu1 %vm58_vm0, %v3865_v48 }
0x1a1f   :  { %v12367_v17 = vpop.f32.mrb[68].mxu1  ;;  %12378 = vmatpush3.bf16.msra.mxu1 %v15249_v36 }
0x1a20   :  { %v3849_v6 = vpop.f32.mrb[69].mxu1  ;;  %12379 = vmatprep.subr.bf16.mxu1 %v17396_v32 }
0x1a21   :  { %v12368_v54 = vpop.f32.mrb[70].mxu1 }
0x1a22   :  { %v3867_v51 = vpack.c.bf16 %v12368_v54, %v12367_v17  ;;  %v3852_v26 = vpop.f32.mrb[71].mxu1 }
0x1a23   :  { %v3866_v63 = vpack.c.bf16 %v3852_v26, %v3849_v6  ;;  %12380 = vmatpush3.bf16.msra.mxu1 %v15256_v41 }
0x1a24   :  { %12385 = vmatprep.subr.bf16.mxu1 %v17397_v42 }
0x1a25   :  { %12381 = vmatprep.mubr.msk.bf16.mxu1 %vm58_vm0, %v3866_v63 }
0x1a2a   :  { %12382 = vmatmul.mubr.msk.bf16.vlgmr.msra.gmra.mrb[72].mxu1 %vm58_vm0, %v3867_v51 }
0x1a2b   :  { %12389 = vmatprep.mubr.msk.bf16.mxu1 %vm58_vm0, %v3797_v56  ;;  %12386 = vmatpush3.bf16.msra.mxu1 %v15266_v29 }
0x1a2c   :  { %12387 = vmatprep.subr.bf16.mxu1 %v17398_v60 }
0x1a2f   :  { %12388 = vmatpush3.bf16.msra.mxu1 %v17398_v60 }
0x1a36   :  { %12390 = vmatmul.mubr.msk.bf16.vlgmr.msra.gmra.mrb[72].mxu1 %vm58_vm0, %v3798_v31 }
0x1a37   :  { %12433 = vmatprep.mubr.msk.bf16.mxu1 %vm58_vm0, %v15275_v58 }
0x1b09   :  { %v12391_v50 = vpop.f32.mrb[72].mxu1 }
0x1b0a   :  { %v15280_v46 = vadd.f32 %v17399_v45, %v12391_v50  ;;  %v4026_v21 = vpop.f32.mrb[73].mxu1 }
0x1b0b   :  { %v12392_v12 = vpop.f32.mrb[74].mxu1  ;;  %v13206_v14 = vadd.f32 %v17399_v45, %v4026_v21 }
0x1b0c   :  { %v15289_v30 = vadd.f32 %v15286_v34, %v12392_v12  ;;  %v4029_v23 = vpop.f32.mrb[75].mxu1  ;;  %v4051_v33 = vsel %vm58_vm0, %v15280_v46, 0.0  ;;  %v4063_v5 = vmul.f32 %v15280_v46, %v15280_v46 }
0x1b0d   :  { %4052 = vadd.xlane.f32.xlu0 %v4051_v33  ;;  %v13208_v20 = vadd.f32 %v15286_v34, %v4029_v23  ;;  %v4045_v43 = vsel %vm58_vm0, %v13206_v14, 0.0  ;;  %v4061_v62 = vmul.f32 %v13206_v14, %v13206_v14 }
0x1b0e   :  { %v4054_v11 = vsel %vm58_vm0, %v15289_v30, 0.0  ;;  %v4064_v7 = vmul.f32 %v15289_v30, %v15289_v30  ;;  %v4071_v9 = vsel %vm58_vm0, %v4063_v5, 0.0 }
0x1b0f   :  { %4055 = vadd.xlane.f32.xlu1 %v4054_v11  ;;  %v4048_v56 = vsel %vm58_vm0, %v13208_v20, 0.0  ;;  %v4062_v47 = vmul.f32 %v13208_v20, %v13208_v20  ;;  %v4065_v31 = vsel %vm58_vm0, %v4061_v62, 0.0 }
0x1b10   :  { %v4074_v48 = vsel %vm58_vm0, %v4064_v7, 0.0 }
0x1b11   :  { %4046 = vadd.xlane.f32.xlu0 %v4045_v43  ;;  %v4068_v16 = vsel %vm58_vm0, %v4062_v47, 0.0 }
0x1b13   :  { %4049 = vadd.xlane.f32.xlu1 %v4048_v56 }
0x1b15   :  { %4066 = vadd.xlane.f32.xlu0 %v4065_v31 }
0x1b17   :  { %4069 = vadd.xlane.f32.xlu1 %v4068_v16 }
0x1b19   :  { %4072 = vadd.xlane.f32.xlu0 %v4071_v9 }
0x1b1b   :  { %4075 = vadd.xlane.f32.xlu1 %v4074_v48 }
0x1b9a   :  { %v4053_v37 = vpop.xlane.xlu0 %4052 }
0x1b9b   :  { %v4059_v26 = vmul.f32 0.03125, %v4053_v37 }
0x1b9c   :  { %v4056_v39 = vpop.xlane.xlu1 %4055 }
0x1b9d   :  { %v4060_v60 = vmul.f32 0.03125, %v4056_v39  ;;  %v4083_v33 = vmul.f32 %v4059_v26, %v4059_v26 }
0x1b9e   :  { %v4047_v17 = vpop.xlane.xlu0 %4046 }
0x1b9f   :  { %v4057_v6 = vmul.f32 0.03125, %v4047_v17  ;;  %v4084_v56 = vmul.f32 %v4060_v60, %v4060_v60 }
0x1ba0   :  { %v4050_v32 = vpop.xlane.xlu1 %4049 }
0x1ba1   :  { %v4058_v54 = vmul.f32 0.03125, %v4050_v32  ;;  %v4081_v63 = vmul.f32 %v4057_v6, %v4057_v6  ;;  %v4089_v37 = vsub.f32 %v13206_v14, %v4057_v6 }
0x1ba2   :  { %v4067_v51 = vpop.xlane.xlu0 %4066 }
0x1ba3   :  { %v4077_v42 = vmul.f32 0.03125, %v4067_v51  ;;  %v4082_v45 = vmul.f32 %v4058_v54, %v4058_v54  ;;  %v4090_v17 = vsub.f32 %v13208_v20, %v4058_v54  ;;  %v15315_v20 = vld [vmem:[%s17315_s2 + $0x8] ss:$0 sm:$0xff] }
0x1ba4   :  { %v4070_v50 = vpop.xlane.xlu1 %4069 }
0x1ba5   :  { %v4085_v21 = vsub.f32 %v4077_v42, %v4081_v63  ;;  %v4078_v12 = vmul.f32 0.03125, %v4070_v50  ;;  %v4091_v63 = vsub.f32 %v15280_v46, %v4059_v26 }
0x1ba6   :  { %v4073_v23 = vpop.xlane.xlu0 %4072 }
0x1ba7   :  { %v4093_v11 = vadd.f32 1e-05, %v4085_v21  ;;  %v4086_v43 = vsub.f32 %v4078_v12, %v4082_v45  ;;  %v4079_v62 = vmul.f32 0.03125, %v4073_v23  ;;  %v4092_v21 = vsub.f32 %v15289_v30, %v4060_v60  ;;  %v17400_v23 = vld [vmem:[#allocation11_spill] sm:$0xff] }
0x1ba8   :  { %v4076_v47 = vpop.xlane.xlu1 %4075 }
0x1ba9   :  { %13680 = vrsqrt.f32 %v4093_v11  ;;  %v4094_v31 = vadd.f32 1e-05, %v4086_v43  ;;  %v4087_v5 = vsub.f32 %v4079_v62, %v4083_v33  ;;  %v4080_v16 = vmul.f32 0.03125, %v4076_v47 }
0x1bab   :  { %13682 = vrsqrt.f32 %v4094_v31  ;;  %v4095_v7 = vadd.f32 1e-05, %v4087_v5  ;;  %v4088_v9 = vsub.f32 %v4080_v16, %v4084_v56  ;;  %v17402_v16 = vld [vmem:[#allocation12_spill] sm:$0xff] }
0x1bad   :  { %13684 = vrsqrt.f32 %v4095_v7  ;;  %v4096_v48 = vadd.f32 1e-05, %v4088_v9  ;;  %v15330_v7 = vld [vmem:[%s17314_s1 + $0x28] sm:$0xff]   ;;  %v15337_v9 = vld [vmem:[%s17314_s1 + $0x30] sm:$0xff]  }
0x1baf   :  { %13686 = vrsqrt.f32 %v4096_v48  ;;  %v17403_v48 = vld [vmem:[#allocation13_spill] sm:$0xff] }
0x1bb3   :  { %v13681_v39 = vpop.eup %13680 }
0x1bb4   :  { %v4101_v32 = vmul.f32 %v13681_v39, %v4089_v37  ;;  %v17404_v37 = vld [vmem:[#allocation14_spill] sm:$0xff]  ;;  %v15348_v39 = vld [vmem:[%s17314_s1 + $0x38] sm:$0xff]  }
0x1bb5   :  { %v13683_v51 = vpop.eup %13682 }
0x1bb6   :  { %v4102_v42 = vmul.f32 %v13683_v51, %v4090_v17  ;;  %v4105_v50 = vmul.f32 %v14882_v19, %v4101_v32 }
0x1bb7   :  { %v13685_v45 = vpop.eup %13684 }
0x1bb8   :  { %v4106_v12 = vmul.f32 %v14882_v19, %v4102_v42  ;;  %v4109_v33 = vadd.f32 %v17400_v23, %v4105_v50  ;;  %v4103_v11 = vmul.f32 %v13685_v45, %v4091_v63  ;;  %v15322_v19 = vld [vmem:[%s17315_s2 + $0x9] ss:$0 sm:$0xff] }
0x1bb9   :  { %v13687_v43 = vpop.eup %13686  ;;  %17401 = vst [vmem:[#allocation6_spill] sm:$0xff] %v15322_v19 }
0x1bba   :  { %v4110_v14 = vadd.f32 %v17400_v23, %v4106_v12  ;;  %v4104_v6 = vmul.f32 %v13687_v43, %v4092_v21  ;;  %v4107_v46 = vmul.f32 %v15315_v20, %v4103_v11  ;;  %v4113_v54 = vmax.f32 %v4109_v33, 0.0  ;;  %v15357_v21 = vld [vmem:[%s17314_s1 + $0x110] sm:$0xff]  }
0x1bbb   :  { %17405 = vst [vmem:[#allocation7_spill] sm:$0xff] %v15357_v21  ;;  %v17406_v23 = vld [vmem:[#allocation15_spill] sm:$0xff] }
0x1bbc   :  { %v4114_v26 = vmax.f32 %v4110_v14, 0.0  ;;  %v4108_v30 = vmul.f32 %v15315_v20, %v4104_v6  ;;  %v4111_v60 = vadd.f32 %v15322_v19, %v4107_v46  ;;  %v15364_v6 = vld [vmem:[%s17314_s1 + $0x118] sm:$0xff]  }
0x1bbd   :  { %17407 = vst [vmem:[#allocation8_spill] sm:$0xff] %v15364_v6  ;;  %v17408_v46 = vld [vmem:[#allocation16_spill] sm:$0xff] }
0x1bbe   :  { %v4117_v62 = vpack.c.bf16 %v4114_v26, %v4113_v54  ;;  %v4112_v56 = vadd.f32 %v15322_v19, %v4108_v30  ;;  %v4115_v47 = vmax.f32 %v4111_v60, 0.0  ;;  %v15374_v54 = vld [vmem:[%s17314_s1 + $0x120] sm:$0xff]   ;;  %v17411_v60 = vld [vmem:[#allocation18_spill] sm:$0xff] }
0x1bbf   :  { %17409 = vst [vmem:[#allocation9_spill] sm:$0xff] %v15374_v54  ;;  %v17410_v26 = vld [vmem:[#allocation17_spill] sm:$0xff] }
0x1bc0   :  { %12393 = vmatprep.subr.bf16.mxu0 %v4117_v62  ;;  %v4116_v31 = vmax.f32 %v4112_v56, 0.0 }
0x1bc1   :  { %12394 = vmatpush3.bf16.msra.mxu0 %v4117_v62 }
0x1bc2   :  { %v4118_v5 = vpack.c.bf16 %v4116_v31, %v4115_v47 }
0x1bc4   :  { %12395 = vmatprep.subr.bf16.mxu0 %v4118_v5 }
0x1bc5   :  { %12396 = vmatpush3.bf16.msra.mxu0 %v4118_v5 }
0x1bc6   :  { %12405 = vmatprep.subr.bf16.mxu0 %v17402_v16 }
0x1bc8   :  { %12398 = vmatmul.mubr.msk.bf16.vlgmr.msra.gmra.mrb[60].mxu0 %vm58_vm0, %v15330_v7 }
0x1bc9   :  { %12401 = vmatprep.mubr.msk.bf16.mxu0 %vm58_vm0, %v15337_v9  ;;  %12406 = vmatpush3.bf16.msra.mxu0 %v17402_v16  ;;  %v15389_v16 = vld [vmem:[%s17315_s2 + $0xa] ss:$0 sm:$0xff] }
0x1bca   :  { %12407 = vmatprep.subr.bf16.mxu0 %v17403_v48  ;;  %17412 = vst [vmem:[#allocation10_spill] sm:$0xff] %v15389_v16 }
0x1bcd   :  { %12408 = vmatpush3.bf16.msra.mxu0 %v17403_v48 }
0x1bce   :  { %12413 = vmatprep.subr.bf16.mxu0 %v17404_v37 }
0x1bd0   :  { %12402 = vmatmul.mubr.msk.bf16.gmra.mrb[64].mxu0 %vm58_vm0, %v15348_v39 }
0x1c9b   :  { %v12399_v17 = vpop.f32.mrb[60].mxu0 }
0x1c9c   :  { %v4153_v32 = vpop.f32.mrb[61].mxu0 }
0x1c9d   :  { %v12400_v51 = vpop.f32.mrb[62].mxu0 }
0x1c9e   :  { %v4185_v63 = vpack.c.bf16 %v12400_v51, %v12399_v17  ;;  %v4156_v42 = vpop.f32.mrb[63].mxu0 }
0x1c9f   :  { %v4184_v50 = vpack.c.bf16 %v4156_v42, %v4153_v32 }
0x1ca1   :  { %12409 = vmatprep.mubr.msk.bf16.mxu0 %vm58_vm0, %v4184_v50 }
0x1ca2   :  { %12410 = vmatmul.mubr.msk.bf16.vlgmr.msra.gmra.mrb[68].mxu0 %vm58_vm0, %v4185_v63 }
0x1ca3   :  { %v12403_v45 = vpop.f32.mrb[64].mxu0  ;;  %12414 = vmatpush3.bf16.msra.mxu0 %v15357_v21 }
0x1ca4   :  { %v4169_v12 = vpop.f32.mrb[65].mxu0  ;;  %12415 = vmatprep.subr.bf16.mxu0 %v17406_v23 }
0x1ca5   :  { %v12404_v33 = vpop.f32.mrb[66].mxu0 }
0x1ca6   :  { %v4187_v11 = vpack.c.bf16 %v12404_v33, %v12403_v45  ;;  %v4172_v43 = vpop.f32.mrb[67].mxu0 }
0x1ca7   :  { %v4186_v14 = vpack.c.bf16 %v4172_v43, %v4169_v12  ;;  %12416 = vmatpush3.bf16.msra.mxu0 %v15364_v6 }
0x1ca8   :  { %12421 = vmatprep.subr.bf16.mxu0 %v17408_v46 }
0x1ca9   :  { %12417 = vmatprep.mubr.msk.bf16.mxu0 %vm58_vm0, %v4186_v14 }
0x1cae   :  { %12418 = vmatmul.mubr.msk.bf16.vlgmr.msra.gmra.mrb[68].mxu0 %vm58_vm0, %v4187_v11 }
0x1caf   :  { %12425 = vmatprep.mubr.msk.bf16.mxu0 %vm58_vm0, %v4117_v62  ;;  %12422 = vmatpush3.bf16.msra.mxu0 %v15374_v54 }
0x1cb0   :  { %12423 = vmatprep.subr.bf16.mxu0 %v17410_v26 }
0x1cb3   :  { %12424 = vmatpush3.bf16.msra.mxu0 %v17410_v26 }
0x1cba   :  { %12426 = vmatmul.mubr.msk.bf16.vlgmr.msra.gmra.mrb[68].mxu0 %vm58_vm0, %v4118_v5 }
0x1cbb   :  { %12469 = vmatprep.mubr.msk.bf16.mxu0 %vm58_vm0, %v15275_v58 }
0x1d8d   :  { %v12427_v30 = vpop.f32.mrb[68].mxu0 }
0x1d8e   :  { %v15383_v56 = vadd.f32 %v17411_v60, %v12427_v30  ;;  %v4346_v62 = vpop.f32.mrb[69].mxu0 }
0x1d8f   :  { %v12428_v47 = vpop.f32.mrb[70].mxu0  ;;  %v13210_v31 = vadd.f32 %v17411_v60, %v4346_v62 }
0x1d90   :  { %v15392_v48 = vadd.f32 %v15389_v16, %v12428_v47  ;;  %v4349_v5 = vpop.f32.mrb[71].mxu0  ;;  %v4371_v37 = vsel %vm58_vm0, %v15383_v56, 0.0  ;;  %v4383_v12 = vmul.f32 %v15383_v56, %v15383_v56 }
0x1d91   :  { %4372 = vadd.xlane.f32.xlu0 %v4371_v37  ;;  %v13212_v17 = vadd.f32 %v15389_v16, %v4349_v5  ;;  %v4365_v51 = vsel %vm58_vm0, %v13210_v31, 0.0  ;;  %v4381_v63 = vmul.f32 %v13210_v31, %v13210_v31 }
0x1d92   :  { %v4374_v32 = vsel %vm58_vm0, %v15392_v48, 0.0  ;;  %v4384_v33 = vmul.f32 %v15392_v48, %v15392_v48  ;;  %v4391_v11 = vsel %vm58_vm0, %v4383_v12, 0.0 }
0x1d93   :  { %4375 = vadd.xlane.f32.xlu1 %v4374_v32  ;;  %v4368_v42 = vsel %vm58_vm0, %v13212_v17, 0.0  ;;  %v4382_v50 = vmul.f32 %v13212_v17, %v13212_v17  ;;  %v4385_v45 = vsel %vm58_vm0, %v4381_v63, 0.0 }
0x1d94   :  { %v4394_v43 = vsel %vm58_vm0, %v4384_v33, 0.0 }
0x1d95   :  { %4366 = vadd.xlane.f32.xlu0 %v4365_v51  ;;  %v4388_v23 = vsel %vm58_vm0, %v4382_v50, 0.0 }
0x1d97   :  { %4369 = vadd.xlane.f32.xlu1 %v4368_v42 }
0x1d99   :  { %4386 = vadd.xlane.f32.xlu0 %v4385_v45 }
0x1d9b   :  { %4389 = vadd.xlane.f32.xlu1 %v4388_v23 }
0x1d9d   :  { %4392 = vadd.xlane.f32.xlu0 %v4391_v11 }
0x1d9f   :  { %4395 = vadd.xlane.f32.xlu1 %v4394_v43 }
0x1e1e   :  { %v4373_v14 = vpop.xlane.xlu0 %4372 }
0x1e1f   :  { %v4379_v5 = vmul.f32 0.03125, %v4373_v14 }
0x1e20   :  { %v4376_v46 = vpop.xlane.xlu1 %4375 }
0x1e21   :  { %v4380_v51 = vmul.f32 0.03125, %v4376_v46  ;;  %v4403_v23 = vmul.f32 %v4379_v5, %v4379_v5 }
0x1e22   :  { %v4367_v26 = vpop.xlane.xlu0 %4366 }
0x1e23   :  { %v4377_v30 = vmul.f32 0.03125, %v4367_v26  ;;  %v4404_v16 = vmul.f32 %v4380_v51, %v4380_v51 }
0x1e24   :  { %v4370_v60 = vpop.xlane.xlu1 %4369 }
0x1e25   :  { %v4378_v62 = vmul.f32 0.03125, %v4370_v60  ;;  %v4401_v37 = vmul.f32 %v4377_v30, %v4377_v30 }
0x1e26   :  { %v4387_v47 = vpop.xlane.xlu0 %4386 }
0x1e27   :  { %v4397_v32 = vmul.f32 0.03125, %v4387_v47  ;;  %v4402_v42 = vmul.f32 %v4378_v62, %v4378_v62  ;;  %v4409_v47 = vsub.f32 %v13210_v31, %v4377_v30 }
0x1e28   :  { %v4390_v63 = vpop.xlane.xlu1 %4389 }
0x1e29   :  { %v4405_v50 = vsub.f32 %v4397_v32, %v4401_v37  ;;  %v4398_v45 = vmul.f32 0.03125, %v4390_v63  ;;  %v4410_v32 = vsub.f32 %v13212_v17, %v4378_v62 }
0x1e2a   :  { %v4393_v12 = vpop.xlane.xlu0 %4392 }
0x1e2b   :  { %v4413_v11 = vadd.f32 1e-05, %v4405_v50  ;;  %v4406_v33 = vsub.f32 %v4398_v45, %v4402_v42  ;;  %v4399_v43 = vmul.f32 0.03125, %v4393_v12  ;;  %v4411_v42 = vsub.f32 %v15383_v56, %v4379_v5  ;;  %v15418_v56 = vld [vmem:[%s17315_s2 + $0xb] ss:$0 sm:$0xff] }
0x1e2c   :  { %v4396_v54 = vpop.xlane.xlu1 %4395 }
0x1e2d   :  { %13688 = vrsqrt.f32 %v4413_v11  ;;  %v4414_v26 = vadd.f32 1e-05, %v4406_v33  ;;  %v4407_v6 = vsub.f32 %v4399_v43, %v4403_v23  ;;  %v4400_v60 = vmul.f32 0.03125, %v4396_v54 }
0x1e2e   :  { %v4412_v23 = vsub.f32 %v15392_v48, %v4380_v51 }
0x1e2f   :  { %13690 = vrsqrt.f32 %v4414_v26  ;;  %v4415_v14 = vadd.f32 1e-05, %v4407_v6  ;;  %v4408_v21 = vsub.f32 %v4400_v60, %v4404_v16 }
0x1e31   :  { %13692 = vrsqrt.f32 %v4415_v14  ;;  %v4416_v46 = vadd.f32 1e-05, %v4408_v21 }
0x1e33   :  { %13694 = vrsqrt.f32 %v4416_v46 }
0x1e37   :  { %v13689_v37 = vpop.eup %13688 }
0x1e38   :  { %v4421_v63 = vmul.f32 %v13689_v37, %v4409_v47 }
0x1e39   :  { %v13691_v19 = vpop.eup %13690 }
0x1e3a   :  { %v4422_v50 = vmul.f32 %v13691_v19, %v4410_v32  ;;  %v4425_v45 = vmul.f32 %v14985_v10, %v4421_v63 }
0x1e3b   :  { %v13693_v12 = vpop.eup %13692 }
0x1e3c   :  { %v4426_v54 = vmul.f32 %v14985_v10, %v4422_v50  ;;  %v4429_v6 = vadd.f32 %v14993_v59, %v4425_v45  ;;  %v4423_v16 = vmul.f32 %v13693_v12, %v4411_v42  ;;  %v15425_v10 = vld [vmem:[%s17315_s2 + $0xc] ss:$0 sm:$0xff] }
0x1e3d   :  { %v13695_v21 = vpop.eup %13694 }
0x1e3e   :  { %v4430_v31 = vadd.f32 %v14993_v59, %v4426_v54  ;;  %v4433_v30 = vmax.f32 %v4429_v6, 0.0  ;;  %v4424_v17 = vmul.f32 %v13695_v21, %v4412_v23  ;;  %v4427_v19 = vmul.f32 %v15418_v56, %v4423_v16 }
0x1e40   :  { %v4434_v62 = vmax.f32 %v4430_v31, 0.0  ;;  %v4428_v48 = vmul.f32 %v15418_v56, %v4424_v17  ;;  %v4431_v5 = vadd.f32 %v15425_v10, %v4427_v19  ;;  %v15429_v59 = vadd.f32 %v4433_v30, %v15217_v25 }
0x1e42   :  { %v15432_v51 = vadd.f32 %v4434_v62, %v15220_v22  ;;  %v4432_v11 = vadd.f32 %v15425_v10, %v4428_v48  ;;  %v4435_v33 = vmax.f32 %v4431_v5, 0.0  ;;  %v15448_v22 = vld [vmem:[%s17314_s1 + $0x70] sm:$0xff]  }
0x1e44   :  { %v4441_v43 = vpack.c.bf16 %v15432_v51, %v15429_v59  ;;  %v4436_v26 = vmax.f32 %v4432_v11, 0.0  ;;  %v15438_v60 = vadd.f32 %v4435_v33, %v15226_v15  ;;  %v15459_v15 = vld [vmem:[%s17314_s1 + $0x78] sm:$0xff]  }
0x1e46   :  { %12429 = vmatprep.subr.bf16.mxu1 %v4441_v43  ;;  %v15441_v14 = vadd.f32 %v4436_v26, %v15229_v35 }
0x1e47   :  { %12430 = vmatpush3.bf16.msra.mxu1 %v4441_v43 }
0x1e48   :  { %v4442_v25 = vpack.c.bf16 %v15441_v14, %v15438_v60 }
0x1e4a   :  { %12431 = vmatprep.subr.bf16.mxu1 %v4442_v25 }
0x1e4b   :  { %12432 = vmatpush3.bf16.msra.mxu1 %v4442_v25 }
0x1e4c   :  { %12441 = vmatprep.subr.bf16.mxu1 %v15448_v22 }
0x1e4e   :  { %12434 = vmatmul.mubr.msk.bf16.vlgmr.msra.gmra.mrb[76].mxu1 %vm58_vm0, %v15118_v0 }
0x1e4f   :  { %12437 = vmatprep.mubr.msk.bf16.mxu1 %vm58_vm0, %v15125_v13  ;;  %12442 = vmatpush3.bf16.msra.mxu1 %v15448_v22 }
0x1e50   :  { %12443 = vmatprep.subr.bf16.mxu1 %v15459_v15 }
0x1e53   :  { %12444 = vmatpush3.bf16.msra.mxu1 %v15459_v15 }
0x1e54   :  { %12449 = vmatprep.subr.bf16.mxu1 %v15033_v3 }
0x1e56   :  { %12438 = vmatmul.mubr.msk.bf16.gmra.mrb[80].mxu1 %vm58_vm0, %v15136_v8 }
0x1f21   :  { %v12435_v35 = vpop.f32.mrb[76].mxu1 }
0x1f22   :  { %v4477_v46 = vpop.f32.mrb[77].mxu1 }
0x1f23   :  { %v12436_v47 = vpop.f32.mrb[78].mxu1 }
0x1f24   :  { %v4509_v37 = vpack.c.bf16 %v12436_v47, %v12435_v35  ;;  %v4480_v32 = vpop.f32.mrb[79].mxu1 }
0x1f25   :  { %v4508_v63 = vpack.c.bf16 %v4480_v32, %v4477_v46 }
0x1f27   :  { %12445 = vmatprep.mubr.msk.bf16.mxu1 %vm58_vm0, %v4508_v63 }
0x1f28   :  { %12446 = vmatmul.mubr.msk.bf16.vlgmr.msra.gmra.mrb[84].mxu1 %vm58_vm0, %v4509_v37 }
0x1f29   :  { %v12439_v42 = vpop.f32.mrb[80].mxu1  ;;  %12450 = vmatpush3.bf16.msra.mxu1 %v15033_v3  ;;  %v15479_v3 = vld [vmem:[%s17314_s1 + $0x98] sm:$0xff]  }
0x1f2a   :  { %v4493_v50 = vpop.f32.mrb[81].mxu1  ;;  %12451 = vmatprep.subr.bf16.mxu1 %v15040_v38 }
0x1f2b   :  { %v12440_v45 = vpop.f32.mrb[82].mxu1 }
0x1f2c   :  { %v4511_v12 = vpack.c.bf16 %v12440_v45, %v12439_v42  ;;  %v4496_v23 = vpop.f32.mrb[83].mxu1 }
0x1f2d   :  { %v4510_v54 = vpack.c.bf16 %v4496_v23, %v4493_v50  ;;  %12452 = vmatpush3.bf16.msra.mxu1 %v15040_v38 }
0x1f2e   :  { %12457 = vmatprep.subr.bf16.mxu1 %v15050_v55 }
0x1f2f   :  { %12453 = vmatprep.mubr.msk.bf16.mxu1 %vm58_vm0, %v4510_v54 }
0x1f34   :  { %12454 = vmatmul.mubr.msk.bf16.vlgmr.msra.gmra.mrb[84].mxu1 %vm58_vm0, %v4511_v12 }
0x1f35   :  { %12461 = vmatprep.mubr.msk.bf16.mxu1 %vm58_vm0, %v4441_v43  ;;  %12458 = vmatpush3.bf16.msra.mxu1 %v15050_v55 }
0x1f36   :  { %12459 = vmatprep.subr.bf16.mxu1 %v15479_v3 }
0x1f39   :  { %12460 = vmatpush3.bf16.msra.mxu1 %v15479_v3 }
0x1f40   :  { %12462 = vmatmul.mubr.msk.bf16.vlgmr.msra.gmra.mrb[84].mxu1 %vm58_vm0, %v4442_v25 }
0x1f41   :  { %12505 = vmatprep.mubr.msk.bf16.mxu1 %vm58_vm0, %v15059_v61 }
0x2013   :  { %v12463_v38 = vpop.f32.mrb[84].mxu1 }
0x2014   :  { %v13213_v6 = vadd.f32 %v15071_v2, %v12463_v38  ;;  %v4670_v16 = vpop.f32.mrb[85].mxu1 }
0x2015   :  { %v13214_v55 = vadd.f32 %v15071_v2, %v4670_v16  ;;  %v12464_v21 = vpop.f32.mrb[86].mxu1 }
0x2016   :  { %v15489_v31 = vadd.f32 %v13213_v6, %v14247_v52  ;;  %v13215_v30 = vadd.f32 %v15071_v2, %v12464_v21  ;;  %v4673_v17 = vpop.f32.mrb[87].mxu1 }
0x2017   :  { %v13216_v19 = vadd.f32 %v15071_v2, %v4673_v17  ;;  %v4689_v62 = vadd.f32 %v13214_v55, %v14235_v40 }
0x2018   :  { %v15495_v48 = vadd.f32 %v13215_v30, %v14237_v44  ;;  %v4699_v61 = vsel %vm58_vm0, %v15489_v31, 0.0  ;;  %v4711_v35 = vmul.f32 %v15489_v31, %v15489_v31 }
0x2019   :  { %4700 = vadd.xlane.f32.xlu0 %v4699_v61  ;;  %v4690_v5 = vadd.f32 %v13216_v19, %v14242_v49  ;;  %v4693_v33 = vsel %vm58_vm0, %v4689_v62, 0.0  ;;  %v4709_v43 = vmul.f32 %v4689_v62, %v4689_v62 }
0x201a   :  { %v4702_v11 = vsel %vm58_vm0, %v15495_v48, 0.0  ;;  %v4712_v47 = vmul.f32 %v15495_v48, %v15495_v48  ;;  %v4719_v37 = vsel %vm58_vm0, %v4711_v35, 0.0 }
0x201b   :  { %4703 = vadd.xlane.f32.xlu1 %v4702_v11  ;;  %v4696_v2 = vsel %vm58_vm0, %v4690_v5, 0.0  ;;  %v4710_v26 = vmul.f32 %v4690_v5, %v4690_v5  ;;  %v4713_v25 = vsel %vm58_vm0, %v4709_v43, 0.0 }
0x201c   :  { %v4722_v32 = vsel %vm58_vm0, %v4712_v47, 0.0 }
0x201d   :  { %4694 = vadd.xlane.f32.xlu0 %v4693_v33  ;;  %v4716_v46 = vsel %vm58_vm0, %v4710_v26, 0.0 }
0x201f   :  { %4697 = vadd.xlane.f32.xlu1 %v4696_v2 }
0x2021   :  { %4714 = vadd.xlane.f32.xlu0 %v4713_v25 }
0x2023   :  { %4717 = vadd.xlane.f32.xlu1 %v4716_v46 }
0x2025   :  { %4720 = vadd.xlane.f32.xlu0 %v4719_v37 }
0x2027   :  { %4723 = vadd.xlane.f32.xlu1 %v4722_v32 }
0x20a6   :  { %v4701_v63 = vpop.xlane.xlu0 %4700 }
0x20a7   :  { %v4707_v38 = vmul.f32 0.03125, %v4701_v63 }
0x20a8   :  { %v4704_v42 = vpop.xlane.xlu1 %4703 }
0x20a9   :  { %v4708_v55 = vmul.f32 0.03125, %v4704_v42  ;;  %v4731_v11 = vmul.f32 %v4707_v38, %v4707_v38 }
0x20aa   :  { %v4695_v50 = vpop.xlane.xlu0 %4694 }
0x20ab   :  { %v4705_v45 = vmul.f32 0.03125, %v4695_v50  ;;  %v4732_v26 = vmul.f32 %v4708_v55, %v4708_v55 }
0x20ac   :  { %v4698_v12 = vpop.xlane.xlu1 %4697 }
0x20ad   :  { %v4706_v23 = vmul.f32 0.03125, %v4698_v12  ;;  %v4729_v6 = vmul.f32 %v4705_v45, %v4705_v45  ;;  %v4737_v42 = vsub.f32 %v4689_v62, %v4705_v45 }
0x20ae   :  { %v4715_v54 = vpop.xlane.xlu0 %4714 }
0x20af   :  { %v4725_v16 = vmul.f32 0.03125, %v4715_v54  ;;  %v4730_v30 = vmul.f32 %v4706_v23, %v4706_v23  ;;  %v4738_v12 = vsub.f32 %v4690_v5, %v4706_v23 }
0x20b0   :  { %v4718_v21 = vpop.xlane.xlu1 %4717 }
0x20b1   :  { %v4733_v17 = vsub.f32 %v4725_v16, %v4729_v6  ;;  %v4726_v19 = vmul.f32 0.03125, %v4718_v21  ;;  %v4739_v16 = vsub.f32 %v15489_v31, %v4707_v38 }
0x20b2   :  { %v4721_v61 = vpop.xlane.xlu0 %4720 }
0x20b3   :  { %v4741_v33 = vadd.f32 1e-05, %v4733_v17  ;;  %v4734_v43 = vsub.f32 %v4726_v19, %v4730_v30  ;;  %v4727_v2 = vmul.f32 0.03125, %v4721_v61  ;;  %v4740_v19 = vsub.f32 %v15495_v48, %v4708_v55 }
0x20b4   :  { %v4724_v25 = vpop.xlane.xlu1 %4723 }
0x20b5   :  { %13696 = vrsqrt.f32 %v4741_v33  ;;  %v4742_v35 = vadd.f32 1e-05, %v4734_v43  ;;  %v4735_v46 = vsub.f32 %v4727_v2, %v4731_v11  ;;  %v4728_v47 = vmul.f32 0.03125, %v4724_v25 }
0x20b7   :  { %13698 = vrsqrt.f32 %v4742_v35  ;;  %v4743_v37 = vadd.f32 1e-05, %v4735_v46  ;;  %v4736_v32 = vsub.f32 %v4728_v47, %v4732_v26  ;;  %v15525_v46 = vld [vmem:[%s17314_s1 + $0xa0] sm:$0xff]  }
0x20b9   :  { %13700 = vrsqrt.f32 %v4743_v37  ;;  %v4744_v63 = vadd.f32 1e-05, %v4736_v32 }
0x20bb   :  { %13702 = vrsqrt.f32 %v4744_v63 }
0x20bf   :  { %v13697_v50 = vpop.eup %13696 }
0x20c0   :  { %v4749_v54 = vmul.f32 %v13697_v50, %v4737_v42 }
0x20c1   :  { %v13699_v6 = vpop.eup %13698 }
0x20c2   :  { %v4750_v21 = vmul.f32 %v13699_v6, %v4738_v12  ;;  %v4753_v30 = vmul.f32 %v15103_v18, %v4749_v54 }
0x20c3   :  { %v13701_v17 = vpop.eup %13700 }
0x20c4   :  { %v4754_v61 = vmul.f32 %v15103_v18, %v4750_v21  ;;  %v4757_v11 = vadd.f32 %v15110_v24, %v4753_v30  ;;  %v4751_v33 = vmul.f32 %v13701_v17, %v4739_v16 }
0x20c5   :  { %v13703_v43 = vpop.eup %13702 }
0x20c6   :  { %v4758_v62 = vadd.f32 %v15110_v24, %v4754_v61  ;;  %v4752_v45 = vmul.f32 %v13703_v43, %v4740_v19  ;;  %v4755_v5 = vmul.f32 %v15103_v18, %v4751_v33  ;;  %v4761_v23 = vmax.f32 %v4757_v11, 0.0  ;;  %v15580_v11 = vld [vmem:[%s17315_s2 + $0x4] ss:$0 sm:$0xff] }
0x20c8   :  { %v4762_v2 = vmax.f32 %v4758_v62, 0.0  ;;  %v4756_v31 = vmul.f32 %v15103_v18, %v4752_v45  ;;  %v4759_v38 = vadd.f32 %v15110_v24, %v4755_v5  ;;  %v15536_v18 = vld [vmem:[%s17314_s1 + $0xa8] sm:$0xff]  }
0x20ca   :  { %v4765_v26 = vpack.c.bf16 %v4762_v2, %v4761_v23  ;;  %v4760_v48 = vadd.f32 %v15110_v24, %v4756_v31  ;;  %v4763_v55 = vmax.f32 %v4759_v38, 0.0 }
0x20cc   :  { %12465 = vmatprep.subr.bf16.mxu0 %v4765_v26  ;;  %v4764_v25 = vmax.f32 %v4760_v48, 0.0 }
0x20cd   :  { %12466 = vmatpush3.bf16.msra.mxu0 %v4765_v26 }
0x20ce   :  { %v4766_v35 = vpack.c.bf16 %v4764_v25, %v4763_v55 }
0x20d0   :  { %12467 = vmatprep.subr.bf16.mxu0 %v4766_v35 }
0x20d1   :  { %12468 = vmatpush3.bf16.msra.mxu0 %v4766_v35 }
0x20d2   :  { %12477 = vmatprep.subr.bf16.mxu0 %v15525_v46 }
0x20d4   :  { %12470 = vmatmul.mubr.msk.bf16.vlgmr.msra.gmra.mrb[72].mxu0 %vm58_vm0, %v15118_v0 }
0x20d5   :  { %12473 = vmatprep.mubr.msk.bf16.mxu0 %vm58_vm0, %v15125_v13  ;;  %12478 = vmatpush3.bf16.msra.mxu0 %v15525_v46 }
0x20d6   :  { %12479 = vmatprep.subr.bf16.mxu0 %v15536_v18 }
0x20d9   :  { %12480 = vmatpush3.bf16.msra.mxu0 %v15536_v18 }
0x20da   :  { %12485 = vmatprep.subr.bf16.mxu0 %v15145_v53 }
0x20dc   :  { %12474 = vmatmul.mubr.msk.bf16.gmra.mrb[76].mxu0 %vm58_vm0, %v15136_v8 }
0x21a7   :  { %v12471_v24 = vpop.f32.mrb[72].mxu0 }
0x21a8   :  { %v4801_v0 = vpop.f32.mrb[73].mxu0 }
0x21a9   :  { %v12472_v47 = vpop.f32.mrb[74].mxu0 }
0x21aa   :  { %v4833_v13 = vpack.c.bf16 %v12472_v47, %v12471_v24  ;;  %v4804_v37 = vpop.f32.mrb[75].mxu0 }
0x21ab   :  { %v4832_v32 = vpack.c.bf16 %v4804_v37, %v4801_v0 }
0x21ad   :  { %12481 = vmatprep.mubr.msk.bf16.mxu0 %vm58_vm0, %v4832_v32 }
0x21ae   :  { %12482 = vmatmul.mubr.msk.bf16.vlgmr.msra.gmra.mrb[80].mxu0 %vm58_vm0, %v4833_v13 }
0x21af   :  { %v12475_v63 = vpop.f32.mrb[76].mxu0  ;;  %12486 = vmatpush3.bf16.msra.mxu0 %v15145_v53  ;;  %v15556_v53 = vld [vmem:[%s17314_s1 + $0xc8] sm:$0xff]  }
0x21b0   :  { %v4817_v42 = vpop.f32.mrb[77].mxu0  ;;  %12487 = vmatprep.subr.bf16.mxu0 %v15152_v57 }
0x21b1   :  { %v12476_v50 = vpop.f32.mrb[78].mxu0 }
0x21b2   :  { %v4835_v12 = vpack.c.bf16 %v12476_v50, %v12475_v63  ;;  %v4820_v54 = vpop.f32.mrb[79].mxu0 }
0x21b3   :  { %v4834_v8 = vpack.c.bf16 %v4820_v54, %v4817_v42  ;;  %12488 = vmatpush3.bf16.msra.mxu0 %v15152_v57  ;;  %v15564_v57 = vld [vmem:[%s17314_s1 + $0x20] sm:$0xff]  }
0x21b4   :  { %12493 = vmatprep.subr.bf16.mxu0 %v15162_v1 }
0x21b5   :  { %12489 = vmatprep.mubr.msk.bf16.mxu0 %vm58_vm0, %v4834_v8 }
0x21ba   :  { %12490 = vmatmul.mubr.msk.bf16.vlgmr.msra.gmra.mrb[80].mxu0 %vm58_vm0, %v4835_v12 }
0x21bb   :  { %12497 = vmatprep.mubr.msk.bf16.mxu0 %vm58_vm0, %v4765_v26  ;;  %12494 = vmatpush3.bf16.msra.mxu0 %v15162_v1 }
0x21bc   :  { %12495 = vmatprep.subr.bf16.mxu0 %v15556_v53 }
0x21bf   :  { %12496 = vmatpush3.bf16.msra.mxu0 %v15556_v53 }
0x21c6   :  { %12498 = vmatmul.mubr.msk.bf16.vlgmr.msra.gmra.mrb[80].mxu0 %vm58_vm0, %v4766_v35 }
0x21c7   :  { %12541 = vmatprep.mubr.msk.bf16.mxu0 %vm58_vm0, %v15564_v57 }
0x2299   :  { %v12499_v1 = vpop.f32.mrb[80].mxu0 }
0x229a   :  { %v15569_v6 = vadd.f32 %v15177_v4, %v12499_v1  ;;  %v4994_v16 = vpop.f32.mrb[81].mxu0 }
0x229b   :  { %v12500_v21 = vpop.f32.mrb[82].mxu0  ;;  %v13218_v30 = vadd.f32 %v15177_v4, %v4994_v16 }
0x229c   :  { %v15573_v17 = vadd.f32 %v15177_v4, %v12500_v21  ;;  %v4997_v19 = vpop.f32.mrb[83].mxu0  ;;  %v5019_v61 = vsel %vm58_vm0, %v15569_v6, 0.0  ;;  %v5031_v2 = vmul.f32 %v15569_v6, %v15569_v6 }
0x229d   :  { %5020 = vadd.xlane.f32.xlu0 %v5019_v61  ;;  %v13220_v33 = vadd.f32 %v15580_v11, %v4997_v19  ;;  %v5013_v62 = vsel %vm58_vm0, %v13218_v30, 0.0  ;;  %v5029_v4 = vmul.f32 %v13218_v30, %v13218_v30 }
0x229e   :  { %v5022_v43 = vsel %vm58_vm0, %v15573_v17, 0.0  ;;  %v5032_v38 = vmul.f32 %v15573_v17, %v15573_v17  ;;  %v5039_v26 = vsel %vm58_vm0, %v5031_v2, 0.0 }
0x229f   :  { %5023 = vadd.xlane.f32.xlu1 %v5022_v43  ;;  %v5016_v45 = vsel %vm58_vm0, %v13220_v33, 0.0  ;;  %v5030_v5 = vmul.f32 %v13220_v33, %v13220_v33  ;;  %v5033_v23 = vsel %vm58_vm0, %v5029_v4, 0.0 }
0x22a0   :  { %v5042_v48 = vsel %vm58_vm0, %v5032_v38, 0.0 }
0x22a1   :  { %5014 = vadd.xlane.f32.xlu0 %v5013_v62  ;;  %v5036_v31 = vsel %vm58_vm0, %v5030_v5, 0.0 }
0x22a3   :  { %5017 = vadd.xlane.f32.xlu1 %v5016_v45 }
0x22a5   :  { %5034 = vadd.xlane.f32.xlu0 %v5033_v23 }
0x22a7   :  { %5037 = vadd.xlane.f32.xlu1 %v5036_v31 }
0x22a9   :  { %5040 = vadd.xlane.f32.xlu0 %v5039_v26 }
0x22ab   :  { %5043 = vadd.xlane.f32.xlu1 %v5042_v48 }
0x232a   :  { %v5021_v55 = vpop.xlane.xlu0 %5020 }
0x232b   :  { %v5027_v37 = vmul.f32 0.03125, %v5021_v55 }
0x232c   :  { %v5024_v25 = vpop.xlane.xlu1 %5023 }
0x232d   :  { %v5028_v42 = vmul.f32 0.03125, %v5024_v25  ;;  %v5051_v16 = vmul.f32 %v5027_v37, %v5027_v37 }
0x232e   :  { %v5015_v35 = vpop.xlane.xlu0 %5014 }
0x232f   :  { %v5025_v24 = vmul.f32 0.03125, %v5015_v35  ;;  %v5052_v43 = vmul.f32 %v5028_v42, %v5028_v42  ;;  %v5059_v35 = vsub.f32 %v15569_v6, %v5027_v37 }
0x2330   :  { %v5018_v0 = vpop.xlane.xlu1 %5017 }
0x2331   :  { %v5026_v47 = vmul.f32 0.03125, %v5018_v0  ;;  %v5049_v32 = vmul.f32 %v5025_v24, %v5025_v24  ;;  %v5057_v38 = vsub.f32 %v13218_v30, %v5025_v24 }
0x2332   :  { %v5035_v13 = vpop.xlane.xlu0 %5034 }
0x2333   :  { %v5045_v63 = vmul.f32 0.03125, %v5035_v13  ;;  %v5050_v12 = vmul.f32 %v5026_v47, %v5026_v47  ;;  %v5058_v48 = vsub.f32 %v13220_v33, %v5026_v47 }
0x2334   :  { %v5038_v50 = vpop.xlane.xlu1 %5037 }
0x2335   :  { %v5053_v54 = vsub.f32 %v5045_v63, %v5049_v32  ;;  %v5046_v8 = vmul.f32 0.03125, %v5038_v50  ;;  %v5060_v63 = vsub.f32 %v15573_v17, %v5028_v42 }
0x2336   :  { %v5041_v1 = vpop.xlane.xlu0 %5040 }
0x2337   :  { %v5061_v21 = vadd.f32 1e-05, %v5053_v54  ;;  %v5054_v19 = vsub.f32 %v5046_v8, %v5050_v12  ;;  %v5047_v61 = vmul.f32 0.03125, %v5041_v1 }
0x2338   :  { %v5044_v62 = vpop.xlane.xlu1 %5043 }
0x2339   :  { %13704 = vrsqrt.f32 %v5061_v21  ;;  %v5062_v4 = vadd.f32 1e-05, %v5054_v19  ;;  %v5055_v45 = vsub.f32 %v5047_v61, %v5051_v16  ;;  %v5048_v5 = vmul.f32 0.03125, %v5044_v62 }
0x233b   :  { %13706 = vrsqrt.f32 %v5062_v4  ;;  %v5063_v23 = vadd.f32 1e-05, %v5055_v45  ;;  %v5056_v2 = vsub.f32 %v5048_v5, %v5052_v43 }
0x233d   :  { %13708 = vrsqrt.f32 %v5063_v23  ;;  %v5064_v31 = vadd.f32 1e-05, %v5056_v2 }
0x233f   :  { %13710 = vrsqrt.f32 %v5064_v31 }
0x2343   :  { %v13705_v26 = vpop.eup %13704 }
0x2344   :  { %v5069_v55 = vmul.f32 %v13705_v26, %v5057_v38 }
0x2345   :  { %v13707_v25 = vpop.eup %13706 }
0x2346   :  { %v5070_v0 = vmul.f32 %v13707_v25, %v5058_v48  ;;  %v5073_v13 = vmul.f32 %v15206_v28, %v5069_v55 }
0x2347   :  { %v13709_v32 = vpop.eup %13708 }
0x2348   :  { %v5074_v50 = vmul.f32 %v15206_v28, %v5070_v0  ;;  %v5077_v12 = vadd.f32 %v15213_v27, %v5073_v13  ;;  %v5071_v54 = vmul.f32 %v13709_v32, %v5059_v35 }
0x2349   :  { %v13711_v8 = vpop.eup %13710 }
0x234a   :  { %v5078_v30 = vadd.f32 %v15213_v27, %v5074_v50  ;;  %v5081_v24 = vmax.f32 %v5077_v12, 0.0  ;;  %v5072_v33 = vmul.f32 %v13711_v8, %v5060_v63  ;;  %v5075_v47 = vmul.f32 %v15206_v28, %v5071_v54 }
0x234c   :  { %v5082_v1 = vmax.f32 %v5078_v30, 0.0  ;;  %v5076_v6 = vmul.f32 %v15206_v28, %v5072_v33  ;;  %v5079_v37 = vadd.f32 %v15213_v27, %v5075_v47  ;;  %v15605_v16 = vadd.f32 %v5081_v24, %v15429_v59 }
0x234e   :  { %v15608_v17 = vadd.f32 %v5082_v1, %v15432_v51  ;;  %v5080_v42 = vadd.f32 %v15213_v27, %v5076_v6  ;;  %v5083_v21 = vmax.f32 %v5079_v37, 0.0  ;;  %v15624_v27 = vld [vmem:[%s17314_s1 + $0xd0] sm:$0xff]   ;;  %v15635_v51 = vld [vmem:[%s17314_s1 + $0xd8] sm:$0xff]  }
0x2350   :  { %v5089_v19 = vpack.c.bf16 %v15608_v17, %v15605_v16  ;;  %v5084_v61 = vmax.f32 %v5080_v42, 0.0  ;;  %v15614_v43 = vadd.f32 %v5083_v21, %v15438_v60 }
0x2352   :  { %12501 = vmatprep.subr.bf16.mxu1 %v5089_v19  ;;  %v15617_v28 = vadd.f32 %v5084_v61, %v15441_v14 }
0x2353   :  { %12502 = vmatpush3.bf16.msra.mxu1 %v5089_v19 }
0x2354   :  { %v5090_v59 = vpack.c.bf16 %v15617_v28, %v15614_v43 }
0x2356   :  { %12503 = vmatprep.subr.bf16.mxu1 %v5090_v59 }
0x2357   :  { %12504 = vmatpush3.bf16.msra.mxu1 %v5090_v59 }
0x2358   :  { %12513 = vmatprep.subr.bf16.mxu1 %v15624_v27 }
0x235a   :  { %12506 = vmatmul.mubr.msk.bf16.vlgmr.msra.gmra.mrb[88].mxu1 %vm58_vm0, %v15330_v7 }
0x235b   :  { %12509 = vmatprep.mubr.msk.bf16.mxu1 %vm58_vm0, %v15337_v9  ;;  %12514 = vmatpush3.bf16.msra.mxu1 %v15624_v27 }
0x235c   :  { %12515 = vmatprep.subr.bf16.mxu1 %v15635_v51 }
0x235f   :  { %12516 = vmatpush3.bf16.msra.mxu1 %v15635_v51 }
0x2360   :  { %12521 = vmatprep.subr.bf16.mxu1 %v15249_v36 }
0x2362   :  { %12510 = vmatmul.mubr.msk.bf16.gmra.mrb[92].mxu1 %vm58_vm0, %v15348_v39 }
0x242d   :  { %v12507_v60 = vpop.f32.mrb[88].mxu1 }
0x242e   :  { %v5125_v14 = vpop.f32.mrb[89].mxu1 }
0x242f   :  { %v12508_v62 = vpop.f32.mrb[90].mxu1 }
0x2430   :  { %v5157_v4 = vpack.c.bf16 %v12508_v62, %v12507_v60  ;;  %v5128_v45 = vpop.f32.mrb[91].mxu1 }
0x2431   :  { %v5156_v5 = vpack.c.bf16 %v5128_v45, %v5125_v14 }
0x2433   :  { %12517 = vmatprep.mubr.msk.bf16.mxu1 %vm58_vm0, %v5156_v5 }
0x2434   :  { %12518 = vmatmul.mubr.msk.bf16.vlgmr.msra.gmra.mrb[96].mxu1 %vm58_vm0, %v5157_v4 }
0x2435   :  { %v12511_v23 = vpop.f32.mrb[92].mxu1  ;;  %12522 = vmatpush3.bf16.msra.mxu1 %v15249_v36  ;;  %v15655_v36 = vld [vmem:[%s17314_s1 + $0xf8] sm:$0xff]  }
0x2436   :  { %v5141_v2 = vpop.f32.mrb[93].mxu1  ;;  %12523 = vmatprep.subr.bf16.mxu1 %v15256_v41 }
0x2437   :  { %v12512_v31 = vpop.f32.mrb[94].mxu1 }
0x2438   :  { %v5159_v38 = vpack.c.bf16 %v12512_v31, %v12511_v23  ;;  %v5144_v26 = vpop.f32.mrb[95].mxu1 }
0x2439   :  { %v5158_v48 = vpack.c.bf16 %v5144_v26, %v5141_v2  ;;  %12524 = vmatpush3.bf16.msra.mxu1 %v15256_v41 }
0x243a   :  { %12529 = vmatprep.subr.bf16.mxu1 %v15266_v29 }
0x243b   :  { %12525 = vmatprep.mubr.msk.bf16.mxu1 %vm58_vm0, %v5158_v48 }
0x2440   :  { %12526 = vmatmul.mubr.msk.bf16.vlgmr.msra.gmra.mrb[96].mxu1 %vm58_vm0, %v5159_v38 }
0x2441   :  { %12533 = vmatprep.mubr.msk.bf16.mxu1 %vm58_vm0, %v5089_v19  ;;  %12530 = vmatpush3.bf16.msra.mxu1 %v15266_v29 }
0x2442   :  { %12531 = vmatprep.subr.bf16.mxu1 %v15655_v36 }
0x2445   :  { %12532 = vmatpush3.bf16.msra.mxu1 %v15655_v36 }
0x244c   :  { %12534 = vmatmul.mubr.msk.bf16.vlgmr.msra.gmra.mrb[96].mxu1 %vm58_vm0, %v5090_v59 }
0x244d   :  { %12577 = vmatprep.mubr.msk.bf16.mxu1 %vm58_vm0, %v15275_v58  ;;  %v15674_v58 = vld [vmem:[%s17315_s2 + $0x7] ss:$0 sm:$0xff] }
0x251f   :  { %v12535_v41 = vpop.f32.mrb[96].mxu1 }
0x2520   :  { %v15663_v55 = vadd.f32 %v15286_v34, %v12535_v41  ;;  %v5318_v25 = vpop.f32.mrb[97].mxu1 }
0x2521   :  { %v12536_v29 = vpop.f32.mrb[98].mxu1  ;;  %v13222_v35 = vadd.f32 %v15286_v34, %v5318_v25 }
0x2522   :  { %v15667_v0 = vadd.f32 %v15286_v34, %v12536_v29  ;;  %v5321_v13 = vpop.f32.mrb[99].mxu1  ;;  %v5343_v32 = vsel %vm58_vm0, %v15663_v55, 0.0  ;;  %v5355_v24 = vmul.f32 %v15663_v55, %v15663_v55 }
0x2523   :  { %5344 = vadd.xlane.f32.xlu0 %v5343_v32  ;;  %v13224_v63 = vadd.f32 %v15674_v58, %v5321_v13  ;;  %v5337_v12 = vsel %vm58_vm0, %v13222_v35, 0.0  ;;  %v5353_v34 = vmul.f32 %v13222_v35, %v13222_v35 }
0x2524   :  { %v5346_v50 = vsel %vm58_vm0, %v15667_v0, 0.0  ;;  %v5356_v47 = vmul.f32 %v15667_v0, %v15667_v0  ;;  %v5363_v1 = vsel %vm58_vm0, %v5355_v24, 0.0 }
0x2525   :  { %5347 = vadd.xlane.f32.xlu1 %v5346_v50  ;;  %v5340_v54 = vsel %vm58_vm0, %v13224_v63, 0.0  ;;  %v5354_v8 = vmul.f32 %v13224_v63, %v13224_v63  ;;  %v5357_v30 = vsel %vm58_vm0, %v5353_v34, 0.0 }
0x2526   :  { %v5366_v6 = vsel %vm58_vm0, %v5356_v47, 0.0 }
0x2527   :  { %5338 = vadd.xlane.f32.xlu0 %v5337_v12  ;;  %v5360_v33 = vsel %vm58_vm0, %v5354_v8, 0.0 }
0x2529   :  { %5341 = vadd.xlane.f32.xlu1 %v5340_v54 }
0x252b   :  { %5358 = vadd.xlane.f32.xlu0 %v5357_v30 }
0x252d   :  { %5361 = vadd.xlane.f32.xlu1 %v5360_v33 }
0x252f   :  { %5364 = vadd.xlane.f32.xlu0 %v5363_v1 }
0x2531   :  { %5367 = vadd.xlane.f32.xlu1 %v5366_v6 }
0x25b0   :  { %v5345_v37 = vpop.xlane.xlu0 %5344 }
0x25b1   :  { %v5351_v14 = vmul.f32 0.03125, %v5345_v37 }
0x25b2   :  { %v5348_v42 = vpop.xlane.xlu1 %5347 }
0x25b3   :  { %v5352_v45 = vmul.f32 0.03125, %v5348_v42  ;;  %v5375_v26 = vmul.f32 %v5351_v14, %v5351_v14  ;;  %v5383_v6 = vsub.f32 %v15663_v55, %v5351_v14 }
0x25b4   :  { %v5339_v21 = vpop.xlane.xlu0 %5338 }
0x25b5   :  { %v5349_v19 = vmul.f32 0.03125, %v5339_v21  ;;  %v5376_v29 = vmul.f32 %v5352_v45, %v5352_v45 }
0x25b6   :  { %v5342_v61 = vpop.xlane.xlu1 %5341 }
0x25b7   :  { %v5350_v59 = vmul.f32 0.03125, %v5342_v61  ;;  %v5373_v62 = vmul.f32 %v5349_v19, %v5349_v19  ;;  %v5381_v30 = vsub.f32 %v13222_v35, %v5349_v19  ;;  %v5384_v61 = vsub.f32 %v15667_v0, %v5352_v45 }
0x25b8   :  { %v5359_v60 = vpop.xlane.xlu0 %5358 }
0x25b9   :  { %v5369_v4 = vmul.f32 0.03125, %v5359_v60  ;;  %v5374_v23 = vmul.f32 %v5350_v59, %v5350_v59  ;;  %v5382_v33 = vsub.f32 %v13224_v63, %v5350_v59 }
0x25ba   :  { %v5362_v5 = vpop.xlane.xlu1 %5361 }
0x25bb   :  { %v5377_v2 = vsub.f32 %v5369_v4, %v5373_v62  ;;  %v5370_v31 = vmul.f32 0.03125, %v5362_v5  ;;  %v17413_v62 = vld [vmem:[#allocation6_spill] sm:$0xff] }
0x25bc   :  { %v5365_v38 = vpop.xlane.xlu0 %5364 }
0x25bd   :  { %v5385_v48 = vadd.f32 1e-05, %v5377_v2  ;;  %v5378_v41 = vsub.f32 %v5370_v31, %v5374_v23  ;;  %v5371_v25 = vmul.f32 0.03125, %v5365_v38 }
0x25be   :  { %v5368_v13 = vpop.xlane.xlu1 %5367 }
0x25bf   :  { %13712 = vrsqrt.f32 %v5385_v48  ;;  %v5386_v32 = vadd.f32 1e-05, %v5378_v41  ;;  %v5379_v50 = vsub.f32 %v5371_v25, %v5375_v26  ;;  %v5372_v12 = vmul.f32 0.03125, %v5368_v13  ;;  %v15702_v48 = vld [vmem:[%s17314_s1 + $0x100] sm:$0xff]   ;;  %v17414_v41 = vld [vmem:[#allocation7_spill] sm:$0xff] }
0x25c1   :  { %13714 = vrsqrt.f32 %v5386_v32  ;;  %v5387_v34 = vadd.f32 1e-05, %v5379_v50  ;;  %v5380_v54 = vsub.f32 %v5372_v12, %v5376_v29 }
0x25c3   :  { %13716 = vrsqrt.f32 %v5387_v34  ;;  %v5388_v8 = vadd.f32 1e-05, %v5380_v54  ;;  %v17415_v34 = vld [vmem:[#allocation8_spill] sm:$0xff] }
0x25c5   :  { %13718 = vrsqrt.f32 %v5388_v8 }
0x25c9   :  { %v13713_v24 = vpop.eup %13712 }
0x25ca   :  { %v5393_v47 = vmul.f32 %v13713_v24, %v5381_v30  ;;  %v17416_v24 = vld [vmem:[#allocation9_spill] sm:$0xff] }
0x25cb   :  { %v13715_v1 = vpop.eup %13714 }
0x25cc   :  { %v5394_v37 = vmul.f32 %v13715_v1, %v5382_v33  ;;  %v5397_v42 = vmul.f32 %v15315_v20, %v5393_v47  ;;  %v15733_v33 = vld [vmem:[%s17314_s1 + $0x128] sm:$0xff]   ;;  %v15741_v47 = vld [vmem:[%s17314_s1] sm:$0xff]  }
0x25cd   :  { %v13717_v21 = vpop.eup %13716 }
0x25ce   :  { %v5398_v60 = vmul.f32 %v15315_v20, %v5394_v37  ;;  %v5401_v4 = vadd.f32 %v17413_v62, %v5397_v42  ;;  %v5395_v5 = vmul.f32 %v13717_v21, %v5383_v6  ;;  %v17417_v6 = vld [vmem:[#allocation10_spill] sm:$0xff] }
0x25cf   :  { %v13719_v23 = vpop.eup %13718 }
0x25d0   :  { %v5402_v35 = vadd.f32 %v17413_v62, %v5398_v60  ;;  %v5396_v19 = vmul.f32 %v13719_v23, %v5384_v61  ;;  %v5399_v63 = vmul.f32 %v15315_v20, %v5395_v5  ;;  %v5405_v59 = vmax.f32 %v5401_v4, 0.0  ;;  %v15757_v5 = vld [vmem:[%s17315_s2 + $0xa] ss:$0 sm:$0xff] }
0x25d2   :  { %v5406_v2 = vmax.f32 %v5402_v35, 0.0  ;;  %v5400_v55 = vmul.f32 %v15315_v20, %v5396_v19  ;;  %v5403_v14 = vadd.f32 %v17413_v62, %v5399_v63  ;;  %v15713_v20 = vld [vmem:[%s17314_s1 + $0x108] sm:$0xff]  }
0x25d4   :  { %v5409_v31 = vpack.c.bf16 %v5406_v2, %v5405_v59  ;;  %v5404_v0 = vadd.f32 %v17413_v62, %v5400_v55  ;;  %v5407_v45 = vmax.f32 %v5403_v14, 0.0 }
0x25d6   :  { %12537 = vmatprep.subr.bf16.mxu0 %v5409_v31  ;;  %v5408_v38 = vmax.f32 %v5404_v0, 0.0 }
0x25d7   :  { %12538 = vmatpush3.bf16.msra.mxu0 %v5409_v31 }
0x25d8   :  { %v5410_v26 = vpack.c.bf16 %v5408_v38, %v5407_v45 }
0x25da   :  { %12539 = vmatprep.subr.bf16.mxu0 %v5410_v26 }
0x25db   :  { %12540 = vmatpush3.bf16.msra.mxu0 %v5410_v26 }
0x25dc   :  { %12549 = vmatprep.subr.bf16.mxu0 %v15702_v48 }
0x25de   :  { %12542 = vmatmul.mubr.msk.bf16.vlgmr.msra.gmra.mrb[84].mxu0 %vm58_vm0, %v15330_v7 }
0x25df   :  { %12545 = vmatprep.mubr.msk.bf16.mxu0 %vm58_vm0, %v15337_v9  ;;  %12550 = vmatpush3.bf16.msra.mxu0 %v15702_v48 }
0x25e0   :  { %12551 = vmatprep.subr.bf16.mxu0 %v15713_v20 }
0x25e3   :  { %12552 = vmatpush3.bf16.msra.mxu0 %v15713_v20 }
0x25e4   :  { %12557 = vmatprep.subr.bf16.mxu0 %v17414_v41 }
0x25e6   :  { %12546 = vmatmul.mubr.msk.bf16.gmra.mrb[88].mxu0 %vm58_vm0, %v15348_v39 }
0x26b1   :  { %v12543_v7 = vpop.f32.mrb[84].mxu0 }
0x26b2   :  { %v5445_v25 = vpop.f32.mrb[85].mxu0 }
0x26b3   :  { %v12544_v29 = vpop.f32.mrb[86].mxu0 }
0x26b4   :  { %v5477_v9 = vpack.c.bf16 %v12544_v29, %v12543_v7  ;;  %v5448_v13 = vpop.f32.mrb[87].mxu0 }
0x26b5   :  { %v5476_v32 = vpack.c.bf16 %v5448_v13, %v5445_v25 }
0x26b7   :  { %12553 = vmatprep.mubr.msk.bf16.mxu0 %vm58_vm0, %v5476_v32 }
0x26b8   :  { %12554 = vmatmul.mubr.msk.bf16.vlgmr.msra.gmra.mrb[92].mxu0 %vm58_vm0, %v5477_v9 }
0x26b9   :  { %v12547_v50 = vpop.f32.mrb[88].mxu0  ;;  %12558 = vmatpush3.bf16.msra.mxu0 %v17414_v41 }
0x26ba   :  { %v5461_v12 = vpop.f32.mrb[89].mxu0  ;;  %12559 = vmatprep.subr.bf16.mxu0 %v17415_v34 }
0x26bb   :  { %v12548_v54 = vpop.f32.mrb[90].mxu0 }
0x26bc   :  { %v5479_v8 = vpack.c.bf16 %v12548_v54, %v12547_v50  ;;  %v5464_v30 = vpop.f32.mrb[91].mxu0 }
0x26bd   :  { %v5478_v39 = vpack.c.bf16 %v5464_v30, %v5461_v12  ;;  %12560 = vmatpush3.bf16.msra.mxu0 %v17415_v34 }
0x26be   :  { %12565 = vmatprep.subr.bf16.mxu0 %v17416_v24 }
0x26bf   :  { %12561 = vmatprep.mubr.msk.bf16.mxu0 %vm58_vm0, %v5478_v39 }
0x26c4   :  { %12562 = vmatmul.mubr.msk.bf16.vlgmr.msra.gmra.mrb[92].mxu0 %vm58_vm0, %v5479_v8 }
0x26c5   :  { %12569 = vmatprep.mubr.msk.bf16.mxu0 %vm58_vm0, %v5409_v31  ;;  %12566 = vmatpush3.bf16.msra.mxu0 %v17416_v24 }
0x26c6   :  { %12567 = vmatprep.subr.bf16.mxu0 %v15733_v33 }
0x26c9   :  { %12568 = vmatpush3.bf16.msra.mxu0 %v15733_v33 }
0x26d0   :  { %12570 = vmatmul.mubr.msk.bf16.vlgmr.msra.gmra.mrb[92].mxu0 %vm58_vm0, %v5410_v26 }
0x26d1   :  { %12613 = vmatprep.mubr.msk.bf16.mxu0 %vm58_vm0, %v15741_v47 }
0x27a3   :  { %v12571_v1 = vpop.f32.mrb[92].mxu0 }
0x27a4   :  { %v15746_v37 = vadd.f32 %v17417_v6, %v12571_v1  ;;  %v5638_v42 = vpop.f32.mrb[93].mxu0 }
0x27a5   :  { %v12572_v21 = vpop.f32.mrb[94].mxu0  ;;  %v13226_v61 = vadd.f32 %v17417_v6, %v5638_v42 }
0x27a6   :  { %v15750_v60 = vadd.f32 %v17417_v6, %v12572_v21  ;;  %v5641_v62 = vpop.f32.mrb[95].mxu0  ;;  %v5663_v4 = vsel %vm58_vm0, %v15746_v37, 0.0  ;;  %v5675_v14 = vmul.f32 %v15746_v37, %v15746_v37 }
0x27a7   :  { %5664 = vadd.xlane.f32.xlu0 %v5663_v4  ;;  %v13228_v23 = vadd.f32 %v15757_v5, %v5641_v62  ;;  %v5657_v19 = vsel %vm58_vm0, %v13226_v61, 0.0  ;;  %v5673_v63 = vmul.f32 %v13226_v61, %v13226_v61 }
0x27a8   :  { %v5666_v35 = vsel %vm58_vm0, %v15750_v60, 0.0  ;;  %v5676_v0 = vmul.f32 %v15750_v60, %v15750_v60  ;;  %v5683_v45 = vsel %vm58_vm0, %v5675_v14, 0.0 }
0x27a9   :  { %5667 = vadd.xlane.f32.xlu1 %v5666_v35  ;;  %v5660_v59 = vsel %vm58_vm0, %v13228_v23, 0.0  ;;  %v5674_v2 = vmul.f32 %v13228_v23, %v13228_v23  ;;  %v5677_v55 = vsel %vm58_vm0, %v5673_v63, 0.0 }
0x27aa   :  { %v5686_v38 = vsel %vm58_vm0, %v5676_v0, 0.0 }
0x27ab   :  { %5658 = vadd.xlane.f32.xlu0 %v5657_v19  ;;  %v5680_v31 = vsel %vm58_vm0, %v5674_v2, 0.0 }
0x27ad   :  { %5661 = vadd.xlane.f32.xlu1 %v5660_v59 }
0x27af   :  { %5678 = vadd.xlane.f32.xlu0 %v5677_v55 }
0x27b1   :  { %5681 = vadd.xlane.f32.xlu1 %v5680_v31 }
0x27b3   :  { %5684 = vadd.xlane.f32.xlu0 %v5683_v45 }
0x27b5   :  { %5687 = vadd.xlane.f32.xlu1 %v5686_v38 }
0x2834   :  { %v5665_v26 = vpop.xlane.xlu0 %5664 }
0x2835   :  { %v5671_v32 = vmul.f32 0.03125, %v5665_v26 }
0x2836   :  { %v5668_v41 = vpop.xlane.xlu1 %5667 }
0x2837   :  { %v5672_v34 = vmul.f32 0.03125, %v5668_v41  ;;  %v5695_v1 = vmul.f32 %v5671_v32, %v5671_v32  ;;  %v5703_v26 = vsub.f32 %v15746_v37, %v5671_v32 }
0x2838   :  { %v5659_v7 = vpop.xlane.xlu0 %5658 }
0x2839   :  { %v5669_v25 = vmul.f32 0.03125, %v5659_v7  ;;  %v5696_v62 = vmul.f32 %v5672_v34, %v5672_v34 }
0x283a   :  { %v5662_v29 = vpop.xlane.xlu1 %5661 }
0x283b   :  { %v5670_v9 = vmul.f32 0.03125, %v5662_v29  ;;  %v5693_v50 = vmul.f32 %v5669_v25, %v5669_v25  ;;  %v5701_v14 = vsub.f32 %v13226_v61, %v5669_v25 }
0x283c   :  { %v5679_v13 = vpop.xlane.xlu0 %5678 }
0x283d   :  { %v5689_v12 = vmul.f32 0.03125, %v5679_v13  ;;  %v5694_v8 = vmul.f32 %v5670_v9, %v5670_v9  ;;  %v5702_v0 = vsub.f32 %v13228_v23, %v5670_v9  ;;  %v5704_v13 = vsub.f32 %v15750_v60, %v5672_v34 }
0x283e   :  { %v5682_v54 = vpop.xlane.xlu1 %5681 }
0x283f   :  { %v5697_v30 = vsub.f32 %v5689_v12, %v5693_v50  ;;  %v5690_v39 = vmul.f32 0.03125, %v5682_v54 }
0x2840   :  { %v5685_v24 = vpop.xlane.xlu0 %5684 }
0x2841   :  { %v5705_v6 = vadd.f32 1e-05, %v5697_v30  ;;  %v5698_v42 = vsub.f32 %v5690_v39, %v5694_v8  ;;  %v5691_v21 = vmul.f32 0.03125, %v5685_v24 }
0x2842   :  { %v5688_v4 = vpop.xlane.xlu1 %5687 }
0x2843   :  { %13720 = vrsqrt.f32 %v5705_v6  ;;  %v5706_v35 = vadd.f32 1e-05, %v5698_v42  ;;  %v5699_v19 = vsub.f32 %v5691_v21, %v5695_v1  ;;  %v5692_v63 = vmul.f32 0.03125, %v5688_v4 }
0x2845   :  { %13722 = vrsqrt.f32 %v5706_v35  ;;  %v5707_v59 = vadd.f32 1e-05, %v5699_v19  ;;  %v5700_v2 = vsub.f32 %v5692_v63, %v5696_v62 }
0x2847   :  { %13724 = vrsqrt.f32 %v5707_v59  ;;  %v5708_v55 = vadd.f32 1e-05, %v5700_v2  ;;  %v15835_v59 = vld [vmem:[%s17314_s1 + $0x88] sm:$0xff]  }
0x2849   :  { %13726 = vrsqrt.f32 %v5708_v55 }
0x284d   :  { %v13721_v31 = vpop.eup %13720 }
0x284e   :  { %v5713_v45 = vmul.f32 %v13721_v31, %v5701_v14 }
0x284f   :  { %v13723_v38 = vpop.eup %13722 }
0x2850   :  { %v5714_v41 = vmul.f32 %v13723_v38, %v5702_v0  ;;  %v5717_v7 = vmul.f32 %v15418_v56, %v5713_v45  ;;  %v15842_v0 = vld [vmem:[%s17314_s1 + $0x90] sm:$0xff]   ;;  %v15857_v38 = vld [vmem:[%s17315_s2 + $0x1] ss:$0 sm:$0xff] }
0x2851   :  { %v13725_v29 = vpop.eup %13724 }
0x2852   :  { %v5718_v50 = vmul.f32 %v15418_v56, %v5714_v41  ;;  %v5721_v12 = vadd.f32 %v15425_v10, %v5717_v7  ;;  %v5715_v54 = vmul.f32 %v13725_v29, %v5703_v26 }
0x2853   :  { %v13727_v8 = vpop.eup %13726 }
0x2854   :  { %v5722_v61 = vadd.f32 %v15425_v10, %v5718_v50  ;;  %v5725_v25 = vmax.f32 %v5721_v12, 0.0  ;;  %v5716_v23 = vmul.f32 %v13727_v8, %v5704_v13  ;;  %v5719_v9 = vmul.f32 %v15418_v56, %v5715_v54 }
0x2856   :  { %v5726_v30 = vmax.f32 %v5722_v61, 0.0  ;;  %v5720_v37 = vmul.f32 %v15418_v56, %v5716_v23  ;;  %v5723_v32 = vadd.f32 %v15425_v10, %v5719_v9  ;;  %v15782_v39 = vadd.f32 %v5725_v25, %v15605_v16 }
0x2858   :  { %v15785_v60 = vadd.f32 %v5726_v30, %v15608_v17  ;;  %v5724_v34 = vadd.f32 %v15425_v10, %v5720_v37  ;;  %v5727_v24 = vmax.f32 %v5723_v32, 0.0  ;;  %v15802_v10 = vld [vmem:[%s17314_s1 + $0x8] sm:$0xff]   ;;  %v15809_v17 = vld [vmem:[%s17314_s1 + $0x10] sm:$0xff]  }
0x285a   :  { %v5733_v1 = vpack.c.bf16 %v15785_v60, %v15782_v39  ;;  %v5728_v6 = vmax.f32 %v5724_v34, 0.0  ;;  %v15791_v42 = vadd.f32 %v5727_v24, %v15614_v43  ;;  %v15819_v43 = vld [vmem:[%s17314_s1 + $0x80] sm:$0xff]  }
0x285c   :  { %12573 = vmatprep.subr.bf16.mxu1 %v5733_v1  ;;  %v15794_v56 = vadd.f32 %v5728_v6, %v15617_v28  ;;  %v15825_v28 = vld [vmem:[%s17314_s1 + $0x18] sm:$0xff]  }
0x285d   :  { %12574 = vmatpush3.bf16.msra.mxu1 %v5733_v1 }
0x285e   :  { %v5734_v16 = vpack.c.bf16 %v15794_v56, %v15791_v42 }
0x2860   :  { %12575 = vmatprep.subr.bf16.mxu1 %v5734_v16 }
0x2861   :  { %12576 = vmatpush3.bf16.msra.mxu1 %v5734_v16 }
0x2862   :  { %12585 = vmatprep.subr.bf16.mxu1 %v15448_v22 }
0x2864   :  { %12578 = vmatmul.mubr.msk.bf16.vlgmr.msra.gmra.mrb[100].mxu1 %vm58_vm0, %v15802_v10 }
0x2865   :  { %12581 = vmatprep.mubr.msk.bf16.mxu1 %vm58_vm0, %v15809_v17  ;;  %12586 = vmatpush3.bf16.msra.mxu1 %v15448_v22 }
0x2866   :  { %12587 = vmatprep.subr.bf16.mxu1 %v15459_v15 }
0x2869   :  { %12588 = vmatpush3.bf16.msra.mxu1 %v15459_v15 }
0x286a   :  { %12593 = vmatprep.subr.bf16.mxu1 %v15819_v43 }
0x286c   :  { %12582 = vmatmul.mubr.msk.bf16.gmra.mrb[104].mxu1 %vm58_vm0, %v15825_v28 }
0x2937   :  { %v12579_v22 = vpop.f32.mrb[100].mxu1 }
0x2938   :  { %v5769_v21 = vpop.f32.mrb[101].mxu1 }
0x2939   :  { %v12580_v62 = vpop.f32.mrb[102].mxu1 }
0x293a   :  { %v5801_v4 = vpack.c.bf16 %v12580_v62, %v12579_v22  ;;  %v5772_v15 = vpop.f32.mrb[103].mxu1 }
0x293b   :  { %v5800_v35 = vpack.c.bf16 %v5772_v15, %v5769_v21 }
0x293d   :  { %12589 = vmatprep.mubr.msk.bf16.mxu1 %vm58_vm0, %v5800_v35 }
0x293e   :  { %12590 = vmatmul.mubr.msk.bf16.vlgmr.msra.gmra.mrb[108].mxu1 %vm58_vm0, %v5801_v4 }
0x293f   :  { %v12583_v19 = vpop.f32.mrb[104].mxu1  ;;  %12594 = vmatpush3.bf16.msra.mxu1 %v15819_v43 }
0x2940   :  { %v5785_v63 = vpop.f32.mrb[105].mxu1  ;;  %12595 = vmatprep.subr.bf16.mxu1 %v15835_v59 }
0x2941   :  { %v12584_v2 = vpop.f32.mrb[106].mxu1 }
0x2942   :  { %v5803_v55 = vpack.c.bf16 %v12584_v2, %v12583_v19  ;;  %v5788_v14 = vpop.f32.mrb[107].mxu1 }
0x2943   :  { %v5802_v31 = vpack.c.bf16 %v5788_v14, %v5785_v63  ;;  %12596 = vmatpush3.bf16.msra.mxu1 %v15835_v59 }
0x2944   :  { %12601 = vmatprep.subr.bf16.mxu1 %v15842_v0 }
0x2945   :  { %12597 = vmatprep.mubr.msk.bf16.mxu1 %vm58_vm0, %v5802_v31 }
0x294a   :  { %12598 = vmatmul.mubr.msk.bf16.vlgmr.msra.gmra.mrb[108].mxu1 %vm58_vm0, %v5803_v55 }
0x294b   :  { %12605 = vmatprep.mubr.msk.bf16.mxu1 %vm58_vm0, %v5733_v1  ;;  %12602 = vmatpush3.bf16.msra.mxu1 %v15842_v0 }
0x294c   :  { %12603 = vmatprep.subr.bf16.mxu1 %v15479_v3 }
0x294f   :  { %12604 = vmatpush3.bf16.msra.mxu1 %v15479_v3 }
0x2956   :  { %12606 = vmatmul.mubr.msk.bf16.vlgmr.msra.gmra.mrb[108].mxu1 %vm58_vm0, %v5734_v16 }
0x2957   :  { %12649 = vmatprep.mubr.msk.bf16.mxu1 %vm58_vm0, %v15564_v57 }
0x2a29   :  { %v12607_v45 = vpop.f32.mrb[108].mxu1 }
0x2a2a   :  { %v13229_v26 = vadd.f32 %v15857_v38, %v12607_v45  ;;  %v5962_v41 = vpop.f32.mrb[109].mxu1 }
0x2a2b   :  { %v13230_v7 = vadd.f32 %v15857_v38, %v5962_v41  ;;  %v12608_v29 = vpop.f32.mrb[110].mxu1 }
0x2a2c   :  { %v15862_v13 = vadd.f32 %v13229_v26, %v14247_v52  ;;  %v13231_v3 = vadd.f32 %v15857_v38, %v12608_v29  ;;  %v5965_v50 = vpop.f32.mrb[111].mxu1 }
0x2a2d   :  { %v13232_v12 = vadd.f32 %v15857_v38, %v5965_v50  ;;  %v5981_v54 = vadd.f32 %v13230_v7, %v14235_v40 }
0x2a2e   :  { %v15868_v8 = vadd.f32 %v13231_v3, %v14237_v44  ;;  %v5991_v61 = vsel %vm58_vm0, %v15862_v13, 0.0  ;;  %v6003_v24 = vmul.f32 %v15862_v13, %v15862_v13 }
0x2a2f   :  { %5992 = vadd.xlane.f32.xlu0 %v5991_v61  ;;  %v5982_v25 = vadd.f32 %v13232_v12, %v14242_v49  ;;  %v5985_v9 = vsel %vm58_vm0, %v5981_v54, 0.0  ;;  %v6001_v30 = vmul.f32 %v5981_v54, %v5981_v54 }
0x2a30   :  { %v5994_v23 = vsel %vm58_vm0, %v15868_v8, 0.0  ;;  %v6004_v6 = vmul.f32 %v15868_v8, %v15868_v8  ;;  %v6011_v16 = vsel %vm58_vm0, %v6003_v24, 0.0 }
0x2a31   :  { %5995 = vadd.xlane.f32.xlu1 %v5994_v23  ;;  %v5988_v37 = vsel %vm58_vm0, %v5982_v25, 0.0  ;;  %v6002_v32 = vmul.f32 %v5982_v25, %v5982_v25  ;;  %v6005_v34 = vsel %vm58_vm0, %v6001_v30, 0.0 }
0x2a32   :  { %v6014_v22 = vsel %vm58_vm0, %v6004_v6, 0.0 }
0x2a33   :  { %5986 = vadd.xlane.f32.xlu0 %v5985_v9  ;;  %v6008_v1 = vsel %vm58_vm0, %v6002_v32, 0.0 }
0x2a35   :  { %5989 = vadd.xlane.f32.xlu1 %v5988_v37 }
0x2a37   :  { %6006 = vadd.xlane.f32.xlu0 %v6005_v34 }
0x2a39   :  { %6009 = vadd.xlane.f32.xlu1 %v6008_v1 }
0x2a3b   :  { %6012 = vadd.xlane.f32.xlu0 %v6011_v16 }
0x2a3d   :  { %6015 = vadd.xlane.f32.xlu1 %v6014_v22 }
0x2abc   :  { %v5993_v21 = vpop.xlane.xlu0 %5992 }
0x2abd   :  { %v5999_v2 = vmul.f32 0.03125, %v5993_v21 }
0x2abe   :  { %v5996_v62 = vpop.xlane.xlu1 %5995 }
0x2abf   :  { %v6000_v31 = vmul.f32 0.03125, %v5996_v62  ;;  %v6023_v3 = vmul.f32 %v5999_v2, %v5999_v2 }
0x2ac0   :  { %v5987_v4 = vpop.xlane.xlu0 %5986 }
0x2ac1   :  { %v5997_v15 = vmul.f32 0.03125, %v5987_v4  ;;  %v6024_v23 = vmul.f32 %v6000_v31, %v6000_v31  ;;  %v6031_v4 = vsub.f32 %v15862_v13, %v5999_v2 }
0x2ac2   :  { %v5990_v35 = vpop.xlane.xlu1 %5989 }
0x2ac3   :  { %v5998_v19 = vmul.f32 0.03125, %v5990_v35  ;;  %v6021_v55 = vmul.f32 %v5997_v15, %v5997_v15  ;;  %v6029_v6 = vsub.f32 %v5981_v54, %v5997_v15  ;;  %v15897_v54 = vld [vmem:[%s17315_s2 + $0x3] ss:$0 sm:$0xff] }
0x2ac4   :  { %v6007_v63 = vpop.xlane.xlu0 %6006 }
0x2ac5   :  { %v6017_v14 = vmul.f32 0.03125, %v6007_v63  ;;  %v6022_v26 = vmul.f32 %v5998_v19, %v5998_v19  ;;  %v6030_v22 = vsub.f32 %v5982_v25, %v5998_v19  ;;  %v15889_v63 = vld [vmem:[%s17315_s2 + $0x2] ss:$0 sm:$0xff] }
0x2ac6   :  { %v6010_v45 = vpop.xlane.xlu1 %6009 }
0x2ac7   :  { %v6025_v41 = vsub.f32 %v6017_v14, %v6021_v55  ;;  %v6018_v7 = vmul.f32 0.03125, %v6010_v45  ;;  %v6032_v45 = vsub.f32 %v15868_v8, %v6000_v31 }
0x2ac8   :  { %v6013_v29 = vpop.xlane.xlu0 %6012 }
0x2ac9   :  { %v6033_v50 = vadd.f32 1e-05, %v6025_v41  ;;  %v6026_v12 = vsub.f32 %v6018_v7, %v6022_v26  ;;  %v6019_v61 = vmul.f32 0.03125, %v6013_v29 }
0x2aca   :  { %v6016_v9 = vpop.xlane.xlu1 %6015 }
0x2acb   :  { %13728 = vrsqrt.f32 %v6033_v50  ;;  %v6034_v30 = vadd.f32 1e-05, %v6026_v12  ;;  %v6027_v37 = vsub.f32 %v6019_v61, %v6023_v3  ;;  %v6020_v32 = vmul.f32 0.03125, %v6016_v9  ;;  %v15916_v9 = vld [vmem:[%s17314_s1 + $0xb0] sm:$0xff]  }
0x2acd   :  { %13730 = vrsqrt.f32 %v6034_v30  ;;  %v6035_v34 = vadd.f32 1e-05, %v6027_v37  ;;  %v6028_v24 = vsub.f32 %v6020_v32, %v6024_v23 }
0x2acf   :  { %13732 = vrsqrt.f32 %v6035_v34  ;;  %v6036_v1 = vadd.f32 1e-05, %v6028_v24 }
0x2ad1   :  { %13734 = vrsqrt.f32 %v6036_v1 }
0x2ad5   :  { %v13729_v16 = vpop.eup %13728 }
0x2ad6   :  { %v6041_v21 = vmul.f32 %v13729_v16, %v6029_v6  ;;  %v15927_v6 = vld [vmem:[%s17314_s1 + $0xb8] sm:$0xff]  }
0x2ad7   :  { %v13731_v62 = vpop.eup %13730 }
0x2ad8   :  { %v6042_v35 = vmul.f32 %v13731_v62, %v6030_v22  ;;  %v6045_v55 = vmul.f32 %v15889_v63, %v6041_v21 }
0x2ad9   :  { %v13733_v14 = vpop.eup %13732 }
0x2ada   :  { %v6046_v26 = vmul.f32 %v15889_v63, %v6042_v35  ;;  %v6049_v13 = vadd.f32 %v15897_v54, %v6045_v55  ;;  %v6043_v25 = vmul.f32 %v13733_v14, %v6031_v4  ;;  %v15934_v4 = vld [vmem:[%s17314_s1 + $0xc0] sm:$0xff]  }
0x2adb   :  { %v13735_v15 = vpop.eup %13734 }
0x2adc   :  { %v6050_v19 = vadd.f32 %v15897_v54, %v6046_v26  ;;  %v6044_v2 = vmul.f32 %v13735_v15, %v6032_v45  ;;  %v6047_v41 = vmul.f32 %v15889_v63, %v6043_v25  ;;  %v6053_v7 = vmax.f32 %v6049_v13, 0.0 }
0x2ade   :  { %v6054_v29 = vmax.f32 %v6050_v19, 0.0  ;;  %v6048_v8 = vmul.f32 %v15889_v63, %v6044_v2  ;;  %v6051_v31 = vadd.f32 %v15897_v54, %v6047_v41 }
0x2ae0   :  { %v6057_v3 = vpack.c.bf16 %v6054_v29, %v6053_v7  ;;  %v6052_v50 = vadd.f32 %v15897_v54, %v6048_v8  ;;  %v6055_v12 = vmax.f32 %v6051_v31, 0.0 }
0x2ae2   :  { %12609 = vmatprep.subr.bf16.mxu0 %v6057_v3  ;;  %v6056_v61 = vmax.f32 %v6052_v50, 0.0 }
0x2ae3   :  { %12610 = vmatpush3.bf16.msra.mxu0 %v6057_v3 }
0x2ae4   :  { %v6058_v23 = vpack.c.bf16 %v6056_v61, %v6055_v12 }
0x2ae6   :  { %12611 = vmatprep.subr.bf16.mxu0 %v6058_v23 }
0x2ae7   :  { %12612 = vmatpush3.bf16.msra.mxu0 %v6058_v23 }
0x2ae8   :  { %12621 = vmatprep.subr.bf16.mxu0 %v15525_v46 }
0x2aea   :  { %12614 = vmatmul.mubr.msk.bf16.vlgmr.msra.gmra.mrb[96].mxu0 %vm58_vm0, %v15802_v10 }
0x2aeb   :  { %12617 = vmatprep.mubr.msk.bf16.mxu0 %vm58_vm0, %v15809_v17  ;;  %12622 = vmatpush3.bf16.msra.mxu0 %v15525_v46 }
0x2aec   :  { %12623 = vmatprep.subr.bf16.mxu0 %v15536_v18 }
0x2aef   :  { %12624 = vmatpush3.bf16.msra.mxu0 %v15536_v18 }
0x2af0   :  { %12629 = vmatprep.subr.bf16.mxu0 %v15916_v9 }
0x2af2   :  { %12618 = vmatmul.mubr.msk.bf16.gmra.mrb[100].mxu0 %vm58_vm0, %v15825_v28 }
0x2bbd   :  { %v12615_v30 = vpop.f32.mrb[96].mxu0 }
0x2bbe   :  { %v6093_v37 = vpop.f32.mrb[97].mxu0 }
0x2bbf   :  { %v12616_v32 = vpop.f32.mrb[98].mxu0 }
0x2bc0   :  { %v6125_v34 = vpack.c.bf16 %v12616_v32, %v12615_v30  ;;  %v6096_v24 = vpop.f32.mrb[99].mxu0 }
0x2bc1   :  { %v6124_v46 = vpack.c.bf16 %v6096_v24, %v6093_v37 }
0x2bc3   :  { %12625 = vmatprep.mubr.msk.bf16.mxu0 %vm58_vm0, %v6124_v46 }
0x2bc4   :  { %12626 = vmatmul.mubr.msk.bf16.vlgmr.msra.gmra.mrb[104].mxu0 %vm58_vm0, %v6125_v34 }
0x2bc5   :  { %v12619_v18 = vpop.f32.mrb[100].mxu0  ;;  %12630 = vmatpush3.bf16.msra.mxu0 %v15916_v9 }
0x2bc6   :  { %v6109_v1 = vpop.f32.mrb[101].mxu0  ;;  %12631 = vmatprep.subr.bf16.mxu0 %v15927_v6 }
0x2bc7   :  { %v12620_v16 = vpop.f32.mrb[102].mxu0 }
0x2bc8   :  { %v6127_v22 = vpack.c.bf16 %v12620_v16, %v12619_v18  ;;  %v6112_v21 = vpop.f32.mrb[103].mxu0 }
0x2bc9   :  { %v6126_v62 = vpack.c.bf16 %v6112_v21, %v6109_v1  ;;  %12632 = vmatpush3.bf16.msra.mxu0 %v15927_v6 }
0x2bca   :  { %12637 = vmatprep.subr.bf16.mxu0 %v15934_v4 }
0x2bcb   :  { %12633 = vmatprep.mubr.msk.bf16.mxu0 %vm58_vm0, %v6126_v62 }
0x2bd0   :  { %12634 = vmatmul.mubr.msk.bf16.vlgmr.msra.gmra.mrb[104].mxu0 %vm58_vm0, %v6127_v22 }
0x2bd1   :  { %12641 = vmatprep.mubr.msk.bf16.mxu0 %vm58_vm0, %v6057_v3  ;;  %12638 = vmatpush3.bf16.msra.mxu0 %v15934_v4 }
0x2bd2   :  { %12639 = vmatprep.subr.bf16.mxu0 %v15556_v53 }
0x2bd5   :  { %12640 = vmatpush3.bf16.msra.mxu0 %v15556_v53 }
0x2bdc   :  { %12642 = vmatmul.mubr.msk.bf16.vlgmr.msra.gmra.mrb[104].mxu0 %vm58_vm0, %v6058_v23 }
0x2bdd   :  { %12685 = vmatprep.mubr.msk.bf16.mxu0 %vm58_vm0, %v15564_v57 }
0x2caf   :  { %v12643_v35 = vpop.f32.mrb[104].mxu0 }
0x2cb0   :  { %v15947_v55 = vadd.f32 %v15580_v11, %v12643_v35  ;;  %v6286_v14 = vpop.f32.mrb[105].mxu0 }
0x2cb1   :  { %v12644_v45 = vpop.f32.mrb[106].mxu0  ;;  %v13234_v26 = vadd.f32 %v15580_v11, %v6286_v14 }
0x2cb2   :  { %v15951_v13 = vadd.f32 %v15580_v11, %v12644_v45  ;;  %v6289_v25 = vpop.f32.mrb[107].mxu0  ;;  %v6311_v53 = vsel %vm58_vm0, %v15947_v55, 0.0  ;;  %v6323_v8 = vmul.f32 %v15947_v55, %v15947_v55 }
0x2cb3   :  { %6312 = vadd.xlane.f32.xlu0 %v6311_v53  ;;  %v13236_v15 = vadd.f32 %v15580_v11, %v6289_v25  ;;  %v6305_v19 = vsel %vm58_vm0, %v13234_v26, 0.0  ;;  %v6321_v2 = vmul.f32 %v13234_v26, %v13234_v26 }
0x2cb4   :  { %v6314_v57 = vsel %vm58_vm0, %v15951_v13, 0.0  ;;  %v6324_v31 = vmul.f32 %v15951_v13, %v15951_v13  ;;  %v6331_v3 = vsel %vm58_vm0, %v6323_v8, 0.0 }
0x2cb5   :  { %6315 = vadd.xlane.f32.xlu1 %v6314_v57  ;;  %v6308_v41 = vsel %vm58_vm0, %v13236_v15, 0.0  ;;  %v6322_v7 = vmul.f32 %v13236_v15, %v13236_v15  ;;  %v6325_v29 = vsel %vm58_vm0, %v6321_v2, 0.0 }
0x2cb6   :  { %v6334_v50 = vsel %vm58_vm0, %v6324_v31, 0.0 }
0x2cb7   :  { %6306 = vadd.xlane.f32.xlu0 %v6305_v19  ;;  %v6328_v11 = vsel %vm58_vm0, %v6322_v7, 0.0 }
0x2cb9   :  { %6309 = vadd.xlane.f32.xlu1 %v6308_v41 }
0x2cbb   :  { %6326 = vadd.xlane.f32.xlu0 %v6325_v29 }
0x2cbd   :  { %6329 = vadd.xlane.f32.xlu1 %v6328_v11 }
0x2cbf   :  { %6332 = vadd.xlane.f32.xlu0 %v6331_v3 }
0x2cc1   :  { %6335 = vadd.xlane.f32.xlu1 %v6334_v50 }
0x2d40   :  { %v6313_v12 = vpop.xlane.xlu0 %6312 }
0x2d41   :  { %v6319_v24 = vmul.f32 0.03125, %v6313_v12 }
0x2d42   :  { %v6316_v61 = vpop.xlane.xlu1 %6315 }
0x2d43   :  { %v6320_v1 = vmul.f32 0.03125, %v6316_v61  ;;  %v6343_v14 = vmul.f32 %v6319_v24, %v6319_v24 }
0x2d44   :  { %v6307_v23 = vpop.xlane.xlu0 %6306 }
0x2d45   :  { %v6317_v30 = vmul.f32 0.03125, %v6307_v23  ;;  %v6344_v57 = vmul.f32 %v6320_v1, %v6320_v1  ;;  %v6351_v23 = vsub.f32 %v15947_v55, %v6319_v24 }
0x2d46   :  { %v6310_v37 = vpop.xlane.xlu1 %6309 }
0x2d47   :  { %v6318_v32 = vmul.f32 0.03125, %v6310_v37  ;;  %v6341_v46 = vmul.f32 %v6317_v30, %v6317_v30  ;;  %v6349_v31 = vsub.f32 %v13234_v26, %v6317_v30  ;;  %v15980_v26 = vld [vmem:[%s17315_s2 + $0x6] ss:$0 sm:$0xff] }
0x2d48   :  { %v6327_v34 = vpop.xlane.xlu0 %6326 }
0x2d49   :  { %v6337_v18 = vmul.f32 0.03125, %v6327_v34  ;;  %v6342_v22 = vmul.f32 %v6318_v32, %v6318_v32  ;;  %v6350_v50 = vsub.f32 %v13236_v15, %v6318_v32  ;;  %v15972_v34 = vld [vmem:[%s17315_s2 + $0x5] ss:$0 sm:$0xff] }
0x2d4a   :  { %v6330_v16 = vpop.xlane.xlu1 %6329 }
0x2d4b   :  { %v6345_v21 = vsub.f32 %v6337_v18, %v6341_v46  ;;  %v6338_v62 = vmul.f32 0.03125, %v6330_v16  ;;  %v6352_v16 = vsub.f32 %v15951_v13, %v6320_v1 }
0x2d4c   :  { %v6333_v35 = vpop.xlane.xlu0 %6332 }
0x2d4d   :  { %v6353_v45 = vadd.f32 1e-05, %v6345_v21  ;;  %v6346_v25 = vsub.f32 %v6338_v62, %v6342_v22  ;;  %v6339_v53 = vmul.f32 0.03125, %v6333_v35 }
0x2d4e   :  { %v6336_v19 = vpop.xlane.xlu1 %6335 }
0x2d4f   :  { %13736 = vrsqrt.f32 %v6353_v45  ;;  %v6354_v2 = vadd.f32 1e-05, %v6346_v25  ;;  %v6347_v41 = vsub.f32 %v6339_v53, %v6343_v14  ;;  %v6340_v7 = vmul.f32 0.03125, %v6336_v19 }
0x2d51   :  { %13738 = vrsqrt.f32 %v6354_v2  ;;  %v6355_v29 = vadd.f32 1e-05, %v6347_v41  ;;  %v6348_v8 = vsub.f32 %v6340_v7, %v6344_v57  ;;  %v16031_v7 = vld [vmem:[%s17314_s1 + $0x38] sm:$0xff]  }
0x2d53   :  { %13740 = vrsqrt.f32 %v6355_v29  ;;  %v6356_v11 = vadd.f32 1e-05, %v6348_v8 }
0x2d55   :  { %13742 = vrsqrt.f32 %v6356_v11 }
0x2d59   :  { %v13737_v3 = vpop.eup %13736 }
0x2d5a   :  { %v6361_v12 = vmul.f32 %v13737_v3, %v6349_v31 }
0x2d5b   :  { %v13739_v61 = vpop.eup %13738 }
0x2d5c   :  { %v6362_v37 = vmul.f32 %v13739_v61, %v6350_v50  ;;  %v6365_v46 = vmul.f32 %v15972_v34, %v6361_v12  ;;  %v16041_v12 = vld [vmem:[%s17314_s1 + $0xe8] sm:$0xff]  }
0x2d5d   :  { %v13741_v18 = vpop.eup %13740 }
0x2d5e   :  { %v6366_v22 = vmul.f32 %v15972_v34, %v6362_v37  ;;  %v6369_v55 = vadd.f32 %v15980_v26, %v6365_v46  ;;  %v6363_v15 = vmul.f32 %v13741_v18, %v6351_v23  ;;  %v16048_v18 = vld [vmem:[%s17314_s1 + $0xf0] sm:$0xff]  }
0x2d5f   :  { %v13743_v30 = vpop.eup %13742 }
0x2d60   :  { %v6370_v32 = vadd.f32 %v15980_v26, %v6366_v22  ;;  %v6373_v24 = vmax.f32 %v6369_v55, 0.0  ;;  %v6364_v21 = vmul.f32 %v13743_v30, %v6352_v16  ;;  %v6367_v62 = vmul.f32 %v15972_v34, %v6363_v15 }
0x2d62   :  { %v6374_v35 = vmax.f32 %v6370_v32, 0.0  ;;  %v6368_v13 = vmul.f32 %v15972_v34, %v6364_v21  ;;  %v6371_v1 = vadd.f32 %v15980_v26, %v6367_v62  ;;  %v15988_v14 = vadd.f32 %v6373_v24, %v15782_v39 }
0x2d64   :  { %v15991_v45 = vadd.f32 %v6374_v35, %v15785_v60  ;;  %v6372_v25 = vadd.f32 %v15980_v26, %v6368_v13  ;;  %v6375_v53 = vmax.f32 %v6371_v1, 0.0  ;;  %v16008_v60 = vld [vmem:[%s17314_s1 + $0x28] sm:$0xff]  }
0x2d66   :  { %v6381_v57 = vpack.c.bf16 %v15991_v45, %v15988_v14  ;;  %v6376_v19 = vmax.f32 %v6372_v25, 0.0  ;;  %v15997_v2 = vadd.f32 %v6375_v53, %v15791_v42  ;;  %v16015_v42 = vld [vmem:[%s17314_s1 + $0x30] sm:$0xff]  }
0x2d68   :  { %12645 = vmatprep.subr.bf16.mxu1 %v6381_v57  ;;  %v16000_v41 = vadd.f32 %v6376_v19, %v15794_v56  ;;  %v16025_v56 = vld [vmem:[%s17314_s1 + $0xe0] sm:$0xff]  }
0x2d69   :  { %12646 = vmatpush3.bf16.msra.mxu1 %v6381_v57 }
0x2d6a   :  { %v6382_v39 = vpack.c.bf16 %v16000_v41, %v15997_v2 }
0x2d6c   :  { %12647 = vmatprep.subr.bf16.mxu1 %v6382_v39 }
0x2d6d   :  { %12648 = vmatpush3.bf16.msra.mxu1 %v6382_v39 }
0x2d6e   :  { %12657 = vmatprep.subr.bf16.mxu1 %v15624_v27 }
0x2d70   :  { %12650 = vmatmul.mubr.msk.bf16.vlgmr.msra.gmra.mrb[112].mxu1 %vm58_vm0, %v16008_v60 }
0x2d71   :  { %12653 = vmatprep.mubr.msk.bf16.mxu1 %vm58_vm0, %v16015_v42  ;;  %12658 = vmatpush3.bf16.msra.mxu1 %v15624_v27 }
0x2d72   :  { %12659 = vmatprep.subr.bf16.mxu1 %v15635_v51 }
0x2d75   :  { %12660 = vmatpush3.bf16.msra.mxu1 %v15635_v51 }
0x2d76   :  { %12665 = vmatprep.subr.bf16.mxu1 %v16025_v56 }
0x2d78   :  { %12654 = vmatmul.mubr.msk.bf16.gmra.mrb[116].mxu1 %vm58_vm0, %v16031_v7 }
0x2e43   :  { %v12651_v27 = vpop.f32.mrb[112].mxu1 }
0x2e44   :  { %v6417_v29 = vpop.f32.mrb[113].mxu1 }
0x2e45   :  { %v12652_v8 = vpop.f32.mrb[114].mxu1 }
0x2e46   :  { %v6449_v11 = vpack.c.bf16 %v12652_v8, %v12651_v27  ;;  %v6420_v51 = vpop.f32.mrb[115].mxu1 }
0x2e47   :  { %v6448_v31 = vpack.c.bf16 %v6420_v51, %v6417_v29 }
0x2e49   :  { %12661 = vmatprep.mubr.msk.bf16.mxu1 %vm58_vm0, %v6448_v31 }
0x2e4a   :  { %12662 = vmatmul.mubr.msk.bf16.vlgmr.msra.gmra.mrb[120].mxu1 %vm58_vm0, %v6449_v11 }
0x2e4b   :  { %v12655_v3 = vpop.f32.mrb[116].mxu1  ;;  %12666 = vmatpush3.bf16.msra.mxu1 %v16025_v56 }
0x2e4c   :  { %v6433_v50 = vpop.f32.mrb[117].mxu1  ;;  %12667 = vmatprep.subr.bf16.mxu1 %v16041_v12 }
0x2e4d   :  { %v12656_v61 = vpop.f32.mrb[118].mxu1 }
0x2e4e   :  { %v6451_v23 = vpack.c.bf16 %v12656_v61, %v12655_v3  ;;  %v6436_v37 = vpop.f32.mrb[119].mxu1 }
0x2e4f   :  { %v6450_v46 = vpack.c.bf16 %v6436_v37, %v6433_v50  ;;  %12668 = vmatpush3.bf16.msra.mxu1 %v16041_v12 }
0x2e50   :  { %12673 = vmatprep.subr.bf16.mxu1 %v16048_v18 }
0x2e51   :  { %12669 = vmatprep.mubr.msk.bf16.mxu1 %vm58_vm0, %v6450_v46 }
0x2e56   :  { %12670 = vmatmul.mubr.msk.bf16.vlgmr.msra.gmra.mrb[120].mxu1 %vm58_vm0, %v6451_v23 }
0x2e57   :  { %12677 = vmatprep.mubr.msk.bf16.mxu1 %vm58_vm0, %v6381_v57  ;;  %12674 = vmatpush3.bf16.msra.mxu1 %v16048_v18 }
0x2e58   :  { %12675 = vmatprep.subr.bf16.mxu1 %v15655_v36 }
0x2e5b   :  { %12676 = vmatpush3.bf16.msra.mxu1 %v15655_v36 }
0x2e62   :  { %12678 = vmatmul.mubr.msk.bf16.vlgmr.msra.gmra.mrb[120].mxu1 %vm58_vm0, %v6382_v39 }
0x2e63   :  { %12721 = vmatprep.mubr.msk.bf16.mxu1 %vm58_vm0, %v15741_v47 }
0x2f35   :  { %v12679_v16 = vpop.f32.mrb[120].mxu1 }
0x2f36   :  { %v16061_v22 = vadd.f32 %v15674_v58, %v12679_v16  ;;  %v6610_v55 = vpop.f32.mrb[121].mxu1 }
0x2f37   :  { %v12680_v15 = vpop.f32.mrb[122].mxu1  ;;  %v13238_v30 = vadd.f32 %v15674_v58, %v6610_v55 }
0x2f38   :  { %v16065_v32 = vadd.f32 %v15674_v58, %v12680_v15  ;;  %v6613_v24 = vpop.f32.mrb[123].mxu1  ;;  %v6635_v36 = vsel %vm58_vm0, %v16061_v22, 0.0  ;;  %v6647_v57 = vmul.f32 %v16061_v22, %v16061_v22 }
0x2f39   :  { %6636 = vadd.xlane.f32.xlu0 %v6635_v36  ;;  %v13240_v21 = vadd.f32 %v15674_v58, %v6613_v24  ;;  %v6629_v35 = vsel %vm58_vm0, %v13238_v30, 0.0  ;;  %v6645_v13 = vmul.f32 %v13238_v30, %v13238_v30 }
0x2f3a   :  { %v6638_v62 = vsel %vm58_vm0, %v16065_v32, 0.0  ;;  %v6648_v19 = vmul.f32 %v16065_v32, %v16065_v32  ;;  %v6655_v39 = vsel %vm58_vm0, %v6647_v57, 0.0 }
0x2f3b   :  { %6639 = vadd.xlane.f32.xlu1 %v6638_v62  ;;  %v6632_v1 = vsel %vm58_vm0, %v13240_v21, 0.0  ;;  %v6646_v25 = vmul.f32 %v13240_v21, %v13240_v21  ;;  %v6649_v53 = vsel %vm58_vm0, %v6645_v13, 0.0 }
0x2f3c   :  { %v6658_v27 = vsel %vm58_vm0, %v6648_v19, 0.0 }
0x2f3d   :  { %6630 = vadd.xlane.f32.xlu0 %v6629_v35  ;;  %v6652_v58 = vsel %vm58_vm0, %v6646_v25, 0.0 }
0x2f3f   :  { %6633 = vadd.xlane.f32.xlu1 %v6632_v1 }
0x2f41   :  { %6650 = vadd.xlane.f32.xlu0 %v6649_v53 }
0x2f43   :  { %6653 = vadd.xlane.f32.xlu1 %v6652_v58 }
0x2f45   :  { %6656 = vadd.xlane.f32.xlu0 %v6655_v39 }
0x2f47   :  { %6659 = vadd.xlane.f32.xlu1 %v6658_v27 }
0x2fc6   :  { %v6637_v29 = vpop.xlane.xlu0 %6636 }
0x2fc7   :  { %v6643_v61 = vmul.f32 0.03125, %v6637_v29 }
0x2fc8   :  { %v6640_v8 = vpop.xlane.xlu1 %6639 }
0x2fc9   :  { %v6644_v46 = vmul.f32 0.03125, %v6640_v8  ;;  %v6667_v62 = vmul.f32 %v6643_v61, %v6643_v61 }
0x2fca   :  { %v6631_v11 = vpop.xlane.xlu0 %6630 }
0x2fcb   :  { %v6641_v51 = vmul.f32 0.03125, %v6631_v11  ;;  %v6668_v25 = vmul.f32 %v6644_v46, %v6644_v46 }
0x2fcc   :  { %v6634_v31 = vpop.xlane.xlu1 %6633 }
0x2fcd   :  { %v6642_v3 = vmul.f32 0.03125, %v6634_v31  ;;  %v6665_v23 = vmul.f32 %v6641_v51, %v6641_v51  ;;  %v6673_v8 = vsub.f32 %v13238_v30, %v6641_v51  ;;  %v16094_v30 = vld [vmem:[%s17315_s2 + $0x9] ss:$0 sm:$0xff] }
0x2fce   :  { %v6651_v50 = vpop.xlane.xlu0 %6650 }
0x2fcf   :  { %v6661_v37 = vmul.f32 0.03125, %v6651_v50  ;;  %v6666_v55 = vmul.f32 %v6642_v3, %v6642_v3  ;;  %v6674_v31 = vsub.f32 %v13240_v21, %v6642_v3 }
0x2fd0   :  { %v6654_v16 = vpop.xlane.xlu1 %6653 }
0x2fd1   :  { %v6669_v15 = vsub.f32 %v6661_v37, %v6665_v23  ;;  %v6662_v24 = vmul.f32 0.03125, %v6654_v16  ;;  %v6675_v37 = vsub.f32 %v16061_v22, %v6643_v61 }
0x2fd2   :  { %v6657_v36 = vpop.xlane.xlu0 %6656 }
0x2fd3   :  { %v6677_v35 = vadd.f32 1e-05, %v6669_v15  ;;  %v6670_v13 = vsub.f32 %v6662_v24, %v6666_v55  ;;  %v6663_v1 = vmul.f32 0.03125, %v6657_v36  ;;  %v16086_v55 = vld [vmem:[%s17315_s2 + $0x8] ss:$0 sm:$0xff]  ;;  %v6676_v36 = vsub.f32 %v16065_v32, %v6644_v46 }
0x2fd4   :  { %v6660_v53 = vpop.xlane.xlu1 %6659 }
0x2fd5   :  { %13744 = vrsqrt.f32 %v6677_v35  ;;  %v6678_v57 = vadd.f32 1e-05, %v6670_v13  ;;  %v6671_v58 = vsub.f32 %v6663_v1, %v6667_v62  ;;  %v6664_v19 = vmul.f32 0.03125, %v6660_v53 }
0x2fd7   :  { %13746 = vrsqrt.f32 %v6678_v57  ;;  %v6679_v39 = vadd.f32 1e-05, %v6671_v58  ;;  %v6672_v27 = vsub.f32 %v6664_v19, %v6668_v25 }
0x2fd9   :  { %13748 = vrsqrt.f32 %v6679_v39  ;;  %v6680_v29 = vadd.f32 1e-05, %v6672_v27  ;;  %v16113_v39 = vld [vmem:[%s17314_s1 + $0x110] sm:$0xff]  }
0x2fdb   :  { %13750 = vrsqrt.f32 %v6680_v29 }
0x2fdf   :  { %v13745_v11 = vpop.eup %13744 }
0x2fe0   :  { %v6685_v50 = vmul.f32 %v13745_v11, %v6673_v8 }
0x2fe1   :  { %v13747_v23 = vpop.eup %13746 }
0x2fe2   :  { %v6686_v16 = vmul.f32 %v13747_v23, %v6674_v31  ;;  %v6689_v15 = vmul.f32 %v16086_v55, %v6685_v50  ;;  %v16124_v23 = vld [vmem:[%s17314_s1 + $0x118] sm:$0xff]  }
0x2fe3   :  { %v13749_v24 = vpop.eup %13748 }
0x2fe4   :  { %v6690_v62 = vmul.f32 %v16086_v55, %v6686_v16  ;;  %v6693_v22 = vadd.f32 %v16094_v30, %v6689_v15  ;;  %v6687_v21 = vmul.f32 %v13749_v24, %v6675_v37 }
0x2fe5   :  { %v13751_v51 = vpop.eup %13750 }
0x2fe6   :  { %v6694_v3 = vadd.f32 %v16094_v30, %v6690_v62  ;;  %v6688_v61 = vmul.f32 %v13751_v51, %v6676_v36  ;;  %v6691_v35 = vmul.f32 %v16086_v55, %v6687_v21  ;;  %v6697_v13 = vmax.f32 %v6693_v22, 0.0  ;;  %v16131_v36 = vld [vmem:[%s17314_s1 + $0x120] sm:$0xff]  }
0x2fe8   :  { %v6698_v1 = vmax.f32 %v6694_v3, 0.0  ;;  %v6692_v32 = vmul.f32 %v16086_v55, %v6688_v61  ;;  %v6695_v46 = vadd.f32 %v16094_v30, %v6691_v35 }
0x2fea   :  { %v6701_v25 = vpack.c.bf16 %v6698_v1, %v6697_v13  ;;  %v6696_v53 = vadd.f32 %v16094_v30, %v6692_v32  ;;  %v6699_v57 = vmax.f32 %v6695_v46, 0.0 }
0x2fec   :  { %12681 = vmatprep.subr.bf16.mxu0 %v6701_v25  ;;  %v6700_v58 = vmax.f32 %v6696_v53, 0.0 }
0x2fed   :  { %12682 = vmatpush3.bf16.msra.mxu0 %v6701_v25 }
0x2fee   :  { %v6702_v19 = vpack.c.bf16 %v6700_v58, %v6699_v57 }
0x2ff0   :  { %12683 = vmatprep.subr.bf16.mxu0 %v6702_v19 }
0x2ff1   :  { %12684 = vmatpush3.bf16.msra.mxu0 %v6702_v19 }
0x2ff2   :  { %12693 = vmatprep.subr.bf16.mxu0 %v15702_v48 }
0x2ff4   :  { %12686 = vmatmul.mubr.msk.bf16.vlgmr.msra.gmra.mrb[108].mxu0 %vm58_vm0, %v16008_v60 }
0x2ff5   :  { %12689 = vmatprep.mubr.msk.bf16.mxu0 %vm58_vm0, %v16015_v42  ;;  %12694 = vmatpush3.bf16.msra.mxu0 %v15702_v48 }
0x2ff6   :  { %12695 = vmatprep.subr.bf16.mxu0 %v15713_v20 }
0x2ff9   :  { %12696 = vmatpush3.bf16.msra.mxu0 %v15713_v20 }
0x2ffa   :  { %12701 = vmatprep.subr.bf16.mxu0 %v16113_v39 }
0x2ffc   :  { %12690 = vmatmul.mubr.msk.bf16.gmra.mrb[112].mxu0 %vm58_vm0, %v16031_v7 }
0x30c7   :  { %v12687_v27 = vpop.f32.mrb[108].mxu0 }
0x30c8   :  { %v6737_v29 = vpop.f32.mrb[109].mxu0 }
0x30c9   :  { %v12688_v8 = vpop.f32.mrb[110].mxu0 }
0x30ca   :  { %v6769_v11 = vpack.c.bf16 %v12688_v8, %v12687_v27  ;;  %v6740_v31 = vpop.f32.mrb[111].mxu0 }
0x30cb   :  { %v6768_v48 = vpack.c.bf16 %v6740_v31, %v6737_v29 }
0x30cd   :  { %12697 = vmatprep.mubr.msk.bf16.mxu0 %vm58_vm0, %v6768_v48 }
0x30ce   :  { %12698 = vmatmul.mubr.msk.bf16.vlgmr.msra.gmra.mrb[116].mxu0 %vm58_vm0, %v6769_v11 }
0x30cf   :  { %v12691_v20 = vpop.f32.mrb[112].mxu0  ;;  %12702 = vmatpush3.bf16.msra.mxu0 %v16113_v39 }
0x30d0   :  { %v6753_v50 = vpop.f32.mrb[113].mxu0  ;;  %12703 = vmatprep.subr.bf16.mxu0 %v16124_v23 }
0x30d1   :  { %v12692_v37 = vpop.f32.mrb[114].mxu0 }
0x30d2   :  { %v6771_v16 = vpack.c.bf16 %v12692_v37, %v12691_v20  ;;  %v6756_v15 = vpop.f32.mrb[115].mxu0 }
0x30d3   :  { %v6770_v24 = vpack.c.bf16 %v6756_v15, %v6753_v50  ;;  %12704 = vmatpush3.bf16.msra.mxu0 %v16124_v23 }
0x30d4   :  { %12709 = vmatprep.subr.bf16.mxu0 %v16131_v36 }
0x30d5   :  { %12705 = vmatprep.mubr.msk.bf16.mxu0 %vm58_vm0, %v6770_v24 }
0x30da   :  { %12706 = vmatmul.mubr.msk.bf16.vlgmr.msra.gmra.mrb[116].mxu0 %vm58_vm0, %v6771_v16 }
0x30db   :  { %12713 = vmatprep.mubr.msk.bf16.mxu0 %vm58_vm0, %v6701_v25  ;;  %12710 = vmatpush3.bf16.msra.mxu0 %v16131_v36 }
0x30dc   :  { %12711 = vmatprep.subr.bf16.mxu0 %v15733_v33 }
0x30df   :  { %12712 = vmatpush3.bf16.msra.mxu0 %v15733_v33 }
0x30e6   :  { %12714 = vmatmul.mubr.msk.bf16.vlgmr.msra.gmra.mrb[116].mxu0 %vm58_vm0, %v6702_v19 }
0x30e7   :  { %12757 = vmatprep.mubr.msk.bf16.mxu0 %vm58_vm0, %v15741_v47 }
0x31b9   :  { %v12715_v62 = vpop.f32.mrb[116].mxu0 }
0x31ba   :  { %v16144_v22 = vadd.f32 %v15757_v5, %v12715_v62  ;;  %v6930_v21 = vpop.f32.mrb[117].mxu0 }
0x31bb   :  { %v12716_v51 = vpop.f32.mrb[118].mxu0  ;;  %v13242_v3 = vadd.f32 %v15757_v5, %v6930_v21 }
0x31bc   :  { %v16148_v61 = vadd.f32 %v15757_v5, %v12716_v51  ;;  %v6933_v35 = vpop.f32.mrb[119].mxu0  ;;  %v6955_v33 = vsel %vm58_vm0, %v16144_v22, 0.0  ;;  %v6967_v57 = vmul.f32 %v16144_v22, %v16144_v22 }
0x31bd   :  { %6956 = vadd.xlane.f32.xlu0 %v6955_v33  ;;  %v13244_v13 = vadd.f32 %v15757_v5, %v6933_v35  ;;  %v6949_v1 = vsel %vm58_vm0, %v13242_v3, 0.0  ;;  %v6965_v32 = vmul.f32 %v13242_v3, %v13242_v3 }
0x31be   :  { %v6958_v47 = vsel %vm58_vm0, %v16148_v61, 0.0  ;;  %v6968_v58 = vmul.f32 %v16148_v61, %v16148_v61  ;;  %v6975_v19 = vsel %vm58_vm0, %v6967_v57, 0.0 }
0x31bf   :  { %6959 = vadd.xlane.f32.xlu1 %v6958_v47  ;;  %v6952_v46 = vsel %vm58_vm0, %v13244_v13, 0.0  ;;  %v6966_v25 = vmul.f32 %v13244_v13, %v13244_v13  ;;  %v6969_v53 = vsel %vm58_vm0, %v6965_v32, 0.0 }
0x31c0   :  { %v6978_v27 = vsel %vm58_vm0, %v6968_v58, 0.0 }
0x31c1   :  { %6950 = vadd.xlane.f32.xlu0 %v6949_v1  ;;  %v6972_v5 = vsel %vm58_vm0, %v6966_v25, 0.0 }
0x31c3   :  { %6953 = vadd.xlane.f32.xlu1 %v6952_v46 }
0x31c5   :  { %6970 = vadd.xlane.f32.xlu0 %v6969_v53 }
0x31c7   :  { %6973 = vadd.xlane.f32.xlu1 %v6972_v5 }
0x31c9   :  { %6976 = vadd.xlane.f32.xlu0 %v6975_v19 }
0x31cb   :  { %6979 = vadd.xlane.f32.xlu1 %v6978_v27 }
0x324a   :  { %v6957_v29 = vpop.xlane.xlu0 %6956 }
0x324b   :  { %v6963_v37 = vmul.f32 0.03125, %v6957_v29 }
0x324c   :  { %v6960_v8 = vpop.xlane.xlu1 %6959 }
0x324d   :  { %v6964_v24 = vmul.f32 0.03125, %v6960_v8  ;;  %v6987_v47 = vmul.f32 %v6963_v37, %v6963_v37 }
0x324e   :  { %v6951_v11 = vpop.xlane.xlu0 %6950 }
0x324f   :  { %v6961_v31 = vmul.f32 0.03125, %v6951_v11  ;;  %v6988_v25 = vmul.f32 %v6964_v24, %v6964_v24 }
0x3250   :  { %v6954_v48 = vpop.xlane.xlu1 %6953 }
0x3251   :  { %v6962_v20 = vmul.f32 0.03125, %v6954_v48  ;;  %v6985_v16 = vmul.f32 %v6961_v31, %v6961_v31  ;;  %v6993_v8 = vsub.f32 %v13242_v3, %v6961_v31  ;;  %v16177_v3 = vld [vmem:[%s17315_s2 + $0xc] ss:$0 sm:$0xff] }
0x3252   :  { %v6971_v50 = vpop.xlane.xlu0 %6970 }
0x3253   :  { %v6981_v15 = vmul.f32 0.03125, %v6971_v50  ;;  %v6986_v21 = vmul.f32 %v6962_v20, %v6962_v20  ;;  %v6994_v48 = vsub.f32 %v13244_v13, %v6962_v20 }
0x3254   :  { %v6974_v62 = vpop.xlane.xlu1 %6973 }
0x3255   :  { %v6989_v51 = vsub.f32 %v6981_v15, %v6985_v16  ;;  %v6982_v35 = vmul.f32 0.03125, %v6974_v62  ;;  %v6995_v15 = vsub.f32 %v16144_v22, %v6963_v37 }
0x3256   :  { %v6977_v33 = vpop.xlane.xlu0 %6976 }
0x3257   :  { %v6997_v1 = vadd.f32 1e-05, %v6989_v51  ;;  %v6990_v32 = vsub.f32 %v6982_v35, %v6986_v21  ;;  %v6983_v46 = vmul.f32 0.03125, %v6977_v33  ;;  %v16169_v21 = vld [vmem:[%s17315_s2 + $0xb] ss:$0 sm:$0xff]  ;;  %v6996_v33 = vsub.f32 %v16148_v61, %v6964_v24 }
0x3258   :  { %v6980_v53 = vpop.xlane.xlu1 %6979 }
0x3259   :  { %13752 = vrsqrt.f32 %v6997_v1  ;;  %v6998_v57 = vadd.f32 1e-05, %v6990_v32  ;;  %v6991_v5 = vsub.f32 %v6983_v46, %v6987_v47  ;;  %v6984_v58 = vmul.f32 0.03125, %v6980_v53 }
0x325b   :  { %13754 = vrsqrt.f32 %v6998_v57  ;;  %v6999_v19 = vadd.f32 1e-05, %v6991_v5  ;;  %v6992_v27 = vsub.f32 %v6984_v58, %v6988_v25 }
0x325d   :  { %13756 = vrsqrt.f32 %v6999_v19  ;;  %v7000_v29 = vadd.f32 1e-05, %v6992_v27 }
0x325f   :  { %13758 = vrsqrt.f32 %v7000_v29 }
0x3263   :  { %v13753_v11 = vpop.eup %13752 }
0x3264   :  { %v7005_v50 = vmul.f32 %v13753_v11, %v6993_v8 }
0x3265   :  { %v13755_v16 = vpop.eup %13754 }
0x3266   :  { %v7006_v62 = vmul.f32 %v13755_v16, %v6994_v48  ;;  %v7009_v51 = vmul.f32 %v16169_v21, %v7005_v50  ;;  %v16227_v16 = vld [vmem:[%s17314_s1 + $0x80] sm:$0xff]  }
0x3267   :  { %v13757_v35 = vpop.eup %13756 }
0x3268   :  { %v7010_v47 = vmul.f32 %v16169_v21, %v7006_v62  ;;  %v7013_v22 = vadd.f32 %v16177_v3, %v7009_v51  ;;  %v7007_v13 = vmul.f32 %v13757_v35, %v6995_v15  ;;  %v16234_v35 = vld [vmem:[%s17314_s1 + $0x88] sm:$0xff]  }
0x3269   :  { %v13759_v31 = vpop.eup %13758 }
0x326a   :  { %v7014_v20 = vadd.f32 %v16177_v3, %v7010_v47  ;;  %v7017_v37 = vmax.f32 %v7013_v22, 0.0  ;;  %v7008_v1 = vmul.f32 %v13759_v31, %v6996_v33  ;;  %v7011_v32 = vmul.f32 %v16169_v21, %v7007_v13  ;;  %v16250_v33 = vld [vmem:[%s17314_s1 + $0x98] sm:$0xff]  }
0x326c   :  { %v7018_v46 = vmax.f32 %v7014_v20, 0.0  ;;  %v7012_v61 = vmul.f32 %v16169_v21, %v7008_v1  ;;  %v7015_v24 = vadd.f32 %v16177_v3, %v7011_v32  ;;  %v16185_v25 = vadd.f32 %v7017_v37, %v15988_v14  ;;  %v16270_v1 = vld [vmem:[%s17315_s2 + $0x1] ss:$0 sm:$0xff] }
0x326e   :  { %v16188_v53 = vadd.f32 %v7018_v46, %v15991_v45  ;;  %v7016_v57 = vadd.f32 %v16177_v3, %v7012_v61  ;;  %v7019_v5 = vmax.f32 %v7015_v24, 0.0  ;;  %v16204_v45 = vld [vmem:[%s17314_s1 + $0x70] sm:$0xff]  }
0x3270   :  { %v7025_v58 = vpack.c.bf16 %v16188_v53, %v16185_v25  ;;  %v7020_v19 = vmax.f32 %v7016_v57, 0.0  ;;  %v16194_v27 = vadd.f32 %v7019_v5, %v15997_v2  ;;  %v16215_v2 = vld [vmem:[%s17314_s1 + $0x78] sm:$0xff]  }
0x3272   :  { %12717 = vmatprep.subr.bf16.mxu1 %v7025_v58  ;;  %v16197_v29 = vadd.f32 %v7020_v19, %v16000_v41 }
0x3273   :  { %12718 = vmatpush3.bf16.msra.mxu1 %v7025_v58 }
0x3274   :  { %v7026_v14 = vpack.c.bf16 %v16197_v29, %v16194_v27 }
0x3276   :  { %12719 = vmatprep.subr.bf16.mxu1 %v7026_v14 }
0x3277   :  { %12720 = vmatpush3.bf16.msra.mxu1 %v7026_v14 }
0x3278   :  { %12729 = vmatprep.subr.bf16.mxu1 %v16204_v45 }
0x327a   :  { %12722 = vmatmul.mubr.msk.bf16.vlgmr.msra.gmra.mrb[124].mxu1 %vm58_vm0, %v15802_v10 }
0x327b   :  { %12725 = vmatprep.mubr.msk.bf16.mxu1 %vm58_vm0, %v15809_v17  ;;  %12730 = vmatpush3.bf16.msra.mxu1 %v16204_v45 }
0x327c   :  { %12731 = vmatprep.subr.bf16.mxu1 %v16215_v2 }
0x327f   :  { %12732 = vmatpush3.bf16.msra.mxu1 %v16215_v2 }
0x3280   :  { %12737 = vmatprep.subr.bf16.mxu1 %v15819_v43 }
0x3282   :  { %12726 = vmatmul.mubr.msk.bf16.gmra.mrb[128].mxu1 %vm58_vm0, %v15825_v28 }
0x334d   :  { %v12723_v10 = vpop.f32.mrb[124].mxu1 }
0x334e   :  { %v7061_v41 = vpop.f32.mrb[125].mxu1 }
0x334f   :  { %v12724_v8 = vpop.f32.mrb[126].mxu1 }
0x3350   :  { %v7093_v17 = vpack.c.bf16 %v12724_v8, %v12723_v10  ;;  %v7064_v11 = vpop.f32.mrb[127].mxu1 }
0x3351   :  { %v7092_v48 = vpack.c.bf16 %v7064_v11, %v7061_v41 }
0x3353   :  { %12733 = vmatprep.mubr.msk.bf16.mxu1 %vm58_vm0, %v7092_v48 }
0x3354   :  { %12734 = vmatmul.mubr.msk.bf16.vlgmr.msra.gmra.mrb[132].mxu1 %vm58_vm0, %v7093_v17 }
0x3355   :  { %v12727_v50 = vpop.f32.mrb[128].mxu1  ;;  %12738 = vmatpush3.bf16.msra.mxu1 %v16227_v16 }
0x3356   :  { %v7077_v43 = vpop.f32.mrb[129].mxu1  ;;  %12739 = vmatprep.subr.bf16.mxu1 %v15835_v59  ;;  %v16244_v59 = vld [vmem:[%s17314_s1 + $0x90] sm:$0xff]  }
0x3357   :  { %v12728_v28 = vpop.f32.mrb[130].mxu1 }
0x3358   :  { %v7095_v15 = vpack.c.bf16 %v12728_v28, %v12727_v50  ;;  %v7080_v62 = vpop.f32.mrb[131].mxu1 }
0x3359   :  { %v7094_v51 = vpack.c.bf16 %v7080_v62, %v7077_v43  ;;  %12740 = vmatpush3.bf16.msra.mxu1 %v16234_v35 }
0x335a   :  { %12745 = vmatprep.subr.bf16.mxu1 %v15842_v0  ;;  %v16258_v0 = vld [vmem:[%s17314_s1 + $0x20] sm:$0xff]  }
0x335b   :  { %12741 = vmatprep.mubr.msk.bf16.mxu1 %vm58_vm0, %v7094_v51 }
0x3360   :  { %12742 = vmatmul.mubr.msk.bf16.vlgmr.msra.gmra.mrb[132].mxu1 %vm58_vm0, %v7095_v15 }
0x3361   :  { %12749 = vmatprep.mubr.msk.bf16.mxu1 %vm58_vm0, %v7025_v58  ;;  %12746 = vmatpush3.bf16.msra.mxu1 %v16244_v59 }
0x3362   :  { %12747 = vmatprep.subr.bf16.mxu1 %v16250_v33 }
0x3365   :  { %12748 = vmatpush3.bf16.msra.mxu1 %v16250_v33 }
0x336c   :  { %12750 = vmatmul.mubr.msk.bf16.vlgmr.msra.gmra.mrb[132].mxu1 %vm58_vm0, %v7026_v14 }
0x336d   :  { %12793 = vmatprep.mubr.msk.bf16.mxu1 %vm58_vm0, %v16258_v0 }
0x343f   :  { %v12751_v47 = vpop.f32.mrb[132].mxu1 }
0x3440   :  { %v13245_v22 = vadd.f32 %v15857_v38, %v12751_v47  ;;  %v7254_v13 = vpop.f32.mrb[133].mxu1 }
0x3441   :  { %v13246_v31 = vadd.f32 %v15857_v38, %v7254_v13  ;;  %v12752_v20 = vpop.f32.mrb[134].mxu1 }
0x3442   :  { %v16265_v37 = vadd.f32 %v13245_v22, %v14247_v52  ;;  %v13247_v32 = vadd.f32 %v16270_v1, %v12752_v20  ;;  %v7257_v46 = vpop.f32.mrb[135].mxu1 }
0x3443   :  { %v13248_v61 = vadd.f32 %v16270_v1, %v7257_v46  ;;  %v7273_v24 = vadd.f32 %v13246_v31, %v14235_v40 }
0x3444   :  { %v16276_v57 = vadd.f32 %v13247_v32, %v14237_v44  ;;  %v7283_v38 = vsel %vm58_vm0, %v16265_v37, 0.0  ;;  %v7295_v17 = vmul.f32 %v16265_v37, %v16265_v37 }
0x3445   :  { %7284 = vadd.xlane.f32.xlu0 %v7283_v38  ;;  %v7274_v5 = vadd.f32 %v13248_v61, %v14242_v49  ;;  %v7277_v19 = vsel %vm58_vm0, %v7273_v24, 0.0  ;;  %v7293_v14 = vmul.f32 %v7273_v24, %v7273_v24 }
0x3446   :  { %v7286_v58 = vsel %vm58_vm0, %v16276_v57, 0.0  ;;  %v7296_v48 = vmul.f32 %v16276_v57, %v16276_v57  ;;  %v7303_v50 = vsel %vm58_vm0, %v7295_v17, 0.0 }
0x3447   :  { %7287 = vadd.xlane.f32.xlu1 %v7286_v58  ;;  %v7280_v10 = vsel %vm58_vm0, %v7274_v5, 0.0  ;;  %v7294_v41 = vmul.f32 %v7274_v5, %v7274_v5  ;;  %v7297_v8 = vsel %vm58_vm0, %v7293_v14, 0.0 }
0x3448   :  { %v7306_v43 = vsel %vm58_vm0, %v7296_v48, 0.0 }
0x3449   :  { %7278 = vadd.xlane.f32.xlu0 %v7277_v19  ;;  %v7300_v11 = vsel %vm58_vm0, %v7294_v41, 0.0 }
0x344b   :  { %7281 = vadd.xlane.f32.xlu1 %v7280_v10 }
0x344d   :  { %7298 = vadd.xlane.f32.xlu0 %v7297_v8 }
0x344f   :  { %7301 = vadd.xlane.f32.xlu1 %v7300_v11 }
0x3451   :  { %7304 = vadd.xlane.f32.xlu0 %v7303_v50 }
0x3453   :  { %7307 = vadd.xlane.f32.xlu1 %v7306_v43 }
0x34d2   :  { %v7285_v28 = vpop.xlane.xlu0 %7284 }
0x34d3   :  { %v7291_v31 = vmul.f32 0.03125, %v7285_v28 }
0x34d4   :  { %v7288_v15 = vpop.xlane.xlu1 %7287 }
0x34d5   :  { %v7292_v46 = vmul.f32 0.03125, %v7288_v15  ;;  %v7315_v10 = vmul.f32 %v7291_v31, %v7291_v31 }
0x34d6   :  { %v7279_v62 = vpop.xlane.xlu0 %7278 }
0x34d7   :  { %v7289_v51 = vmul.f32 0.03125, %v7279_v62  ;;  %v7316_v11 = vmul.f32 %v7292_v46, %v7292_v46 }
0x34d8   :  { %v7282_v47 = vpop.xlane.xlu1 %7281 }
0x34d9   :  { %v7290_v22 = vmul.f32 0.03125, %v7282_v47  ;;  %v7313_v20 = vmul.f32 %v7289_v51, %v7289_v51 }
0x34da   :  { %v7299_v13 = vpop.xlane.xlu0 %7298 }
0x34db   :  { %v7309_v32 = vmul.f32 0.03125, %v7299_v13  ;;  %v7314_v38 = vmul.f32 %v7290_v22, %v7290_v22  ;;  %v7321_v13 = vsub.f32 %v7273_v24, %v7289_v51 }
0x34dc   :  { %v7302_v61 = vpop.xlane.xlu1 %7301 }
0x34dd   :  { %v7317_v58 = vsub.f32 %v7309_v32, %v7313_v20  ;;  %v7310_v19 = vmul.f32 0.03125, %v7302_v61  ;;  %v7322_v32 = vsub.f32 %v7274_v5, %v7290_v22  ;;  %v16302_v5 = vld [vmem:[%s17315_s2 + $0x2] ss:$0 sm:$0xff] }
0x34de   :  { %v7305_v14 = vpop.xlane.xlu0 %7304 }
0x34df   :  { %v7325_v41 = vadd.f32 1e-05, %v7317_v58  ;;  %v7318_v8 = vsub.f32 %v7310_v19, %v7314_v38  ;;  %v7311_v17 = vmul.f32 0.03125, %v7305_v14  ;;  %v7323_v38 = vsub.f32 %v16265_v37, %v7291_v31 }
0x34e0   :  { %v7308_v48 = vpop.xlane.xlu1 %7307 }
0x34e1   :  { %13760 = vrsqrt.f32 %v7325_v41  ;;  %v7326_v50 = vadd.f32 1e-05, %v7318_v8  ;;  %v7319_v43 = vsub.f32 %v7311_v17, %v7315_v10  ;;  %v7312_v62 = vmul.f32 0.03125, %v7308_v48 }
0x34e2   :  { %v7324_v10 = vsub.f32 %v16276_v57, %v7292_v46 }
0x34e3   :  { %13762 = vrsqrt.f32 %v7326_v50  ;;  %v7327_v28 = vadd.f32 1e-05, %v7319_v43  ;;  %v7320_v47 = vsub.f32 %v7312_v62, %v7316_v11  ;;  %v16316_v62 = vld [vmem:[%s17314_s1 + $0xa0] sm:$0xff]  }
0x34e4   :  { %17418 = vst [vmem:[#allocation11_spill] sm:$0xff] %v16316_v62 }
0x34e5   :  { %13764 = vrsqrt.f32 %v7327_v28  ;;  %v7328_v15 = vadd.f32 1e-05, %v7320_v47  ;;  %v16322_v28 = vld [vmem:[%s17314_s1 + $0x8] sm:$0xff]   ;;  %v16329_v47 = vld [vmem:[%s17314_s1 + $0x10] sm:$0xff]  }
0x34e7   :  { %13766 = vrsqrt.f32 %v7328_v15  ;;  %v16337_v15 = vld [vmem:[%s17314_s1 + $0xa8] sm:$0xff]  }
0x34e8   :  { %17419 = vst [vmem:[#allocation12_spill] sm:$0xff] %v16337_v15 }
0x34eb   :  { %v13761_v20 = vpop.eup %13760 }
0x34ec   :  { %v7333_v61 = vmul.f32 %v13761_v20, %v7321_v13  ;;  %v16345_v13 = vld [vmem:[%s17314_s1 + $0x18] sm:$0xff]  }
0x34ed   :  { %v13763_v49 = vpop.eup %13762 }
0x34ee   :  { %v7334_v58 = vmul.f32 %v13763_v49, %v7322_v32  ;;  %v7337_v19 = vmul.f32 %v15889_v63, %v7333_v61 }
0x34ef   :  { %v13765_v14 = vpop.eup %13764 }
0x34f0   :  { %v7338_v41 = vmul.f32 %v15889_v63, %v7334_v58  ;;  %v7341_v8 = vadd.f32 %v15897_v54, %v7337_v19  ;;  %v7335_v17 = vmul.f32 %v13765_v14, %v7323_v38  ;;  %v16309_v63 = vld [vmem:[%s17315_s2 + $0x3] ss:$0 sm:$0xff] }
0x34f1   :  { %v13767_v11 = vpop.eup %13766 }
0x34f2   :  { %v7342_v24 = vadd.f32 %v15897_v54, %v7338_v41  ;;  %v7336_v51 = vmul.f32 %v13767_v11, %v7324_v10  ;;  %v7339_v49 = vmul.f32 %v16302_v5, %v7335_v17  ;;  %v7345_v37 = vmax.f32 %v7341_v8, 0.0 }
0x34f4   :  { %v7346_v22 = vmax.f32 %v7342_v24, 0.0  ;;  %v7340_v57 = vmul.f32 %v16302_v5, %v7336_v51  ;;  %v7343_v31 = vadd.f32 %v16309_v63, %v7339_v49  ;;  %v16361_v24 = vld [vmem:[%s17314_s1 + $0xb8] sm:$0xff]   ;;  %v16377_v51 = vld [vmem:[%s17314_s1 + $0xc8] sm:$0xff]   ;;  %v16387_v49 = vld [vmem:[%s17315_s2 + $0x4] ss:$0 sm:$0xff] }
0x34f5   :  { %17421 = vst [vmem:[#allocation14_spill] sm:$0xff] %v16361_v24  ;;  %17423 = vst [vmem:[#allocation16_spill] sm:$0xff] %v16377_v51 }
0x34f6   :  { %v7349_v54 = vpack.c.bf16 %v7346_v22, %v7345_v37  ;;  %v7344_v46 = vadd.f32 %v16309_v63, %v7340_v57  ;;  %v7347_v48 = vmax.f32 %v7343_v31, 0.0  ;;  %17424 = vst [vmem:[#allocation17_spill] sm:$0xff] %v16387_v49 }
0x34f8   :  { %12753 = vmatprep.subr.bf16.mxu0 %v7349_v54  ;;  %v7348_v50 = vmax.f32 %v7344_v46, 0.0 }
0x34f9   :  { %12754 = vmatpush3.bf16.msra.mxu0 %v7349_v54 }
0x34fa   :  { %v7350_v43 = vpack.c.bf16 %v7348_v50, %v7347_v48 }
0x34fc   :  { %12755 = vmatprep.subr.bf16.mxu0 %v7350_v43 }
0x34fd   :  { %12756 = vmatpush3.bf16.msra.mxu0 %v7350_v43 }
0x34fe   :  { %12765 = vmatprep.subr.bf16.mxu0 %v16316_v62 }
0x3500   :  { %12758 = vmatmul.mubr.msk.bf16.vlgmr.msra.gmra.mrb[120].mxu0 %vm58_vm0, %v16322_v28 }
0x3501   :  { %12761 = vmatprep.mubr.msk.bf16.mxu0 %vm58_vm0, %v16329_v47  ;;  %12766 = vmatpush3.bf16.msra.mxu0 %v16316_v62 }
0x3502   :  { %12767 = vmatprep.subr.bf16.mxu0 %v16337_v15 }
0x3505   :  { %12768 = vmatpush3.bf16.msra.mxu0 %v16337_v15 }
0x3506   :  { %12773 = vmatprep.subr.bf16.mxu0 %v15916_v9  ;;  %v16354_v9 = vld [vmem:[%s17314_s1 + $0xb0] sm:$0xff]  }
0x3507   :  { %17420 = vst [vmem:[#allocation13_spill] sm:$0xff] %v16354_v9 }
0x3508   :  { %12762 = vmatmul.mubr.msk.bf16.gmra.mrb[124].mxu0 %vm58_vm0, %v16345_v13 }
0x35d3   :  { %v12759_v20 = vpop.f32.mrb[120].mxu0 }
0x35d4   :  { %v7385_v32 = vpop.f32.mrb[121].mxu0 }
0x35d5   :  { %v12760_v61 = vpop.f32.mrb[122].mxu0 }
0x35d6   :  { %v7417_v38 = vpack.c.bf16 %v12760_v61, %v12759_v20  ;;  %v7388_v58 = vpop.f32.mrb[123].mxu0 }
0x35d7   :  { %v7416_v19 = vpack.c.bf16 %v7388_v58, %v7385_v32 }
0x35d9   :  { %12769 = vmatprep.mubr.msk.bf16.mxu0 %vm58_vm0, %v7416_v19 }
0x35da   :  { %12770 = vmatmul.mubr.msk.bf16.vlgmr.msra.gmra.mrb[128].mxu0 %vm58_vm0, %v7417_v38 }
0x35db   :  { %v12763_v14 = vpop.f32.mrb[124].mxu0  ;;  %12774 = vmatpush3.bf16.msra.mxu0 %v16354_v9 }
0x35dc   :  { %v7401_v10 = vpop.f32.mrb[125].mxu0  ;;  %12775 = vmatprep.subr.bf16.mxu0 %v15927_v6  ;;  %v16371_v6 = vld [vmem:[%s17314_s1 + $0xc0] sm:$0xff]  }
0x35dd   :  { %v12764_v41 = vpop.f32.mrb[126].mxu0  ;;  %17422 = vst [vmem:[#allocation15_spill] sm:$0xff] %v16371_v6 }
0x35de   :  { %v7419_v8 = vpack.c.bf16 %v12764_v41, %v12763_v14  ;;  %v7404_v17 = vpop.f32.mrb[127].mxu0 }
0x35df   :  { %v7418_v11 = vpack.c.bf16 %v7404_v17, %v7401_v10  ;;  %12776 = vmatpush3.bf16.msra.mxu0 %v16361_v24 }
0x35e0   :  { %12781 = vmatprep.subr.bf16.mxu0 %v15934_v4 }
0x35e1   :  { %12777 = vmatprep.mubr.msk.bf16.mxu0 %vm58_vm0, %v7418_v11 }
0x35e6   :  { %12778 = vmatmul.mubr.msk.bf16.vlgmr.msra.gmra.mrb[128].mxu0 %vm58_vm0, %v7419_v8 }
0x35e7   :  { %12785 = vmatprep.mubr.msk.bf16.mxu0 %vm58_vm0, %v7349_v54  ;;  %12782 = vmatpush3.bf16.msra.mxu0 %v16371_v6 }
0x35e8   :  { %12783 = vmatprep.subr.bf16.mxu0 %v16377_v51 }
0x35eb   :  { %12784 = vmatpush3.bf16.msra.mxu0 %v16377_v51 }
0x35f2   :  { %12786 = vmatmul.mubr.msk.bf16.vlgmr.msra.gmra.mrb[128].mxu0 %vm58_vm0, %v7350_v43 }
0x35f3   :  { %12829 = vmatprep.mubr.msk.bf16.mxu0 %vm58_vm0, %v16258_v0 }
0x36c5   :  { %v12787_v4 = vpop.f32.mrb[128].mxu0 }
0x36c6   :  { %v16390_v37 = vadd.f32 %v16387_v49, %v12787_v4  ;;  %v7578_v22 = vpop.f32.mrb[129].mxu0 }
0x36c7   :  { %v12788_v57 = vpop.f32.mrb[130].mxu0  ;;  %v13250_v31 = vadd.f32 %v16387_v49, %v7578_v22 }
0x36c8   :  { %v16394_v54 = vadd.f32 %v16387_v49, %v12788_v57  ;;  %v7581_v46 = vpop.f32.mrb[131].mxu0  ;;  %v7603_v48 = vsel %vm58_vm0, %v16390_v37, 0.0  ;;  %v7615_v19 = vmul.f32 %v16390_v37, %v16390_v37 }
0x36c9   :  { %7604 = vadd.xlane.f32.xlu0 %v7603_v48  ;;  %v13252_v50 = vadd.f32 %v16387_v49, %v7581_v46  ;;  %v7597_v20 = vsel %vm58_vm0, %v13250_v31, 0.0  ;;  %v7613_v32 = vmul.f32 %v13250_v31, %v13250_v31 }
0x36ca   :  { %v7606_v43 = vsel %vm58_vm0, %v16394_v54, 0.0  ;;  %v7616_v10 = vmul.f32 %v16394_v54, %v16394_v54  ;;  %v7623_v41 = vsel %vm58_vm0, %v7615_v19, 0.0 }
0x36cb   :  { %7607 = vadd.xlane.f32.xlu1 %v7606_v43  ;;  %v7600_v61 = vsel %vm58_vm0, %v13252_v50, 0.0  ;;  %v7614_v38 = vmul.f32 %v13252_v50, %v13252_v50  ;;  %v7617_v58 = vsel %vm58_vm0, %v7613_v32, 0.0 }
0x36cc   :  { %v7626_v8 = vsel %vm58_vm0, %v7616_v10, 0.0 }
0x36cd   :  { %7598 = vadd.xlane.f32.xlu0 %v7597_v20  ;;  %v7620_v14 = vsel %vm58_vm0, %v7614_v38, 0.0 }
0x36cf   :  { %7601 = vadd.xlane.f32.xlu1 %v7600_v61 }
0x36d1   :  { %7618 = vadd.xlane.f32.xlu0 %v7617_v58 }
0x36d3   :  { %7621 = vadd.xlane.f32.xlu1 %v7620_v14 }
0x36d5   :  { %7624 = vadd.xlane.f32.xlu0 %v7623_v41 }
0x36d7   :  { %7627 = vadd.xlane.f32.xlu1 %v7626_v8 }
0x3756   :  { %v7605_v17 = vpop.xlane.xlu0 %7604 }
0x3757   :  { %v7611_v43 = vmul.f32 0.03125, %v7605_v17 }
0x3758   :  { %v7608_v11 = vpop.xlane.xlu1 %7607 }
0x3759   :  { %v7612_v61 = vmul.f32 0.03125, %v7608_v11  ;;  %v7635_v41 = vmul.f32 %v7611_v43, %v7611_v43 }
0x375a   :  { %v7599_v4 = vpop.xlane.xlu0 %7598 }
0x375b   :  { %v7609_v22 = vmul.f32 0.03125, %v7599_v4  ;;  %v7636_v6 = vmul.f32 %v7612_v61, %v7612_v61 }
0x375c   :  { %v7602_v57 = vpop.xlane.xlu1 %7601 }
0x375d   :  { %v7610_v46 = vmul.f32 0.03125, %v7602_v57  ;;  %v7633_v20 = vmul.f32 %v7609_v22, %v7609_v22 }
0x375e   :  { %v7619_v48 = vpop.xlane.xlu0 %7618 }
0x375f   :  { %v7629_v32 = vmul.f32 0.03125, %v7619_v48  ;;  %v7634_v58 = vmul.f32 %v7610_v46, %v7610_v46  ;;  %v7641_v48 = vsub.f32 %v13250_v31, %v7609_v22 }
0x3760   :  { %v7622_v38 = vpop.xlane.xlu1 %7621 }
0x3761   :  { %v7637_v14 = vsub.f32 %v7629_v32, %v7633_v20  ;;  %v7630_v49 = vmul.f32 0.03125, %v7622_v38  ;;  %v7642_v32 = vsub.f32 %v13252_v50, %v7610_v46 }
0x3762   :  { %v7625_v19 = vpop.xlane.xlu0 %7624 }
0x3763   :  { %v7645_v51 = vadd.f32 1e-05, %v7637_v14  ;;  %v7638_v10 = vsub.f32 %v7630_v49, %v7634_v58  ;;  %v7631_v8 = vmul.f32 0.03125, %v7625_v19  ;;  %v7643_v49 = vsub.f32 %v16390_v37, %v7611_v43  ;;  %v16420_v37 = vld [vmem:[%s17315_s2 + $0x5] ss:$0 sm:$0xff] }
0x3764   :  { %v7628_v24 = vpop.xlane.xlu1 %7627  ;;  %v7644_v19 = vsub.f32 %v16394_v54, %v7612_v61 }
0x3765   :  { %13768 = vrsqrt.f32 %v7645_v51  ;;  %v7646_v4 = vadd.f32 1e-05, %v7638_v10  ;;  %v7639_v9 = vsub.f32 %v7631_v8, %v7635_v41  ;;  %v7632_v57 = vmul.f32 0.03125, %v7628_v24 }
0x3767   :  { %13770 = vrsqrt.f32 %v7646_v4  ;;  %v7647_v17 = vadd.f32 1e-05, %v7639_v9  ;;  %v7640_v15 = vsub.f32 %v7632_v57, %v7636_v6 }
0x3769   :  { %13772 = vrsqrt.f32 %v7647_v17  ;;  %v7648_v11 = vadd.f32 1e-05, %v7640_v15 }
0x376b   :  { %13774 = vrsqrt.f32 %v7648_v11 }
0x376f   :  { %v13769_v20 = vpop.eup %13768 }
0x3770   :  { %v7653_v38 = vmul.f32 %v13769_v20, %v7641_v48 }
0x3771   :  { %v13771_v62 = vpop.eup %13770 }
0x3772   :  { %v7654_v58 = vmul.f32 %v13771_v62, %v7642_v32  ;;  %v7657_v14 = vmul.f32 %v15972_v34, %v7653_v38  ;;  %v16473_v38 = vld [vmem:[%s17314_s1 + $0xe0] sm:$0xff]  }
0x3773   :  { %v13773_v51 = vpop.eup %13772 }
0x3774   :  { %v7658_v24 = vmul.f32 %v15972_v34, %v7654_v58  ;;  %v7661_v9 = vadd.f32 %v15980_v26, %v7657_v14  ;;  %v7655_v6 = vmul.f32 %v13773_v51, %v7643_v49  ;;  %v16427_v34 = vld [vmem:[%s17315_s2 + $0x6] ss:$0 sm:$0xff]  ;;  %v16480_v51 = vld [vmem:[%s17314_s1 + $0xe8] sm:$0xff]  }
0x3775   :  { %v13775_v15 = vpop.eup %13774 }
0x3776   :  { %v7662_v31 = vadd.f32 %v15980_v26, %v7658_v24  ;;  %v7665_v22 = vmax.f32 %v7661_v9, 0.0  ;;  %v7656_v50 = vmul.f32 %v13775_v15, %v7644_v19  ;;  %v7659_v62 = vmul.f32 %v16420_v37, %v7655_v6  ;;  %v16496_v19 = vld [vmem:[%s17314_s1 + $0xf8] sm:$0xff]   ;;  %v16511_v9 = vld [vmem:[%s17315_s2 + $0x7] ss:$0 sm:$0xff] }
0x3777   :  { %17425 = vst [vmem:[#allocation18_spill] sm:$0xff] %v16496_v19  ;;  %17426 = vst [vmem:[#allocation6_spill] sm:$0xff] %v16511_v9 }
0x3778   :  { %v7666_v46 = vmax.f32 %v7662_v31, 0.0  ;;  %v7660_v54 = vmul.f32 %v16420_v37, %v7656_v50  ;;  %v7663_v43 = vadd.f32 %v16427_v34, %v7659_v62  ;;  %v16431_v26 = vadd.f32 %v7665_v22, %v16185_v25 }
0x377a   :  { %v16434_v61 = vadd.f32 %v7666_v46, %v16188_v53  ;;  %v7664_v41 = vadd.f32 %v16427_v34, %v7660_v54  ;;  %v7667_v10 = vmax.f32 %v7663_v43, 0.0  ;;  %v16450_v53 = vld [vmem:[%s17314_s1 + $0xd0] sm:$0xff]  }
0x377c   :  { %v7673_v8 = vpack.c.bf16 %v16434_v61, %v16431_v26  ;;  %v7668_v4 = vmax.f32 %v7664_v41, 0.0  ;;  %v16440_v57 = vadd.f32 %v7667_v10, %v16194_v27  ;;  %v16461_v27 = vld [vmem:[%s17314_s1 + $0xd8] sm:$0xff]  }
0x377e   :  { %12789 = vmatprep.subr.bf16.mxu1 %v7673_v8  ;;  %v16443_v17 = vadd.f32 %v7668_v4, %v16197_v29 }
0x377f   :  { %12790 = vmatpush3.bf16.msra.mxu1 %v7673_v8 }
0x3780   :  { %v7674_v25 = vpack.c.bf16 %v16443_v17, %v16440_v57 }
0x3782   :  { %12791 = vmatprep.subr.bf16.mxu1 %v7674_v25 }
0x3783   :  { %12792 = vmatpush3.bf16.msra.mxu1 %v7674_v25 }
0x3784   :  { %12801 = vmatprep.subr.bf16.mxu1 %v16450_v53 }
0x3786   :  { %12794 = vmatmul.mubr.msk.bf16.vlgmr.msra.gmra.mrb[136].mxu1 %vm58_vm0, %v16008_v60 }
0x3787   :  { %12797 = vmatprep.mubr.msk.bf16.mxu1 %vm58_vm0, %v16015_v42  ;;  %12802 = vmatpush3.bf16.msra.mxu1 %v16450_v53 }
0x3788   :  { %12803 = vmatprep.subr.bf16.mxu1 %v16461_v27 }
0x378b   :  { %12804 = vmatpush3.bf16.msra.mxu1 %v16461_v27 }
0x378c   :  { %12809 = vmatprep.subr.bf16.mxu1 %v16025_v56 }
0x378e   :  { %12798 = vmatmul.mubr.msk.bf16.gmra.mrb[140].mxu1 %vm58_vm0, %v16031_v7 }
0x3859   :  { %v12795_v60 = vpop.f32.mrb[136].mxu1 }
0x385a   :  { %v7709_v29 = vpop.f32.mrb[137].mxu1 }
0x385b   :  { %v12796_v11 = vpop.f32.mrb[138].mxu1 }
0x385c   :  { %v7741_v42 = vpack.c.bf16 %v12796_v11, %v12795_v60  ;;  %v7712_v48 = vpop.f32.mrb[139].mxu1 }
0x385d   :  { %v7740_v20 = vpack.c.bf16 %v7712_v48, %v7709_v29 }
0x385f   :  { %12805 = vmatprep.mubr.msk.bf16.mxu1 %vm58_vm0, %v7740_v20 }
0x3860   :  { %12806 = vmatmul.mubr.msk.bf16.vlgmr.msra.gmra.mrb[144].mxu1 %vm58_vm0, %v7741_v42 }
0x3861   :  { %v12799_v32 = vpop.f32.mrb[140].mxu1  ;;  %12810 = vmatpush3.bf16.msra.mxu1 %v16473_v38 }
0x3862   :  { %v7725_v56 = vpop.f32.mrb[141].mxu1  ;;  %12811 = vmatprep.subr.bf16.mxu1 %v16041_v12  ;;  %v16490_v12 = vld [vmem:[%s17314_s1 + $0xf0] sm:$0xff]  }
0x3863   :  { %v12800_v7 = vpop.f32.mrb[142].mxu1 }
0x3864   :  { %v7743_v49 = vpack.c.bf16 %v12800_v7, %v12799_v32  ;;  %v7728_v58 = vpop.f32.mrb[143].mxu1 }
0x3865   :  { %v7742_v14 = vpack.c.bf16 %v7728_v58, %v7725_v56  ;;  %12812 = vmatpush3.bf16.msra.mxu1 %v16480_v51 }
0x3866   :  { %12817 = vmatprep.subr.bf16.mxu1 %v16048_v18  ;;  %v16504_v18 = vld [vmem:[%s17314_s1] sm:$0xff]  }
0x3867   :  { %12813 = vmatprep.mubr.msk.bf16.mxu1 %vm58_vm0, %v7742_v14 }
0x386c   :  { %12814 = vmatmul.mubr.msk.bf16.vlgmr.msra.gmra.mrb[144].mxu1 %vm58_vm0, %v7743_v49 }
0x386d   :  { %12821 = vmatprep.mubr.msk.bf16.mxu1 %vm58_vm0, %v7673_v8  ;;  %12818 = vmatpush3.bf16.msra.mxu1 %v16490_v12 }
0x386e   :  { %12819 = vmatprep.subr.bf16.mxu1 %v16496_v19 }
0x3871   :  { %12820 = vmatpush3.bf16.msra.mxu1 %v16496_v19 }
0x3878   :  { %12822 = vmatmul.mubr.msk.bf16.vlgmr.msra.gmra.mrb[144].mxu1 %vm58_vm0, %v7674_v25 }
0x3879   :  { %12865 = vmatprep.mubr.msk.bf16.mxu1 %vm58_vm0, %v16504_v18 }
0x394b   :  { %v12823_v24 = vpop.f32.mrb[144].mxu1 }
0x394c   :  { %v16514_v6 = vadd.f32 %v16511_v9, %v12823_v24  ;;  %v7902_v15 = vpop.f32.mrb[145].mxu1 }
0x394d   :  { %v12824_v31 = vpop.f32.mrb[146].mxu1  ;;  %v13254_v22 = vadd.f32 %v16511_v9, %v7902_v15 }
0x394e   :  { %v16518_v50 = vadd.f32 %v16511_v9, %v12824_v31  ;;  %v7905_v62 = vpop.f32.mrb[147].mxu1  ;;  %v7927_v46 = vsel %vm58_vm0, %v16514_v6, 0.0  ;;  %v7939_v60 = vmul.f32 %v16514_v6, %v16514_v6 }
0x394f   :  { %7928 = vadd.xlane.f32.xlu0 %v7927_v46  ;;  %v13256_v54 = vadd.f32 %v16511_v9, %v7905_v62  ;;  %v7921_v41 = vsel %vm58_vm0, %v13254_v22, 0.0  ;;  %v7937_v10 = vmul.f32 %v13254_v22, %v13254_v22 }
0x3950   :  { %v7930_v43 = vsel %vm58_vm0, %v16518_v50, 0.0  ;;  %v7940_v11 = vmul.f32 %v16518_v50, %v16518_v50  ;;  %v7947_v42 = vsel %vm58_vm0, %v7939_v60, 0.0 }
0x3951   :  { %7931 = vadd.xlane.f32.xlu1 %v7930_v43  ;;  %v7924_v8 = vsel %vm58_vm0, %v13256_v54, 0.0  ;;  %v7938_v4 = vmul.f32 %v13256_v54, %v13256_v54  ;;  %v7941_v25 = vsel %vm58_vm0, %v7937_v10, 0.0 }
0x3952   :  { %v7950_v48 = vsel %vm58_vm0, %v7940_v11, 0.0 }
0x3953   :  { %7922 = vadd.xlane.f32.xlu0 %v7921_v41  ;;  %v7944_v29 = vsel %vm58_vm0, %v7938_v4, 0.0 }
0x3955   :  { %7925 = vadd.xlane.f32.xlu1 %v7924_v8 }
0x3957   :  { %7942 = vadd.xlane.f32.xlu0 %v7941_v25 }
0x3959   :  { %7945 = vadd.xlane.f32.xlu1 %v7944_v29 }
0x395b   :  { %7948 = vadd.xlane.f32.xlu0 %v7947_v42 }
0x395d   :  { %7951 = vadd.xlane.f32.xlu1 %v7950_v48 }
0x39dc   :  { %v7929_v20 = vpop.xlane.xlu0 %7928 }
0x39dd   :  { %v7935_v24 = vmul.f32 0.03125, %v7929_v20 }
0x39de   :  { %v7932_v32 = vpop.xlane.xlu1 %7931 }
0x39df   :  { %v7936_v62 = vmul.f32 0.03125, %v7932_v32  ;;  %v7959_v4 = vmul.f32 %v7935_v24, %v7935_v24 }
0x39e0   :  { %v7923_v56 = vpop.xlane.xlu0 %7922 }
0x39e1   :  { %v7933_v7 = vmul.f32 0.03125, %v7923_v56  ;;  %v7960_v11 = vmul.f32 %v7936_v62, %v7936_v62 }
0x39e2   :  { %v7926_v49 = vpop.xlane.xlu1 %7925 }
0x39e3   :  { %v7934_v58 = vmul.f32 0.03125, %v7926_v49  ;;  %v7957_v15 = vmul.f32 %v7933_v7, %v7933_v7 }
0x39e4   :  { %v7943_v14 = vpop.xlane.xlu0 %7942 }
0x39e5   :  { %v7953_v31 = vmul.f32 0.03125, %v7943_v14  ;;  %v7958_v43 = vmul.f32 %v7934_v58, %v7934_v58  ;;  %v7965_v14 = vsub.f32 %v13254_v22, %v7933_v7 }
0x39e6   :  { %v7946_v46 = vpop.xlane.xlu1 %7945 }
0x39e7   :  { %v7961_v41 = vsub.f32 %v7953_v31, %v7957_v15  ;;  %v7954_v10 = vmul.f32 0.03125, %v7946_v46  ;;  %v7966_v31 = vsub.f32 %v13256_v54, %v7934_v58  ;;  %v16544_v54 = vld [vmem:[%s17315_s2 + $0x8] ss:$0 sm:$0xff] }
0x39e8   :  { %v7949_v8 = vpop.xlane.xlu0 %7948 }
0x39e9   :  { %v7969_v25 = vadd.f32 1e-05, %v7961_v41  ;;  %v7962_v60 = vsub.f32 %v7954_v10, %v7958_v43  ;;  %v7955_v29 = vmul.f32 0.03125, %v7949_v8  ;;  %v7967_v43 = vsub.f32 %v16514_v6, %v7935_v24 }
0x39ea   :  { %v7952_v42 = vpop.xlane.xlu1 %7951 }
0x39eb   :  { %13776 = vrsqrt.f32 %v7969_v25  ;;  %v7970_v48 = vadd.f32 1e-05, %v7962_v60  ;;  %v7963_v56 = vsub.f32 %v7955_v29, %v7959_v4  ;;  %v7956_v49 = vmul.f32 0.03125, %v7952_v42 }
0x39ec   :  { %v7968_v4 = vsub.f32 %v16518_v50, %v7936_v62 }
0x39ed   :  { %13778 = vrsqrt.f32 %v7970_v48  ;;  %v7971_v20 = vadd.f32 1e-05, %v7963_v56  ;;  %v7964_v9 = vsub.f32 %v7956_v49, %v7960_v11  ;;  %v16558_v56 = vld [vmem:[%s17314_s1 + $0x100] sm:$0xff]   ;;  %v16564_v49 = vld [vmem:[%s17314_s1 + $0x28] sm:$0xff]  }
0x39ee   :  { %17427 = vst [vmem:[#allocation7_spill] sm:$0xff] %v16558_v56 }
0x39ef   :  { %13780 = vrsqrt.f32 %v7971_v20  ;;  %v7972_v32 = vadd.f32 1e-05, %v7964_v9  ;;  %v16571_v20 = vld [vmem:[%s17314_s1 + $0x30] sm:$0xff]  }
0x39f1   :  { %13782 = vrsqrt.f32 %v7972_v32  ;;  %v16579_v32 = vld [vmem:[%s17314_s1 + $0x108] sm:$0xff]  }
0x39f2   :  { %17428 = vst [vmem:[#allocation8_spill] sm:$0xff] %v16579_v32 }
0x39f5   :  { %v13777_v15 = vpop.eup %13776 }
0x39f6   :  { %v7977_v46 = vmul.f32 %v13777_v15, %v7965_v14  ;;  %v16587_v14 = vld [vmem:[%s17314_s1 + $0x38] sm:$0xff]  }
0x39f7   :  { %v13779_v19 = vpop.eup %13778 }
0x39f8   :  { %v7978_v41 = vmul.f32 %v13779_v19, %v7966_v31  ;;  %v7981_v10 = vmul.f32 %v16086_v55, %v7977_v46 }
0x39f9   :  { %v13781_v8 = vpop.eup %13780 }
0x39fa   :  { %v7982_v25 = vmul.f32 %v16086_v55, %v7978_v41  ;;  %v7985_v60 = vadd.f32 %v16094_v30, %v7981_v10  ;;  %v7979_v29 = vmul.f32 %v13781_v8, %v7967_v43  ;;  %v16551_v55 = vld [vmem:[%s17315_s2 + $0x9] ss:$0 sm:$0xff] }
0x39fb   :  { %v13783_v9 = vpop.eup %13782 }
0x39fc   :  { %v7986_v22 = vadd.f32 %v16094_v30, %v7982_v25  ;;  %v7980_v7 = vmul.f32 %v13783_v9, %v7968_v4  ;;  %v7983_v19 = vmul.f32 %v16544_v54, %v7979_v29  ;;  %v7989_v6 = vmax.f32 %v7985_v60, 0.0 }
0x39fe   :  { %v7990_v58 = vmax.f32 %v7986_v22, 0.0  ;;  %v7984_v50 = vmul.f32 %v16544_v54, %v7980_v7  ;;  %v7987_v24 = vadd.f32 %v16551_v55, %v7983_v19  ;;  %v16603_v22 = vld [vmem:[%s17314_s1 + $0x118] sm:$0xff]   ;;  %v16619_v7 = vld [vmem:[%s17314_s1 + $0x128] sm:$0xff]  }
0x39ff   :  { %17430 = vst [vmem:[#allocation10_spill] sm:$0xff] %v16603_v22  ;;  %17432 = vst [vmem:[#allocation20_spill] sm:$0xff] %v16619_v7  ;;  %v16629_v19 = vld [vmem:[%s17315_s2 + $0xa] ss:$0 sm:$0xff] }
0x3a00   :  { %v7993_v30 = vpack.c.bf16 %v7990_v58, %v7989_v6  ;;  %v7988_v62 = vadd.f32 %v16551_v55, %v7984_v50  ;;  %v7991_v11 = vmax.f32 %v7987_v24, 0.0  ;;  %17433 = vst [vmem:[#allocation21_spill] sm:$0xff] %v16629_v19 }
0x3a02   :  { %12825 = vmatprep.subr.bf16.mxu0 %v7993_v30  ;;  %v7992_v42 = vmax.f32 %v7988_v62, 0.0 }
0x3a03   :  { %12826 = vmatpush3.bf16.msra.mxu0 %v7993_v30 }
0x3a04   :  { %v7994_v48 = vpack.c.bf16 %v7992_v42, %v7991_v11 }
0x3a06   :  { %12827 = vmatprep.subr.bf16.mxu0 %v7994_v48 }
0x3a07   :  { %12828 = vmatpush3.bf16.msra.mxu0 %v7994_v48 }
0x3a08   :  { %12837 = vmatprep.subr.bf16.mxu0 %v16558_v56 }
0x3a0a   :  { %12830 = vmatmul.mubr.msk.bf16.vlgmr.msra.gmra.mrb[132].mxu0 %vm58_vm0, %v16564_v49 }
0x3a0b   :  { %12833 = vmatprep.mubr.msk.bf16.mxu0 %vm58_vm0, %v16571_v20  ;;  %12838 = vmatpush3.bf16.msra.mxu0 %v16558_v56 }
0x3a0c   :  { %12839 = vmatprep.subr.bf16.mxu0 %v16579_v32 }
0x3a0f   :  { %12840 = vmatpush3.bf16.msra.mxu0 %v16579_v32 }
0x3a10   :  { %12845 = vmatprep.subr.bf16.mxu0 %v16113_v39  ;;  %v16596_v39 = vld [vmem:[%s17314_s1 + $0x110] sm:$0xff]  }
0x3a11   :  { %17429 = vst [vmem:[#allocation9_spill] sm:$0xff] %v16596_v39 }
0x3a12   :  { %12834 = vmatmul.mubr.msk.bf16.gmra.mrb[136].mxu0 %vm58_vm0, %v16587_v14 }
0x3add   :  { %v12831_v15 = vpop.f32.mrb[132].mxu0 }
0x3ade   :  { %v8029_v31 = vpop.f32.mrb[133].mxu0 }
0x3adf   :  { %v12832_v46 = vpop.f32.mrb[134].mxu0 }
0x3ae0   :  { %v8061_v43 = vpack.c.bf16 %v12832_v46, %v12831_v15  ;;  %v8032_v41 = vpop.f32.mrb[135].mxu0 }
0x3ae1   :  { %v8060_v10 = vpack.c.bf16 %v8032_v41, %v8029_v31 }
0x3ae3   :  { %12841 = vmatprep.mubr.msk.bf16.mxu0 %vm58_vm0, %v8060_v10 }
0x3ae4   :  { %12842 = vmatmul.mubr.msk.bf16.vlgmr.msra.gmra.mrb[140].mxu0 %vm58_vm0, %v8061_v43 }
0x3ae5   :  { %v12835_v8 = vpop.f32.mrb[136].mxu0  ;;  %12846 = vmatpush3.bf16.msra.mxu0 %v16596_v39 }
0x3ae6   :  { %v8045_v4 = vpop.f32.mrb[137].mxu0  ;;  %12847 = vmatprep.subr.bf16.mxu0 %v16124_v23  ;;  %v16613_v23 = vld [vmem:[%s17314_s1 + $0x120] sm:$0xff]  }
0x3ae7   :  { %v12836_v25 = vpop.f32.mrb[138].mxu0  ;;  %17431 = vst [vmem:[#allocation19_spill] sm:$0xff] %v16613_v23 }
0x3ae8   :  { %v8063_v60 = vpack.c.bf16 %v12836_v25, %v12835_v8  ;;  %v8048_v29 = vpop.f32.mrb[139].mxu0 }
0x3ae9   :  { %v8062_v9 = vpack.c.bf16 %v8048_v29, %v8045_v4  ;;  %12848 = vmatpush3.bf16.msra.mxu0 %v16603_v22 }
0x3aea   :  { %12853 = vmatprep.subr.bf16.mxu0 %v16131_v36 }
0x3aeb   :  { %12849 = vmatprep.mubr.msk.bf16.mxu0 %vm58_vm0, %v8062_v9 }
0x3af0   :  { %12850 = vmatmul.mubr.msk.bf16.vlgmr.msra.gmra.mrb[140].mxu0 %vm58_vm0, %v8063_v60 }
0x3af1   :  { %12857 = vmatprep.mubr.msk.bf16.mxu0 %vm58_vm0, %v7993_v30  ;;  %12854 = vmatpush3.bf16.msra.mxu0 %v16613_v23 }
0x3af2   :  { %12855 = vmatprep.subr.bf16.mxu0 %v16619_v7 }
0x3af5   :  { %12856 = vmatpush3.bf16.msra.mxu0 %v16619_v7 }
0x3afc   :  { %12858 = vmatmul.mubr.msk.bf16.vlgmr.msra.gmra.mrb[140].mxu0 %vm58_vm0, %v7994_v48 }
0x3afd   :  { %12901 = vmatprep.mubr.msk.bf16.mxu0 %vm58_vm0, %v16504_v18 }
0x3bcf   :  { %v12859_v36 = vpop.f32.mrb[140].mxu0 }
0x3bd0   :  { %v16632_v6 = vadd.f32 %v16629_v19, %v12859_v36  ;;  %v8222_v58 = vpop.f32.mrb[141].mxu0 }
0x3bd1   :  { %v12860_v50 = vpop.f32.mrb[142].mxu0  ;;  %v13258_v24 = vadd.f32 %v16629_v19, %v8222_v58 }
0x3bd2   :  { %v16636_v30 = vadd.f32 %v16629_v19, %v12860_v50  ;;  %v8225_v62 = vpop.f32.mrb[143].mxu0  ;;  %v8247_v11 = vsel %vm58_vm0, %v16632_v6, 0.0  ;;  %v8259_v10 = vmul.f32 %v16632_v6, %v16632_v6 }
0x3bd3   :  { %8248 = vadd.xlane.f32.xlu0 %v8247_v11  ;;  %v13260_v42 = vadd.f32 %v16629_v19, %v8225_v62  ;;  %v8241_v15 = vsel %vm58_vm0, %v13258_v24, 0.0  ;;  %v8257_v31 = vmul.f32 %v13258_v24, %v13258_v24 }
0x3bd4   :  { %v8250_v48 = vsel %vm58_vm0, %v16636_v30, 0.0  ;;  %v8260_v4 = vmul.f32 %v16636_v30, %v16636_v30  ;;  %v8267_v25 = vsel %vm58_vm0, %v8259_v10, 0.0 }
0x3bd5   :  { %8251 = vadd.xlane.f32.xlu1 %v8250_v48  ;;  %v8244_v46 = vsel %vm58_vm0, %v13260_v42, 0.0  ;;  %v8258_v43 = vmul.f32 %v13260_v42, %v13260_v42  ;;  %v8261_v41 = vsel %vm58_vm0, %v8257_v31, 0.0 }
0x3bd6   :  { %v8270_v60 = vsel %vm58_vm0, %v8260_v4, 0.0 }
0x3bd7   :  { %8242 = vadd.xlane.f32.xlu0 %v8241_v15  ;;  %v8264_v8 = vsel %vm58_vm0, %v8258_v43, 0.0 }
0x3bd9   :  { %8245 = vadd.xlane.f32.xlu1 %v8244_v46 }
0x3bdb   :  { %8262 = vadd.xlane.f32.xlu0 %v8261_v41 }
0x3bdd   :  { %8265 = vadd.xlane.f32.xlu1 %v8264_v8 }
0x3bdf   :  { %8268 = vadd.xlane.f32.xlu0 %v8267_v25 }
0x3be1   :  { %8271 = vadd.xlane.f32.xlu1 %v8270_v60 }
0x3c60   :  { %v8249_v29 = vpop.xlane.xlu0 %8248 }
0x3c61   :  { %v8255_v48 = vmul.f32 0.03125, %v8249_v29 }
0x3c62   :  { %v8252_v9 = vpop.xlane.xlu1 %8251 }
0x3c63   :  { %v8256_v46 = vmul.f32 0.03125, %v8252_v9  ;;  %v8279_v25 = vmul.f32 %v8255_v48, %v8255_v48 }
0x3c64   :  { %v8243_v36 = vpop.xlane.xlu0 %8242 }
0x3c65   :  { %v8253_v58 = vmul.f32 0.03125, %v8243_v36  ;;  %v8280_v23 = vmul.f32 %v8256_v46, %v8256_v46 }
0x3c66   :  { %v8246_v50 = vpop.xlane.xlu1 %8245 }
0x3c67   :  { %v8254_v62 = vmul.f32 0.03125, %v8246_v50  ;;  %v8277_v15 = vmul.f32 %v8253_v58, %v8253_v58 }
0x3c68   :  { %v8263_v11 = vpop.xlane.xlu0 %8262 }
0x3c69   :  { %v8273_v31 = vmul.f32 0.03125, %v8263_v11  ;;  %v8278_v41 = vmul.f32 %v8254_v62, %v8254_v62  ;;  %v8285_v11 = vsub.f32 %v13258_v24, %v8253_v58 }
0x3c6a   :  { %v8266_v43 = vpop.xlane.xlu1 %8265 }
0x3c6b   :  { %v8281_v8 = vsub.f32 %v8273_v31, %v8277_v15  ;;  %v8274_v19 = vmul.f32 0.03125, %v8266_v43  ;;  %v8286_v31 = vsub.f32 %v13260_v42, %v8254_v62 }
0x3c6c   :  { %v8269_v10 = vpop.xlane.xlu0 %8268 }
0x3c6d   :  { %v8289_v7 = vadd.f32 1e-05, %v8281_v8  ;;  %v8282_v4 = vsub.f32 %v8274_v19, %v8278_v41  ;;  %v8275_v60 = vmul.f32 0.03125, %v8269_v10  ;;  %v8287_v19 = vsub.f32 %v16632_v6, %v8255_v48  ;;  %v16662_v6 = vld [vmem:[%s17315_s2 + $0xb] ss:$0 sm:$0xff] }
0x3c6e   :  { %v8272_v22 = vpop.xlane.xlu1 %8271  ;;  %v8288_v10 = vsub.f32 %v16636_v30, %v8256_v46 }
0x3c6f   :  { %13784 = vrsqrt.f32 %v8289_v7  ;;  %v8290_v36 = vadd.f32 1e-05, %v8282_v4  ;;  %v8283_v39 = vsub.f32 %v8275_v60, %v8279_v25  ;;  %v8276_v50 = vmul.f32 0.03125, %v8272_v22 }
0x3c71   :  { %13786 = vrsqrt.f32 %v8290_v36  ;;  %v8291_v29 = vadd.f32 1e-05, %v8283_v39  ;;  %v8284_v32 = vsub.f32 %v8276_v50, %v8280_v23 }
0x3c73   :  { %13788 = vrsqrt.f32 %v8291_v29  ;;  %v8292_v9 = vadd.f32 1e-05, %v8284_v32 }
0x3c75   :  { %13790 = vrsqrt.f32 %v8292_v9 }
0x3c79   :  { %v13785_v15 = vpop.eup %13784 }
0x3c7a   :  { %v8297_v43 = vmul.f32 %v13785_v15, %v8285_v11 }
0x3c7b   :  { %v13787_v56 = vpop.eup %13786 }
0x3c7c   :  { %v8298_v41 = vmul.f32 %v13787_v56, %v8286_v31  ;;  %v8301_v8 = vmul.f32 %v16169_v21, %v8297_v43 }
0x3c7d   :  { %v13789_v7 = vpop.eup %13788 }
0x3c7e   :  { %v8302_v22 = vmul.f32 %v16169_v21, %v8298_v41  ;;  %v8305_v39 = vadd.f32 %v16177_v3, %v8301_v8  ;;  %v8299_v23 = vmul.f32 %v13789_v7, %v8287_v19  ;;  %v16669_v21 = vld [vmem:[%s17315_s2 + $0xc] ss:$0 sm:$0xff] }
0x3c7f   :  { %v13791_v32 = vpop.eup %13790 }
0x3c80   :  { %v8306_v24 = vadd.f32 %v16177_v3, %v8302_v22  ;;  %v8309_v58 = vmax.f32 %v8305_v39, 0.0  ;;  %v8300_v42 = vmul.f32 %v13791_v32, %v8288_v10  ;;  %v8303_v56 = vmul.f32 %v16662_v6, %v8299_v23 }
0x3c82   :  { %v8310_v62 = vmax.f32 %v8306_v24, 0.0  ;;  %v8304_v30 = vmul.f32 %v16662_v6, %v8300_v42  ;;  %v8307_v48 = vadd.f32 %v16669_v21, %v8303_v56  ;;  %v16673_v3 = vadd.f32 %v8309_v58, %v16431_v26  ;;  %v17434_v24 = vld [vmem:[#allocation5_spill] sm:$0xff] }
0x3c84   :  { %v16676_v46 = vadd.f32 %v8310_v62, %v16434_v61  ;;  %v8308_v25 = vadd.f32 %v16669_v21, %v8304_v30  ;;  %v8311_v4 = vmax.f32 %v8307_v48, 0.0 }
0x3c86   :  { %v8317_v60 = vpack.c.bf16 %v16676_v46, %v16673_v3  ;;  %v8312_v36 = vmax.f32 %v8308_v25, 0.0  ;;  %v16682_v50 = vadd.f32 %v8311_v4, %v16440_v57 }
0x3c88   :  { %12861 = vmatprep.subr.bf16.mxu1 %v8317_v60  ;;  %v16685_v29 = vadd.f32 %v8312_v36, %v16443_v17 }
0x3c89   :  { %12862 = vmatpush3.bf16.msra.mxu1 %v8317_v60 }
0x3c8a   :  { %v8318_v26 = vpack.c.bf16 %v16685_v29, %v16682_v50 }
0x3c8c   :  { %12863 = vmatprep.subr.bf16.mxu1 %v8318_v26 }
0x3c8d   :  { %12864 = vmatpush3.bf16.msra.mxu1 %v8318_v26 }
0x3c8e   :  { %12873 = vmatprep.subr.bf16.mxu1 %v16204_v45 }
0x3c90   :  { %12866 = vmatmul.mubr.msk.bf16.vlgmr.msra.gmra.mrb[148].mxu1 %vm58_vm0, %v16322_v28 }
0x3c91   :  { %12869 = vmatprep.mubr.msk.bf16.mxu1 %vm58_vm0, %v16329_v47  ;;  %12874 = vmatpush3.bf16.msra.mxu1 %v16204_v45 }
0x3c92   :  { %12875 = vmatprep.subr.bf16.mxu1 %v16215_v2 }
0x3c95   :  { %12876 = vmatpush3.bf16.msra.mxu1 %v16215_v2 }
0x3c96   :  { %12881 = vmatprep.subr.bf16.mxu1 %v16227_v16 }
0x3c98   :  { %12870 = vmatmul.mubr.msk.bf16.gmra.mrb[152].mxu1 %vm58_vm0, %v16345_v13 }
0x3d63   :  { %v12867_v61 = vpop.f32.mrb[148].mxu1 }
0x3d64   :  { %v8353_v57 = vpop.f32.mrb[149].mxu1 }
0x3d65   :  { %v12868_v17 = vpop.f32.mrb[150].mxu1 }
0x3d66   :  { %v8385_v9 = vpack.c.bf16 %v12868_v17, %v12867_v61  ;;  %v8356_v11 = vpop.f32.mrb[151].mxu1 }
0x3d67   :  { %v8384_v15 = vpack.c.bf16 %v8356_v11, %v8353_v57 }
0x3d69   :  { %12877 = vmatprep.mubr.msk.bf16.mxu1 %vm58_vm0, %v8384_v15 }
0x3d6a   :  { %12878 = vmatmul.mubr.msk.bf16.vlgmr.msra.gmra.mrb[156].mxu1 %vm58_vm0, %v8385_v9 }
0x3d6b   :  { %v12871_v45 = vpop.f32.mrb[152].mxu1  ;;  %12882 = vmatpush3.bf16.msra.mxu1 %v16227_v16 }
0x3d6c   :  { %v8369_v31 = vpop.f32.mrb[153].mxu1  ;;  %12883 = vmatprep.subr.bf16.mxu1 %v16234_v35 }
0x3d6d   :  { %v12872_v2 = vpop.f32.mrb[154].mxu1 }
0x3d6e   :  { %v8387_v43 = vpack.c.bf16 %v12872_v2, %v12871_v45  ;;  %v8372_v19 = vpop.f32.mrb[155].mxu1 }
0x3d6f   :  { %v8386_v41 = vpack.c.bf16 %v8372_v19, %v8369_v31  ;;  %12884 = vmatpush3.bf16.msra.mxu1 %v16234_v35 }
0x3d70   :  { %12889 = vmatprep.subr.bf16.mxu1 %v16244_v59 }
0x3d71   :  { %12885 = vmatprep.mubr.msk.bf16.mxu1 %vm58_vm0, %v8386_v41 }
0x3d76   :  { %12886 = vmatmul.mubr.msk.bf16.vlgmr.msra.gmra.mrb[156].mxu1 %vm58_vm0, %v8387_v43 }
0x3d77   :  { %12893 = vmatprep.mubr.msk.bf16.mxu1 %vm58_vm0, %v8317_v60  ;;  %12890 = vmatpush3.bf16.msra.mxu1 %v16244_v59 }
0x3d78   :  { %12891 = vmatprep.subr.bf16.mxu1 %v16250_v33 }
0x3d7b   :  { %12892 = vmatpush3.bf16.msra.mxu1 %v16250_v33 }
0x3d82   :  { %12894 = vmatmul.mubr.msk.bf16.vlgmr.msra.gmra.mrb[156].mxu1 %vm58_vm0, %v8318_v26 }
0x3d83   :  { %12937 = vmatprep.mubr.msk.bf16.mxu1 %vm58_vm0, %v16258_v0 }
0x3e55   :  { %v12895_v16 = vpop.f32.mrb[156].mxu1 }
0x3e56   :  { %v13261_v35 = vadd.f32 %v16270_v1, %v12895_v16  ;;  %v8546_v8 = vpop.f32.mrb[157].mxu1 }
0x3e57   :  { %v13262_v7 = vadd.f32 %v16270_v1, %v8546_v8  ;;  %v12896_v10 = vpop.f32.mrb[158].mxu1 }
0x3e58   :  { %v16718_v22 = vadd.f32 %v13261_v35, %v14247_v52  ;;  %v13263_v59 = vadd.f32 %v16270_v1, %v12896_v10  ;;  %v8549_v39 = vpop.f32.mrb[159].mxu1 }
0x3e59   :  { %v13264_v33 = vadd.f32 %v16270_v1, %v8549_v39  ;;  %v8565_v23 = vadd.f32 %v13262_v7, %v14235_v40 }
0x3e5a   :  { %v16724_v32 = vadd.f32 %v13263_v59, %v14237_v44  ;;  %v8575_v0 = vsel %vm58_vm0, %v16718_v22, 0.0  ;;  %v8587_v25 = vmul.f32 %v16718_v22, %v16718_v22 }
0x3e5b   :  { %8576 = vadd.xlane.f32.xlu0 %v8575_v0  ;;  %v8566_v58 = vadd.f32 %v13264_v33, %v17434_v24  ;;  %v8569_v56 = vsel %vm58_vm0, %v8565_v23, 0.0  ;;  %v8585_v62 = vmul.f32 %v8565_v23, %v8565_v23 }
0x3e5c   :  { %v8578_v42 = vsel %vm58_vm0, %v16724_v32, 0.0  ;;  %v8588_v60 = vmul.f32 %v16724_v32, %v16724_v32  ;;  %v8595_v36 = vsel %vm58_vm0, %v8587_v25, 0.0 }
0x3e5d   :  { %8579 = vadd.xlane.f32.xlu1 %v8578_v42  ;;  %v8572_v1 = vsel %vm58_vm0, %v8566_v58, 0.0  ;;  %v8586_v30 = vmul.f32 %v8566_v58, %v8566_v58  ;;  %v8589_v48 = vsel %vm58_vm0, %v8585_v62, 0.0 }
0x3e5e   :  { %v8598_v26 = vsel %vm58_vm0, %v8588_v60, 0.0 }
0x3e5f   :  { %8570 = vadd.xlane.f32.xlu0 %v8569_v56  ;;  %v8592_v4 = vsel %vm58_vm0, %v8586_v30, 0.0 }
0x3e61   :  { %8573 = vadd.xlane.f32.xlu1 %v8572_v1 }
0x3e63   :  { %8590 = vadd.xlane.f32.xlu0 %v8589_v48 }
0x3e65   :  { %8593 = vadd.xlane.f32.xlu1 %v8592_v4 }
0x3e67   :  { %8596 = vadd.xlane.f32.xlu0 %v8595_v36 }
0x3e69   :  { %8599 = vadd.xlane.f32.xlu1 %v8598_v26 }
0x3ee8   :  { %v8577_v61 = vpop.xlane.xlu0 %8576 }
0x3ee9   :  { %v8583_v31 = vmul.f32 0.03125, %v8577_v61 }
0x3eea   :  { %v8580_v57 = vpop.xlane.xlu1 %8579 }
0x3eeb   :  { %v8584_v19 = vmul.f32 0.03125, %v8580_v57  ;;  %v8607_v10 = vmul.f32 %v8583_v31, %v8583_v31  ;;  %v8615_v57 = vsub.f32 %v16718_v22, %v8583_v31 }
0x3eec   :  { %v8571_v17 = vpop.xlane.xlu0 %8570 }
0x3eed   :  { %v8581_v9 = vmul.f32 0.03125, %v8571_v17  ;;  %v8608_v0 = vmul.f32 %v8584_v19, %v8584_v19 }
0x3eee   :  { %v8574_v11 = vpop.xlane.xlu1 %8573 }
0x3eef   :  { %v8582_v15 = vmul.f32 0.03125, %v8574_v11  ;;  %v8605_v2 = vmul.f32 %v8581_v9, %v8581_v9  ;;  %v8613_v4 = vsub.f32 %v8565_v23, %v8581_v9 }
0x3ef0   :  { %v8591_v45 = vpop.xlane.xlu0 %8590 }
0x3ef1   :  { %v8601_v43 = vmul.f32 0.03125, %v8591_v45  ;;  %v8606_v16 = vmul.f32 %v8582_v15, %v8582_v15  ;;  %v8614_v36 = vsub.f32 %v8566_v58, %v8582_v15 }
0x3ef2   :  { %v8594_v41 = vpop.xlane.xlu1 %8593 }
0x3ef3   :  { %v8609_v35 = vsub.f32 %v8601_v43, %v8605_v2  ;;  %v8602_v8 = vmul.f32 0.03125, %v8594_v41  ;;  %v8616_v2 = vsub.f32 %v16724_v32, %v8584_v19 }
0x3ef4   :  { %v8597_v7 = vpop.xlane.xlu0 %8596 }
0x3ef5   :  { %v8617_v59 = vadd.f32 1e-05, %v8609_v35  ;;  %v8610_v39 = vsub.f32 %v8602_v8, %v8606_v16  ;;  %v8603_v33 = vmul.f32 0.03125, %v8597_v7 }
0x3ef6   :  { %v8600_v42 = vpop.xlane.xlu1 %8599 }
0x3ef7   :  { %13792 = vrsqrt.f32 %v8617_v59  ;;  %v8618_v56 = vadd.f32 1e-05, %v8610_v39  ;;  %v8611_v62 = vsub.f32 %v8603_v33, %v8607_v10  ;;  %v8604_v1 = vmul.f32 0.03125, %v8600_v42  ;;  %v17435_v39 = vld [vmem:[#allocation11_spill] sm:$0xff] }
0x3ef9   :  { %13794 = vrsqrt.f32 %v8618_v56  ;;  %v8619_v30 = vadd.f32 1e-05, %v8611_v62  ;;  %v8612_v48 = vsub.f32 %v8604_v1, %v8608_v0 }
0x3efb   :  { %13796 = vrsqrt.f32 %v8619_v30  ;;  %v8620_v25 = vadd.f32 1e-05, %v8612_v48  ;;  %v17438_v30 = vld [vmem:[#allocation14_spill] sm:$0xff] }
0x3efd   :  { %13798 = vrsqrt.f32 %v8620_v25 }
0x3f01   :  { %v13793_v60 = vpop.eup %13792 }
0x3f02   :  { %v8625_v26 = vmul.f32 %v13793_v60, %v8613_v4  ;;  %v17439_v60 = vld [vmem:[#allocation15_spill] sm:$0xff] }
0x3f03   :  { %v13795_v61 = vpop.eup %13794 }
0x3f04   :  { %v8626_v17 = vmul.f32 %v13795_v61, %v8614_v36  ;;  %v8629_v11 = vmul.f32 %v16302_v5, %v8625_v26  ;;  %v17440_v36 = vld [vmem:[#allocation16_spill] sm:$0xff]  ;;  %v16778_v26 = vld [vmem:[%s17314_s1 + $0x20] sm:$0xff]  }
0x3f05   :  { %v13797_v45 = vpop.eup %13796 }
0x3f06   :  { %v8630_v43 = vmul.f32 %v16302_v5, %v8626_v17  ;;  %v8633_v41 = vadd.f32 %v16309_v63, %v8629_v11  ;;  %v8627_v16 = vmul.f32 %v13797_v45, %v8615_v57  ;;  %v17441_v57 = vld [vmem:[#allocation17_spill] sm:$0xff] }
0x3f07   :  { %v13799_v35 = vpop.eup %13798 }
0x3f08   :  { %v8634_v23 = vadd.f32 %v16309_v63, %v8630_v43  ;;  %v8628_v9 = vmul.f32 %v13799_v35, %v8616_v2  ;;  %v8631_v58 = vmul.f32 %v16302_v5, %v8627_v16  ;;  %v8637_v15 = vmax.f32 %v8633_v41, 0.0  ;;  %v16789_v43 = vld [vmem:[%s17315_s2 + $0x4] ss:$0 sm:$0xff] }
0x3f0a   :  { %v8638_v8 = vmax.f32 %v8634_v23, 0.0  ;;  %v8632_v22 = vmul.f32 %v16302_v5, %v8628_v9  ;;  %v8635_v31 = vadd.f32 %v16309_v63, %v8631_v58  ;;  %v17436_v5 = vld [vmem:[#allocation12_spill] sm:$0xff] }
0x3f0c   :  { %v8641_v7 = vpack.c.bf16 %v8638_v8, %v8637_v15  ;;  %v8636_v32 = vadd.f32 %v16309_v63, %v8632_v22  ;;  %v8639_v19 = vmax.f32 %v8635_v31, 0.0  ;;  %v17437_v63 = vld [vmem:[#allocation13_spill] sm:$0xff] }
0x3f0e   :  { %12897 = vmatprep.subr.bf16.mxu0 %v8641_v7  ;;  %v8640_v10 = vmax.f32 %v8636_v32, 0.0 }
0x3f0f   :  { %12898 = vmatpush3.bf16.msra.mxu0 %v8641_v7 }
0x3f10   :  { %v8642_v59 = vpack.c.bf16 %v8640_v10, %v8639_v19 }
0x3f12   :  { %12899 = vmatprep.subr.bf16.mxu0 %v8642_v59 }
0x3f13   :  { %12900 = vmatpush3.bf16.msra.mxu0 %v8642_v59 }
0x3f14   :  { %12909 = vmatprep.subr.bf16.mxu0 %v17435_v39 }
0x3f16   :  { %12902 = vmatmul.mubr.msk.bf16.vlgmr.msra.gmra.mrb[144].mxu0 %vm58_vm0, %v16322_v28 }
0x3f17   :  { %12905 = vmatprep.mubr.msk.bf16.mxu0 %vm58_vm0, %v16329_v47  ;;  %12910 = vmatpush3.bf16.msra.mxu0 %v17435_v39 }
0x3f18   :  { %12911 = vmatprep.subr.bf16.mxu0 %v17436_v5 }
0x3f1b   :  { %12912 = vmatpush3.bf16.msra.mxu0 %v17436_v5 }
0x3f1c   :  { %12917 = vmatprep.subr.bf16.mxu0 %v17437_v63 }
0x3f1e   :  { %12906 = vmatmul.mubr.msk.bf16.gmra.mrb[148].mxu0 %vm58_vm0, %v16345_v13 }
0x3fe9   :  { %v12903_v33 = vpop.f32.mrb[144].mxu0 }
0x3fea   :  { %v8677_v0 = vpop.f32.mrb[145].mxu0 }
0x3feb   :  { %v12904_v42 = vpop.f32.mrb[146].mxu0 }
0x3fec   :  { %v8709_v56 = vpack.c.bf16 %v12904_v42, %v12903_v33  ;;  %v8680_v62 = vpop.f32.mrb[147].mxu0 }
0x3fed   :  { %v8708_v28 = vpack.c.bf16 %v8680_v62, %v8677_v0 }
0x3fef   :  { %12913 = vmatprep.mubr.msk.bf16.mxu0 %vm58_vm0, %v8708_v28 }
0x3ff0   :  { %12914 = vmatmul.mubr.msk.bf16.vlgmr.msra.gmra.mrb[152].mxu0 %vm58_vm0, %v8709_v56 }
0x3ff1   :  { %v12907_v47 = vpop.f32.mrb[148].mxu0  ;;  %12918 = vmatpush3.bf16.msra.mxu0 %v17437_v63 }
0x3ff2   :  { %v8693_v1 = vpop.f32.mrb[149].mxu0  ;;  %12919 = vmatprep.subr.bf16.mxu0 %v17438_v30 }
0x3ff3   :  { %v12908_v48 = vpop.f32.mrb[150].mxu0 }
0x3ff4   :  { %v8711_v25 = vpack.c.bf16 %v12908_v48, %v12907_v47  ;;  %v8696_v4 = vpop.f32.mrb[151].mxu0 }
0x3ff5   :  { %v8710_v13 = vpack.c.bf16 %v8696_v4, %v8693_v1  ;;  %12920 = vmatpush3.bf16.msra.mxu0 %v17438_v30 }
0x3ff6   :  { %12925 = vmatprep.subr.bf16.mxu0 %v17439_v60 }
0x3ff7   :  { %12921 = vmatprep.mubr.msk.bf16.mxu0 %vm58_vm0, %v8710_v13 }
0x3ffc   :  { %12922 = vmatmul.mubr.msk.bf16.vlgmr.msra.gmra.mrb[152].mxu0 %vm58_vm0, %v8711_v25 }
0x3ffd   :  { %12929 = vmatprep.mubr.msk.bf16.mxu0 %vm58_vm0, %v8641_v7  ;;  %12926 = vmatpush3.bf16.msra.mxu0 %v17439_v60 }
0x3ffe   :  { %12927 = vmatprep.subr.bf16.mxu0 %v17440_v36 }
0x4001   :  { %12928 = vmatpush3.bf16.msra.mxu0 %v17440_v36 }
0x4008   :  { %12930 = vmatmul.mubr.msk.bf16.vlgmr.msra.gmra.mrb[152].mxu0 %vm58_vm0, %v8642_v59 }
0x4009   :  { %12973 = vmatprep.mubr.msk.bf16.mxu0 %vm58_vm0, %v16778_v26 }
0x40db   :  { %v12931_v61 = vpop.f32.mrb[152].mxu0 }
0x40dc   :  { %v16783_v17 = vadd.f32 %v17441_v57, %v12931_v61  ;;  %v8870_v11 = vpop.f32.mrb[153].mxu0 }
0x40dd   :  { %v12932_v45 = vpop.f32.mrb[154].mxu0  ;;  %v13266_v2 = vadd.f32 %v17441_v57, %v8870_v11 }
0x40de   :  { %v16792_v41 = vadd.f32 %v16789_v43, %v12932_v45  ;;  %v8873_v16 = vpop.f32.mrb[155].mxu0  ;;  %v8895_v35 = vsel %vm58_vm0, %v16783_v17, 0.0  ;;  %v8907_v7 = vmul.f32 %v16783_v17, %v16783_v17 }
0x40df   :  { %8896 = vadd.xlane.f32.xlu0 %v8895_v35  ;;  %v13268_v23 = vadd.f32 %v16789_v43, %v8873_v16  ;;  %v8889_v58 = vsel %vm58_vm0, %v13266_v2, 0.0  ;;  %v8905_v15 = vmul.f32 %v13266_v2, %v13266_v2 }
0x40e0   :  { %v8898_v9 = vsel %vm58_vm0, %v16792_v41, 0.0  ;;  %v8908_v19 = vmul.f32 %v16792_v41, %v16792_v41  ;;  %v8915_v10 = vsel %vm58_vm0, %v8907_v7, 0.0 }
0x40e1   :  { %8899 = vadd.xlane.f32.xlu1 %v8898_v9  ;;  %v8892_v8 = vsel %vm58_vm0, %v13268_v23, 0.0  ;;  %v8906_v22 = vmul.f32 %v13268_v23, %v13268_v23  ;;  %v8909_v31 = vsel %vm58_vm0, %v8905_v15, 0.0 }
0x40e2   :  { %v8918_v59 = vsel %vm58_vm0, %v8908_v19, 0.0 }
0x40e3   :  { %8890 = vadd.xlane.f32.xlu0 %v8889_v58  ;;  %v8912_v32 = vsel %vm58_vm0, %v8906_v22, 0.0 }
0x40e5   :  { %8893 = vadd.xlane.f32.xlu1 %v8892_v8 }
0x40e7   :  { %8910 = vadd.xlane.f32.xlu0 %v8909_v31 }
0x40e9   :  { %8913 = vadd.xlane.f32.xlu1 %v8912_v32 }
0x40eb   :  { %8916 = vadd.xlane.f32.xlu0 %v8915_v10 }
0x40ed   :  { %8919 = vadd.xlane.f32.xlu1 %v8918_v59 }
0x416c   :  { %v8897_v39 = vpop.xlane.xlu0 %8896 }
0x416d   :  { %v8903_v62 = vmul.f32 0.03125, %v8897_v39 }
0x416e   :  { %v8900_v5 = vpop.xlane.xlu1 %8899 }
0x416f   :  { %v8904_v1 = vmul.f32 0.03125, %v8900_v5  ;;  %v8927_v60 = vmul.f32 %v8903_v62, %v8903_v62  ;;  %v8935_v10 = vsub.f32 %v16783_v17, %v8903_v62 }
0x4170   :  { %v8891_v63 = vpop.xlane.xlu0 %8890 }
0x4171   :  { %v8901_v33 = vmul.f32 0.03125, %v8891_v63  ;;  %v8928_v11 = vmul.f32 %v8904_v1, %v8904_v1  ;;  %v8936_v63 = vsub.f32 %v16792_v41, %v8904_v1 }
0x4172   :  { %v8894_v0 = vpop.xlane.xlu1 %8893 }
0x4173   :  { %v8902_v42 = vmul.f32 0.03125, %v8894_v0  ;;  %v8925_v28 = vmul.f32 %v8901_v33, %v8901_v33  ;;  %v8933_v22 = vsub.f32 %v13266_v2, %v8901_v33 }
0x4174   :  { %v8911_v56 = vpop.xlane.xlu0 %8910 }
0x4175   :  { %v8921_v47 = vmul.f32 0.03125, %v8911_v56  ;;  %v8926_v48 = vmul.f32 %v8902_v42, %v8902_v42  ;;  %v8934_v7 = vsub.f32 %v13268_v23, %v8902_v42 }
0x4176   :  { %v8914_v30 = vpop.xlane.xlu1 %8913 }
0x4177   :  { %v8929_v25 = vsub.f32 %v8921_v47, %v8925_v28  ;;  %v8922_v4 = vmul.f32 0.03125, %v8914_v30 }
0x4178   :  { %v8917_v13 = vpop.xlane.xlu0 %8916 }
0x4179   :  { %v8937_v36 = vadd.f32 1e-05, %v8929_v25  ;;  %v8930_v61 = vsub.f32 %v8922_v4, %v8926_v48  ;;  %v8923_v57 = vmul.f32 0.03125, %v8917_v13 }
0x417a   :  { %v8920_v45 = vpop.xlane.xlu1 %8919 }
0x417b   :  { %13800 = vrsqrt.f32 %v8937_v36  ;;  %v8938_v16 = vadd.f32 1e-05, %v8930_v61  ;;  %v8931_v35 = vsub.f32 %v8923_v57, %v8927_v60  ;;  %v8924_v9 = vmul.f32 0.03125, %v8920_v45 }
0x417d   :  { %13802 = vrsqrt.f32 %v8938_v16  ;;  %v8939_v58 = vadd.f32 1e-05, %v8931_v35  ;;  %v8932_v15 = vsub.f32 %v8924_v9, %v8928_v11  ;;  %v17443_v35 = vld [vmem:[#allocation6_spill] sm:$0xff] }
0x417f   :  { %13804 = vrsqrt.f32 %v8939_v58  ;;  %v8940_v8 = vadd.f32 1e-05, %v8932_v15 }
0x4181   :  { %13806 = vrsqrt.f32 %v8940_v8 }
0x4185   :  { %v13801_v31 = vpop.eup %13800 }
0x4186   :  { %v8945_v32 = vmul.f32 %v13801_v31, %v8933_v22 }
0x4187   :  { %v13803_v19 = vpop.eup %13802 }
0x4188   :  { %v8946_v59 = vmul.f32 %v13803_v19, %v8934_v7  ;;  %v8949_v39 = vmul.f32 %v16420_v37, %v8945_v32 }
0x4189   :  { %v13805_v5 = vpop.eup %13804 }
0x418a   :  { %v8950_v0 = vmul.f32 %v16420_v37, %v8946_v59  ;;  %v8953_v56 = vadd.f32 %v16427_v34, %v8949_v39  ;;  %v8947_v28 = vmul.f32 %v13805_v5, %v8935_v10 }
0x418b   :  { %v13807_v47 = vpop.eup %13806 }
0x418c   :  { %v8954_v2 = vadd.f32 %v16427_v34, %v8950_v0  ;;  %v8957_v33 = vmax.f32 %v8953_v56, 0.0  ;;  %v8948_v23 = vmul.f32 %v13807_v47, %v8936_v63  ;;  %v8951_v42 = vmul.f32 %v16420_v37, %v8947_v28 }
0x418e   :  { %v8958_v30 = vmax.f32 %v8954_v2, 0.0  ;;  %v8952_v17 = vmul.f32 %v16420_v37, %v8948_v23  ;;  %v8955_v62 = vadd.f32 %v16427_v34, %v8951_v42  ;;  %v16819_v48 = vadd.f32 %v8957_v33, %v16673_v3 }
0x4190   :  { %v16822_v41 = vadd.f32 %v8958_v30, %v16676_v46  ;;  %v8956_v1 = vadd.f32 %v16427_v34, %v8952_v17  ;;  %v8959_v25 = vmax.f32 %v8955_v62, 0.0 }
0x4192   :  { %v8965_v4 = vpack.c.bf16 %v16822_v41, %v16819_v48  ;;  %v8960_v13 = vmax.f32 %v8956_v1, 0.0  ;;  %v16828_v60 = vadd.f32 %v8959_v25, %v16682_v50 }
0x4194   :  { %12933 = vmatprep.subr.bf16.mxu1 %v8965_v4  ;;  %v16831_v37 = vadd.f32 %v8960_v13, %v16685_v29 }
0x4195   :  { %12934 = vmatpush3.bf16.msra.mxu1 %v8965_v4 }
0x4196   :  { %v8966_v3 = vpack.c.bf16 %v16831_v37, %v16828_v60 }
0x4198   :  { %12935 = vmatprep.subr.bf16.mxu1 %v8966_v3 }
0x4199   :  { %12936 = vmatpush3.bf16.msra.mxu1 %v8966_v3 }
0x419a   :  { %12945 = vmatprep.subr.bf16.mxu1 %v16450_v53 }
0x419c   :  { %12938 = vmatmul.mubr.msk.bf16.vlgmr.msra.gmra.mrb[160].mxu1 %vm58_vm0, %v16564_v49 }
0x419d   :  { %12941 = vmatprep.mubr.msk.bf16.mxu1 %vm58_vm0, %v16571_v20  ;;  %12946 = vmatpush3.bf16.msra.mxu1 %v16450_v53 }
0x419e   :  { %12947 = vmatprep.subr.bf16.mxu1 %v16461_v27 }
0x41a1   :  { %12948 = vmatpush3.bf16.msra.mxu1 %v16461_v27 }
0x41a2   :  { %12953 = vmatprep.subr.bf16.mxu1 %v16473_v38 }
0x41a4   :  { %12942 = vmatmul.mubr.msk.bf16.gmra.mrb[164].mxu1 %vm58_vm0, %v16587_v14 }
0x426f   :  { %v12939_v34 = vpop.f32.mrb[160].mxu1 }
0x4270   :  { %v9001_v46 = vpop.f32.mrb[161].mxu1 }
0x4271   :  { %v12940_v50 = vpop.f32.mrb[162].mxu1 }
0x4272   :  { %v9033_v29 = vpack.c.bf16 %v12940_v50, %v12939_v34  ;;  %v9004_v36 = vpop.f32.mrb[163].mxu1 }
0x4273   :  { %v9032_v61 = vpack.c.bf16 %v9004_v36, %v9001_v46 }
0x4275   :  { %12949 = vmatprep.mubr.msk.bf16.mxu1 %vm58_vm0, %v9032_v61 }
0x4276   :  { %12950 = vmatmul.mubr.msk.bf16.vlgmr.msra.gmra.mrb[168].mxu1 %vm58_vm0, %v9033_v29 }
0x4277   :  { %v12943_v53 = vpop.f32.mrb[164].mxu1  ;;  %12954 = vmatpush3.bf16.msra.mxu1 %v16473_v38  ;;  %v17442_v38 = vld [vmem:[#allocation18_spill] sm:$0xff] }
0x4278   :  { %v9017_v57 = vpop.f32.mrb[165].mxu1  ;;  %12955 = vmatprep.subr.bf16.mxu1 %v16480_v51 }
0x4279   :  { %v12944_v27 = vpop.f32.mrb[166].mxu1 }
0x427a   :  { %v9035_v11 = vpack.c.bf16 %v12944_v27, %v12943_v53  ;;  %v9020_v45 = vpop.f32.mrb[167].mxu1 }
0x427b   :  { %v9034_v16 = vpack.c.bf16 %v9020_v45, %v9017_v57  ;;  %12956 = vmatpush3.bf16.msra.mxu1 %v16480_v51 }
0x427c   :  { %12961 = vmatprep.subr.bf16.mxu1 %v16490_v12 }
0x427d   :  { %12957 = vmatprep.mubr.msk.bf16.mxu1 %vm58_vm0, %v9034_v16 }
0x4282   :  { %12958 = vmatmul.mubr.msk.bf16.vlgmr.msra.gmra.mrb[168].mxu1 %vm58_vm0, %v9035_v11 }
0x4283   :  { %12965 = vmatprep.mubr.msk.bf16.mxu1 %vm58_vm0, %v8965_v4  ;;  %12962 = vmatpush3.bf16.msra.mxu1 %v16490_v12  ;;  %v16868_v12 = vld [vmem:[%s17315_s2 + $0x7] ss:$0 sm:$0xff] }
0x4284   :  { %12963 = vmatprep.subr.bf16.mxu1 %v17442_v38 }
0x4287   :  { %12964 = vmatpush3.bf16.msra.mxu1 %v17442_v38 }
0x428e   :  { %12966 = vmatmul.mubr.msk.bf16.vlgmr.msra.gmra.mrb[168].mxu1 %vm58_vm0, %v8966_v3 }
0x428f   :  { %13009 = vmatprep.mubr.msk.bf16.mxu1 %vm58_vm0, %v16504_v18 }
0x4361   :  { %v12967_v51 = vpop.f32.mrb[168].mxu1 }
0x4362   :  { %v16862_v9 = vadd.f32 %v17443_v35, %v12967_v51  ;;  %v9194_v58 = vpop.f32.mrb[169].mxu1 }
0x4363   :  { %v12968_v15 = vpop.f32.mrb[170].mxu1  ;;  %v13270_v8 = vadd.f32 %v17443_v35, %v9194_v58 }
0x4364   :  { %v16871_v22 = vadd.f32 %v16868_v12, %v12968_v15  ;;  %v9197_v31 = vpop.f32.mrb[171].mxu1  ;;  %v9219_v18 = vsel %vm58_vm0, %v16862_v9, 0.0  ;;  %v9231_v63 = vmul.f32 %v16862_v9, %v16862_v9 }
0x4365   :  { %9220 = vadd.xlane.f32.xlu0 %v9219_v18  ;;  %v13272_v7 = vadd.f32 %v16868_v12, %v9197_v31  ;;  %v9213_v19 = vsel %vm58_vm0, %v13270_v8, 0.0  ;;  %v9229_v10 = vmul.f32 %v13270_v8, %v13270_v8 }
0x4366   :  { %v9222_v32 = vsel %vm58_vm0, %v16871_v22, 0.0  ;;  %v9232_v56 = vmul.f32 %v16871_v22, %v16871_v22  ;;  %v9239_v28 = vsel %vm58_vm0, %v9231_v63, 0.0 }
0x4367   :  { %9223 = vadd.xlane.f32.xlu1 %v9222_v32  ;;  %v9216_v59 = vsel %vm58_vm0, %v13272_v7, 0.0  ;;  %v9230_v39 = vmul.f32 %v13272_v7, %v13272_v7  ;;  %v9233_v5 = vsel %vm58_vm0, %v9229_v10, 0.0 }
0x4368   :  { %v9242_v47 = vsel %vm58_vm0, %v9232_v56, 0.0 }
0x4369   :  { %9214 = vadd.xlane.f32.xlu0 %v9213_v19  ;;  %v9236_v0 = vsel %vm58_vm0, %v9230_v39, 0.0 }
0x436b   :  { %9217 = vadd.xlane.f32.xlu1 %v9216_v59 }
0x436d   :  { %9234 = vadd.xlane.f32.xlu0 %v9233_v5 }
0x436f   :  { %9237 = vadd.xlane.f32.xlu1 %v9236_v0 }
0x4371   :  { %9240 = vadd.xlane.f32.xlu0 %v9239_v28 }
0x4373   :  { %9243 = vadd.xlane.f32.xlu1 %v9242_v47 }
0x43f2   :  { %v9221_v2 = vpop.xlane.xlu0 %9220 }
0x43f3   :  { %v9227_v1 = vmul.f32 0.03125, %v9221_v2 }
0x43f4   :  { %v9224_v33 = vpop.xlane.xlu1 %9223 }
0x43f5   :  { %v9228_v13 = vmul.f32 0.03125, %v9224_v33  ;;  %v9251_v36 = vmul.f32 %v9227_v1, %v9227_v1  ;;  %v9259_v10 = vsub.f32 %v16862_v9, %v9227_v1 }
0x43f6   :  { %v9215_v23 = vpop.xlane.xlu0 %9214 }
0x43f7   :  { %v9225_v42 = vmul.f32 0.03125, %v9215_v23  ;;  %v9252_v27 = vmul.f32 %v9228_v13, %v9228_v13  ;;  %v9260_v63 = vsub.f32 %v16871_v22, %v9228_v13 }
0x43f8   :  { %v9218_v30 = vpop.xlane.xlu1 %9217 }
0x43f9   :  { %v9226_v17 = vmul.f32 0.03125, %v9218_v30  ;;  %v9249_v25 = vmul.f32 %v9225_v42, %v9225_v42  ;;  %v9257_v15 = vsub.f32 %v13270_v8, %v9225_v42 }
0x43fa   :  { %v9235_v62 = vpop.xlane.xlu0 %9234 }
0x43fb   :  { %v9245_v4 = vmul.f32 0.03125, %v9235_v62  ;;  %v9250_v34 = vmul.f32 %v9226_v17, %v9226_v17  ;;  %v9258_v18 = vsub.f32 %v13272_v7, %v9226_v17 }
0x43fc   :  { %v9238_v3 = vpop.xlane.xlu1 %9237 }
0x43fd   :  { %v9253_v46 = vsub.f32 %v9245_v4, %v9249_v25  ;;  %v9246_v50 = vmul.f32 0.03125, %v9238_v3  ;;  %v17444_v25 = vld [vmem:[#allocation7_spill] sm:$0xff] }
0x43fe   :  { %v9241_v29 = vpop.xlane.xlu0 %9240 }
0x43ff   :  { %v9261_v61 = vadd.f32 1e-05, %v9253_v46  ;;  %v9254_v53 = vsub.f32 %v9246_v50, %v9250_v34  ;;  %v9247_v57 = vmul.f32 0.03125, %v9241_v29  ;;  %v17447_v29 = vld [vmem:[#allocation10_spill] sm:$0xff] }
0x4400   :  { %v9244_v11 = vpop.xlane.xlu1 %9243 }
0x4401   :  { %13808 = vrsqrt.f32 %v9261_v61  ;;  %v9262_v45 = vadd.f32 1e-05, %v9254_v53  ;;  %v9255_v16 = vsub.f32 %v9247_v57, %v9251_v36  ;;  %v9248_v38 = vmul.f32 0.03125, %v9244_v11  ;;  %v17448_v57 = vld [vmem:[#allocation19_spill] sm:$0xff]  ;;  %v14022_v11 = vld [vmem:[%s17314_s1] sm:$0xff]  }
0x4403   :  { %13810 = vrsqrt.f32 %v9262_v45  ;;  %v9263_v51 = vadd.f32 1e-05, %v9255_v16  ;;  %v9256_v35 = vsub.f32 %v9248_v38, %v9252_v27  ;;  %v17449_v27 = vld [vmem:[#allocation20_spill] sm:$0xff]  ;;  %v17450_v16 = vld [vmem:[#allocation21_spill] sm:$0xff] }
0x4405   :  { %13812 = vrsqrt.f32 %v9263_v51  ;;  %v9264_v58 = vadd.f32 1e-05, %v9256_v35 }
0x4407   :  { %13814 = vrsqrt.f32 %v9264_v58 }
0x440b   :  { %v13809_v31 = vpop.eup %13808 }
0x440c   :  { %v9269_v32 = vmul.f32 %v13809_v31, %v9257_v15  ;;  %v16933_v15 = vld [vmem:[%s17315_s2 + $0xa] ss:$0 sm:$0xff] }
0x440d   :  { %v13811_v19 = vpop.eup %13810 }
0x440e   :  { %v9270_v59 = vmul.f32 %v13811_v19, %v9258_v18  ;;  %v9273_v39 = vmul.f32 %v16544_v54, %v9269_v32 }
0x440f   :  { %v13813_v5 = vpop.eup %13812 }
0x4410   :  { %v9274_v0 = vmul.f32 %v16544_v54, %v9270_v59  ;;  %v9277_v56 = vadd.f32 %v16551_v55, %v9273_v39  ;;  %v9271_v28 = vmul.f32 %v13813_v5, %v9259_v10 }
0x4411   :  { %v13815_v47 = vpop.eup %13814 }
0x4412   :  { %v9278_v8 = vadd.f32 %v16551_v55, %v9274_v0  ;;  %v9272_v2 = vmul.f32 %v13815_v47, %v9260_v63  ;;  %v9275_v7 = vmul.f32 %v16544_v54, %v9271_v28  ;;  %v9281_v33 = vmax.f32 %v9277_v56, 0.0 }
0x4414   :  { %v9282_v23 = vmax.f32 %v9278_v8, 0.0  ;;  %v9276_v9 = vmul.f32 %v16544_v54, %v9272_v2  ;;  %v9279_v42 = vadd.f32 %v16551_v55, %v9275_v7  ;;  %v17445_v54 = vld [vmem:[#allocation8_spill] sm:$0xff] }
0x4416   :  { %v9285_v30 = vpack.c.bf16 %v9282_v23, %v9281_v33  ;;  %v9280_v22 = vadd.f32 %v16551_v55, %v9276_v9  ;;  %v9283_v17 = vmax.f32 %v9279_v42, 0.0  ;;  %v17446_v55 = vld [vmem:[#allocation9_spill] sm:$0xff] }
0x4418   :  { %12969 = vmatprep.subr.bf16.mxu0 %v9285_v30  ;;  %v9284_v62 = vmax.f32 %v9280_v22, 0.0 }
0x4419   :  { %12970 = vmatpush3.bf16.msra.mxu0 %v9285_v30 }
0x441a   :  { %v9286_v1 = vpack.c.bf16 %v9284_v62, %v9283_v17 }
0x441c   :  { %12971 = vmatprep.subr.bf16.mxu0 %v9286_v1 }
0x441d   :  { %12972 = vmatpush3.bf16.msra.mxu0 %v9286_v1 }
0x441e   :  { %12981 = vmatprep.subr.bf16.mxu0 %v17444_v25 }
0x4420   :  { %12974 = vmatmul.mubr.msk.bf16.vlgmr.msra.gmra.mrb[156].mxu0 %vm58_vm0, %v16564_v49 }
0x4421   :  { %12977 = vmatprep.mubr.msk.bf16.mxu0 %vm58_vm0, %v16571_v20  ;;  %12982 = vmatpush3.bf16.msra.mxu0 %v17444_v25 }
0x4422   :  { %12983 = vmatprep.subr.bf16.mxu0 %v17445_v54 }
0x4425   :  { %12984 = vmatpush3.bf16.msra.mxu0 %v17445_v54 }
0x4426   :  { %12989 = vmatprep.subr.bf16.mxu0 %v17446_v55 }
0x4428   :  { %12978 = vmatmul.mubr.msk.bf16.gmra.mrb[160].mxu0 %vm58_vm0, %v16587_v14 }
0x44f3   :  { %v12975_v4 = vpop.f32.mrb[156].mxu0 }
0x44f4   :  { %v9321_v13 = vpop.f32.mrb[157].mxu0 }
0x44f5   :  { %v12976_v3 = vpop.f32.mrb[158].mxu0 }
0x44f6   :  { %v9353_v34 = vpack.c.bf16 %v12976_v3, %v12975_v4  ;;  %v9324_v46 = vpop.f32.mrb[159].mxu0 }
0x44f7   :  { %v9352_v49 = vpack.c.bf16 %v9324_v46, %v9321_v13 }
0x44f9   :  { %12985 = vmatprep.mubr.msk.bf16.mxu0 %vm58_vm0, %v9352_v49 }
0x44fa   :  { %12986 = vmatmul.mubr.msk.bf16.vlgmr.msra.gmra.mrb[164].mxu0 %vm58_vm0, %v9353_v34 }
0x44fb   :  { %v12979_v20 = vpop.f32.mrb[160].mxu0  ;;  %12990 = vmatpush3.bf16.msra.mxu0 %v17446_v55 }
0x44fc   :  { %v9337_v50 = vpop.f32.mrb[161].mxu0  ;;  %12991 = vmatprep.subr.bf16.mxu0 %v17447_v29 }
0x44fd   :  { %v12980_v36 = vpop.f32.mrb[162].mxu0 }
0x44fe   :  { %v9355_v61 = vpack.c.bf16 %v12980_v36, %v12979_v20  ;;  %v9340_v53 = vpop.f32.mrb[163].mxu0 }
0x44ff   :  { %v9354_v14 = vpack.c.bf16 %v9340_v53, %v9337_v50  ;;  %12992 = vmatpush3.bf16.msra.mxu0 %v17447_v29 }
0x4500   :  { %12997 = vmatprep.subr.bf16.mxu0 %v17448_v57 }
0x4501   :  { %12993 = vmatprep.mubr.msk.bf16.mxu0 %vm58_vm0, %v9354_v14 }
0x4506   :  { %12994 = vmatmul.mubr.msk.bf16.vlgmr.msra.gmra.mrb[164].mxu0 %vm58_vm0, %v9355_v61 }
0x4507   :  { %13001 = vmatprep.mubr.msk.bf16.mxu0 %vm58_vm0, %v9285_v30  ;;  %12998 = vmatpush3.bf16.msra.mxu0 %v17448_v57 }
0x4508   :  { %12999 = vmatprep.subr.bf16.mxu0 %v17449_v27 }
0x450b   :  { %13000 = vmatpush3.bf16.msra.mxu0 %v17449_v27 }
0x4512   :  { %13002 = vmatmul.mubr.msk.bf16.vlgmr.msra.gmra.mrb[164].mxu0 %vm58_vm0, %v9286_v1 }
0x4513   :  { %13045 = vmatprep.mubr.msk.bf16.mxu0 %vm58_vm0, %v14022_v11 }
0x45e5   :  { %v13003_v45 = vpop.f32.mrb[164].mxu0 }
0x45e6   :  { %v16927_v38 = vadd.f32 %v17450_v16, %v13003_v45  ;;  %v9514_v51 = vpop.f32.mrb[165].mxu0 }
0x45e7   :  { %v13004_v35 = vpop.f32.mrb[166].mxu0  ;;  %v13274_v58 = vadd.f32 %v17450_v16, %v9514_v51 }
0x45e8   :  { %v16936_v31 = vadd.f32 %v16933_v15, %v13004_v35  ;;  %v9517_v18 = vpop.f32.mrb[167].mxu0  ;;  %v9539_v32 = vsel %vm58_vm0, %v16927_v38, 0.0  ;;  %v9551_v56 = vmul.f32 %v16927_v38, %v16927_v38 }
0x45e9   :  { %9540 = vadd.xlane.f32.xlu0 %v9539_v32  ;;  %v13276_v19 = vadd.f32 %v16933_v15, %v9517_v18  ;;  %v9533_v59 = vsel %vm58_vm0, %v13274_v58, 0.0  ;;  %v9549_v39 = vmul.f32 %v13274_v58, %v13274_v58 }
0x45ea   :  { %v9542_v10 = vsel %vm58_vm0, %v16936_v31, 0.0  ;;  %v9552_v47 = vmul.f32 %v16936_v31, %v16936_v31  ;;  %v9559_v8 = vsel %vm58_vm0, %v9551_v56, 0.0 }
0x45eb   :  { %9543 = vadd.xlane.f32.xlu1 %v9542_v10  ;;  %v9536_v5 = vsel %vm58_vm0, %v13276_v19, 0.0  ;;  %v9550_v63 = vmul.f32 %v13276_v19, %v13276_v19  ;;  %v9553_v0 = vsel %vm58_vm0, %v9549_v39, 0.0 }
0x45ec   :  { %v9562_v2 = vsel %vm58_vm0, %v9552_v47, 0.0 }
0x45ed   :  { %9534 = vadd.xlane.f32.xlu0 %v9533_v59  ;;  %v9556_v28 = vsel %vm58_vm0, %v9550_v63, 0.0 }
0x45ef   :  { %9537 = vadd.xlane.f32.xlu1 %v9536_v5 }
0x45f1   :  { %9554 = vadd.xlane.f32.xlu0 %v9553_v0 }
0x45f3   :  { %9557 = vadd.xlane.f32.xlu1 %v9556_v28 }
0x45f5   :  { %9560 = vadd.xlane.f32.xlu0 %v9559_v8 }
0x45f7   :  { %9563 = vadd.xlane.f32.xlu1 %v9562_v2 }
0x4676   :  { %v9541_v7 = vpop.xlane.xlu0 %9540 }
0x4677   :  { %v9547_v17 = vmul.f32 0.03125, %v9541_v7 }
0x4678   :  { %v9544_v33 = vpop.xlane.xlu1 %9543 }
0x4679   :  { %v9548_v25 = vmul.f32 0.03125, %v9544_v33  ;;  %v9571_v34 = vmul.f32 %v9547_v17, %v9547_v17  ;;  %v9579_v18 = vsub.f32 %v16927_v38, %v9547_v17  ;;  %v17005_v17 = vld [vmem:[%s17314_s1 + $0x18] sm:$0xff]  }
0x467a   :  { %v9535_v23 = vpop.xlane.xlu0 %9534 }
0x467b   :  { %v9545_v9 = vmul.f32 0.03125, %v9535_v23  ;;  %v9572_v50 = vmul.f32 %v9548_v25, %v9548_v25  ;;  %v9580_v39 = vsub.f32 %v16936_v31, %v9548_v25 }
0x467c   :  { %v9538_v42 = vpop.xlane.xlu1 %9537 }
0x467d   :  { %v9546_v30 = vmul.f32 0.03125, %v9538_v42  ;;  %v9569_v62 = vmul.f32 %v9545_v9, %v9545_v9  ;;  %v9577_v11 = vsub.f32 %v13274_v58, %v9545_v9 }
0x467e   :  { %v9555_v22 = vpop.xlane.xlu0 %9554 }
0x467f   :  { %v9565_v1 = vmul.f32 0.03125, %v9555_v22  ;;  %v9570_v55 = vmul.f32 %v9546_v30, %v9546_v30  ;;  %v9578_v16 = vsub.f32 %v13276_v19, %v9546_v30  ;;  %v14028_v22 = vld [vmem:[%s17314_s1 + $0x80] sm:$0xff]  }
0x4680   :  { %v9558_v54 = vpop.xlane.xlu1 %9557 }
0x4681   :  { %v9573_v4 = vsub.f32 %v9565_v1, %v9569_v62  ;;  %v9566_v13 = vmul.f32 0.03125, %v9558_v54 }
0x4682   :  { %v9561_v3 = vpop.xlane.xlu0 %9560 }
0x4683   :  { %v9581_v46 = vadd.f32 1e-05, %v9573_v4  ;;  %v9574_v49 = vsub.f32 %v9566_v13, %v9570_v55  ;;  %v9567_v20 = vmul.f32 0.03125, %v9561_v3 }
0x4684   :  { %v9564_v29 = vpop.xlane.xlu1 %9563 }
0x4685   :  { %13816 = vrsqrt.f32 %v9581_v46  ;;  %v9582_v36 = vadd.f32 1e-05, %v9574_v49  ;;  %v9575_v61 = vsub.f32 %v9567_v20, %v9571_v34  ;;  %v9568_v53 = vmul.f32 0.03125, %v9564_v29  ;;  %v14030_v34 = vld [vmem:[%s17314_s1 + $0x88] sm:$0xff]   ;;  %v14031_v29 = vld [vmem:[%s17314_s1 + $0x90] sm:$0xff]  }
0x4687   :  { %13818 = vrsqrt.f32 %v9582_v36  ;;  %v9583_v14 = vadd.f32 1e-05, %v9575_v61  ;;  %v9576_v57 = vsub.f32 %v9568_v53, %v9572_v50  ;;  %v14032_v36 = vld [vmem:[%s17314_s1 + $0x98] sm:$0xff]   ;;  %v14033_v53 = vld [vmem:[%s17315_s2 + $0x1] ss:$0 sm:$0xff] }
0x4689   :  { %13820 = vrsqrt.f32 %v9583_v14  ;;  %v9584_v27 = vadd.f32 1e-05, %v9576_v57 }
0x468b   :  { %13822 = vrsqrt.f32 %v9584_v27 }
0x468f   :  { %v13817_v45 = vpop.eup %13816 }
0x4690   :  { %v9589_v51 = vmul.f32 %v13817_v45, %v9577_v11 }
0x4691   :  { %v13819_v35 = vpop.eup %13818 }
0x4692   :  { %v9590_v32 = vmul.f32 %v13819_v35, %v9578_v16  ;;  %v9593_v10 = vmul.f32 %v16662_v6, %v9589_v51 }
0x4693   :  { %v13821_v59 = vpop.eup %13820 }
0x4694   :  { %v9594_v5 = vmul.f32 %v16662_v6, %v9590_v32  ;;  %v9597_v63 = vadd.f32 %v16669_v21, %v9593_v10  ;;  %v9591_v0 = vmul.f32 %v13821_v59, %v9579_v18 }
0x4695   :  { %v13823_v56 = vpop.eup %13822 }
0x4696   :  { %v9598_v58 = vadd.f32 %v16669_v21, %v9594_v5  ;;  %v9601_v28 = vmax.f32 %v9597_v63, 0.0  ;;  %v9592_v19 = vmul.f32 %v13823_v56, %v9580_v39  ;;  %v9595_v47 = vmul.f32 %v16662_v6, %v9591_v0 }
0x4698   :  { %v9602_v8 = vmax.f32 %v9598_v58, 0.0  ;;  %v9596_v38 = vmul.f32 %v16662_v6, %v9592_v19  ;;  %v9599_v2 = vadd.f32 %v16669_v21, %v9595_v47  ;;  %v16963_v7 = vadd.f32 %v9601_v28, %v16819_v48 }
0x469a   :  { %v16966_v31 = vadd.f32 %v9602_v8, %v16822_v41  ;;  %v9600_v33 = vadd.f32 %v16669_v21, %v9596_v38  ;;  %v9603_v23 = vmax.f32 %v9599_v2, 0.0  ;;  %v14024_v21 = vld [vmem:[%s17314_s1 + $0x70] sm:$0xff]   ;;  %v16985_v41 = vld [vmem:[%s17314_s1 + $0x8] sm:$0xff]  }
0x469c   :  { %v9609_v9 = vpack.c.bf16 %v16966_v31, %v16963_v7  ;;  %v9604_v42 = vmax.f32 %v9600_v33, 0.0  ;;  %v16972_v30 = vadd.f32 %v9603_v23, %v16828_v60  ;;  %v16992_v60 = vld [vmem:[%s17314_s1 + $0x10] sm:$0xff]  }
0x469e   :  { %13005 = vmatprep.subr.bf16.mxu1 %v9609_v9  ;;  %v16975_v6 = vadd.f32 %v9604_v42, %v16831_v37  ;;  %v14027_v37 = vld [vmem:[%s17314_s1 + $0x78] sm:$0xff]  }
0x469f   :  { %13006 = vmatpush3.bf16.msra.mxu1 %v9609_v9 }
0x46a0   :  { %v9610_v48 = vpack.c.bf16 %v16975_v6, %v16972_v30 }
0x46a2   :  { %13007 = vmatprep.subr.bf16.mxu1 %v9610_v48 }
0x46a3   :  { %13008 = vmatpush3.bf16.msra.mxu1 %v9610_v48 }
0x46a4   :  { %13017 = vmatprep.subr.bf16.mxu1 %v14024_v21 }
0x46a6   :  { %13010 = vmatmul.mubr.msk.bf16.vlgmr.msra.gmra.mrb[172].mxu1 %vm58_vm0, %v16985_v41 }
0x46a7   :  { %13013 = vmatprep.mubr.msk.bf16.mxu1 %vm58_vm0, %v16992_v60  ;;  %13018 = vmatpush3.bf16.msra.mxu1 %v14024_v21 }
0x46a8   :  { %13019 = vmatprep.subr.bf16.mxu1 %v14027_v37 }
0x46ab   :  { %13020 = vmatpush3.bf16.msra.mxu1 %v14027_v37 }
0x46ac   :  { %13025 = vmatprep.subr.bf16.mxu1 %v14028_v22 }
0x46ae   :  { %13014 = vmatmul.mubr.msk.bf16.gmra.mrb[176].mxu1 %vm58_vm0, %v17005_v17 }
0x4779   :  { %v13011_v62 = vpop.f32.mrb[172].mxu1 }
0x477a   :  { %v9645_v1 = vpop.f32.mrb[173].mxu1 }
0x477b   :  { %v13012_v25 = vpop.f32.mrb[174].mxu1 }
0x477c   :  { %v9677_v54 = vpack.c.bf16 %v13012_v25, %v13011_v62  ;;  %v9648_v55 = vpop.f32.mrb[175].mxu1 }
0x477d   :  { %v9676_v4 = vpack.c.bf16 %v9648_v55, %v9645_v1 }
0x477f   :  { %13021 = vmatprep.mubr.msk.bf16.mxu1 %vm58_vm0, %v9676_v4 }
0x4780   :  { %13022 = vmatmul.mubr.msk.bf16.vlgmr.msra.gmra.mrb[180].mxu1 %vm58_vm0, %v9677_v54 }
0x4781   :  { %v13015_v13 = vpop.f32.mrb[176].mxu1  ;;  %13026 = vmatpush3.bf16.msra.mxu1 %v14028_v22 }
0x4782   :  { %v9661_v3 = vpop.f32.mrb[177].mxu1  ;;  %13027 = vmatprep.subr.bf16.mxu1 %v14030_v34 }
0x4783   :  { %v13016_v46 = vpop.f32.mrb[178].mxu1 }
0x4784   :  { %v9679_v49 = vpack.c.bf16 %v13016_v46, %v13015_v13  ;;  %v9664_v20 = vpop.f32.mrb[179].mxu1 }
0x4785   :  { %v9678_v50 = vpack.c.bf16 %v9664_v20, %v9661_v3  ;;  %13028 = vmatpush3.bf16.msra.mxu1 %v14030_v34 }
0x4786   :  { %13033 = vmatprep.subr.bf16.mxu1 %v14031_v29 }
0x4787   :  { %13029 = vmatprep.mubr.msk.bf16.mxu1 %vm58_vm0, %v9678_v50 }
0x478c   :  { %13030 = vmatmul.mubr.msk.bf16.vlgmr.msra.gmra.mrb[180].mxu1 %vm58_vm0, %v9679_v49 }
0x478d   :  { %13037 = vmatprep.mubr.msk.bf16.mxu1 %vm58_vm0, %v9609_v9  ;;  %13034 = vmatpush3.bf16.msra.mxu1 %v14031_v29 }
0x478e   :  { %13035 = vmatprep.subr.bf16.mxu1 %v14032_v36 }
0x4791   :  { %13036 = vmatpush3.bf16.msra.mxu1 %v14032_v36 }
0x4798   :  { %13038 = vmatmul.mubr.msk.bf16.vlgmr.msra.gmra.mrb[180].mxu1 %vm58_vm0, %v9610_v48 }
0x4799   :  { %13081 = vmatprep.mubr.msk.bf16.mxu1 %vm58_vm0, %v16778_v26 }
0x486b   :  { %v13039_v61 = vpop.f32.mrb[180].mxu1 }
0x486c   :  { %v13277_v14 = vadd.f32 %v14033_v53, %v13039_v61  ;;  %v9838_v57 = vpop.f32.mrb[181].mxu1 }
0x486d   :  { %v13278_v27 = vadd.f32 %v14033_v53, %v9838_v57  ;;  %v13040_v11 = vpop.f32.mrb[182].mxu1 }
0x486e   :  { %v17030_v45 = vadd.f32 %v13277_v14, %v14247_v52  ;;  %v13279_v16 = vadd.f32 %v14033_v53, %v13040_v11  ;;  %v9841_v51 = vpop.f32.mrb[183].mxu1 }
0x486f   :  { %v13280_v35 = vadd.f32 %v14033_v53, %v9841_v51  ;;  %v9857_v18 = vadd.f32 %v13278_v27, %v14235_v40  ;;  %v14034_v51 = vld [vmem:[%s17315_s2 + $0x2] ss:$0 sm:$0xff] }
0x4870   :  { %v17034_v32 = vadd.f32 %v13279_v16, %v14237_v44  ;;  %v9867_v10 = vsel %vm58_vm0, %v17030_v45, 0.0  ;;  %v9879_v0 = vmul.f32 %v17030_v45, %v17030_v45 }
0x4871   :  { %9868 = vadd.xlane.f32.xlu0 %v9867_v10  ;;  %v9858_v59 = vadd.f32 %v13280_v35, %v17434_v24  ;;  %v9861_v52 = vsel %vm58_vm0, %v9857_v18, 0.0  ;;  %v9877_v5 = vmul.f32 %v9857_v18, %v9857_v18 }
0x4872   :  { %v9870_v39 = vsel %vm58_vm0, %v17034_v32, 0.0  ;;  %v9880_v56 = vmul.f32 %v17034_v32, %v17034_v32  ;;  %v9887_v58 = vsel %vm58_vm0, %v9879_v0, 0.0 }
0x4873   :  { %9871 = vadd.xlane.f32.xlu1 %v9870_v39  ;;  %v9864_v63 = vsel %vm58_vm0, %v9858_v59, 0.0  ;;  %v9878_v40 = vmul.f32 %v9858_v59, %v9858_v59  ;;  %v9881_v44 = vsel %vm58_vm0, %v9877_v5, 0.0 }
0x4874   :  { %v9890_v28 = vsel %vm58_vm0, %v9880_v56, 0.0 }
0x4875   :  { %9862 = vadd.xlane.f32.xlu0 %v9861_v52  ;;  %v9884_v24 = vsel %vm58_vm0, %v9878_v40, 0.0 }
0x4877   :  { %9865 = vadd.xlane.f32.xlu1 %v9864_v63 }
0x4879   :  { %9882 = vadd.xlane.f32.xlu0 %v9881_v44 }
0x487b   :  { %9885 = vadd.xlane.f32.xlu1 %v9884_v24 }
0x487d   :  { %9888 = vadd.xlane.f32.xlu0 %v9887_v58 }
0x487f   :  { %9891 = vadd.xlane.f32.xlu1 %v9890_v28 }
0x48fe   :  { %v9869_v19 = vpop.xlane.xlu0 %9868 }
0x48ff   :  { %v9875_v9 = vmul.f32 0.03125, %v9869_v19 }
0x4900   :  { %v9872_v47 = vpop.xlane.xlu1 %9871 }
0x4901   :  { %v9876_v21 = vmul.f32 0.03125, %v9872_v47  ;;  %v9899_v54 = vmul.f32 %v9875_v9, %v9875_v9  ;;  %v9907_v11 = vsub.f32 %v17030_v45, %v9875_v9 }
0x4902   :  { %v9863_v8 = vpop.xlane.xlu0 %9862 }
0x4903   :  { %v9873_v38 = vmul.f32 0.03125, %v9863_v8  ;;  %v9900_v3 = vmul.f32 %v9876_v21, %v9876_v21  ;;  %v9908_v39 = vsub.f32 %v17034_v32, %v9876_v21 }
0x4904   :  { %v9866_v2 = vpop.xlane.xlu1 %9865 }
0x4905   :  { %v9874_v33 = vmul.f32 0.03125, %v9866_v2  ;;  %v9897_v42 = vmul.f32 %v9873_v38, %v9873_v38  ;;  %v9905_v61 = vsub.f32 %v9857_v18, %v9873_v38  ;;  %v14035_v18 = vld [vmem:[%s17315_s2 + $0x3] ss:$0 sm:$0xff]  ;;  %v14037_v2 = vld [vmem:[%s17314_s1 + $0xa8] sm:$0xff]  }
0x4906   :  { %v9883_v23 = vpop.xlane.xlu0 %9882  ;;  %v14036_v38 = vld [vmem:[%s17314_s1 + $0xa0] sm:$0xff]  }
0x4907   :  { %v9893_v48 = vmul.f32 0.03125, %v9883_v23  ;;  %v9898_v22 = vmul.f32 %v9874_v33, %v9874_v33  ;;  %v9906_v14 = vsub.f32 %v9858_v59, %v9874_v33  ;;  %v14038_v33 = vld [vmem:[%s17314_s1 + $0xb0] sm:$0xff]  }
0x4908   :  { %v9886_v37 = vpop.xlane.xlu1 %9885 }
0x4909   :  { %v9901_v62 = vsub.f32 %v9893_v48, %v9897_v42  ;;  %v9894_v1 = vmul.f32 0.03125, %v9886_v37 }
0x490a   :  { %v9889_v25 = vpop.xlane.xlu0 %9888 }
0x490b   :  { %v9909_v55 = vadd.f32 1e-05, %v9901_v62  ;;  %v9902_v4 = vsub.f32 %v9894_v1, %v9898_v22  ;;  %v9895_v13 = vmul.f32 0.03125, %v9889_v25  ;;  %v14039_v22 = vld [vmem:[%s17314_s1 + $0xb8] sm:$0xff]  }
0x490c   :  { %v9892_v34 = vpop.xlane.xlu1 %9891 }
0x490d   :  { %13824 = vrsqrt.f32 %v9909_v55  ;;  %v9910_v46 = vadd.f32 1e-05, %v9902_v4  ;;  %v9903_v49 = vsub.f32 %v9895_v13, %v9899_v54  ;;  %v9896_v20 = vmul.f32 0.03125, %v9892_v34  ;;  %v14040_v54 = vld [vmem:[%s17314_s1 + $0xc0] sm:$0xff]   ;;  %v14041_v55 = vld [vmem:[%s17314_s1 + $0xc8] sm:$0xff]  }
0x490f   :  { %13826 = vrsqrt.f32 %v9910_v46  ;;  %v9911_v50 = vadd.f32 1e-05, %v9903_v49  ;;  %v9904_v29 = vsub.f32 %v9896_v20, %v9900_v3 }
0x4911   :  { %13828 = vrsqrt.f32 %v9911_v50  ;;  %v9912_v36 = vadd.f32 1e-05, %v9904_v29 }
0x4913   :  { %13830 = vrsqrt.f32 %v9912_v36 }
0x4917   :  { %v13825_v53 = vpop.eup %13824 }
0x4918   :  { %v9917_v57 = vmul.f32 %v13825_v53, %v9905_v61 }
0x4919   :  { %v13827_v27 = vpop.eup %13826 }
0x491a   :  { %v9918_v16 = vmul.f32 %v13827_v27, %v9906_v14  ;;  %v9921_v35 = vmul.f32 %v14034_v51, %v9917_v57 }
0x491b   :  { %v13829_v10 = vpop.eup %13828 }
0x491c   :  { %v9922_v52 = vmul.f32 %v14034_v51, %v9918_v16  ;;  %v9925_v5 = vadd.f32 %v14035_v18, %v9921_v35  ;;  %v9919_v59 = vmul.f32 %v13829_v10, %v9907_v11 }
0x491d   :  { %v13831_v63 = vpop.eup %13830 }
0x491e   :  { %v9926_v40 = vadd.f32 %v14035_v18, %v9922_v52  ;;  %v9920_v44 = vmul.f32 %v13831_v63, %v9908_v39  ;;  %v9923_v45 = vmul.f32 %v14034_v51, %v9919_v59  ;;  %v9929_v0 = vmax.f32 %v9925_v5, 0.0 }
0x4920   :  { %v9930_v24 = vmax.f32 %v9926_v40, 0.0  ;;  %v9924_v56 = vmul.f32 %v14034_v51, %v9920_v44  ;;  %v9927_v58 = vadd.f32 %v14035_v18, %v9923_v45 }
0x4922   :  { %v9933_v28 = vpack.c.bf16 %v9930_v24, %v9929_v0  ;;  %v9928_v19 = vadd.f32 %v14035_v18, %v9924_v56  ;;  %v9931_v47 = vmax.f32 %v9927_v58, 0.0 }
0x4924   :  { %13041 = vmatprep.subr.bf16.mxu0 %v9933_v28  ;;  %v9932_v32 = vmax.f32 %v9928_v19, 0.0 }
0x4925   :  { %13042 = vmatpush3.bf16.msra.mxu0 %v9933_v28 }
0x4926   :  { %v9934_v8 = vpack.c.bf16 %v9932_v32, %v9931_v47 }
0x4928   :  { %13043 = vmatprep.subr.bf16.mxu0 %v9934_v8 }
0x4929   :  { %13044 = vmatpush3.bf16.msra.mxu0 %v9934_v8 }
0x492a   :  { %13053 = vmatprep.subr.bf16.mxu0 %v14036_v38 }
0x492c   :  { %13046 = vmatmul.mubr.msk.bf16.vlgmr.msra.gmra.mrb[168].mxu0 %vm58_vm0, %v16985_v41 }
0x492d   :  { %13049 = vmatprep.mubr.msk.bf16.mxu0 %vm58_vm0, %v16992_v60  ;;  %13054 = vmatpush3.bf16.msra.mxu0 %v14036_v38 }
0x492e   :  { %13055 = vmatprep.subr.bf16.mxu0 %v14037_v2 }
0x4931   :  { %13056 = vmatpush3.bf16.msra.mxu0 %v14037_v2 }
0x4932   :  { %13061 = vmatprep.subr.bf16.mxu0 %v14038_v33 }
0x4934   :  { %13050 = vmatmul.mubr.msk.bf16.gmra.mrb[172].mxu0 %vm58_vm0, %v17005_v17 }
0x49ff   :  { %v13047_v23 = vpop.f32.mrb[168].mxu0 }
0x4a00   :  { %v9969_v41 = vpop.f32.mrb[169].mxu0 }
0x4a01   :  { %v13048_v9 = vpop.f32.mrb[170].mxu0 }
0x4a02   :  { %v10001_v42 = vpack.c.bf16 %v13048_v9, %v13047_v23  ;;  %v9972_v60 = vpop.f32.mrb[171].mxu0 }
0x4a03   :  { %v10000_v48 = vpack.c.bf16 %v9972_v60, %v9969_v41 }
0x4a05   :  { %13057 = vmatprep.mubr.msk.bf16.mxu0 %vm58_vm0, %v10000_v48 }
0x4a06   :  { %13058 = vmatmul.mubr.msk.bf16.vlgmr.msra.gmra.mrb[176].mxu0 %vm58_vm0, %v10001_v42 }
0x4a07   :  { %v13051_v21 = vpop.f32.mrb[172].mxu0  ;;  %13062 = vmatpush3.bf16.msra.mxu0 %v14038_v33 }
0x4a08   :  { %v9985_v37 = vpop.f32.mrb[173].mxu0  ;;  %13063 = vmatprep.subr.bf16.mxu0 %v14039_v22 }
0x4a09   :  { %v13052_v62 = vpop.f32.mrb[174].mxu0 }
0x4a0a   :  { %v10003_v17 = vpack.c.bf16 %v13052_v62, %v13051_v21  ;;  %v9988_v1 = vpop.f32.mrb[175].mxu0 }
0x4a0b   :  { %v10002_v25 = vpack.c.bf16 %v9988_v1, %v9985_v37  ;;  %13064 = vmatpush3.bf16.msra.mxu0 %v14039_v22 }
0x4a0c   :  { %13069 = vmatprep.subr.bf16.mxu0 %v14040_v54 }
0x4a0d   :  { %13065 = vmatprep.mubr.msk.bf16.mxu0 %vm58_vm0, %v10002_v25 }
0x4a12   :  { %13066 = vmatmul.mubr.msk.bf16.vlgmr.msra.gmra.mrb[176].mxu0 %vm58_vm0, %v10003_v17 }
0x4a13   :  { %13073 = vmatprep.mubr.msk.bf16.mxu0 %vm58_vm0, %v9933_v28  ;;  %13070 = vmatpush3.bf16.msra.mxu0 %v14040_v54  ;;  %v14043_v54 = vld [vmem:[%s17315_s2 + $0x5] ss:$0 sm:$0xff] }
0x4a14   :  { %13071 = vmatprep.subr.bf16.mxu0 %v14041_v55 }
0x4a17   :  { %13072 = vmatpush3.bf16.msra.mxu0 %v14041_v55 }
0x4a1e   :  { %13074 = vmatmul.mubr.msk.bf16.vlgmr.msra.gmra.mrb[176].mxu0 %vm58_vm0, %v9934_v8 }
0x4a1f   :  { %13117 = vmatprep.mubr.msk.bf16.mxu0 %vm58_vm0, %v16778_v26  ;;  %v14042_v26 = vld [vmem:[%s17315_s2 + $0x4] ss:$0 sm:$0xff] }
0x4af1   :  { %v13075_v4 = vpop.f32.mrb[176].mxu0 }
0x4af2   :  { %v17092_v13 = vadd.f32 %v16789_v43, %v13075_v4  ;;  %v10162_v3 = vpop.f32.mrb[177].mxu0 }
0x4af3   :  { %v13076_v34 = vpop.f32.mrb[178].mxu0  ;;  %v13282_v46 = vadd.f32 %v16789_v43, %v10162_v3 }
0x4af4   :  { %v17096_v49 = vadd.f32 %v16789_v43, %v13076_v34  ;;  %v10165_v20 = vpop.f32.mrb[179].mxu0  ;;  %v10187_v50 = vsel %vm58_vm0, %v17092_v13, 0.0  ;;  %v10199_v27 = vmul.f32 %v17092_v13, %v17092_v13 }
0x4af5   :  { %10188 = vadd.xlane.f32.xlu0 %v10187_v50  ;;  %v13284_v29 = vadd.f32 %v14042_v26, %v10165_v20  ;;  %v10181_v61 = vsel %vm58_vm0, %v13282_v46, 0.0  ;;  %v10197_v53 = vmul.f32 %v13282_v46, %v13282_v46 }
0x4af6   :  { %v10190_v36 = vsel %vm58_vm0, %v17096_v49, 0.0  ;;  %v10200_v16 = vmul.f32 %v17096_v49, %v17096_v49  ;;  %v10207_v51 = vsel %vm58_vm0, %v10199_v27, 0.0 }
0x4af7   :  { %10191 = vadd.xlane.f32.xlu1 %v10190_v36  ;;  %v10184_v43 = vsel %vm58_vm0, %v13284_v29, 0.0  ;;  %v10198_v14 = vmul.f32 %v13284_v29, %v13284_v29  ;;  %v10201_v57 = vsel %vm58_vm0, %v10197_v53, 0.0 }
0x4af8   :  { %v10210_v35 = vsel %vm58_vm0, %v10200_v16, 0.0 }
0x4af9   :  { %10182 = vadd.xlane.f32.xlu0 %v10181_v61  ;;  %v10204_v11 = vsel %vm58_vm0, %v10198_v14, 0.0 }
0x4afb   :  { %10185 = vadd.xlane.f32.xlu1 %v10184_v43 }
0x4afd   :  { %10202 = vadd.xlane.f32.xlu0 %v10201_v57 }
0x4aff   :  { %10205 = vadd.xlane.f32.xlu1 %v10204_v11 }
0x4b01   :  { %10208 = vadd.xlane.f32.xlu0 %v10207_v51 }
0x4b03   :  { %10211 = vadd.xlane.f32.xlu1 %v10210_v35 }
0x4b82   :  { %v10189_v10 = vpop.xlane.xlu0 %10188 }
0x4b83   :  { %v10195_v40 = vmul.f32 0.03125, %v10189_v10 }
0x4b84   :  { %v10192_v39 = vpop.xlane.xlu1 %10191 }
0x4b85   :  { %v10196_v0 = vmul.f32 0.03125, %v10192_v39  ;;  %v10219_v47 = vmul.f32 %v10195_v40, %v10195_v40  ;;  %v10227_v1 = vsub.f32 %v17092_v13, %v10195_v40  ;;  %v17145_v39 = vld [vmem:[%s17314_s1 + $0x28] sm:$0xff]  }
0x4b86   :  { %v10183_v52 = vpop.xlane.xlu0 %10182 }
0x4b87   :  { %v10193_v18 = vmul.f32 0.03125, %v10183_v52  ;;  %v10220_v2 = vmul.f32 %v10196_v0, %v10196_v0  ;;  %v10228_v3 = vsub.f32 %v17096_v49, %v10196_v0  ;;  %v14049_v52 = vld [vmem:[%s17314_s1 + $0xe0] sm:$0xff]  }
0x4b88   :  { %v10186_v5 = vpop.xlane.xlu1 %10185 }
0x4b89   :  { %v10194_v59 = vmul.f32 0.03125, %v10186_v5  ;;  %v10217_v44 = vmul.f32 %v10193_v18, %v10193_v18  ;;  %v10225_v21 = vsub.f32 %v13282_v46, %v10193_v18  ;;  %v14044_v46 = vld [vmem:[%s17315_s2 + $0x6] ss:$0 sm:$0xff]  ;;  %v17165_v18 = vld [vmem:[%s17314_s1 + $0x38] sm:$0xff]  }
0x4b8a   :  { %v10203_v63 = vpop.xlane.xlu0 %10202 }
0x4b8b   :  { %v10213_v45 = vmul.f32 0.03125, %v10203_v63  ;;  %v10218_v56 = vmul.f32 %v10194_v59, %v10194_v59  ;;  %v10226_v22 = vsub.f32 %v13284_v29, %v10194_v59 }
0x4b8c   :  { %v10206_v24 = vpop.xlane.xlu1 %10205 }
0x4b8d   :  { %v10221_v58 = vsub.f32 %v10213_v45, %v10217_v44  ;;  %v10214_v28 = vmul.f32 0.03125, %v10206_v24 }
0x4b8e   :  { %v10209_v19 = vpop.xlane.xlu0 %10208 }
0x4b8f   :  { %v10229_v32 = vadd.f32 1e-05, %v10221_v58  ;;  %v10222_v8 = vsub.f32 %v10214_v28, %v10218_v56  ;;  %v10215_v38 = vmul.f32 0.03125, %v10209_v19  ;;  %v14051_v56 = vld [vmem:[%s17314_s1 + $0xe8] sm:$0xff]  }
0x4b90   :  { %v10212_v33 = vpop.xlane.xlu1 %10211 }
0x4b91   :  { %13832 = vrsqrt.f32 %v10229_v32  ;;  %v10230_v23 = vadd.f32 1e-05, %v10222_v8  ;;  %v10223_v41 = vsub.f32 %v10215_v38, %v10219_v47  ;;  %v10216_v9 = vmul.f32 0.03125, %v10212_v33  ;;  %v14052_v32 = vld [vmem:[%s17314_s1 + $0xf0] sm:$0xff]   ;;  %v14053_v8 = vld [vmem:[%s17314_s1 + $0xf8] sm:$0xff]  }
0x4b93   :  { %13834 = vrsqrt.f32 %v10230_v23  ;;  %v10231_v42 = vadd.f32 1e-05, %v10223_v41  ;;  %v10224_v60 = vsub.f32 %v10216_v9, %v10220_v2 }
0x4b95   :  { %13836 = vrsqrt.f32 %v10231_v42  ;;  %v10232_v48 = vadd.f32 1e-05, %v10224_v60 }
0x4b97   :  { %13838 = vrsqrt.f32 %v10232_v48 }
0x4b9b   :  { %v13833_v37 = vpop.eup %13832 }
0x4b9c   :  { %v10237_v62 = vmul.f32 %v13833_v37, %v10225_v21 }
0x4b9d   :  { %v13835_v17 = vpop.eup %13834 }
0x4b9e   :  { %v10238_v25 = vmul.f32 %v13835_v17, %v10226_v22  ;;  %v10241_v55 = vmul.f32 %v14043_v54, %v10237_v62 }
0x4b9f   :  { %v13837_v4 = vpop.eup %13836 }
0x4ba0   :  { %v10242_v34 = vmul.f32 %v14043_v54, %v10238_v25  ;;  %v10245_v20 = vadd.f32 %v14044_v46, %v10241_v55  ;;  %v10239_v50 = vmul.f32 %v13837_v4, %v10227_v1 }
0x4ba1   :  { %v13839_v26 = vpop.eup %13838 }
0x4ba2   :  { %v10246_v29 = vadd.f32 %v14044_v46, %v10242_v34  ;;  %v10249_v36 = vmax.f32 %v10245_v20, 0.0  ;;  %v10240_v13 = vmul.f32 %v13839_v26, %v10228_v3  ;;  %v10243_v61 = vmul.f32 %v14043_v54, %v10239_v50 }
0x4ba4   :  { %v10250_v53 = vmax.f32 %v10246_v29, 0.0  ;;  %v10244_v43 = vmul.f32 %v14043_v54, %v10240_v13  ;;  %v10247_v14 = vadd.f32 %v14044_v46, %v10243_v61  ;;  %v17124_v57 = vadd.f32 %v10249_v36, %v16963_v7 }
0x4ba6   :  { %v17127_v49 = vadd.f32 %v10250_v53, %v16966_v31  ;;  %v10248_v27 = vadd.f32 %v14044_v46, %v10244_v43  ;;  %v10251_v11 = vmax.f32 %v10247_v14, 0.0  ;;  %v14045_v31 = vld [vmem:[%s17314_s1 + $0xd0] sm:$0xff]  }
0x4ba8   :  { %v10257_v16 = vpack.c.bf16 %v17127_v49, %v17124_v57  ;;  %v10252_v51 = vmax.f32 %v10248_v27, 0.0  ;;  %v17132_v35 = vadd.f32 %v10251_v11, %v16972_v30  ;;  %v17152_v30 = vld [vmem:[%s17314_s1 + $0x30] sm:$0xff]  }
0x4baa   :  { %13077 = vmatprep.subr.bf16.mxu1 %v10257_v16  ;;  %v17135_v10 = vadd.f32 %v10252_v51, %v16975_v6  ;;  %v14048_v6 = vld [vmem:[%s17314_s1 + $0xd8] sm:$0xff]  }
0x4bab   :  { %13078 = vmatpush3.bf16.msra.mxu1 %v10257_v16 }
0x4bac   :  { %v10258_v7 = vpack.c.bf16 %v17135_v10, %v17132_v35 }
0x4bae   :  { %13079 = vmatprep.subr.bf16.mxu1 %v10258_v7 }
0x4baf   :  { %13080 = vmatpush3.bf16.msra.mxu1 %v10258_v7 }
0x4bb0   :  { %13089 = vmatprep.subr.bf16.mxu1 %v14045_v31 }
0x4bb2   :  { %13082 = vmatmul.mubr.msk.bf16.vlgmr.msra.gmra.mrb[184].mxu1 %vm58_vm0, %v17145_v39 }
0x4bb3   :  { %13085 = vmatprep.mubr.msk.bf16.mxu1 %vm58_vm0, %v17152_v30  ;;  %13090 = vmatpush3.bf16.msra.mxu1 %v14045_v31 }
0x4bb4   :  { %13091 = vmatprep.subr.bf16.mxu1 %v14048_v6 }
0x4bb7   :  { %13092 = vmatpush3.bf16.msra.mxu1 %v14048_v6 }
0x4bb8   :  { %13097 = vmatprep.subr.bf16.mxu1 %v14049_v52 }
0x4bba   :  { %13086 = vmatmul.mubr.msk.bf16.gmra.mrb[188].mxu1 %vm58_vm0, %v17165_v18 }
0x4c85   :  { %v13083_v5 = vpop.f32.mrb[184].mxu1 }
0x4c86   :  { %v10293_v59 = vpop.f32.mrb[185].mxu1 }
0x4c87   :  { %v13084_v63 = vpop.f32.mrb[186].mxu1 }
0x4c88   :  { %v10325_v40 = vpack.c.bf16 %v13084_v63, %v13083_v5  ;;  %v10296_v44 = vpop.f32.mrb[187].mxu1 }
0x4c89   :  { %v10324_v45 = vpack.c.bf16 %v10296_v44, %v10293_v59 }
0x4c8b   :  { %13093 = vmatprep.mubr.msk.bf16.mxu1 %vm58_vm0, %v10324_v45 }
0x4c8c   :  { %13094 = vmatmul.mubr.msk.bf16.vlgmr.msra.gmra.mrb[192].mxu1 %vm58_vm0, %v10325_v40 }
0x4c8d   :  { %v13087_v0 = vpop.f32.mrb[188].mxu1  ;;  %13098 = vmatpush3.bf16.msra.mxu1 %v14049_v52 }
0x4c8e   :  { %v10309_v24 = vpop.f32.mrb[189].mxu1  ;;  %13099 = vmatprep.subr.bf16.mxu1 %v14051_v56 }
0x4c8f   :  { %v13088_v58 = vpop.f32.mrb[190].mxu1 }
0x4c90   :  { %v10327_v28 = vpack.c.bf16 %v13088_v58, %v13087_v0  ;;  %v10312_v19 = vpop.f32.mrb[191].mxu1 }
0x4c91   :  { %v10326_v47 = vpack.c.bf16 %v10312_v19, %v10309_v24  ;;  %13100 = vmatpush3.bf16.msra.mxu1 %v14051_v56 }
0x4c92   :  { %13105 = vmatprep.subr.bf16.mxu1 %v14052_v32 }
0x4c93   :  { %13101 = vmatprep.mubr.msk.bf16.mxu1 %vm58_vm0, %v10326_v47 }
0x4c98   :  { %13102 = vmatmul.mubr.msk.bf16.vlgmr.msra.gmra.mrb[192].mxu1 %vm58_vm0, %v10327_v28 }
0x4c99   :  { %13109 = vmatprep.mubr.msk.bf16.mxu1 %vm58_vm0, %v10257_v16  ;;  %13106 = vmatpush3.bf16.msra.mxu1 %v14052_v32 }
0x4c9a   :  { %13107 = vmatprep.subr.bf16.mxu1 %v14053_v8 }
0x4c9d   :  { %13108 = vmatpush3.bf16.msra.mxu1 %v14053_v8  ;;  %v14054_v8 = vld [vmem:[%s17315_s2 + $0x8] ss:$0 sm:$0xff] }
0x4ca4   :  { %13110 = vmatmul.mubr.msk.bf16.vlgmr.msra.gmra.mrb[192].mxu1 %vm58_vm0, %v10258_v7 }
0x4d77   :  { %v13111_v38 = vpop.f32.mrb[192].mxu1 }
0x4d78   :  { %v17185_v2 = vadd.f32 %v16868_v12, %v13111_v38  ;;  %v10486_v33 = vpop.f32.mrb[193].mxu1 }
0x4d79   :  { %v13112_v23 = vpop.f32.mrb[194].mxu1  ;;  %v13286_v41 = vadd.f32 %v16868_v12, %v10486_v33 }
0x4d7a   :  { %v17189_v9 = vadd.f32 %v16868_v12, %v13112_v23  ;;  %v10489_v42 = vpop.f32.mrb[195].mxu1  ;;  %v10511_v60 = vsel %vm58_vm0, %v17185_v2, 0.0  ;;  %v10523_v25 = vmul.f32 %v17185_v2, %v17185_v2 }
0x4d7b   :  { %10512 = vadd.xlane.f32.xlu0 %v10511_v60  ;;  %v13288_v48 = vadd.f32 %v16868_v12, %v10489_v42  ;;  %v10505_v37 = vsel %vm58_vm0, %v13286_v41, 0.0  ;;  %v10521_v22 = vmul.f32 %v13286_v41, %v13286_v41 }
0x4d7c   :  { %v10514_v21 = vsel %vm58_vm0, %v17189_v9, 0.0  ;;  %v10524_v54 = vmul.f32 %v17189_v9, %v17189_v9  ;;  %v10531_v55 = vsel %vm58_vm0, %v10523_v25, 0.0 }
0x4d7d   :  { %10515 = vadd.xlane.f32.xlu1 %v10514_v21  ;;  %v10508_v62 = vsel %vm58_vm0, %v13288_v48, 0.0  ;;  %v10522_v17 = vmul.f32 %v13288_v48, %v13288_v48  ;;  %v10525_v1 = vsel %vm58_vm0, %v10521_v22, 0.0 }
0x4d7e   :  { %v10534_v4 = vsel %vm58_vm0, %v10524_v54, 0.0 }
0x4d7f   :  { %10506 = vadd.xlane.f32.xlu0 %v10505_v37  ;;  %v10528_v12 = vsel %vm58_vm0, %v10522_v17, 0.0 }
0x4d81   :  { %10509 = vadd.xlane.f32.xlu1 %v10508_v62 }
0x4d83   :  { %10526 = vadd.xlane.f32.xlu0 %v10525_v1 }
0x4d85   :  { %10529 = vadd.xlane.f32.xlu1 %v10528_v12 }
0x4d87   :  { %10532 = vadd.xlane.f32.xlu0 %v10531_v55 }
0x4d89   :  { %10535 = vadd.xlane.f32.xlu1 %v10534_v4 }
0x4e08   :  { %v10513_v3 = vpop.xlane.xlu0 %10512 }
0x4e09   :  { %v10519_v36 = vmul.f32 0.03125, %v10513_v3  ;;  %v14056_v3 = vld [vmem:[%s17314_s1 + $0x100] sm:$0xff]  }
0x4e0a   :  { %v10516_v34 = vpop.xlane.xlu1 %10515 }
0x4e0b   :  { %v10520_v53 = vmul.f32 0.03125, %v10516_v34  ;;  %v10543_v51 = vmul.f32 %v10519_v36, %v10519_v36  ;;  %v10551_v47 = vsub.f32 %v17185_v2, %v10519_v36  ;;  %v14057_v34 = vld [vmem:[%s17314_s1 + $0x108] sm:$0xff]  }
0x4e0c   :  { %v10507_v46 = vpop.xlane.xlu0 %10506 }
0x4e0d   :  { %v10517_v20 = vmul.f32 0.03125, %v10507_v46  ;;  %v10544_v52 = vmul.f32 %v10520_v53, %v10520_v53  ;;  %v10552_v23 = vsub.f32 %v17189_v9, %v10520_v53  ;;  %v14058_v46 = vld [vmem:[%s17314_s1 + $0x110] sm:$0xff]  }
0x4e0e   :  { %v10510_v50 = vpop.xlane.xlu1 %10509 }
0x4e0f   :  { %v10518_v26 = vmul.f32 0.03125, %v10510_v50  ;;  %v10541_v13 = vmul.f32 %v10517_v20, %v10517_v20  ;;  %v10549_v24 = vsub.f32 %v13286_v41, %v10517_v20  ;;  %v14055_v41 = vld [vmem:[%s17315_s2 + $0x9] ss:$0 sm:$0xff] }
0x4e10   :  { %v10527_v29 = vpop.xlane.xlu0 %10526 }
0x4e11   :  { %v10537_v61 = vmul.f32 0.03125, %v10527_v29  ;;  %v10542_v14 = vmul.f32 %v10518_v26, %v10518_v26  ;;  %v10550_v58 = vsub.f32 %v13288_v48, %v10518_v26 }
0x4e12   :  { %v10530_v43 = vpop.xlane.xlu1 %10529 }
0x4e13   :  { %v10545_v27 = vsub.f32 %v10537_v61, %v10541_v13  ;;  %v10538_v11 = vmul.f32 0.03125, %v10530_v43  ;;  %v14059_v61 = vld [vmem:[%s17314_s1 + $0x118] sm:$0xff]  }
0x4e14   :  { %v10533_v16 = vpop.xlane.xlu0 %10532 }
0x4e15   :  { %v10553_v7 = vadd.f32 1e-05, %v10545_v27  ;;  %v10546_v31 = vsub.f32 %v10538_v11, %v10542_v14  ;;  %v10539_v6 = vmul.f32 0.03125, %v10533_v16  ;;  %v14060_v27 = vld [vmem:[%s17314_s1 + $0x120] sm:$0xff]   ;;  %v14061_v11 = vld [vmem:[%s17314_s1 + $0x128] sm:$0xff]  }
0x4e16   :  { %v10536_v5 = vpop.xlane.xlu1 %10535 }
0x4e17   :  { %13840 = vrsqrt.f32 %v10553_v7  ;;  %v10554_v59 = vadd.f32 1e-05, %v10546_v31  ;;  %v10547_v63 = vsub.f32 %v10539_v6, %v10543_v51  ;;  %v10540_v40 = vmul.f32 0.03125, %v10536_v5 }
0x4e19   :  { %13842 = vrsqrt.f32 %v10554_v59  ;;  %v10555_v44 = vadd.f32 1e-05, %v10547_v63  ;;  %v10548_v45 = vsub.f32 %v10540_v40, %v10544_v52 }
0x4e1b   :  { %13844 = vrsqrt.f32 %v10555_v44  ;;  %v10556_v0 = vadd.f32 1e-05, %v10548_v45 }
0x4e1d   :  { %13846 = vrsqrt.f32 %v10556_v0 }
0x4e21   :  { %v13841_v56 = vpop.eup %13840 }
0x4e22   :  { %v10561_v28 = vmul.f32 %v13841_v56, %v10549_v24 }
0x4e23   :  { %v13843_v19 = vpop.eup %13842 }
0x4e24   :  { %v10562_v32 = vmul.f32 %v13843_v19, %v10550_v58  ;;  %v10565_v38 = vmul.f32 %v14054_v8, %v10561_v28 }
0x4e25   :  { %v13845_v33 = vpop.eup %13844 }
0x4e26   :  { %v10566_v42 = vmul.f32 %v14054_v8, %v10562_v32  ;;  %v10569_v60 = vadd.f32 %v14055_v41, %v10565_v38  ;;  %v10563_v48 = vmul.f32 %v13845_v33, %v10551_v47  ;;  %v13598_v32 = vld [vmem:[%s17314_s1 + $0x130] sm:$0xff]  }
0x4e27   :  { %v13847_v21 = vpop.eup %13846  ;;  %13149 = vmatprep.subr.bf16.mxu1 %v13598_v32 }
0x4e28   :  { %v10570_v37 = vadd.f32 %v14055_v41, %v10566_v42  ;;  %v10564_v22 = vmul.f32 %v13847_v21, %v10552_v23  ;;  %v10567_v2 = vmul.f32 %v14054_v8, %v10563_v48  ;;  %v10573_v62 = vmax.f32 %v10569_v60, 0.0  ;;  %13150 = vmatpush3.bf16.msra.mxu1 %v13598_v32 }
0x4e2a   :  { %v10574_v17 = vmax.f32 %v10570_v37, 0.0  ;;  %v10568_v1 = vmul.f32 %v14054_v8, %v10564_v22  ;;  %v10571_v25 = vadd.f32 %v14055_v41, %v10567_v2  ;;  %v13599_v8 = vld [vmem:[%s17314_s1 + $0x138] sm:$0xff]  }
0x4e2b   :  { %13151 = vmatprep.subr.bf16.mxu1 %v13599_v8 }
0x4e2c   :  { %v10577_v12 = vpack.c.bf16 %v10574_v17, %v10573_v62  ;;  %v10572_v54 = vadd.f32 %v14055_v41, %v10568_v1  ;;  %v10575_v55 = vmax.f32 %v10571_v25, 0.0  ;;  %13152 = vmatpush3.bf16.msra.mxu1 %v13599_v8 }
0x4e2e   :  { %13113 = vmatprep.subr.bf16.mxu0 %v10577_v12  ;;  %v10576_v9 = vmax.f32 %v10572_v54, 0.0 }
0x4e2f   :  { %13114 = vmatpush3.bf16.msra.mxu0 %v10577_v12 }
0x4e30   :  { %v10578_v4 = vpack.c.bf16 %v10576_v9, %v10575_v55 }
0x4e32   :  { %13115 = vmatprep.subr.bf16.mxu0 %v10578_v4 }
0x4e33   :  { %13116 = vmatpush3.bf16.msra.mxu0 %v10578_v4 }
0x4e34   :  { %13125 = vmatprep.subr.bf16.mxu0 %v14056_v3 }
0x4e36   :  { %13118 = vmatmul.mubr.msk.bf16.vlgmr.msra.gmra.mrb[180].mxu0 %vm58_vm0, %v17145_v39 }
0x4e37   :  { %13121 = vmatprep.mubr.msk.bf16.mxu0 %vm58_vm0, %v17152_v30  ;;  %13126 = vmatpush3.bf16.msra.mxu0 %v14056_v3 }
0x4e38   :  { %13127 = vmatprep.subr.bf16.mxu0 %v14057_v34 }
0x4e3b   :  { %13128 = vmatpush3.bf16.msra.mxu0 %v14057_v34 }
0x4e3c   :  { %13133 = vmatprep.subr.bf16.mxu0 %v14058_v46 }
0x4e3e   :  { %13122 = vmatmul.mubr.msk.bf16.gmra.mrb[184].mxu0 %vm58_vm0, %v17165_v18 }
0x4f09   :  { %v13119_v20 = vpop.f32.mrb[180].mxu0 }
0x4f0a   :  { %v10613_v39 = vpop.f32.mrb[181].mxu0 }
0x4f0b   :  { %v13120_v50 = vpop.f32.mrb[182].mxu0 }
0x4f0c   :  { %v10645_v26 = vpack.c.bf16 %v13120_v50, %v13119_v20  ;;  %v10616_v30 = vpop.f32.mrb[183].mxu0 }
0x4f0d   :  { %v10644_v29 = vpack.c.bf16 %v10616_v30, %v10613_v39 }
0x4f0f   :  { %13129 = vmatprep.mubr.msk.bf16.mxu0 %vm58_vm0, %v10644_v29 }
0x4f10   :  { %13130 = vmatmul.mubr.msk.bf16.vlgmr.msra.gmra.mrb[188].mxu0 %vm58_vm0, %v10645_v26 }
0x4f11   :  { %v13123_v36 = vpop.f32.mrb[184].mxu0  ;;  %13134 = vmatpush3.bf16.msra.mxu0 %v14058_v46 }
0x4f12   :  { %v10629_v13 = vpop.f32.mrb[185].mxu0  ;;  %13135 = vmatprep.subr.bf16.mxu0 %v14059_v61 }
0x4f13   :  { %v13124_v53 = vpop.f32.mrb[186].mxu0 }
0x4f14   :  { %v10647_v18 = vpack.c.bf16 %v13124_v53, %v13123_v36  ;;  %v10632_v43 = vpop.f32.mrb[187].mxu0 }
0x4f15   :  { %v10646_v14 = vpack.c.bf16 %v10632_v43, %v10629_v13  ;;  %13136 = vmatpush3.bf16.msra.mxu0 %v14059_v61 }
0x4f16   :  { %13141 = vmatprep.subr.bf16.mxu0 %v14060_v27 }
0x4f17   :  { %13137 = vmatprep.mubr.msk.bf16.mxu0 %vm58_vm0, %v10646_v14  ;;  %v14062_v14 = vld [vmem:[%s17315_s2 + $0xb] ss:$0 sm:$0xff] }
0x4f1c   :  { %13138 = vmatmul.mubr.msk.bf16.vlgmr.msra.gmra.mrb[188].mxu0 %vm58_vm0, %v10647_v18 }
0x4f1d   :  { %13145 = vmatprep.mubr.msk.bf16.mxu0 %vm58_vm0, %v10577_v12  ;;  %13142 = vmatpush3.bf16.msra.mxu0 %v14060_v27 }
0x4f1e   :  { %13143 = vmatprep.subr.bf16.mxu0 %v14061_v11 }
0x4f21   :  { %13144 = vmatpush3.bf16.msra.mxu0 %v14061_v11 }
0x4f28   :  { %13146 = vmatmul.mubr.msk.bf16.vlgmr.msra.gmra.mrb[188].mxu0 %vm58_vm0, %v10578_v4 }
0x4ffb   :  { %v13147_v16 = vpop.f32.mrb[188].mxu0 }
0x4ffc   :  { %v17245_v51 = vadd.f32 %v16933_v15, %v13147_v16  ;;  %v10806_v7 = vpop.f32.mrb[189].mxu0 }
0x4ffd   :  { %v13148_v31 = vpop.f32.mrb[190].mxu0  ;;  %v17248_v6 = vadd.f32 %v16933_v15, %v10806_v7 }
0x4ffe   :  { %v17251_v52 = vadd.f32 %v16933_v15, %v13148_v31  ;;  %v10809_v5 = vpop.f32.mrb[191].mxu0  ;;  %v10831_v59 = vsel %vm58_vm0, %v17245_v51, 0.0  ;;  %v10843_v56 = vmul.f32 %v17245_v51, %v17245_v51 }
0x4fff   :  { %10832 = vadd.xlane.f32.xlu0 %v10831_v59  ;;  %v17256_v63 = vadd.f32 %v16933_v15, %v10809_v5  ;;  %v10825_v44 = vsel %vm58_vm0, %v17248_v6, 0.0  ;;  %v10841_v45 = vmul.f32 %v17248_v6, %v17248_v6 }
0x5000   :  { %v10834_v40 = vsel %vm58_vm0, %v17251_v52, 0.0  ;;  %v10844_v28 = vmul.f32 %v17251_v52, %v17251_v52  ;;  %v10851_v19 = vsel %vm58_vm0, %v10843_v56, 0.0 }
0x5001   :  { %10835 = vadd.xlane.f32.xlu1 %v10834_v40  ;;  %v10828_v0 = vsel %vm58_vm0, %v17256_v63, 0.0  ;;  %v10842_v24 = vmul.f32 %v17256_v63, %v17256_v63  ;;  %v10845_v15 = vsel %vm58_vm0, %v10841_v45, 0.0 }
0x5002   :  { %v10854_v47 = vsel %vm58_vm0, %v10844_v28, 0.0 }
0x5003   :  { %10826 = vadd.xlane.f32.xlu0 %v10825_v44  ;;  %v10848_v58 = vsel %vm58_vm0, %v10842_v24, 0.0 }
0x5005   :  { %10829 = vadd.xlane.f32.xlu1 %v10828_v0 }
0x5007   :  { %10846 = vadd.xlane.f32.xlu0 %v10845_v15 }
0x5009   :  { %10849 = vadd.xlane.f32.xlu1 %v10848_v58 }
0x500b   :  { %10852 = vadd.xlane.f32.xlu0 %v10851_v19 }
0x500d   :  { %10855 = vadd.xlane.f32.xlu1 %v10854_v47 }
0x508c   :  { %v10833_v38 = vpop.xlane.xlu0 %10832 }
0x508d   :  { %v10839_v21 = vmul.f32 0.03125, %v10833_v38  ;;  %v11376_v38 = vld [vmem:[%s17315_s2 + $0xd] ss:$0 sm:$0xff] }
0x508e   :  { %v10836_v33 = vpop.xlane.xlu1 %10835 }
0x508f   :  { %v10840_v2 = vmul.f32 0.03125, %v10836_v33  ;;  %v10863_v54 = vmul.f32 %v10839_v21, %v10839_v21  ;;  %v10871_v18 = vsub.f32 %v17245_v51, %v10839_v21 }
0x5090   :  { %v10827_v23 = vpop.xlane.xlu0 %10826 }
0x5091   :  { %v10837_v42 = vmul.f32 0.03125, %v10827_v23  ;;  %v10864_v3 = vmul.f32 %v10840_v2, %v10840_v2  ;;  %v10872_v16 = vsub.f32 %v17251_v52, %v10840_v2 }
0x5092   :  { %v10830_v41 = vpop.xlane.xlu1 %10829 }
0x5093   :  { %v10838_v60 = vmul.f32 0.03125, %v10830_v41  ;;  %v10861_v37 = vmul.f32 %v10837_v42, %v10837_v42  ;;  %v10869_v29 = vsub.f32 %v17248_v6, %v10837_v42  ;;  %v14063_v6 = vld [vmem:[%s17315_s2 + $0xc] ss:$0 sm:$0xff] }
0x5094   :  { %v10847_v48 = vpop.xlane.xlu0 %10846 }
0x5095   :  { %v10857_v22 = vmul.f32 0.03125, %v10847_v48  ;;  %v10862_v17 = vmul.f32 %v10838_v60, %v10838_v60  ;;  %v10870_v13 = vsub.f32 %v17256_v63, %v10838_v60 }
0x5096   :  { %v10850_v62 = vpop.xlane.xlu1 %10849 }
0x5097   :  { %v10865_v1 = vsub.f32 %v10857_v22, %v10861_v37  ;;  %v10858_v25 = vmul.f32 0.03125, %v10850_v62 }
0x5098   :  { %v10853_v12 = vpop.xlane.xlu0 %10852 }
0x5099   :  { %v10873_v55 = vadd.f32 1e-05, %v10865_v1  ;;  %v10866_v9 = vsub.f32 %v10858_v25, %v10862_v17  ;;  %v10859_v4 = vmul.f32 0.03125, %v10853_v12 }
0x509a   :  { %v10856_v34 = vpop.xlane.xlu1 %10855 }
0x509b   :  { %13848 = vrsqrt.f32 %v10873_v55  ;;  %v10874_v46 = vadd.f32 1e-05, %v10866_v9  ;;  %v10867_v20 = vsub.f32 %v10859_v4, %v10863_v54  ;;  %v10860_v39 = vmul.f32 0.03125, %v10856_v34 }
0x509d   :  { %13850 = vrsqrt.f32 %v10874_v46  ;;  %v10875_v50 = vadd.f32 1e-05, %v10867_v20  ;;  %v10868_v26 = vsub.f32 %v10860_v39, %v10864_v3 }
0x509f   :  { %13852 = vrsqrt.f32 %v10875_v50  ;;  %v10876_v30 = vadd.f32 1e-05, %v10868_v26 }
0x50a1   :  { %13854 = vrsqrt.f32 %v10876_v30 }
0x50a5   :  { %v13849_v36 = vpop.eup %13848 }
0x50a6   :  { %v10881_v61 = vmul.f32 %v13849_v36, %v10869_v29 }
0x50a7   :  { %v13851_v53 = vpop.eup %13850 }
0x50a8   :  { %v10882_v43 = vmul.f32 %v13851_v53, %v10870_v13  ;;  %v10885_v27 = vmul.f32 %v14062_v14, %v10881_v61 }
0x50a9   :  { %v13853_v11 = vpop.eup %13852 }
0x50aa   :  { %v10883_v7 = vmul.f32 %v13853_v11, %v10871_v18  ;;  %v10886_v31 = vmul.f32 %v14062_v14, %v10882_v43  ;;  %v10889_v5 = vadd.f32 %v14063_v6, %v10885_v27 }
0x50ab   :  { %v13855_v59 = vpop.eup %13854 }
0x50ac   :  { %v10887_v63 = vmul.f32 %v14062_v14, %v10883_v7  ;;  %v10884_v40 = vmul.f32 %v13855_v59, %v10872_v16  ;;  %v10890_v51 = vadd.f32 %v14063_v6, %v10886_v31  ;;  %v10893_v44 = vmax.f32 %v10889_v5, 0.0 }
0x50ae   :  { %v10888_v45 = vmul.f32 %v14062_v14, %v10884_v40  ;;  %v10894_v0 = vmax.f32 %v10890_v51, 0.0  ;;  %v10891_v24 = vadd.f32 %v14063_v6, %v10887_v63  ;;  %v10897_v15 = vadd.f32 %v10893_v44, %v17124_v57 }
0x50b0   :  { %v10898_v56 = vadd.f32 %v10894_v0, %v17127_v49  ;;  %v10892_v52 = vadd.f32 %v14063_v6, %v10888_v45  ;;  %v10895_v58 = vmax.f32 %v10891_v24, 0.0 }
0x50b2   :  { %v10905_v28 = vpack.c.bf16 %v10898_v56, %v10897_v15  ;;  %v10896_v19 = vmax.f32 %v10892_v52, 0.0  ;;  %v10899_v47 = vadd.f32 %v10895_v58, %v17132_v35 }
0x50b4   :  { %13153 = vmatprep.mubr.msk.bf16.mxu1 %vm58_vm0, %v10905_v28  ;;  %v10900_v32 = vadd.f32 %v10896_v19, %v17135_v10 }
0x50b6   :  { %v10906_v8 = vpack.c.bf16 %v10900_v32, %v10899_v47 }
0x50b8   :  { %13154 = vmatmul.mubr.msk.bf16.vlgmr.msra.gmra.mrb[196].mxu1 %vm58_vm0, %v10906_v8 }
0x518b   :  { %v13155_v57 = vpop.f32.mrb[196].mxu1 }
0x518c   :  { %v10973_v49 = vadd.f32 %v13155_v57, %v11376_v38  ;;  %v10964_v33 = vpop.f32.mrb[197].mxu1 }
0x518d   :  { %v10965_v23 = vadd.f32 %v11376_v38, %v10964_v33  ;;  %v13156_v42 = vpop.f32.mrb[198].mxu1 }
0x518e   :  { %10981 = vst [vmem:[#allocation2 + $0x10] sm:$0xff] %v10973_v49  ;;  %v10976_v41 = vadd.f32 %v13156_v42, %v11376_v38  ;;  %v10967_v60 = vpop.f32.mrb[199].mxu1 }
0x518f   :  { %10979 = vst [vmem:[#allocation2] sm:$0xff] %v10965_v23  ;;  %v10968_v35 = vadd.f32 %v11376_v38, %v10967_v60 }
0x5190   :  { %10982 = vst [vmem:[#allocation2 + $0x18] sm:$0xff] %v10976_v41 }
0x5191   :  { %10980 = vst [vmem:[#allocation2 + $0x8] sm:$0xff] %v10968_v35 }
0x5192   :  { %14075 = shalt.err (!%p14072_p4)
}
0x5193   :  { %s14076_s15 = scalar_lea.hbm %s17316_s3, 512 }
0x5194   :  { %p14077_p5 = scmp.ne.s32.totalorder %s17316_s3, %s14076_s15  ;;  %p14080_p6 = scmp.lt.u32.totalorder %s14076_s15, %s17316_s3 }
0x5196   :  { %p14082_p7 = pnand %p14080_p6, %p14077_p5 }
0x5198   :  { %14085 = shalt.err (!%p14082_p7)
}
0x5199   :  { %s14089_s20 = smov 128   ;;  %s14090_s21 = smov 8  }
0x519a   :  { %10994 = dma.vmem_to_hbm [thread:$0]  %s10989_s12, 512, %s17316_s3, [#allocation3], %s14089_s20, %s14089_s20, %s14090_s21  }
0x519b   :  { %14086 = dma.done.wait [#allocation3], 512  }
0x519c   :  { %14087 = vsyncadd [#allocation3], 4294966784 }
0x519d   :  { %10998 = vsyncpa [#allocation3], 1 }

</bundles_post_ra>
